<compile_context>
chip_gen: v7x
topology: tpu7x:2x2x1
jax: 0.10.0
libtpu: 0.0.40
codegen_flags: <defaults>
</compile_context>

<pallas_src>
import functools

import numpy as np
import jax
import jax.numpy as jnp
from jax import lax
from jax.experimental import pallas as pl
from jax.experimental.pallas import tpu as pltpu

KW = 4          # kernel_size
PADW = 1        # padding
BN_EPS = 1e-5
LRELU_SLOPE = 0.2


def _out_hw(h, w, stride):
    return (h + 2 * PADW - KW) // stride + 1, (w + 2 * PADW - KW) // stride + 1


def _round_up(x, m):
    return (x + m - 1) // m * m


def _leaky(y):
    return jnp.where(y >= 0, y, LRELU_SLOPE * y)


def _batchnorm(y, gamma, beta, valid_rows=None):
    # Training-mode BatchNorm2d: biased batch statistics over all (N,H,W)
    # positions, which are exactly the (valid) rows of the pixel-major matrix.
    stats = y if valid_rows is None else y[:valid_rows, :]
    mean = jnp.mean(stats, axis=0, keepdims=True)
    var = jnp.mean((stats - mean) ** 2, axis=0, keepdims=True)   # two-pass, biased
    return (y - mean) * lax.rsqrt(var + BN_EPS) * gamma + beta


# ----------------------------------------------------------------------------
# Fused kernel: all 5 conv layers, VMEM-resident activations.
# ----------------------------------------------------------------------------
def _fused_disc_kernel(p0s_ref, m1_ref, w0_ref, w1s_ref,
                       gm2_ref, w2s_ref, gm3_ref, w3s_ref,
                       gm4_ref, w4r_ref, aux_ref, o_ref, *,
                       C0, C1, C2, C3, M1, M2B, M2V, M3B, M3V, M4B):
    f32 = jnp.float32
    bf16 = jnp.bfloat16
    T = KW * KW

    # Coalesced per-channel parameters (one small DMA instead of eight).
    b0 = aux_ref[0:1, 0:C0]
    gam1, bet1 = aux_ref[1:2, 0:C1], aux_ref[2:3, 0:C1]
    gam2, bet2 = aux_ref[3:4, 0:C2], aux_ref[4:5, 0:C2]
    gam3, bet3 = aux_ref[5:6, 0:C3], aux_ref[6:7, 0:C3]
    b4 = aux_ref[7:8, 0:1]

    # ---- Layer 0: conv(s=2) + bias + LeakyReLU, evaluated directly on the
    # pre-gathered layer-1 tap patches (16 stacked copies of the rows layer 1
    # needs), so layer 1 never has to do a strided gather in the kernel.
    y0 = jnp.dot(p0s_ref[...], w0_ref[...], preferred_element_type=f32)
    y0 = _leaky(y0 + b0) * m1_ref[...]                 # (T*M1, C0); pad rows -> 0

    # ---- Layer 1: conv(s=2) as 16 accumulated taps + BN + LeakyReLU.
    a1 = None
    for t in range(T):
        lhs = y0[t * M1:(t + 1) * M1, :].astype(bf16)
        rhs = w1s_ref[t * C0:(t + 1) * C0, :]
        d = jnp.dot(lhs, rhs, preferred_element_type=f32)
        a1 = d if a1 is None else a1 + d               # (M1, C1)
    y1 = _leaky(_batchnorm(a1, gam1, bet1)).astype(bf16)

    # ---- Layer 2: tap gather via a constant 0/1 matrix on the MXU, 16 taps.
    t2 = jnp.dot(gm2_ref[...], y1, preferred_element_type=f32)   # (T*M2B, C1)
    a2 = None
    for t in range(T):
        lhs = t2[t * M2B:(t + 1) * M2B, :].astype(bf16)
        rhs = w2s_ref[t * C1:(t + 1) * C1, :]
        d = jnp.dot(lhs, rhs, preferred_element_type=f32)
        a2 = d if a2 is None else a2 + d               # (M2B, C2)
    y2 = _leaky(_batchnorm(a2, gam2, bet2, valid_rows=M2V)).astype(bf16)

    # ---- Layer 3 (s=1): same scheme; per-tap blocks padded to M3B rows.
    t3 = jnp.dot(gm3_ref[...], y2, preferred_element_type=f32)   # (T*M3B, C2)
    a3 = None
    for t in range(T):
        lhs = t3[t * M3B:(t + 1) * M3B, :].astype(bf16)
        rhs = w3s_ref[t * C2:(t + 1) * C2, :]
        d = jnp.dot(lhs, rhs, preferred_element_type=f32)
        a3 = d if a3 is None else a3 + d               # (M3B, C3); pad rows stay 0
    # BN statistics over the M3V valid rows only; the padded rows are never
    # read downstream (their columns in gm4 are all-zero).
    y3 = _leaky(_batchnorm(a3, gam3, bet3, valid_rows=M3V)).astype(bf16)

    # ---- Layer 4 (Cout=1): gather on the MXU, then a VPU multiply + lane
    # reduce instead of an N=1 matmul that would waste the systolic array.
    t4 = jnp.dot(gm4_ref[...], y3, preferred_element_type=f32)   # (T*M4B, C3)
    prod = t4 * w4r_ref[...]
    acc = None
    for t in range(T):
        blk = prod[t * M4B:(t + 1) * M4B, :]
        acc = blk if acc is None else acc + blk        # (M4B, C3)
    o_ref[...] = jnp.sum(acc, axis=1, keepdims=True) + b4


# ----------------------------------------------------------------------------
# Build-time helpers (plain numpy / JAX glue; all static).
# ----------------------------------------------------------------------------
def _im2col(x_nhwc, stride):
    x = jnp.pad(x_nhwc, ((0, 0), (PADW, PADW), (PADW, PADW), (0, 0)))
    N, H, W, C = x.shape
    Ho = (H - KW) // stride + 1
    Wo = (W - KW) // stride + 1
    cols = []
    for i in range(KW):
        for j in range(KW):
            cols.append(x[:, i:i + stride * (Ho - 1) + 1:stride,
                           j:j + stride * (Wo - 1) + 1:stride, :])
    p = jnp.stack(cols, axis=3)                        # (N, Ho, Wo, 16, C)
    return p.reshape(N * Ho * Wo, KW * KW * C)


def _tap_sources(N, H, W, stride):
    """Per tap t=(i*4+j) and output pixel m (row-major): source pixel index
    into the (N*H*W)-row input matrix, plus validity (0 for zero padding)."""
    Ho, Wo = _out_hw(H, W, stride)
    M = N * Ho * Wo
    idx = np.zeros((KW * KW, M), np.int64)
    valid = np.zeros((KW * KW, M), np.float32)
    for i in range(KW):
        for j in range(KW):
            t = i * KW + j
            for n in range(N):
                for ho in range(Ho):
                    for wo in range(Wo):
                        m = (n * Ho + ho) * Wo + wo
                        r = i + stride * ho - PADW
                        c = j + stride * wo - PADW
                        if 0 <= r < H and 0 <= c < W:
                            idx[t, m] = (n * H + r) * W + c
                            valid[t, m] = 1.0
    return idx, valid


def _gather_matrix(N, H, W, stride, src_rows, block_rows):
    """0/1 matrix mapping a (src_rows, C) activation to the vertically stacked
    per-tap gathered rows (16*block_rows, C); invalid / pad rows stay zero."""
    idx, valid = _tap_sources(N, H, W, stride)
    m_out = idx.shape[1]
    g = np.zeros((KW * KW * block_rows, src_rows), np.float32)
    for t in range(KW * KW):
        for m in range(m_out):
            if valid[t, m] > 0:
                g[t * block_rows + m, idx[t, m]] = 1.0
    return g


def _stack_taps(w_oihw):
    # (Cout, Cin, kh, kw) -> (16*Cin, Cout); row block t = i*4+j holds W[i,j].
    return jnp.transpose(w_oihw, (2, 3, 1, 0)).reshape(-1, w_oihw.shape[0])


def build_params(key, input_nc, ndf=8, n_layers=3):
    """Deterministic synthetic parameters mirroring NLayerDiscriminator.__init__
    with norm_layer=BatchNorm2d (=> use_bias=False on the normalized convs)."""
    cfgs = [(input_nc, ndf, 2, True, False, True)]
    nf_mult = 1
    for n in range(1, n_layers):
        nf_prev, nf_mult = nf_mult, min(2 ** n, 8)
        cfgs.append((ndf * nf_prev, ndf * nf_mult, 2, False, True, True))
    nf_prev, nf_mult = nf_mult, min(2 ** n_layers, 8)
    cfgs.append((ndf * nf_prev, ndf * nf_mult, 1, False, True, True))
    cfgs.append((ndf * nf_mult, 1, 1, True, False, False))

    params = []
    for (cin, cout, stride, use_bias, use_bn, use_act) in cfgs:
        key, kw_, kb_, kg_, kbt_ = jax.random.split(key, 5)
        params.append(dict(
            w=0.02 * jax.random.normal(kw_, (cout, cin, KW, KW), jnp.float32),
            b=0.02 * jax.random.normal(kb_, (cout,), jnp.float32),
            gamma=1.0 + 0.1 * jax.random.normal(kg_, (cout,), jnp.float32),
            beta=0.1 * jax.random.normal(kbt_, (cout,), jnp.float32),
            stride=stride, use_bias=use_bias, use_bn=use_bn, use_act=use_act,
        ))
    return params


def make_forward(params, batch, spatial):
    """Builds forward(x_nchw) calling the single fused Pallas kernel."""
    # TODO(synk): the fused kernel body is specialized to the default
    # n_layers=3 topology (5 convs); other depths need regenerating the body.
    assert len(params) == 5, "fused kernel is specialized to n_layers=3"
    N = batch
    C = [int(p["w"].shape[0]) for p in params]          # [ndf, 2ndf, 4ndf, 8ndf, 1]
    strides = [p["stride"] for p in params]

    hw = [(spatial, spatial)]
    for s in strides:
        hw.append(_out_hw(hw[-1][0], hw[-1][1], s))
    assert min(hw[-1]) >= 1, "input spatial too small for this architecture"

    # Layer-1 tap gather is applied (outside the kernel) to the layer-0 patches.
    idx1, val1 = _tap_sources(N, hw[1][0], hw[1][1], strides[1])
    M1 = idx1.shape[1]
    assert M1 % 8 == 0
    M2V = N * hw[3][0] * hw[3][1]; M2B = _round_up(M2V, 8)
    M3V = N * hw[4][0] * hw[4][1]; M3B = _round_up(M3V, 8)
    M4V = N * hw[5][0] * hw[5][1]; M4B = _round_up(M4V, 8)

    gm2 = jnp.asarray(_gather_matrix(N, *hw[2], strides[2], M1, M2B), jnp.bfloat16)
    gm3 = jnp.asarray(_gather_matrix(N, *hw[3], strides[3], M2B, M3B), jnp.bfloat16)
    gm4 = jnp.asarray(_gather_matrix(N, *hw[4], strides[4], M3B, M4B), jnp.bfloat16)

    # GEMM weights in bf16 (MXU inputs); accumulation stays f32 in the kernel.
    w0 = _stack_taps(params[0]["w"]).astype(jnp.bfloat16)
    w1s = _stack_taps(params[1]["w"]).astype(jnp.bfloat16)
    w2s = _stack_taps(params[2]["w"]).astype(jnp.bfloat16)
    w3s = _stack_taps(params[3]["w"]).astype(jnp.bfloat16)
    # Final Cout=1 conv weights, one row per tap replicated M4B times (VPU path).
    w4 = jnp.transpose(params[4]["w"], (2, 3, 1, 0)).reshape(KW * KW, C[3])
    w4rep = jnp.repeat(w4, M4B, axis=0).astype(jnp.float32)       # (16*M4B, C3)

    # Coalesce all tiny per-channel vectors into a single (8, max_C) operand.
    maxc = max(C)
    aux_np = np.zeros((8, maxc), np.float32)
    aux_np[0, :C[0]] = np.asarray(params[0]["b"])
    aux_np[1, :C[1]] = np.asarray(params[1]["gamma"])
    aux_np[2, :C[1]] = np.asarray(params[1]["beta"])
    aux_np[3, :C[2]] = np.asarray(params[2]["gamma"])
    aux_np[4, :C[2]] = np.asarray(params[2]["beta"])
    aux_np[5, :C[3]] = np.asarray(params[3]["gamma"])
    aux_np[6, :C[3]] = np.asarray(params[3]["beta"])
    aux_np[7, :1] = np.asarray(params[4]["b"])
    aux = jnp.asarray(aux_np)

    idx1_flat = jnp.asarray(idx1.reshape(-1), jnp.int32)
    mask1 = jnp.asarray(val1.reshape(-1, 1), jnp.float32)         # (16*M1, 1)

    kernel = functools.partial(
        _fused_disc_kernel,
        C0=C[0], C1=C[1], C2=C[2], C3=C[3],
        M1=M1, M2B=M2B, M2V=M2V, M3B=M3B, M3V=M3V, M4B=M4B)

    vmem = functools.partial(pl.BlockSpec, memory_space=pltpu.MemorySpace.VMEM)
    fused = pl.pallas_call(
        kernel,
        out_shape=jax.ShapeDtypeStruct((M4B, 1), jnp.float32),
        in_specs=[vmem() for _ in range(11)],
        out_specs=vmem(),
    )

    def forward(x_nchw):
        x = jnp.transpose(x_nchw, (0, 2, 3, 1)).astype(jnp.float32)   # -> NHWC
        p0 = _im2col(x, strides[0])                                   # (N*H1*W1, 16*Cin0)
        p0s = jnp.take(p0, idx1_flat, axis=0).astype(jnp.bfloat16)    # (16*M1, 16*Cin0)
        out = fused(p0s, mask1, w0, w1s, gm2, w2s, gm3, w3s, gm4, w4rep, aux)
        ho, wo = hw[5]
        y = out[:N * ho * wo].reshape(N, ho, wo, 1)
        return jnp.transpose(y, (0, 3, 1, 2))                         # -> NCHW
        # TODO(synk): training-mode BatchNorm also updates running_mean/var
        # (stateful side effect); it does not affect the forward output.

    return forward


# ----------------------------------------------------------------------------
# Plain-JAX reference (XLA convs) for a numerical sanity check.
# ----------------------------------------------------------------------------
def reference_forward(x_nchw, params):
    y = x_nchw.astype(jnp.float32)
    for p in params:
        w = p["w"]
        dn = lax.conv_dimension_numbers(y.shape, w.shape, ("NCHW", "OIHW", "NCHW"))
        y = lax.conv_general_dilated(
            y, w, (p["stride"], p["stride"]),
            [(PADW, PADW), (PADW, PADW)], dimension_numbers=dn)
        if p["use_bias"]:
            y = y + p["b"][None, :, None, None]
        if p["use_bn"]:
            mean = jnp.mean(y, axis=(0, 2, 3), keepdims=True)
            var = jnp.mean((y - mean) ** 2, axis=(0, 2, 3), keepdims=True)
            y = (y - mean) * lax.rsqrt(var + BN_EPS)
            y = y * p["gamma"][None, :, None, None] + p["beta"][None, :, None, None]
        if p["use_act"]:
            y = jnp.where(y >= 0, y, LRELU_SLOPE * y)
    return y


if __name__ == "__main__":
    key = jax.random.PRNGKey(0)
    k_x, k_p = jax.random.split(key)

    batch, input_nc, spatial = 2, 4, 32
    x = jax.random.normal(k_x, (batch, input_nc, spatial, spatial), jnp.float32)
    params = build_params(k_p, input_nc=input_nc, ndf=8, n_layers=3)

    fwd = jax.jit(make_forward(params, batch, spatial))
    out = fwd(x)
    jax.block_until_ready(out)

    # PatchGAN logits: (N, 1, 2, 2) for a 32x32 input with n_layers=3.
    assert out.shape == (batch, 1, 2, 2), out.shape
    assert bool(jnp.all(jnp.isfinite(out)))

    # Sanity check against a plain-JAX reference (bf16 GEMMs => loose tolerance).
    ref = reference_forward(x, params)
    err = float(jnp.max(jnp.abs(out - ref)))
    assert err < 0.15, f"mismatch vs reference: max abs err = {err}"
    print("KERNEL_OK")
</pallas_src>

<mosaic_0001>
module attributes {stable_mosaic.version = 11 : i64} {
  func.func @_fused_disc_kernel(%arg0: memref<2048x64xbf16, #tpu.memory_space<vmem>>, %arg1: memref<2048x1xf32, #tpu.memory_space<vmem>>, %arg2: memref<64x8xbf16, #tpu.memory_space<vmem>>, %arg3: memref<128x16xbf16, #tpu.memory_space<vmem>>, %arg4: memref<512x128xbf16, #tpu.memory_space<vmem>>, %arg5: memref<256x32xbf16, #tpu.memory_space<vmem>>, %arg6: memref<384x32xbf16, #tpu.memory_space<vmem>>, %arg7: memref<512x64xbf16, #tpu.memory_space<vmem>>, %arg8: memref<128x24xbf16, #tpu.memory_space<vmem>>, %arg9: memref<128x64xf32, #tpu.memory_space<vmem>>, %arg10: memref<8x64xf32, #tpu.memory_space<vmem>>, %arg11: memref<8x1xf32, #tpu.memory_space<vmem>>) attributes {dimension_semantics = [], scalar_prefetch = 0 : i64, scratch_operands = 0 : i64, tpu.core_type = #tpu.core_type<tc>} {
    %c0 = arith.constant 0 : index
    %c0_0 = arith.constant 0 : index
    %0 = vector.load %arg10[%c0, %c0_0] : memref<8x64xf32, #tpu.memory_space<vmem>>, vector<1x8xf32>
    %c1 = arith.constant 1 : index
    %c0_1 = arith.constant 0 : index
    %1 = vector.load %arg10[%c1, %c0_1] : memref<8x64xf32, #tpu.memory_space<vmem>>, vector<1x16xf32>
    %c2 = arith.constant 2 : index
    %c0_2 = arith.constant 0 : index
    %2 = vector.load %arg10[%c2, %c0_2] : memref<8x64xf32, #tpu.memory_space<vmem>>, vector<1x16xf32>
    %c3 = arith.constant 3 : index
    %c0_3 = arith.constant 0 : index
    %3 = vector.load %arg10[%c3, %c0_3] : memref<8x64xf32, #tpu.memory_space<vmem>>, vector<1x32xf32>
    %c4 = arith.constant 4 : index
    %c0_4 = arith.constant 0 : index
    %4 = vector.load %arg10[%c4, %c0_4] : memref<8x64xf32, #tpu.memory_space<vmem>>, vector<1x32xf32>
    %c5 = arith.constant 5 : index
    %c0_5 = arith.constant 0 : index
    %5 = vector.load %arg10[%c5, %c0_5] : memref<8x64xf32, #tpu.memory_space<vmem>>, vector<1x64xf32>
    %c6 = arith.constant 6 : index
    %c0_6 = arith.constant 0 : index
    %6 = vector.load %arg10[%c6, %c0_6] : memref<8x64xf32, #tpu.memory_space<vmem>>, vector<1x64xf32>
    %c7 = arith.constant 7 : index
    %c0_7 = arith.constant 0 : index
    %7 = vector.load %arg10[%c7, %c0_7] : memref<8x64xf32, #tpu.memory_space<vmem>>, vector<1x1xf32>
    %c0_8 = arith.constant 0 : index
    %c0_9 = arith.constant 0 : index
    %8 = vector.load %arg0[%c0_8, %c0_9] : memref<2048x64xbf16, #tpu.memory_space<vmem>>, vector<2048x64xbf16>
    %c0_10 = arith.constant 0 : index
    %c0_11 = arith.constant 0 : index
    %9 = vector.load %arg2[%c0_10, %c0_11] : memref<64x8xbf16, #tpu.memory_space<vmem>>, vector<64x8xbf16>
    %cst = arith.constant dense<0.000000e+00> : vector<2048x8xf32>
    %10 = tpu.matmul %8, %9, %cst {dimension_numbers = #tpu.dot_dimension_numbers<[1], [0], [0], [1], [0, 0, 1, 1], [], []>} : vector<2048x64xbf16>, vector<64x8xbf16>, vector<2048x8xf32> -> vector<2048x8xf32>
    %11 = vector.broadcast %0 : vector<1x8xf32> to vector<2048x8xf32>
    %12 = arith.addf %10, %11 : vector<2048x8xf32>
    %cst_12 = arith.constant 0.000000e+00 : f32
    %13 = vector.broadcast %cst_12 : f32 to vector<2048x8xf32>
    %14 = arith.cmpf oge, %12, %13 : vector<2048x8xf32>
    %cst_13 = arith.constant 2.000000e-01 : f32
    %15 = vector.broadcast %cst_13 : f32 to vector<2048x8xf32>
    %16 = arith.mulf %15, %12 : vector<2048x8xf32>
    %17 = arith.select %14, %12, %16 : vector<2048x8xi1>, vector<2048x8xf32>
    %c0_14 = arith.constant 0 : index
    %c0_15 = arith.constant 0 : index
    %18 = vector.load %arg1[%c0_14, %c0_15] : memref<2048x1xf32, #tpu.memory_space<vmem>>, vector<2048x1xf32>
    %19 = vector.broadcast %18 : vector<2048x1xf32> to vector<2048x8xf32>
    %20 = arith.mulf %17, %19 : vector<2048x8xf32>
    %21 = vector.extract_strided_slice %20 {offsets = [0, 0], sizes = [128, 8], strides = [1, 1]} : vector<2048x8xf32> to vector<128x8xf32>
    %22 = arith.truncf %21 : vector<128x8xf32> to vector<128x8xbf16>
    %c0_16 = arith.constant 0 : index
    %c0_17 = arith.constant 0 : index
    %23 = vector.load %arg3[%c0_16, %c0_17] : memref<128x16xbf16, #tpu.memory_space<vmem>>, vector<8x16xbf16>
    %cst_18 = arith.constant dense<0.000000e+00> : vector<128x16xf32>
    %24 = tpu.matmul %22, %23, %cst_18 {dimension_numbers = #tpu.dot_dimension_numbers<[1], [0], [0], [1], [0, 0, 1, 1], [], []>} : vector<128x8xbf16>, vector<8x16xbf16>, vector<128x16xf32> -> vector<128x16xf32>
    %25 = vector.extract_strided_slice %20 {offsets = [128, 0], sizes = [128, 8], strides = [1, 1]} : vector<2048x8xf32> to vector<128x8xf32>
    %26 = arith.truncf %25 : vector<128x8xf32> to vector<128x8xbf16>
    %c8 = arith.constant 8 : index
    %c0_19 = arith.constant 0 : index
    %27 = vector.load %arg3[%c8, %c0_19] : memref<128x16xbf16, #tpu.memory_space<vmem>>, vector<8x16xbf16>
    %cst_20 = arith.constant dense<0.000000e+00> : vector<128x16xf32>
    %28 = tpu.matmul %26, %27, %cst_20 {dimension_numbers = #tpu.dot_dimension_numbers<[1], [0], [0], [1], [0, 0, 1, 1], [], []>} : vector<128x8xbf16>, vector<8x16xbf16>, vector<128x16xf32> -> vector<128x16xf32>
    %29 = arith.addf %24, %28 : vector<128x16xf32>
    %30 = vector.extract_strided_slice %20 {offsets = [256, 0], sizes = [128, 8], strides = [1, 1]} : vector<2048x8xf32> to vector<128x8xf32>
    %31 = arith.truncf %30 : vector<128x8xf32> to vector<128x8xbf16>
    %c16 = arith.constant 16 : index
    %c0_21 = arith.constant 0 : index
    %32 = vector.load %arg3[%c16, %c0_21] : memref<128x16xbf16, #tpu.memory_space<vmem>>, vector<8x16xbf16>
    %cst_22 = arith.constant dense<0.000000e+00> : vector<128x16xf32>
    %33 = tpu.matmul %31, %32, %cst_22 {dimension_numbers = #tpu.dot_dimension_numbers<[1], [0], [0], [1], [0, 0, 1, 1], [], []>} : vector<128x8xbf16>, vector<8x16xbf16>, vector<128x16xf32> -> vector<128x16xf32>
    %34 = arith.addf %29, %33 : vector<128x16xf32>
    %35 = vector.extract_strided_slice %20 {offsets = [384, 0], sizes = [128, 8], strides = [1, 1]} : vector<2048x8xf32> to vector<128x8xf32>
    %36 = arith.truncf %35 : vector<128x8xf32> to vector<128x8xbf16>
    %c24 = arith.constant 24 : index
    %c0_23 = arith.constant 0 : index
    %37 = vector.load %arg3[%c24, %c0_23] : memref<128x16xbf16, #tpu.memory_space<vmem>>, vector<8x16xbf16>
    %cst_24 = arith.constant dense<0.000000e+00> : vector<128x16xf32>
    %38 = tpu.matmul %36, %37, %cst_24 {dimension_numbers = #tpu.dot_dimension_numbers<[1], [0], [0], [1], [0, 0, 1, 1], [], []>} : vector<128x8xbf16>, vector<8x16xbf16>, vector<128x16xf32> -> vector<128x16xf32>
    %39 = arith.addf %34, %38 : vector<128x16xf32>
    %40 = vector.extract_strided_slice %20 {offsets = [512, 0], sizes = [128, 8], strides = [1, 1]} : vector<2048x8xf32> to vector<128x8xf32>
    %41 = arith.truncf %40 : vector<128x8xf32> to vector<128x8xbf16>
    %c32 = arith.constant 32 : index
    %c0_25 = arith.constant 0 : index
    %42 = vector.load %arg3[%c32, %c0_25] : memref<128x16xbf16, #tpu.memory_space<vmem>>, vector<8x16xbf16>
    %cst_26 = arith.constant dense<0.000000e+00> : vector<128x16xf32>
    %43 = tpu.matmul %41, %42, %cst_26 {dimension_numbers = #tpu.dot_dimension_numbers<[1], [0], [0], [1], [0, 0, 1, 1], [], []>} : vector<128x8xbf16>, vector<8x16xbf16>, vector<128x16xf32> -> vector<128x16xf32>
    %44 = arith.addf %39, %43 : vector<128x16xf32>
    %45 = vector.extract_strided_slice %20 {offsets = [640, 0], sizes = [128, 8], strides = [1, 1]} : vector<2048x8xf32> to vector<128x8xf32>
    %46 = arith.truncf %45 : vector<128x8xf32> to vector<128x8xbf16>
    %c40 = arith.constant 40 : index
    %c0_27 = arith.constant 0 : index
    %47 = vector.load %arg3[%c40, %c0_27] : memref<128x16xbf16, #tpu.memory_space<vmem>>, vector<8x16xbf16>
    %cst_28 = arith.constant dense<0.000000e+00> : vector<128x16xf32>
    %48 = tpu.matmul %46, %47, %cst_28 {dimension_numbers = #tpu.dot_dimension_numbers<[1], [0], [0], [1], [0, 0, 1, 1], [], []>} : vector<128x8xbf16>, vector<8x16xbf16>, vector<128x16xf32> -> vector<128x16xf32>
    %49 = arith.addf %44, %48 : vector<128x16xf32>
    %50 = vector.extract_strided_slice %20 {offsets = [768, 0], sizes = [128, 8], strides = [1, 1]} : vector<2048x8xf32> to vector<128x8xf32>
    %51 = arith.truncf %50 : vector<128x8xf32> to vector<128x8xbf16>
    %c48 = arith.constant 48 : index
    %c0_29 = arith.constant 0 : index
    %52 = vector.load %arg3[%c48, %c0_29] : memref<128x16xbf16, #tpu.memory_space<vmem>>, vector<8x16xbf16>
    %cst_30 = arith.constant dense<0.000000e+00> : vector<128x16xf32>
    %53 = tpu.matmul %51, %52, %cst_30 {dimension_numbers = #tpu.dot_dimension_numbers<[1], [0], [0], [1], [0, 0, 1, 1], [], []>} : vector<128x8xbf16>, vector<8x16xbf16>, vector<128x16xf32> -> vector<128x16xf32>
    %54 = arith.addf %49, %53 : vector<128x16xf32>
    %55 = vector.extract_strided_slice %20 {offsets = [896, 0], sizes = [128, 8], strides = [1, 1]} : vector<2048x8xf32> to vector<128x8xf32>
    %56 = arith.truncf %55 : vector<128x8xf32> to vector<128x8xbf16>
    %c56 = arith.constant 56 : index
    %c0_31 = arith.constant 0 : index
    %57 = vector.load %arg3[%c56, %c0_31] : memref<128x16xbf16, #tpu.memory_space<vmem>>, vector<8x16xbf16>
    %cst_32 = arith.constant dense<0.000000e+00> : vector<128x16xf32>
    %58 = tpu.matmul %56, %57, %cst_32 {dimension_numbers = #tpu.dot_dimension_numbers<[1], [0], [0], [1], [0, 0, 1, 1], [], []>} : vector<128x8xbf16>, vector<8x16xbf16>, vector<128x16xf32> -> vector<128x16xf32>
    %59 = arith.addf %54, %58 : vector<128x16xf32>
    %60 = vector.extract_strided_slice %20 {offsets = [1024, 0], sizes = [128, 8], strides = [1, 1]} : vector<2048x8xf32> to vector<128x8xf32>
    %61 = arith.truncf %60 : vector<128x8xf32> to vector<128x8xbf16>
    %c64 = arith.constant 64 : index
    %c0_33 = arith.constant 0 : index
    %62 = vector.load %arg3[%c64, %c0_33] : memref<128x16xbf16, #tpu.memory_space<vmem>>, vector<8x16xbf16>
    %cst_34 = arith.constant dense<0.000000e+00> : vector<128x16xf32>
    %63 = tpu.matmul %61, %62, %cst_34 {dimension_numbers = #tpu.dot_dimension_numbers<[1], [0], [0], [1], [0, 0, 1, 1], [], []>} : vector<128x8xbf16>, vector<8x16xbf16>, vector<128x16xf32> -> vector<128x16xf32>
    %64 = arith.addf %59, %63 : vector<128x16xf32>
    %65 = vector.extract_strided_slice %20 {offsets = [1152, 0], sizes = [128, 8], strides = [1, 1]} : vector<2048x8xf32> to vector<128x8xf32>
    %66 = arith.truncf %65 : vector<128x8xf32> to vector<128x8xbf16>
    %c72 = arith.constant 72 : index
    %c0_35 = arith.constant 0 : index
    %67 = vector.load %arg3[%c72, %c0_35] : memref<128x16xbf16, #tpu.memory_space<vmem>>, vector<8x16xbf16>
    %cst_36 = arith.constant dense<0.000000e+00> : vector<128x16xf32>
    %68 = tpu.matmul %66, %67, %cst_36 {dimension_numbers = #tpu.dot_dimension_numbers<[1], [0], [0], [1], [0, 0, 1, 1], [], []>} : vector<128x8xbf16>, vector<8x16xbf16>, vector<128x16xf32> -> vector<128x16xf32>
    %69 = arith.addf %64, %68 : vector<128x16xf32>
    %70 = vector.extract_strided_slice %20 {offsets = [1280, 0], sizes = [128, 8], strides = [1, 1]} : vector<2048x8xf32> to vector<128x8xf32>
    %71 = arith.truncf %70 : vector<128x8xf32> to vector<128x8xbf16>
    %c80 = arith.constant 80 : index
    %c0_37 = arith.constant 0 : index
    %72 = vector.load %arg3[%c80, %c0_37] : memref<128x16xbf16, #tpu.memory_space<vmem>>, vector<8x16xbf16>
    %cst_38 = arith.constant dense<0.000000e+00> : vector<128x16xf32>
    %73 = tpu.matmul %71, %72, %cst_38 {dimension_numbers = #tpu.dot_dimension_numbers<[1], [0], [0], [1], [0, 0, 1, 1], [], []>} : vector<128x8xbf16>, vector<8x16xbf16>, vector<128x16xf32> -> vector<128x16xf32>
    %74 = arith.addf %69, %73 : vector<128x16xf32>
    %75 = vector.extract_strided_slice %20 {offsets = [1408, 0], sizes = [128, 8], strides = [1, 1]} : vector<2048x8xf32> to vector<128x8xf32>
    %76 = arith.truncf %75 : vector<128x8xf32> to vector<128x8xbf16>
    %c88 = arith.constant 88 : index
    %c0_39 = arith.constant 0 : index
    %77 = vector.load %arg3[%c88, %c0_39] : memref<128x16xbf16, #tpu.memory_space<vmem>>, vector<8x16xbf16>
    %cst_40 = arith.constant dense<0.000000e+00> : vector<128x16xf32>
    %78 = tpu.matmul %76, %77, %cst_40 {dimension_numbers = #tpu.dot_dimension_numbers<[1], [0], [0], [1], [0, 0, 1, 1], [], []>} : vector<128x8xbf16>, vector<8x16xbf16>, vector<128x16xf32> -> vector<128x16xf32>
    %79 = arith.addf %74, %78 : vector<128x16xf32>
    %80 = vector.extract_strided_slice %20 {offsets = [1536, 0], sizes = [128, 8], strides = [1, 1]} : vector<2048x8xf32> to vector<128x8xf32>
    %81 = arith.truncf %80 : vector<128x8xf32> to vector<128x8xbf16>
    %c96 = arith.constant 96 : index
    %c0_41 = arith.constant 0 : index
    %82 = vector.load %arg3[%c96, %c0_41] : memref<128x16xbf16, #tpu.memory_space<vmem>>, vector<8x16xbf16>
    %cst_42 = arith.constant dense<0.000000e+00> : vector<128x16xf32>
    %83 = tpu.matmul %81, %82, %cst_42 {dimension_numbers = #tpu.dot_dimension_numbers<[1], [0], [0], [1], [0, 0, 1, 1], [], []>} : vector<128x8xbf16>, vector<8x16xbf16>, vector<128x16xf32> -> vector<128x16xf32>
    %84 = arith.addf %79, %83 : vector<128x16xf32>
    %85 = vector.extract_strided_slice %20 {offsets = [1664, 0], sizes = [128, 8], strides = [1, 1]} : vector<2048x8xf32> to vector<128x8xf32>
    %86 = arith.truncf %85 : vector<128x8xf32> to vector<128x8xbf16>
    %c104 = arith.constant 104 : index
    %c0_43 = arith.constant 0 : index
    %87 = vector.load %arg3[%c104, %c0_43] : memref<128x16xbf16, #tpu.memory_space<vmem>>, vector<8x16xbf16>
    %cst_44 = arith.constant dense<0.000000e+00> : vector<128x16xf32>
    %88 = tpu.matmul %86, %87, %cst_44 {dimension_numbers = #tpu.dot_dimension_numbers<[1], [0], [0], [1], [0, 0, 1, 1], [], []>} : vector<128x8xbf16>, vector<8x16xbf16>, vector<128x16xf32> -> vector<128x16xf32>
    %89 = arith.addf %84, %88 : vector<128x16xf32>
    %90 = vector.extract_strided_slice %20 {offsets = [1792, 0], sizes = [128, 8], strides = [1, 1]} : vector<2048x8xf32> to vector<128x8xf32>
    %91 = arith.truncf %90 : vector<128x8xf32> to vector<128x8xbf16>
    %c112 = arith.constant 112 : index
    %c0_45 = arith.constant 0 : index
    %92 = vector.load %arg3[%c112, %c0_45] : memref<128x16xbf16, #tpu.memory_space<vmem>>, vector<8x16xbf16>
    %cst_46 = arith.constant dense<0.000000e+00> : vector<128x16xf32>
    %93 = tpu.matmul %91, %92, %cst_46 {dimension_numbers = #tpu.dot_dimension_numbers<[1], [0], [0], [1], [0, 0, 1, 1], [], []>} : vector<128x8xbf16>, vector<8x16xbf16>, vector<128x16xf32> -> vector<128x16xf32>
    %94 = arith.addf %89, %93 : vector<128x16xf32>
    %95 = vector.extract_strided_slice %20 {offsets = [1920, 0], sizes = [128, 8], strides = [1, 1]} : vector<2048x8xf32> to vector<128x8xf32>
    %96 = arith.truncf %95 : vector<128x8xf32> to vector<128x8xbf16>
    %c120 = arith.constant 120 : index
    %c0_47 = arith.constant 0 : index
    %97 = vector.load %arg3[%c120, %c0_47] : memref<128x16xbf16, #tpu.memory_space<vmem>>, vector<8x16xbf16>
    %cst_48 = arith.constant dense<0.000000e+00> : vector<128x16xf32>
    %98 = tpu.matmul %96, %97, %cst_48 {dimension_numbers = #tpu.dot_dimension_numbers<[1], [0], [0], [1], [0, 0, 1, 1], [], []>} : vector<128x8xbf16>, vector<8x16xbf16>, vector<128x16xf32> -> vector<128x16xf32>
    %99 = arith.addf %94, %98 : vector<128x16xf32>
    %cst_49 = arith.constant dense<0.000000e+00> : vector<16xf32>
    %100 = vector.multi_reduction <add>, %99, %cst_49 [0] : vector<128x16xf32> to vector<16xf32>
    %101 = vector.shape_cast %100 : vector<16xf32> to vector<1x16xf32>
    %cst_50 = arith.constant 1.280000e+02 : f32
    %102 = vector.broadcast %cst_50 : f32 to vector<1x16xf32>
    %103 = arith.divf %101, %102 : vector<1x16xf32>
    %104 = vector.broadcast %103 : vector<1x16xf32> to vector<128x16xf32>
    %105 = arith.subf %99, %104 : vector<128x16xf32>
    %106 = arith.mulf %105, %105 : vector<128x16xf32>
    %cst_51 = arith.constant dense<0.000000e+00> : vector<16xf32>
    %107 = vector.multi_reduction <add>, %106, %cst_51 [0] : vector<128x16xf32> to vector<16xf32>
    %108 = vector.shape_cast %107 : vector<16xf32> to vector<1x16xf32>
    %cst_52 = arith.constant 1.280000e+02 : f32
    %109 = vector.broadcast %cst_52 : f32 to vector<1x16xf32>
    %110 = arith.divf %108, %109 : vector<1x16xf32>
    %111 = vector.broadcast %103 : vector<1x16xf32> to vector<128x16xf32>
    %112 = arith.subf %99, %111 : vector<128x16xf32>
    %cst_53 = arith.constant 9.99999974E-6 : f32
    %113 = vector.broadcast %cst_53 : f32 to vector<1x16xf32>
    %114 = arith.addf %110, %113 : vector<1x16xf32>
    %115 = math.rsqrt %114 : vector<1x16xf32>
    %116 = vector.broadcast %115 : vector<1x16xf32> to vector<128x16xf32>
    %117 = arith.mulf %112, %116 : vector<128x16xf32>
    %118 = vector.broadcast %1 : vector<1x16xf32> to vector<128x16xf32>
    %119 = arith.mulf %117, %118 : vector<128x16xf32>
    %120 = vector.broadcast %2 : vector<1x16xf32> to vector<128x16xf32>
    %121 = arith.addf %119, %120 : vector<128x16xf32>
    %cst_54 = arith.constant 0.000000e+00 : f32
    %122 = vector.broadcast %cst_54 : f32 to vector<128x16xf32>
    %123 = arith.cmpf oge, %121, %122 : vector<128x16xf32>
    %cst_55 = arith.constant 2.000000e-01 : f32
    %124 = vector.broadcast %cst_55 : f32 to vector<128x16xf32>
    %125 = arith.mulf %124, %121 : vector<128x16xf32>
    %126 = arith.select %123, %121, %125 : vector<128x16xi1>, vector<128x16xf32>
    %127 = arith.truncf %126 : vector<128x16xf32> to vector<128x16xbf16>
    %c0_56 = arith.constant 0 : index
    %c0_57 = arith.constant 0 : index
    %128 = vector.load %arg4[%c0_56, %c0_57] : memref<512x128xbf16, #tpu.memory_space<vmem>>, vector<512x128xbf16>
    %cst_58 = arith.constant dense<0.000000e+00> : vector<512x16xf32>
    %129 = tpu.matmul %128, %127, %cst_58 {dimension_numbers = #tpu.dot_dimension_numbers<[1], [0], [0], [1], [0, 0, 1, 1], [], []>} : vector<512x128xbf16>, vector<128x16xbf16>, vector<512x16xf32> -> vector<512x16xf32>
    %130 = vector.extract_strided_slice %129 {offsets = [0, 0], sizes = [32, 16], strides = [1, 1]} : vector<512x16xf32> to vector<32x16xf32>
    %131 = arith.truncf %130 : vector<32x16xf32> to vector<32x16xbf16>
    %c0_59 = arith.constant 0 : index
    %c0_60 = arith.constant 0 : index
    %132 = vector.load %arg5[%c0_59, %c0_60] : memref<256x32xbf16, #tpu.memory_space<vmem>>, vector<16x32xbf16>
    %cst_61 = arith.constant dense<0.000000e+00> : vector<32x32xf32>
    %133 = tpu.matmul %131, %132, %cst_61 {dimension_numbers = #tpu.dot_dimension_numbers<[1], [0], [0], [1], [0, 0, 1, 1], [], []>} : vector<32x16xbf16>, vector<16x32xbf16>, vector<32x32xf32> -> vector<32x32xf32>
    %134 = vector.extract_strided_slice %129 {offsets = [32, 0], sizes = [32, 16], strides = [1, 1]} : vector<512x16xf32> to vector<32x16xf32>
    %135 = arith.truncf %134 : vector<32x16xf32> to vector<32x16xbf16>
    %c16_62 = arith.constant 16 : index
    %c0_63 = arith.constant 0 : index
    %136 = vector.load %arg5[%c16_62, %c0_63] : memref<256x32xbf16, #tpu.memory_space<vmem>>, vector<16x32xbf16>
    %cst_64 = arith.constant dense<0.000000e+00> : vector<32x32xf32>
    %137 = tpu.matmul %135, %136, %cst_64 {dimension_numbers = #tpu.dot_dimension_numbers<[1], [0], [0], [1], [0, 0, 1, 1], [], []>} : vector<32x16xbf16>, vector<16x32xbf16>, vector<32x32xf32> -> vector<32x32xf32>
    %138 = arith.addf %133, %137 : vector<32x32xf32>
    %139 = vector.extract_strided_slice %129 {offsets = [64, 0], sizes = [32, 16], strides = [1, 1]} : vector<512x16xf32> to vector<32x16xf32>
    %140 = arith.truncf %139 : vector<32x16xf32> to vector<32x16xbf16>
    %c32_65 = arith.constant 32 : index
    %c0_66 = arith.constant 0 : index
    %141 = vector.load %arg5[%c32_65, %c0_66] : memref<256x32xbf16, #tpu.memory_space<vmem>>, vector<16x32xbf16>
    %cst_67 = arith.constant dense<0.000000e+00> : vector<32x32xf32>
    %142 = tpu.matmul %140, %141, %cst_67 {dimension_numbers = #tpu.dot_dimension_numbers<[1], [0], [0], [1], [0, 0, 1, 1], [], []>} : vector<32x16xbf16>, vector<16x32xbf16>, vector<32x32xf32> -> vector<32x32xf32>
    %143 = arith.addf %138, %142 : vector<32x32xf32>
    %144 = vector.extract_strided_slice %129 {offsets = [96, 0], sizes = [32, 16], strides = [1, 1]} : vector<512x16xf32> to vector<32x16xf32>
    %145 = arith.truncf %144 : vector<32x16xf32> to vector<32x16xbf16>
    %c48_68 = arith.constant 48 : index
    %c0_69 = arith.constant 0 : index
    %146 = vector.load %arg5[%c48_68, %c0_69] : memref<256x32xbf16, #tpu.memory_space<vmem>>, vector<16x32xbf16>
    %cst_70 = arith.constant dense<0.000000e+00> : vector<32x32xf32>
    %147 = tpu.matmul %145, %146, %cst_70 {dimension_numbers = #tpu.dot_dimension_numbers<[1], [0], [0], [1], [0, 0, 1, 1], [], []>} : vector<32x16xbf16>, vector<16x32xbf16>, vector<32x32xf32> -> vector<32x32xf32>
    %148 = arith.addf %143, %147 : vector<32x32xf32>
    %149 = vector.extract_strided_slice %129 {offsets = [128, 0], sizes = [32, 16], strides = [1, 1]} : vector<512x16xf32> to vector<32x16xf32>
    %150 = arith.truncf %149 : vector<32x16xf32> to vector<32x16xbf16>
    %c64_71 = arith.constant 64 : index
    %c0_72 = arith.constant 0 : index
    %151 = vector.load %arg5[%c64_71, %c0_72] : memref<256x32xbf16, #tpu.memory_space<vmem>>, vector<16x32xbf16>
    %cst_73 = arith.constant dense<0.000000e+00> : vector<32x32xf32>
    %152 = tpu.matmul %150, %151, %cst_73 {dimension_numbers = #tpu.dot_dimension_numbers<[1], [0], [0], [1], [0, 0, 1, 1], [], []>} : vector<32x16xbf16>, vector<16x32xbf16>, vector<32x32xf32> -> vector<32x32xf32>
    %153 = arith.addf %148, %152 : vector<32x32xf32>
    %154 = vector.extract_strided_slice %129 {offsets = [160, 0], sizes = [32, 16], strides = [1, 1]} : vector<512x16xf32> to vector<32x16xf32>
    %155 = arith.truncf %154 : vector<32x16xf32> to vector<32x16xbf16>
    %c80_74 = arith.constant 80 : index
    %c0_75 = arith.constant 0 : index
    %156 = vector.load %arg5[%c80_74, %c0_75] : memref<256x32xbf16, #tpu.memory_space<vmem>>, vector<16x32xbf16>
    %cst_76 = arith.constant dense<0.000000e+00> : vector<32x32xf32>
    %157 = tpu.matmul %155, %156, %cst_76 {dimension_numbers = #tpu.dot_dimension_numbers<[1], [0], [0], [1], [0, 0, 1, 1], [], []>} : vector<32x16xbf16>, vector<16x32xbf16>, vector<32x32xf32> -> vector<32x32xf32>
    %158 = arith.addf %153, %157 : vector<32x32xf32>
    %159 = vector.extract_strided_slice %129 {offsets = [192, 0], sizes = [32, 16], strides = [1, 1]} : vector<512x16xf32> to vector<32x16xf32>
    %160 = arith.truncf %159 : vector<32x16xf32> to vector<32x16xbf16>
    %c96_77 = arith.constant 96 : index
    %c0_78 = arith.constant 0 : index
    %161 = vector.load %arg5[%c96_77, %c0_78] : memref<256x32xbf16, #tpu.memory_space<vmem>>, vector<16x32xbf16>
    %cst_79 = arith.constant dense<0.000000e+00> : vector<32x32xf32>
    %162 = tpu.matmul %160, %161, %cst_79 {dimension_numbers = #tpu.dot_dimension_numbers<[1], [0], [0], [1], [0, 0, 1, 1], [], []>} : vector<32x16xbf16>, vector<16x32xbf16>, vector<32x32xf32> -> vector<32x32xf32>
    %163 = arith.addf %158, %162 : vector<32x32xf32>
    %164 = vector.extract_strided_slice %129 {offsets = [224, 0], sizes = [32, 16], strides = [1, 1]} : vector<512x16xf32> to vector<32x16xf32>
    %165 = arith.truncf %164 : vector<32x16xf32> to vector<32x16xbf16>
    %c112_80 = arith.constant 112 : index
    %c0_81 = arith.constant 0 : index
    %166 = vector.load %arg5[%c112_80, %c0_81] : memref<256x32xbf16, #tpu.memory_space<vmem>>, vector<16x32xbf16>
    %cst_82 = arith.constant dense<0.000000e+00> : vector<32x32xf32>
    %167 = tpu.matmul %165, %166, %cst_82 {dimension_numbers = #tpu.dot_dimension_numbers<[1], [0], [0], [1], [0, 0, 1, 1], [], []>} : vector<32x16xbf16>, vector<16x32xbf16>, vector<32x32xf32> -> vector<32x32xf32>
    %168 = arith.addf %163, %167 : vector<32x32xf32>
    %169 = vector.extract_strided_slice %129 {offsets = [256, 0], sizes = [32, 16], strides = [1, 1]} : vector<512x16xf32> to vector<32x16xf32>
    %170 = arith.truncf %169 : vector<32x16xf32> to vector<32x16xbf16>
    %c128 = arith.constant 128 : index
    %c0_83 = arith.constant 0 : index
    %171 = vector.load %arg5[%c128, %c0_83] : memref<256x32xbf16, #tpu.memory_space<vmem>>, vector<16x32xbf16>
    %cst_84 = arith.constant dense<0.000000e+00> : vector<32x32xf32>
    %172 = tpu.matmul %170, %171, %cst_84 {dimension_numbers = #tpu.dot_dimension_numbers<[1], [0], [0], [1], [0, 0, 1, 1], [], []>} : vector<32x16xbf16>, vector<16x32xbf16>, vector<32x32xf32> -> vector<32x32xf32>
    %173 = arith.addf %168, %172 : vector<32x32xf32>
    %174 = vector.extract_strided_slice %129 {offsets = [288, 0], sizes = [32, 16], strides = [1, 1]} : vector<512x16xf32> to vector<32x16xf32>
    %175 = arith.truncf %174 : vector<32x16xf32> to vector<32x16xbf16>
    %c144 = arith.constant 144 : index
    %c0_85 = arith.constant 0 : index
    %176 = vector.load %arg5[%c144, %c0_85] : memref<256x32xbf16, #tpu.memory_space<vmem>>, vector<16x32xbf16>
    %cst_86 = arith.constant dense<0.000000e+00> : vector<32x32xf32>
    %177 = tpu.matmul %175, %176, %cst_86 {dimension_numbers = #tpu.dot_dimension_numbers<[1], [0], [0], [1], [0, 0, 1, 1], [], []>} : vector<32x16xbf16>, vector<16x32xbf16>, vector<32x32xf32> -> vector<32x32xf32>
    %178 = arith.addf %173, %177 : vector<32x32xf32>
    %179 = vector.extract_strided_slice %129 {offsets = [320, 0], sizes = [32, 16], strides = [1, 1]} : vector<512x16xf32> to vector<32x16xf32>
    %180 = arith.truncf %179 : vector<32x16xf32> to vector<32x16xbf16>
    %c160 = arith.constant 160 : index
    %c0_87 = arith.constant 0 : index
    %181 = vector.load %arg5[%c160, %c0_87] : memref<256x32xbf16, #tpu.memory_space<vmem>>, vector<16x32xbf16>
    %cst_88 = arith.constant dense<0.000000e+00> : vector<32x32xf32>
    %182 = tpu.matmul %180, %181, %cst_88 {dimension_numbers = #tpu.dot_dimension_numbers<[1], [0], [0], [1], [0, 0, 1, 1], [], []>} : vector<32x16xbf16>, vector<16x32xbf16>, vector<32x32xf32> -> vector<32x32xf32>
    %183 = arith.addf %178, %182 : vector<32x32xf32>
    %184 = vector.extract_strided_slice %129 {offsets = [352, 0], sizes = [32, 16], strides = [1, 1]} : vector<512x16xf32> to vector<32x16xf32>
    %185 = arith.truncf %184 : vector<32x16xf32> to vector<32x16xbf16>
    %c176 = arith.constant 176 : index
    %c0_89 = arith.constant 0 : index
    %186 = vector.load %arg5[%c176, %c0_89] : memref<256x32xbf16, #tpu.memory_space<vmem>>, vector<16x32xbf16>
    %cst_90 = arith.constant dense<0.000000e+00> : vector<32x32xf32>
    %187 = tpu.matmul %185, %186, %cst_90 {dimension_numbers = #tpu.dot_dimension_numbers<[1], [0], [0], [1], [0, 0, 1, 1], [], []>} : vector<32x16xbf16>, vector<16x32xbf16>, vector<32x32xf32> -> vector<32x32xf32>
    %188 = arith.addf %183, %187 : vector<32x32xf32>
    %189 = vector.extract_strided_slice %129 {offsets = [384, 0], sizes = [32, 16], strides = [1, 1]} : vector<512x16xf32> to vector<32x16xf32>
    %190 = arith.truncf %189 : vector<32x16xf32> to vector<32x16xbf16>
    %c192 = arith.constant 192 : index
    %c0_91 = arith.constant 0 : index
    %191 = vector.load %arg5[%c192, %c0_91] : memref<256x32xbf16, #tpu.memory_space<vmem>>, vector<16x32xbf16>
    %cst_92 = arith.constant dense<0.000000e+00> : vector<32x32xf32>
    %192 = tpu.matmul %190, %191, %cst_92 {dimension_numbers = #tpu.dot_dimension_numbers<[1], [0], [0], [1], [0, 0, 1, 1], [], []>} : vector<32x16xbf16>, vector<16x32xbf16>, vector<32x32xf32> -> vector<32x32xf32>
    %193 = arith.addf %188, %192 : vector<32x32xf32>
    %194 = vector.extract_strided_slice %129 {offsets = [416, 0], sizes = [32, 16], strides = [1, 1]} : vector<512x16xf32> to vector<32x16xf32>
    %195 = arith.truncf %194 : vector<32x16xf32> to vector<32x16xbf16>
    %c208 = arith.constant 208 : index
    %c0_93 = arith.constant 0 : index
    %196 = vector.load %arg5[%c208, %c0_93] : memref<256x32xbf16, #tpu.memory_space<vmem>>, vector<16x32xbf16>
    %cst_94 = arith.constant dense<0.000000e+00> : vector<32x32xf32>
    %197 = tpu.matmul %195, %196, %cst_94 {dimension_numbers = #tpu.dot_dimension_numbers<[1], [0], [0], [1], [0, 0, 1, 1], [], []>} : vector<32x16xbf16>, vector<16x32xbf16>, vector<32x32xf32> -> vector<32x32xf32>
    %198 = arith.addf %193, %197 : vector<32x32xf32>
    %199 = vector.extract_strided_slice %129 {offsets = [448, 0], sizes = [32, 16], strides = [1, 1]} : vector<512x16xf32> to vector<32x16xf32>
    %200 = arith.truncf %199 : vector<32x16xf32> to vector<32x16xbf16>
    %c224 = arith.constant 224 : index
    %c0_95 = arith.constant 0 : index
    %201 = vector.load %arg5[%c224, %c0_95] : memref<256x32xbf16, #tpu.memory_space<vmem>>, vector<16x32xbf16>
    %cst_96 = arith.constant dense<0.000000e+00> : vector<32x32xf32>
    %202 = tpu.matmul %200, %201, %cst_96 {dimension_numbers = #tpu.dot_dimension_numbers<[1], [0], [0], [1], [0, 0, 1, 1], [], []>} : vector<32x16xbf16>, vector<16x32xbf16>, vector<32x32xf32> -> vector<32x32xf32>
    %203 = arith.addf %198, %202 : vector<32x32xf32>
    %204 = vector.extract_strided_slice %129 {offsets = [480, 0], sizes = [32, 16], strides = [1, 1]} : vector<512x16xf32> to vector<32x16xf32>
    %205 = arith.truncf %204 : vector<32x16xf32> to vector<32x16xbf16>
    %c240 = arith.constant 240 : index
    %c0_97 = arith.constant 0 : index
    %206 = vector.load %arg5[%c240, %c0_97] : memref<256x32xbf16, #tpu.memory_space<vmem>>, vector<16x32xbf16>
    %cst_98 = arith.constant dense<0.000000e+00> : vector<32x32xf32>
    %207 = tpu.matmul %205, %206, %cst_98 {dimension_numbers = #tpu.dot_dimension_numbers<[1], [0], [0], [1], [0, 0, 1, 1], [], []>} : vector<32x16xbf16>, vector<16x32xbf16>, vector<32x32xf32> -> vector<32x32xf32>
    %208 = arith.addf %203, %207 : vector<32x32xf32>
    %cst_99 = arith.constant dense<0.000000e+00> : vector<32xf32>
    %209 = vector.multi_reduction <add>, %208, %cst_99 [0] : vector<32x32xf32> to vector<32xf32>
    %210 = vector.shape_cast %209 : vector<32xf32> to vector<1x32xf32>
    %cst_100 = arith.constant 3.200000e+01 : f32
    %211 = vector.broadcast %cst_100 : f32 to vector<1x32xf32>
    %212 = arith.divf %210, %211 : vector<1x32xf32>
    %213 = vector.broadcast %212 : vector<1x32xf32> to vector<32x32xf32>
    %214 = arith.subf %208, %213 : vector<32x32xf32>
    %215 = arith.mulf %214, %214 : vector<32x32xf32>
    %cst_101 = arith.constant dense<0.000000e+00> : vector<32xf32>
    %216 = vector.multi_reduction <add>, %215, %cst_101 [0] : vector<32x32xf32> to vector<32xf32>
    %217 = vector.shape_cast %216 : vector<32xf32> to vector<1x32xf32>
    %cst_102 = arith.constant 3.200000e+01 : f32
    %218 = vector.broadcast %cst_102 : f32 to vector<1x32xf32>
    %219 = arith.divf %217, %218 : vector<1x32xf32>
    %220 = vector.broadcast %212 : vector<1x32xf32> to vector<32x32xf32>
    %221 = arith.subf %208, %220 : vector<32x32xf32>
    %cst_103 = arith.constant 9.99999974E-6 : f32
    %222 = vector.broadcast %cst_103 : f32 to vector<1x32xf32>
    %223 = arith.addf %219, %222 : vector<1x32xf32>
    %224 = math.rsqrt %223 : vector<1x32xf32>
    %225 = vector.broadcast %224 : vector<1x32xf32> to vector<32x32xf32>
    %226 = arith.mulf %221, %225 : vector<32x32xf32>
    %227 = vector.broadcast %3 : vector<1x32xf32> to vector<32x32xf32>
    %228 = arith.mulf %226, %227 : vector<32x32xf32>
    %229 = vector.broadcast %4 : vector<1x32xf32> to vector<32x32xf32>
    %230 = arith.addf %228, %229 : vector<32x32xf32>
    %cst_104 = arith.constant 0.000000e+00 : f32
    %231 = vector.broadcast %cst_104 : f32 to vector<32x32xf32>
    %232 = arith.cmpf oge, %230, %231 : vector<32x32xf32>
    %cst_105 = arith.constant 2.000000e-01 : f32
    %233 = vector.broadcast %cst_105 : f32 to vector<32x32xf32>
    %234 = arith.mulf %233, %230 : vector<32x32xf32>
    %235 = arith.select %232, %230, %234 : vector<32x32xi1>, vector<32x32xf32>
    %236 = arith.truncf %235 : vector<32x32xf32> to vector<32x32xbf16>
    %c0_106 = arith.constant 0 : index
    %c0_107 = arith.constant 0 : index
    %237 = vector.load %arg6[%c0_106, %c0_107] : memref<384x32xbf16, #tpu.memory_space<vmem>>, vector<384x32xbf16>
    %cst_108 = arith.constant dense<0.000000e+00> : vector<384x32xf32>
    %238 = tpu.matmul %237, %236, %cst_108 {dimension_numbers = #tpu.dot_dimension_numbers<[1], [0], [0], [1], [0, 0, 1, 1], [], []>} : vector<384x32xbf16>, vector<32x32xbf16>, vector<384x32xf32> -> vector<384x32xf32>
    %239 = vector.extract_strided_slice %238 {offsets = [0, 0], sizes = [24, 32], strides = [1, 1]} : vector<384x32xf32> to vector<24x32xf32>
    %240 = arith.truncf %239 : vector<24x32xf32> to vector<24x32xbf16>
    %c0_109 = arith.constant 0 : index
    %c0_110 = arith.constant 0 : index
    %241 = vector.load %arg7[%c0_109, %c0_110] : memref<512x64xbf16, #tpu.memory_space<vmem>>, vector<32x64xbf16>
    %cst_111 = arith.constant dense<0.000000e+00> : vector<24x64xf32>
    %242 = tpu.matmul %240, %241, %cst_111 {dimension_numbers = #tpu.dot_dimension_numbers<[1], [0], [0], [1], [0, 0, 1, 1], [], []>} : vector<24x32xbf16>, vector<32x64xbf16>, vector<24x64xf32> -> vector<24x64xf32>
    %243 = vector.extract_strided_slice %238 {offsets = [24, 0], sizes = [24, 32], strides = [1, 1]} : vector<384x32xf32> to vector<24x32xf32>
    %244 = arith.truncf %243 : vector<24x32xf32> to vector<24x32xbf16>
    %c32_112 = arith.constant 32 : index
    %c0_113 = arith.constant 0 : index
    %245 = vector.load %arg7[%c32_112, %c0_113] : memref<512x64xbf16, #tpu.memory_space<vmem>>, vector<32x64xbf16>
    %cst_114 = arith.constant dense<0.000000e+00> : vector<24x64xf32>
    %246 = tpu.matmul %244, %245, %cst_114 {dimension_numbers = #tpu.dot_dimension_numbers<[1], [0], [0], [1], [0, 0, 1, 1], [], []>} : vector<24x32xbf16>, vector<32x64xbf16>, vector<24x64xf32> -> vector<24x64xf32>
    %247 = arith.addf %242, %246 : vector<24x64xf32>
    %248 = vector.extract_strided_slice %238 {offsets = [48, 0], sizes = [24, 32], strides = [1, 1]} : vector<384x32xf32> to vector<24x32xf32>
    %249 = arith.truncf %248 : vector<24x32xf32> to vector<24x32xbf16>
    %c64_115 = arith.constant 64 : index
    %c0_116 = arith.constant 0 : index
    %250 = vector.load %arg7[%c64_115, %c0_116] : memref<512x64xbf16, #tpu.memory_space<vmem>>, vector<32x64xbf16>
    %cst_117 = arith.constant dense<0.000000e+00> : vector<24x64xf32>
    %251 = tpu.matmul %249, %250, %cst_117 {dimension_numbers = #tpu.dot_dimension_numbers<[1], [0], [0], [1], [0, 0, 1, 1], [], []>} : vector<24x32xbf16>, vector<32x64xbf16>, vector<24x64xf32> -> vector<24x64xf32>
    %252 = arith.addf %247, %251 : vector<24x64xf32>
    %253 = vector.extract_strided_slice %238 {offsets = [72, 0], sizes = [24, 32], strides = [1, 1]} : vector<384x32xf32> to vector<24x32xf32>
    %254 = arith.truncf %253 : vector<24x32xf32> to vector<24x32xbf16>
    %c96_118 = arith.constant 96 : index
    %c0_119 = arith.constant 0 : index
    %255 = vector.load %arg7[%c96_118, %c0_119] : memref<512x64xbf16, #tpu.memory_space<vmem>>, vector<32x64xbf16>
    %cst_120 = arith.constant dense<0.000000e+00> : vector<24x64xf32>
    %256 = tpu.matmul %254, %255, %cst_120 {dimension_numbers = #tpu.dot_dimension_numbers<[1], [0], [0], [1], [0, 0, 1, 1], [], []>} : vector<24x32xbf16>, vector<32x64xbf16>, vector<24x64xf32> -> vector<24x64xf32>
    %257 = arith.addf %252, %256 : vector<24x64xf32>
    %258 = vector.extract_strided_slice %238 {offsets = [96, 0], sizes = [24, 32], strides = [1, 1]} : vector<384x32xf32> to vector<24x32xf32>
    %259 = arith.truncf %258 : vector<24x32xf32> to vector<24x32xbf16>
    %c128_121 = arith.constant 128 : index
    %c0_122 = arith.constant 0 : index
    %260 = vector.load %arg7[%c128_121, %c0_122] : memref<512x64xbf16, #tpu.memory_space<vmem>>, vector<32x64xbf16>
    %cst_123 = arith.constant dense<0.000000e+00> : vector<24x64xf32>
    %261 = tpu.matmul %259, %260, %cst_123 {dimension_numbers = #tpu.dot_dimension_numbers<[1], [0], [0], [1], [0, 0, 1, 1], [], []>} : vector<24x32xbf16>, vector<32x64xbf16>, vector<24x64xf32> -> vector<24x64xf32>
    %262 = arith.addf %257, %261 : vector<24x64xf32>
    %263 = vector.extract_strided_slice %238 {offsets = [120, 0], sizes = [24, 32], strides = [1, 1]} : vector<384x32xf32> to vector<24x32xf32>
    %264 = arith.truncf %263 : vector<24x32xf32> to vector<24x32xbf16>
    %c160_124 = arith.constant 160 : index
    %c0_125 = arith.constant 0 : index
    %265 = vector.load %arg7[%c160_124, %c0_125] : memref<512x64xbf16, #tpu.memory_space<vmem>>, vector<32x64xbf16>
    %cst_126 = arith.constant dense<0.000000e+00> : vector<24x64xf32>
    %266 = tpu.matmul %264, %265, %cst_126 {dimension_numbers = #tpu.dot_dimension_numbers<[1], [0], [0], [1], [0, 0, 1, 1], [], []>} : vector<24x32xbf16>, vector<32x64xbf16>, vector<24x64xf32> -> vector<24x64xf32>
    %267 = arith.addf %262, %266 : vector<24x64xf32>
    %268 = vector.extract_strided_slice %238 {offsets = [144, 0], sizes = [24, 32], strides = [1, 1]} : vector<384x32xf32> to vector<24x32xf32>
    %269 = arith.truncf %268 : vector<24x32xf32> to vector<24x32xbf16>
    %c192_127 = arith.constant 192 : index
    %c0_128 = arith.constant 0 : index
    %270 = vector.load %arg7[%c192_127, %c0_128] : memref<512x64xbf16, #tpu.memory_space<vmem>>, vector<32x64xbf16>
    %cst_129 = arith.constant dense<0.000000e+00> : vector<24x64xf32>
    %271 = tpu.matmul %269, %270, %cst_129 {dimension_numbers = #tpu.dot_dimension_numbers<[1], [0], [0], [1], [0, 0, 1, 1], [], []>} : vector<24x32xbf16>, vector<32x64xbf16>, vector<24x64xf32> -> vector<24x64xf32>
    %272 = arith.addf %267, %271 : vector<24x64xf32>
    %273 = vector.extract_strided_slice %238 {offsets = [168, 0], sizes = [24, 32], strides = [1, 1]} : vector<384x32xf32> to vector<24x32xf32>
    %274 = arith.truncf %273 : vector<24x32xf32> to vector<24x32xbf16>
    %c224_130 = arith.constant 224 : index
    %c0_131 = arith.constant 0 : index
    %275 = vector.load %arg7[%c224_130, %c0_131] : memref<512x64xbf16, #tpu.memory_space<vmem>>, vector<32x64xbf16>
    %cst_132 = arith.constant dense<0.000000e+00> : vector<24x64xf32>
    %276 = tpu.matmul %274, %275, %cst_132 {dimension_numbers = #tpu.dot_dimension_numbers<[1], [0], [0], [1], [0, 0, 1, 1], [], []>} : vector<24x32xbf16>, vector<32x64xbf16>, vector<24x64xf32> -> vector<24x64xf32>
    %277 = arith.addf %272, %276 : vector<24x64xf32>
    %278 = vector.extract_strided_slice %238 {offsets = [192, 0], sizes = [24, 32], strides = [1, 1]} : vector<384x32xf32> to vector<24x32xf32>
    %279 = arith.truncf %278 : vector<24x32xf32> to vector<24x32xbf16>
    %c256 = arith.constant 256 : index
    %c0_133 = arith.constant 0 : index
    %280 = vector.load %arg7[%c256, %c0_133] : memref<512x64xbf16, #tpu.memory_space<vmem>>, vector<32x64xbf16>
    %cst_134 = arith.constant dense<0.000000e+00> : vector<24x64xf32>
    %281 = tpu.matmul %279, %280, %cst_134 {dimension_numbers = #tpu.dot_dimension_numbers<[1], [0], [0], [1], [0, 0, 1, 1], [], []>} : vector<24x32xbf16>, vector<32x64xbf16>, vector<24x64xf32> -> vector<24x64xf32>
    %282 = arith.addf %277, %281 : vector<24x64xf32>
    %283 = vector.extract_strided_slice %238 {offsets = [216, 0], sizes = [24, 32], strides = [1, 1]} : vector<384x32xf32> to vector<24x32xf32>
    %284 = arith.truncf %283 : vector<24x32xf32> to vector<24x32xbf16>
    %c288 = arith.constant 288 : index
    %c0_135 = arith.constant 0 : index
    %285 = vector.load %arg7[%c288, %c0_135] : memref<512x64xbf16, #tpu.memory_space<vmem>>, vector<32x64xbf16>
    %cst_136 = arith.constant dense<0.000000e+00> : vector<24x64xf32>
    %286 = tpu.matmul %284, %285, %cst_136 {dimension_numbers = #tpu.dot_dimension_numbers<[1], [0], [0], [1], [0, 0, 1, 1], [], []>} : vector<24x32xbf16>, vector<32x64xbf16>, vector<24x64xf32> -> vector<24x64xf32>
    %287 = arith.addf %282, %286 : vector<24x64xf32>
    %288 = vector.extract_strided_slice %238 {offsets = [240, 0], sizes = [24, 32], strides = [1, 1]} : vector<384x32xf32> to vector<24x32xf32>
    %289 = arith.truncf %288 : vector<24x32xf32> to vector<24x32xbf16>
    %c320 = arith.constant 320 : index
    %c0_137 = arith.constant 0 : index
    %290 = vector.load %arg7[%c320, %c0_137] : memref<512x64xbf16, #tpu.memory_space<vmem>>, vector<32x64xbf16>
    %cst_138 = arith.constant dense<0.000000e+00> : vector<24x64xf32>
    %291 = tpu.matmul %289, %290, %cst_138 {dimension_numbers = #tpu.dot_dimension_numbers<[1], [0], [0], [1], [0, 0, 1, 1], [], []>} : vector<24x32xbf16>, vector<32x64xbf16>, vector<24x64xf32> -> vector<24x64xf32>
    %292 = arith.addf %287, %291 : vector<24x64xf32>
    %293 = vector.extract_strided_slice %238 {offsets = [264, 0], sizes = [24, 32], strides = [1, 1]} : vector<384x32xf32> to vector<24x32xf32>
    %294 = arith.truncf %293 : vector<24x32xf32> to vector<24x32xbf16>
    %c352 = arith.constant 352 : index
    %c0_139 = arith.constant 0 : index
    %295 = vector.load %arg7[%c352, %c0_139] : memref<512x64xbf16, #tpu.memory_space<vmem>>, vector<32x64xbf16>
    %cst_140 = arith.constant dense<0.000000e+00> : vector<24x64xf32>
    %296 = tpu.matmul %294, %295, %cst_140 {dimension_numbers = #tpu.dot_dimension_numbers<[1], [0], [0], [1], [0, 0, 1, 1], [], []>} : vector<24x32xbf16>, vector<32x64xbf16>, vector<24x64xf32> -> vector<24x64xf32>
    %297 = arith.addf %292, %296 : vector<24x64xf32>
    %298 = vector.extract_strided_slice %238 {offsets = [288, 0], sizes = [24, 32], strides = [1, 1]} : vector<384x32xf32> to vector<24x32xf32>
    %299 = arith.truncf %298 : vector<24x32xf32> to vector<24x32xbf16>
    %c384 = arith.constant 384 : index
    %c0_141 = arith.constant 0 : index
    %300 = vector.load %arg7[%c384, %c0_141] : memref<512x64xbf16, #tpu.memory_space<vmem>>, vector<32x64xbf16>
    %cst_142 = arith.constant dense<0.000000e+00> : vector<24x64xf32>
    %301 = tpu.matmul %299, %300, %cst_142 {dimension_numbers = #tpu.dot_dimension_numbers<[1], [0], [0], [1], [0, 0, 1, 1], [], []>} : vector<24x32xbf16>, vector<32x64xbf16>, vector<24x64xf32> -> vector<24x64xf32>
    %302 = arith.addf %297, %301 : vector<24x64xf32>
    %303 = vector.extract_strided_slice %238 {offsets = [312, 0], sizes = [24, 32], strides = [1, 1]} : vector<384x32xf32> to vector<24x32xf32>
    %304 = arith.truncf %303 : vector<24x32xf32> to vector<24x32xbf16>
    %c416 = arith.constant 416 : index
    %c0_143 = arith.constant 0 : index
    %305 = vector.load %arg7[%c416, %c0_143] : memref<512x64xbf16, #tpu.memory_space<vmem>>, vector<32x64xbf16>
    %cst_144 = arith.constant dense<0.000000e+00> : vector<24x64xf32>
    %306 = tpu.matmul %304, %305, %cst_144 {dimension_numbers = #tpu.dot_dimension_numbers<[1], [0], [0], [1], [0, 0, 1, 1], [], []>} : vector<24x32xbf16>, vector<32x64xbf16>, vector<24x64xf32> -> vector<24x64xf32>
    %307 = arith.addf %302, %306 : vector<24x64xf32>
    %308 = vector.extract_strided_slice %238 {offsets = [336, 0], sizes = [24, 32], strides = [1, 1]} : vector<384x32xf32> to vector<24x32xf32>
    %309 = arith.truncf %308 : vector<24x32xf32> to vector<24x32xbf16>
    %c448 = arith.constant 448 : index
    %c0_145 = arith.constant 0 : index
    %310 = vector.load %arg7[%c448, %c0_145] : memref<512x64xbf16, #tpu.memory_space<vmem>>, vector<32x64xbf16>
    %cst_146 = arith.constant dense<0.000000e+00> : vector<24x64xf32>
    %311 = tpu.matmul %309, %310, %cst_146 {dimension_numbers = #tpu.dot_dimension_numbers<[1], [0], [0], [1], [0, 0, 1, 1], [], []>} : vector<24x32xbf16>, vector<32x64xbf16>, vector<24x64xf32> -> vector<24x64xf32>
    %312 = arith.addf %307, %311 : vector<24x64xf32>
    %313 = vector.extract_strided_slice %238 {offsets = [360, 0], sizes = [24, 32], strides = [1, 1]} : vector<384x32xf32> to vector<24x32xf32>
    %314 = arith.truncf %313 : vector<24x32xf32> to vector<24x32xbf16>
    %c480 = arith.constant 480 : index
    %c0_147 = arith.constant 0 : index
    %315 = vector.load %arg7[%c480, %c0_147] : memref<512x64xbf16, #tpu.memory_space<vmem>>, vector<32x64xbf16>
    %cst_148 = arith.constant dense<0.000000e+00> : vector<24x64xf32>
    %316 = tpu.matmul %314, %315, %cst_148 {dimension_numbers = #tpu.dot_dimension_numbers<[1], [0], [0], [1], [0, 0, 1, 1], [], []>} : vector<24x32xbf16>, vector<32x64xbf16>, vector<24x64xf32> -> vector<24x64xf32>
    %317 = arith.addf %312, %316 : vector<24x64xf32>
    %318 = vector.extract_strided_slice %317 {offsets = [0, 0], sizes = [18, 64], strides = [1, 1]} : vector<24x64xf32> to vector<18x64xf32>
    %cst_149 = arith.constant dense<0.000000e+00> : vector<64xf32>
    %319 = vector.multi_reduction <add>, %318, %cst_149 [0] : vector<18x64xf32> to vector<64xf32>
    %320 = vector.shape_cast %319 : vector<64xf32> to vector<1x64xf32>
    %cst_150 = arith.constant 1.800000e+01 : f32
    %321 = vector.broadcast %cst_150 : f32 to vector<1x64xf32>
    %322 = arith.divf %320, %321 : vector<1x64xf32>
    %323 = vector.broadcast %322 : vector<1x64xf32> to vector<18x64xf32>
    %324 = arith.subf %318, %323 : vector<18x64xf32>
    %325 = arith.mulf %324, %324 : vector<18x64xf32>
    %cst_151 = arith.constant dense<0.000000e+00> : vector<64xf32>
    %326 = vector.multi_reduction <add>, %325, %cst_151 [0] : vector<18x64xf32> to vector<64xf32>
    %327 = vector.shape_cast %326 : vector<64xf32> to vector<1x64xf32>
    %cst_152 = arith.constant 1.800000e+01 : f32
    %328 = vector.broadcast %cst_152 : f32 to vector<1x64xf32>
    %329 = arith.divf %327, %328 : vector<1x64xf32>
    %330 = vector.broadcast %322 : vector<1x64xf32> to vector<24x64xf32>
    %331 = arith.subf %317, %330 : vector<24x64xf32>
    %cst_153 = arith.constant 9.99999974E-6 : f32
    %332 = vector.broadcast %cst_153 : f32 to vector<1x64xf32>
    %333 = arith.addf %329, %332 : vector<1x64xf32>
    %334 = math.rsqrt %333 : vector<1x64xf32>
    %335 = vector.broadcast %334 : vector<1x64xf32> to vector<24x64xf32>
    %336 = arith.mulf %331, %335 : vector<24x64xf32>
    %337 = vector.broadcast %5 : vector<1x64xf32> to vector<24x64xf32>
    %338 = arith.mulf %336, %337 : vector<24x64xf32>
    %339 = vector.broadcast %6 : vector<1x64xf32> to vector<24x64xf32>
    %340 = arith.addf %338, %339 : vector<24x64xf32>
    %cst_154 = arith.constant 0.000000e+00 : f32
    %341 = vector.broadcast %cst_154 : f32 to vector<24x64xf32>
    %342 = arith.cmpf oge, %340, %341 : vector<24x64xf32>
    %cst_155 = arith.constant 2.000000e-01 : f32
    %343 = vector.broadcast %cst_155 : f32 to vector<24x64xf32>
    %344 = arith.mulf %343, %340 : vector<24x64xf32>
    %345 = arith.select %342, %340, %344 : vector<24x64xi1>, vector<24x64xf32>
    %346 = arith.truncf %345 : vector<24x64xf32> to vector<24x64xbf16>
    %c0_156 = arith.constant 0 : index
    %c0_157 = arith.constant 0 : index
    %347 = vector.load %arg8[%c0_156, %c0_157] : memref<128x24xbf16, #tpu.memory_space<vmem>>, vector<128x24xbf16>
    %cst_158 = arith.constant dense<0.000000e+00> : vector<128x64xf32>
    %348 = tpu.matmul %347, %346, %cst_158 {dimension_numbers = #tpu.dot_dimension_numbers<[1], [0], [0], [1], [0, 0, 1, 1], [], []>} : vector<128x24xbf16>, vector<24x64xbf16>, vector<128x64xf32> -> vector<128x64xf32>
    %c0_159 = arith.constant 0 : index
    %c0_160 = arith.constant 0 : index
    %349 = vector.load %arg9[%c0_159, %c0_160] : memref<128x64xf32, #tpu.memory_space<vmem>>, vector<128x64xf32>
    %350 = arith.mulf %348, %349 : vector<128x64xf32>
    %351 = vector.extract_strided_slice %350 {offsets = [0, 0], sizes = [8, 64], strides = [1, 1]} : vector<128x64xf32> to vector<8x64xf32>
    %352 = vector.extract_strided_slice %350 {offsets = [8, 0], sizes = [8, 64], strides = [1, 1]} : vector<128x64xf32> to vector<8x64xf32>
    %353 = arith.addf %351, %352 : vector<8x64xf32>
    %354 = vector.extract_strided_slice %350 {offsets = [16, 0], sizes = [8, 64], strides = [1, 1]} : vector<128x64xf32> to vector<8x64xf32>
    %355 = arith.addf %353, %354 : vector<8x64xf32>
    %356 = vector.extract_strided_slice %350 {offsets = [24, 0], sizes = [8, 64], strides = [1, 1]} : vector<128x64xf32> to vector<8x64xf32>
    %357 = arith.addf %355, %356 : vector<8x64xf32>
    %358 = vector.extract_strided_slice %350 {offsets = [32, 0], sizes = [8, 64], strides = [1, 1]} : vector<128x64xf32> to vector<8x64xf32>
    %359 = arith.addf %357, %358 : vector<8x64xf32>
    %360 = vector.extract_strided_slice %350 {offsets = [40, 0], sizes = [8, 64], strides = [1, 1]} : vector<128x64xf32> to vector<8x64xf32>
    %361 = arith.addf %359, %360 : vector<8x64xf32>
    %362 = vector.extract_strided_slice %350 {offsets = [48, 0], sizes = [8, 64], strides = [1, 1]} : vector<128x64xf32> to vector<8x64xf32>
    %363 = arith.addf %361, %362 : vector<8x64xf32>
    %364 = vector.extract_strided_slice %350 {offsets = [56, 0], sizes = [8, 64], strides = [1, 1]} : vector<128x64xf32> to vector<8x64xf32>
    %365 = arith.addf %363, %364 : vector<8x64xf32>
    %366 = vector.extract_strided_slice %350 {offsets = [64, 0], sizes = [8, 64], strides = [1, 1]} : vector<128x64xf32> to vector<8x64xf32>
    %367 = arith.addf %365, %366 : vector<8x64xf32>
    %368 = vector.extract_strided_slice %350 {offsets = [72, 0], sizes = [8, 64], strides = [1, 1]} : vector<128x64xf32> to vector<8x64xf32>
    %369 = arith.addf %367, %368 : vector<8x64xf32>
    %370 = vector.extract_strided_slice %350 {offsets = [80, 0], sizes = [8, 64], strides = [1, 1]} : vector<128x64xf32> to vector<8x64xf32>
    %371 = arith.addf %369, %370 : vector<8x64xf32>
    %372 = vector.extract_strided_slice %350 {offsets = [88, 0], sizes = [8, 64], strides = [1, 1]} : vector<128x64xf32> to vector<8x64xf32>
    %373 = arith.addf %371, %372 : vector<8x64xf32>
    %374 = vector.extract_strided_slice %350 {offsets = [96, 0], sizes = [8, 64], strides = [1, 1]} : vector<128x64xf32> to vector<8x64xf32>
    %375 = arith.addf %373, %374 : vector<8x64xf32>
    %376 = vector.extract_strided_slice %350 {offsets = [104, 0], sizes = [8, 64], strides = [1, 1]} : vector<128x64xf32> to vector<8x64xf32>
    %377 = arith.addf %375, %376 : vector<8x64xf32>
    %378 = vector.extract_strided_slice %350 {offsets = [112, 0], sizes = [8, 64], strides = [1, 1]} : vector<128x64xf32> to vector<8x64xf32>
    %379 = arith.addf %377, %378 : vector<8x64xf32>
    %380 = vector.extract_strided_slice %350 {offsets = [120, 0], sizes = [8, 64], strides = [1, 1]} : vector<128x64xf32> to vector<8x64xf32>
    %381 = arith.addf %379, %380 : vector<8x64xf32>
    %cst_161 = arith.constant dense<0.000000e+00> : vector<8xf32>
    %382 = vector.multi_reduction <add>, %381, %cst_161 [1] : vector<8x64xf32> to vector<8xf32>
    %383 = vector.shape_cast %382 : vector<8xf32> to vector<8x1xf32>
    %384 = vector.broadcast %7 : vector<1x1xf32> to vector<8x1xf32>
    %385 = arith.addf %383, %384 : vector<8x1xf32>
    %c0_162 = arith.constant 0 : index
    %c0_163 = arith.constant 0 : index
    %386 = vector.load %arg11[%c0_162, %c0_163] : memref<8x1xf32, #tpu.memory_space<vmem>>, vector<8x1xf32>
    tpu.vector_store %arg11[%c0_162, %c0_163], %385 {strides = array<i32>} : memref<8x1xf32, #tpu.memory_space<vmem>>, vector<8x1xf32>,
    return
  }
}

</mosaic_0001>

<bundles_post_ra>
// kernel: forward.1
= control target key start
LH: loop header
LB: loop body
LE: loop exit
PB: predicated region body
PF: predicated region fallthrough
CT: control target
= control target key end

     0   :  { %v13867_v0 = vmov 0   ;;  %vm979_vm0 = vcmask 523264   ;;  %vm5024_vm1 = vcmask 1043456   ;;  %s18358_s1 = inlined_call_operand.vmem [shape: f32[2048,1], index: 1, kind: input, shape index: {}]   ;;  %s18359_s2 = inlined_call_operand.vmem [shape: bf16[64,8], index: 2, kind: input, shape index: {}]   ;;  %s18360_s0 = inlined_call_operand.vmem [shape: bf16[2048,64], index: 0, kind: input, shape index: {}]   ;;  %s18361_s3 = inlined_call_operand.vmem [shape: bf16[128,16], index: 3, kind: input, shape index: {}]   ;;  %s18362_s10 = inlined_call_operand.vmem [shape: f32[8,64], index: 10, kind: input, shape index: {}]   ;;  %s18363_s5 = inlined_call_operand.vmem [shape: bf16[256,32], index: 5, kind: input, shape index: {}]   ;;  %s18364_s4 = inlined_call_operand.vmem [shape: bf16[512,128], index: 4, kind: input, shape index: {}]   ;;  %s18365_s6 = inlined_call_operand.vmem [shape: bf16[384,32], index: 6, kind: input, shape index: {}]   ;;  %s18366_s7 = inlined_call_operand.vmem [shape: bf16[512,64], index: 7, kind: input, shape index: {}]   ;;  %s18367_s8 = inlined_call_operand.vmem [shape: bf16[128,24], index: 8, kind: input, shape index: {}]   ;;  %s18368_s9 = inlined_call_operand.vmem [shape: f32[128,64], index: 9, kind: input, shape index: {}]   ;;  %s18369_s11 = inlined_call_operand.vmem [shape: f32[8,1], index: 11, kind: output, shape index: {}]  }
   0x1   :  { %13612 = vset.pattern.permute.xlu1 %v13867_v0  ;;  %13611 = vset.pattern.permute.xlu0 %v13867_v0  ;;  %v3207_v1 = vld [vmem:[%s18358_s1 + $0x90] sm:$0xff]  ;;  %v3205_v2 = vld [vmem:[%s18358_s1 + $0x80] sm:$0xff]  ;;  %v3208_v4 = vld [vmem:[%s18358_s1 + $0x98] sm:$0xff] }
   0x2   :  { %3537 = vperm.xlu1 %13612, %v3207_v1   ;;  %3527 = vperm.xlu0 %13611, %v3205_v2   ;;  %v13613_v3 = vld [vmem:[%s18359_s2] sm:$0xff]   ;;  %v3206_v5 = vld [vmem:[%s18358_s1 + $0x88] sm:$0xff]  ;;  %v13615_v9 = vld [vmem:[%s18359_s2 + $0x10] sm:$0xff]  }
   0x3   :  { %12305 = vmatprep.subr.bf16.mxu0 %v13613_v3  ;;  %v13614_v6 = vld [vmem:[%s18359_s2 + $0x8] sm:$0xff]   ;;  %v3209_v8 = vld [vmem:[%s18358_s1 + $0xa0] sm:$0xff]  ;;  %v3212_v11 = vld [vmem:[%s18358_s1 + $0xb8] sm:$0xff] }
   0x4   :  { %12306 = vmatpush3.bf16.msra.mxu0 %v13613_v3  ;;  %v3210_v7 = vld [vmem:[%s18358_s1 + $0xa8] sm:$0xff]  ;;  %v13617_v10 = vld [vmem:[%s18360_s0] sm:$0xff]   ;;  %v3211_v12 = vld [vmem:[%s18358_s1 + $0xb0] sm:$0xff] }
   0x5   :  { %12307 = vmatprep.subr.bf16.mxu0 %v13614_v6  ;;  %v13616_v13 = vld [vmem:[%s18359_s2 + $0x18] sm:$0xff]   ;;  %12313 = vmatprep.mubr.msk.bf16.mxu0 %vm979_vm0, %v13617_v10  ;;  %v3214_v14 = vld [vmem:[%s18358_s1 + $0xc8] sm:$0xff]  ;;  %v3213_v15 = vld [vmem:[%s18358_s1 + $0xc0] sm:$0xff] }
   0x6   :  { %3542 = vperm.xlu1 %13612, %v3208_v4   ;;  %3532 = vperm.xlu0 %13611, %v3206_v5   ;;  %v13618_v16 = vld [vmem:[%s18360_s0 + $0x8] sm:$0xff]   ;;  %v13619_v17 = vld [vmem:[%s18360_s0 + $0x10] sm:$0xff]   ;;  %v3216_v18 = vld [vmem:[%s18358_s1 + $0xd8] sm:$0xff] }
   0x7   :  { %v3215_v19 = vld [vmem:[%s18358_s1 + $0xd0] sm:$0xff]  ;;  %v3218_v20 = vld [vmem:[%s18358_s1 + $0xe8] sm:$0xff]  ;;  %v3217_v21 = vld [vmem:[%s18358_s1 + $0xe0] sm:$0xff] }
   0x8   :  { %12308 = vmatpush3.bf16.msra.mxu0 %v13614_v6  ;;  %v13620_v22 = vld [vmem:[%s18360_s0 + $0x18] sm:$0xff]   ;;  %v13621_v23 = vld [vmem:[%s18360_s0 + $0x20] sm:$0xff]   ;;  %v3219_v25 = vld [vmem:[%s18358_s1 + $0xf0] sm:$0xff] }
   0x9   :  { %12309 = vmatprep.subr.bf16.mxu0 %v13615_v9  ;;  %v3220_v24 = vld [vmem:[%s18358_s1 + $0xf8] sm:$0xff]  ;;  %v3190_v26 = vld [vmem:[%s18358_s1 + $0x8] sm:$0xff]  ;;  %v3189_v27 = vld [vmem:[%s18358_s1] sm:$0xff] }
   0xa   :  { %3552 = vperm.xlu1 %13612, %v3210_v7   ;;  %3547 = vperm.xlu0 %13611, %v3209_v8   ;;  %v13622_v28 = vld [vmem:[%s18360_s0 + $0x28] sm:$0xff]   ;;  %v13623_v29 = vld [vmem:[%s18360_s0 + $0x30] sm:$0xff]   ;;  %v3192_v30 = vld [vmem:[%s18358_s1 + $0x18] sm:$0xff] }
   0xb   :  { %v3191_v31 = vld [vmem:[%s18358_s1 + $0x10] sm:$0xff]  ;;  %v3194_v32 = vld [vmem:[%s18358_s1 + $0x28] sm:$0xff]  ;;  %v3193_v33 = vld [vmem:[%s18358_s1 + $0x20] sm:$0xff] }
   0xc   :  { %12310 = vmatpush3.bf16.msra.mxu0 %v13615_v9  ;;  %v13624_v34 = vld [vmem:[%s18360_s0 + $0x38] sm:$0xff]   ;;  %v13625_v35 = vld [vmem:[%s18360_s0 + $0x40] sm:$0xff]   ;;  %v3195_v37 = vld [vmem:[%s18358_s1 + $0x30] sm:$0xff] }
   0xd   :  { %12311 = vmatprep.subr.bf16.mxu0 %v13616_v13  ;;  %v3196_v36 = vld [vmem:[%s18358_s1 + $0x38] sm:$0xff]  ;;  %v3198_v38 = vld [vmem:[%s18358_s1 + $0x48] sm:$0xff]  ;;  %v3197_v39 = vld [vmem:[%s18358_s1 + $0x40] sm:$0xff] }
   0xe   :  { %3562 = vperm.xlu1 %13612, %v3212_v11   ;;  %3557 = vperm.xlu0 %13611, %v3211_v12   ;;  %v13626_v40 = vld [vmem:[%s18360_s0 + $0x48] sm:$0xff]   ;;  %v13627_v41 = vld [vmem:[%s18360_s0 + $0x50] sm:$0xff]   ;;  %v3200_v42 = vld [vmem:[%s18358_s1 + $0x58] sm:$0xff] }
   0xf   :  { %v3199_v43 = vld [vmem:[%s18358_s1 + $0x50] sm:$0xff]  ;;  %v3202_v44 = vld [vmem:[%s18358_s1 + $0x68] sm:$0xff]  ;;  %v3201_v45 = vld [vmem:[%s18358_s1 + $0x60] sm:$0xff] }
  0x10   :  { %12312 = vmatpush3.bf16.msra.mxu0 %v13616_v13  ;;  %v13628_v46 = vld [vmem:[%s18360_s0 + $0x58] sm:$0xff]   ;;  %v13629_v47 = vld [vmem:[%s18360_s0 + $0x60] sm:$0xff]   ;;  %v3203_v49 = vld [vmem:[%s18358_s1 + $0x70] sm:$0xff] }
  0x11   :  { %v3204_v48 = vld [vmem:[%s18358_s1 + $0x78] sm:$0xff]  ;;  %v3222_v50 = vld [vmem:[%s18358_s1 + $0x108] sm:$0xff]  ;;  %v3221_v51 = vld [vmem:[%s18358_s1 + $0x100] sm:$0xff] }
  0x12   :  { %3572 = vperm.xlu1 %13612, %v3214_v14   ;;  %3567 = vperm.xlu0 %13611, %v3213_v15   ;;  %v13630_v52 = vld [vmem:[%s18360_s0 + $0x68] sm:$0xff]   ;;  %v13631_v53 = vld [vmem:[%s18360_s0 + $0x70] sm:$0xff]   ;;  %v3224_v54 = vld [vmem:[%s18358_s1 + $0x118] sm:$0xff] }
  0x13   :  { %12314 = vmatmul.mubr.msk.bf16.vlgmr.msra.gmra.mrb[0].mxu0 %vm979_vm0, %v13618_v16  ;;  %v3223_v55 = vld [vmem:[%s18358_s1 + $0x110] sm:$0xff]  ;;  %v3226_v56 = vld [vmem:[%s18358_s1 + $0x128] sm:$0xff]  ;;  %v3225_v57 = vld [vmem:[%s18358_s1 + $0x120] sm:$0xff] }
  0x14   :  { %12317 = vmatprep.mubr.msk.bf16.mxu0 %vm979_vm0, %v13619_v17  ;;  %v13632_v58 = vld [vmem:[%s18360_s0 + $0x78] sm:$0xff]   ;;  %v13633_v59 = vld [vmem:[%s18360_s0 + $0x80] sm:$0xff]   ;;  %v3227_v61 = vld [vmem:[%s18358_s1 + $0x130] sm:$0xff] }
  0x15   :  { %v3228_v60 = vld [vmem:[%s18358_s1 + $0x138] sm:$0xff]  ;;  %v3230_v62 = vld [vmem:[%s18358_s1 + $0x148] sm:$0xff]  ;;  %v3229_v63 = vld [vmem:[%s18358_s1 + $0x140] sm:$0xff] }
  0x16   :  { %3582 = vperm.xlu1 %13612, %v3216_v18   ;;  %3577 = vperm.xlu0 %13611, %v3215_v19   ;;  %v13634_v0 = vld [vmem:[%s18360_s0 + $0x88] sm:$0xff]   ;;  %v13635_v1 = vld [vmem:[%s18360_s0 + $0x90] sm:$0xff]   ;;  %v3232_v2 = vld [vmem:[%s18358_s1 + $0x158] sm:$0xff] }
  0x17   :  { %v3231_v3 = vld [vmem:[%s18358_s1 + $0x150] sm:$0xff]  ;;  %v3234_v4 = vld [vmem:[%s18358_s1 + $0x168] sm:$0xff]  ;;  %v3233_v5 = vld [vmem:[%s18358_s1 + $0x160] sm:$0xff] }
  0x18   :  { %v13636_v6 = vld [vmem:[%s18360_s0 + $0x98] sm:$0xff]   ;;  %v13637_v7 = vld [vmem:[%s18360_s0 + $0xa0] sm:$0xff]   ;;  %v3235_v9 = vld [vmem:[%s18358_s1 + $0x170] sm:$0xff] }
  0x19   :  { %v3236_v8 = vld [vmem:[%s18358_s1 + $0x178] sm:$0xff]  ;;  %v3238_v10 = vld [vmem:[%s18358_s1 + $0x188] sm:$0xff]  ;;  %v3237_v11 = vld [vmem:[%s18358_s1 + $0x180] sm:$0xff] }
  0x1a   :  { %3592 = vperm.xlu1 %13612, %v3218_v20   ;;  %3587 = vperm.xlu0 %13611, %v3217_v21   ;;  %v13638_v12 = vld [vmem:[%s18360_s0 + $0xa8] sm:$0xff]   ;;  %v13639_v13 = vld [vmem:[%s18360_s0 + $0xb0] sm:$0xff]   ;;  %v3240_v14 = vld [vmem:[%s18358_s1 + $0x198] sm:$0xff] }
  0x1b   :  { %12318 = vmatmul.mubr.msk.bf16.gmra.mrb[4].mxu0 %vm979_vm0, %v13620_v22  ;;  %v3239_v15 = vld [vmem:[%s18358_s1 + $0x190] sm:$0xff]  ;;  %v3242_v16 = vld [vmem:[%s18358_s1 + $0x1a8] sm:$0xff]  ;;  %v3241_v17 = vld [vmem:[%s18358_s1 + $0x1a0] sm:$0xff] }
  0x1c   :  { %12321 = vmatprep.mubr.msk.bf16.mxu0 %vm979_vm0, %v13621_v23  ;;  %v13640_v18 = vld [vmem:[%s18360_s0 + $0xb8] sm:$0xff]   ;;  %v13641_v19 = vld [vmem:[%s18360_s0 + $0xc0] sm:$0xff]   ;;  %v3243_v21 = vld [vmem:[%s18358_s1 + $0x1b0] sm:$0xff] }
  0x1d   :  { %v3244_v20 = vld [vmem:[%s18358_s1 + $0x1b8] sm:$0xff]  ;;  %v3246_v22 = vld [vmem:[%s18358_s1 + $0x1c8] sm:$0xff]  ;;  %v3245_v23 = vld [vmem:[%s18358_s1 + $0x1c0] sm:$0xff] }
  0x1e   :  { %3602 = vperm.xlu1 %13612, %v3220_v24   ;;  %3597 = vperm.xlu0 %13611, %v3219_v25   ;;  %v13642_v24 = vld [vmem:[%s18360_s0 + $0xc8] sm:$0xff]   ;;  %v13643_v25 = vld [vmem:[%s18360_s0 + $0xd0] sm:$0xff]  }
  0x22   :  { %3452 = vperm.xlu1 %13612, %v3190_v26   ;;  %3447 = vperm.xlu0 %13611, %v3189_v27   ;;  %v3248_v26 = vld [vmem:[%s18358_s1 + $0x1d8] sm:$0xff]  ;;  %v3247_v27 = vld [vmem:[%s18358_s1 + $0x1d0] sm:$0xff] }
  0x23   :  { %12322 = vmatmul.mubr.msk.bf16.gmra.mrb[8].mxu0 %vm979_vm0, %v13622_v28  ;;  %v3250_v28 = vld [vmem:[%s18358_s1 + $0x1e8] sm:$0xff] }
  0x24   :  { %12325 = vmatprep.mubr.msk.bf16.mxu0 %vm979_vm0, %v13623_v29  ;;  %v3249_v29 = vld [vmem:[%s18358_s1 + $0x1e0] sm:$0xff] }
  0x26   :  { %3462 = vperm.xlu1 %13612, %v3192_v30   ;;  %3457 = vperm.xlu0 %13611, %v3191_v31   ;;  %v13644_v30 = vld [vmem:[%s18360_s0 + $0xd8] sm:$0xff]   ;;  %v13645_v31 = vld [vmem:[%s18360_s0 + $0xe0] sm:$0xff]  }
  0x2a   :  { %3472 = vperm.xlu1 %13612, %v3194_v32   ;;  %3467 = vperm.xlu0 %13611, %v3193_v33   ;;  %v3252_v32 = vld [vmem:[%s18358_s1 + $0x1f8] sm:$0xff]  ;;  %v3251_v33 = vld [vmem:[%s18358_s1 + $0x1f0] sm:$0xff] }
  0x2b   :  { %12326 = vmatmul.mubr.msk.bf16.gmra.mrb[12].mxu0 %vm979_vm0, %v13624_v34  ;;  %v3254_v34 = vld [vmem:[%s18358_s1 + $0x208] sm:$0xff] }
  0x2c   :  { %12329 = vmatprep.mubr.msk.bf16.mxu0 %vm979_vm0, %v13625_v35  ;;  %v3253_v35 = vld [vmem:[%s18358_s1 + $0x200] sm:$0xff] }
  0x2e   :  { %3482 = vperm.xlu1 %13612, %v3196_v36   ;;  %3477 = vperm.xlu0 %13611, %v3195_v37   ;;  %v13646_v36 = vld [vmem:[%s18360_s0 + $0xe8] sm:$0xff]   ;;  %v13647_v37 = vld [vmem:[%s18360_s0 + $0xf0] sm:$0xff]  }
  0x32   :  { %3492 = vperm.xlu1 %13612, %v3198_v38   ;;  %3487 = vperm.xlu0 %13611, %v3197_v39  }
  0x33   :  { %12330 = vmatmul.mubr.msk.bf16.gmra.mrb[16].mxu0 %vm979_vm0, %v13626_v40  ;;  %v3256_v40 = vld [vmem:[%s18358_s1 + $0x218] sm:$0xff] }
  0x34   :  { %12333 = vmatprep.mubr.msk.bf16.mxu0 %vm979_vm0, %v13627_v41  ;;  %v3255_v41 = vld [vmem:[%s18358_s1 + $0x210] sm:$0xff] }
  0x36   :  { %3502 = vperm.xlu1 %13612, %v3200_v42   ;;  %3497 = vperm.xlu0 %13611, %v3199_v43  }
  0x3a   :  { %3512 = vperm.xlu1 %13612, %v3202_v44   ;;  %3507 = vperm.xlu0 %13611, %v3201_v45   ;;  %v3258_v44 = vld [vmem:[%s18358_s1 + $0x228] sm:$0xff]  ;;  %v3257_v45 = vld [vmem:[%s18358_s1 + $0x220] sm:$0xff] }
  0x3b   :  { %12334 = vmatmul.mubr.msk.bf16.gmra.mrb[20].mxu0 %vm979_vm0, %v13628_v46  ;;  %v13648_v46 = vld [vmem:[%s18360_s0 + $0xf8] sm:$0xff]  }
  0x3c   :  { %12337 = vmatprep.mubr.msk.bf16.mxu0 %vm979_vm0, %v13629_v47  ;;  %v13649_v47 = vld [vmem:[%s18360_s0 + $0x100] sm:$0xff]  }
  0x3e   :  { %3522 = vperm.xlu1 %13612, %v3204_v48   ;;  %3517 = vperm.xlu0 %13611, %v3203_v49  }
  0x42   :  { %3612 = vperm.xlu1 %13612, %v3222_v50   ;;  %3607 = vperm.xlu0 %13611, %v3221_v51   ;;  %v3260_v50 = vld [vmem:[%s18358_s1 + $0x238] sm:$0xff]  ;;  %v3259_v51 = vld [vmem:[%s18358_s1 + $0x230] sm:$0xff] }
  0x43   :  { %12338 = vmatmul.mubr.msk.bf16.gmra.mrb[24].mxu0 %vm979_vm0, %v13630_v52 }
  0x44   :  { %12341 = vmatprep.mubr.msk.bf16.mxu0 %vm979_vm0, %v13631_v53 }
  0x46   :  { %3622 = vperm.xlu1 %13612, %v3224_v54   ;;  %3617 = vperm.xlu0 %13611, %v3223_v55   ;;  %v3262_v54 = vld [vmem:[%s18358_s1 + $0x248] sm:$0xff]  ;;  %v3261_v55 = vld [vmem:[%s18358_s1 + $0x240] sm:$0xff] }
  0x4a   :  { %3632 = vperm.xlu1 %13612, %v3226_v56   ;;  %3627 = vperm.xlu0 %13611, %v3225_v57   ;;  %v13650_v56 = vld [vmem:[%s18360_s0 + $0x108] sm:$0xff]  }
  0x4b   :  { %12342 = vmatmul.mubr.msk.bf16.gmra.mrb[28].mxu0 %vm979_vm0, %v13632_v58 }
  0x4c   :  { %12345 = vmatprep.mubr.msk.bf16.mxu0 %vm979_vm0, %v13633_v59  ;;  %v13651_v59 = vld [vmem:[%s18360_s0 + $0x110] sm:$0xff]  }
  0x4e   :  { %3642 = vperm.xlu1 %13612, %v3228_v60   ;;  %3637 = vperm.xlu0 %13611, %v3227_v61   ;;  %v4998_v60 = vld [vmem:[%s18361_s3 + $0x4] sm:$0xf] }
  0x4f   :  { %v5026_v61 = vsel %vm5024_vm1, %v4998_v60, 0  ;;  %13593 = vmatprep.subr.msk.bf16.mxu1 %vm5024_vm1, %v4998_v60  ;;  %v3283_v60 = vld [vmem:[%s18358_s1 + $0x2f0] sm:$0xff] }
  0x50   :  { %12570 = vmatpush3.bf16.msra.mxu1 %v5026_v61 }
  0x52   :  { %3652 = vperm.xlu1 %13612, %v3230_v62   ;;  %3647 = vperm.xlu0 %13611, %v3229_v63   ;;  %v3264_v62 = vld [vmem:[%s18358_s1 + $0x258] sm:$0xff]  ;;  %v3263_v63 = vld [vmem:[%s18358_s1 + $0x250] sm:$0xff] }
  0x53   :  { %12346 = vmatmul.mubr.msk.bf16.gmra.mrb[32].mxu0 %vm979_vm0, %v13634_v0 }
  0x54   :  { %12349 = vmatprep.mubr.msk.bf16.mxu0 %vm979_vm0, %v13635_v1 }
  0x56   :  { %3662 = vperm.xlu1 %13612, %v3232_v2   ;;  %3657 = vperm.xlu0 %13611, %v3231_v3   ;;  %v3266_v2 = vld [vmem:[%s18358_s1 + $0x268] sm:$0xff]  ;;  %v3265_v3 = vld [vmem:[%s18358_s1 + $0x260] sm:$0xff] }
  0x5a   :  { %3672 = vperm.xlu1 %13612, %v3234_v4   ;;  %3667 = vperm.xlu0 %13611, %v3233_v5   ;;  %v13652_v4 = vld [vmem:[%s18360_s0 + $0x118] sm:$0xff]   ;;  %v13653_v5 = vld [vmem:[%s18360_s0 + $0x120] sm:$0xff]  }
  0x5b   :  { %12350 = vmatmul.mubr.msk.bf16.gmra.mrb[36].mxu0 %vm979_vm0, %v13636_v6 }
  0x5c   :  { %12353 = vmatprep.mubr.msk.bf16.mxu0 %vm979_vm0, %v13637_v7 }
  0x5e   :  { %3682 = vperm.xlu1 %13612, %v3236_v8   ;;  %3677 = vperm.xlu0 %13611, %v3235_v9   ;;  %v3268_v8 = vld [vmem:[%s18358_s1 + $0x278] sm:$0xff]  ;;  %v3267_v9 = vld [vmem:[%s18358_s1 + $0x270] sm:$0xff] }
  0x62   :  { %3692 = vperm.xlu1 %13612, %v3238_v10   ;;  %3687 = vperm.xlu0 %13611, %v3237_v11  }
  0x63   :  { %12354 = vmatmul.mubr.msk.bf16.gmra.mrb[40].mxu0 %vm979_vm0, %v13638_v12  ;;  %v3270_v12 = vld [vmem:[%s18358_s1 + $0x288] sm:$0xff] }
  0x64   :  { %12357 = vmatprep.mubr.msk.bf16.mxu0 %vm979_vm0, %v13639_v13  ;;  %v3269_v13 = vld [vmem:[%s18358_s1 + $0x280] sm:$0xff] }
  0x66   :  { %3702 = vperm.xlu1 %13612, %v3240_v14   ;;  %3697 = vperm.xlu0 %13611, %v3239_v15   ;;  %v13654_v14 = vld [vmem:[%s18360_s0 + $0x128] sm:$0xff]   ;;  %v13655_v15 = vld [vmem:[%s18360_s0 + $0x130] sm:$0xff]  }
  0x6a   :  { %3712 = vperm.xlu1 %13612, %v3242_v16   ;;  %3707 = vperm.xlu0 %13611, %v3241_v17  }
  0x6b   :  { %12358 = vmatmul.mubr.msk.bf16.gmra.mrb[44].mxu0 %vm979_vm0, %v13640_v18  ;;  %v3272_v18 = vld [vmem:[%s18358_s1 + $0x298] sm:$0xff] }
  0x6c   :  { %12361 = vmatprep.mubr.msk.bf16.mxu0 %vm979_vm0, %v13641_v19  ;;  %v3271_v19 = vld [vmem:[%s18358_s1 + $0x290] sm:$0xff] }
  0x6e   :  { %3722 = vperm.xlu1 %13612, %v3244_v20   ;;  %3717 = vperm.xlu0 %13611, %v3243_v21  }
  0x72   :  { %3732 = vperm.xlu1 %13612, %v3246_v22   ;;  %3727 = vperm.xlu0 %13611, %v3245_v23   ;;  %v3274_v22 = vld [vmem:[%s18358_s1 + $0x2a8] sm:$0xff]  ;;  %v3273_v23 = vld [vmem:[%s18358_s1 + $0x2a0] sm:$0xff] }
  0x73   :  { %12362 = vmatmul.mubr.msk.bf16.gmra.mrb[48].mxu0 %vm979_vm0, %v13642_v24  ;;  %v13656_v24 = vld [vmem:[%s18360_s0 + $0x138] sm:$0xff]  }
  0x74   :  { %12365 = vmatprep.mubr.msk.bf16.mxu0 %vm979_vm0, %v13643_v25 }
  0x76   :  { %3742 = vperm.xlu1 %13612, %v3248_v26   ;;  %3737 = vperm.xlu0 %13611, %v3247_v27   ;;  %v13657_v27 = vld [vmem:[%s18360_s0 + $0x140] sm:$0xff]  }
  0x7a   :  { %3752 = vperm.xlu1 %13612, %v3250_v28   ;;  %3747 = vperm.xlu0 %13611, %v3249_v29   ;;  %v3276_v28 = vld [vmem:[%s18358_s1 + $0x2b8] sm:$0xff]  ;;  %v3275_v29 = vld [vmem:[%s18358_s1 + $0x2b0] sm:$0xff] }
  0x7b   :  { %12366 = vmatmul.mubr.msk.bf16.gmra.mrb[52].mxu0 %vm979_vm0, %v13644_v30 }
  0x7c   :  { %12369 = vmatprep.mubr.msk.bf16.mxu0 %vm979_vm0, %v13645_v31 }
  0x7e   :  { %3762 = vperm.xlu1 %13612, %v3252_v32   ;;  %3757 = vperm.xlu0 %13611, %v3251_v33   ;;  %v3278_v32 = vld [vmem:[%s18358_s1 + $0x2c8] sm:$0xff]  ;;  %v3277_v33 = vld [vmem:[%s18358_s1 + $0x2c0] sm:$0xff] }
  0x81   :  { %v14260_v38 = vpop.permute.xlu1 %3537  ;;  %v14262_v39 = vpop.permute.xlu0 %3527 }
  0x82   :  { %3772 = vperm.xlu1 %13612, %v3254_v34   ;;  %3767 = vperm.xlu0 %13611, %v3253_v35   ;;  %v13658_v34 = vld [vmem:[%s18360_s0 + $0x148] sm:$0xff]  }
  0x83   :  { %12370 = vmatmul.mubr.msk.bf16.gmra.mrb[56].mxu0 %vm979_vm0, %v13646_v36 }
  0x84   :  { %12373 = vmatprep.mubr.msk.bf16.mxu0 %vm979_vm0, %v13647_v37  ;;  %v13659_v37 = vld [vmem:[%s18360_s0 + $0x150] sm:$0xff]  }
  0x85   :  { %v14271_v42 = vpop.permute.xlu1 %3542  ;;  %v14273_v43 = vpop.permute.xlu0 %3532 }
  0x86   :  { %3782 = vperm.xlu1 %13612, %v3256_v40   ;;  %3777 = vperm.xlu0 %13611, %v3255_v41   ;;  %v14440_v40 = vld [vmem:[%s18361_s3] sm:$0xf]  ;;  %v3280_v41 = vld [vmem:[%s18358_s1 + $0x2d8] sm:$0xff] }
  0x87   :  { %13594 = vmatprep.subr.msk.bf16.mxu1 %vm5024_vm1, %v14440_v40 }
  0x89   :  { %v14288_v48 = vpop.permute.xlu1 %3552  ;;  %v14290_v49 = vpop.permute.xlu0 %3547 }
  0x8a   :  { %3792 = vperm.xlu1 %13612, %v3258_v44   ;;  %3787 = vperm.xlu0 %13611, %v3257_v45   ;;  %v3279_v44 = vld [vmem:[%s18358_s1 + $0x2d0] sm:$0xff] }
  0x8b   :  { %12374 = vmatmul.mubr.msk.bf16.gmra.mrb[60].mxu0 %vm979_vm0, %v13648_v46 }
  0x8c   :  { %12377 = vmatprep.mubr.msk.bf16.mxu0 %vm979_vm0, %v13649_v47  ;;  %v3282_v47 = vld [vmem:[%s18358_s1 + $0x2e8] sm:$0xff] }
  0x8d   :  { %v14299_v52 = vpop.permute.xlu1 %3562  ;;  %v14301_v53 = vpop.permute.xlu0 %3557 }
  0x8e   :  { %3802 = vperm.xlu1 %13612, %v3260_v50   ;;  %3797 = vperm.xlu0 %13611, %v3259_v51   ;;  %v3281_v50 = vld [vmem:[%s18358_s1 + $0x2e0] sm:$0xff]  ;;  %v13660_v51 = vld [vmem:[%s18360_s0 + $0x158] sm:$0xff]  }
  0x91   :  { %v14313_v57 = vpop.permute.xlu1 %3572  ;;  %v14315_v58 = vpop.permute.xlu0 %3567 }
  0x92   :  { %3812 = vperm.xlu1 %13612, %v3262_v54   ;;  %3807 = vperm.xlu0 %13611, %v3261_v55  }
  0x93   :  { %12378 = vmatmul.mubr.msk.bf16.gmra.mrb[64].mxu0 %vm979_vm0, %v13650_v56  ;;  %v13661_v56 = vld [vmem:[%s18360_s0 + $0x160] sm:$0xff]  }
  0x94   :  { %12381 = vmatprep.mubr.msk.bf16.mxu0 %vm979_vm0, %v13651_v59  ;;  %v3284_v59 = vld [vmem:[%s18358_s1 + $0x2f8] sm:$0xff] }
  0x95   :  { %v14332_v0 = vpop.permute.xlu1 %3582  ;;  %v14334_v1 = vpop.permute.xlu0 %3577 }
  0x96   :  { %3822 = vperm.xlu1 %13612, %v3264_v62   ;;  %3817 = vperm.xlu0 %13611, %v3263_v63   ;;  %v3286_v63 = vld [vmem:[%s18358_s1 + $0x308] sm:$0xff] }
  0x99   :  { %v14349_v6 = vpop.permute.xlu1 %3592  ;;  %v14351_v7 = vpop.permute.xlu0 %3587 }
  0x9a   :  { %3832 = vperm.xlu1 %13612, %v3266_v2   ;;  %3827 = vperm.xlu0 %13611, %v3265_v3   ;;  %v3285_v2 = vld [vmem:[%s18358_s1 + $0x300] sm:$0xff]  ;;  %v13662_v3 = vld [vmem:[%s18360_s0 + $0x168] sm:$0xff]  }
  0x9b   :  { %12382 = vmatmul.mubr.msk.bf16.gmra.mrb[68].mxu0 %vm979_vm0, %v13652_v4 }
  0x9c   :  { %12385 = vmatprep.mubr.msk.bf16.mxu0 %vm979_vm0, %v13653_v5 }
  0x9d   :  { %v14360_v10 = vpop.permute.xlu1 %3602  ;;  %v14362_v11 = vpop.permute.xlu0 %3597 }
  0x9e   :  { %3842 = vperm.xlu1 %13612, %v3268_v8   ;;  %3837 = vperm.xlu0 %13611, %v3267_v9   ;;  %v13663_v8 = vld [vmem:[%s18360_s0 + $0x170] sm:$0xff]   ;;  %v3288_v9 = vld [vmem:[%s18358_s1 + $0x318] sm:$0xff] }
  0xa1   :  { %v14377_v16 = vpop.permute.xlu1 %3452  ;;  %v14379_v17 = vpop.permute.xlu0 %3447 }
  0xa2   :  { %3852 = vperm.xlu1 %13612, %v3270_v12   ;;  %3847 = vperm.xlu0 %13611, %v3269_v13   ;;  %v3287_v12 = vld [vmem:[%s18358_s1 + $0x310] sm:$0xff] }
  0xa3   :  { %12386 = vmatmul.mubr.msk.bf16.gmra.mrb[72].mxu0 %vm979_vm0, %v13654_v14 }
  0xa4   :  { %12389 = vmatprep.mubr.msk.bf16.mxu0 %vm979_vm0, %v13655_v15  ;;  %v3290_v15 = vld [vmem:[%s18358_s1 + $0x328] sm:$0xff] }
  0xa5   :  { %v14388_v20 = vpop.permute.xlu1 %3462  ;;  %v14390_v21 = vpop.permute.xlu0 %3457 }
  0xa6   :  { %3862 = vperm.xlu1 %13612, %v3272_v18   ;;  %3857 = vperm.xlu0 %13611, %v3271_v19   ;;  %v3289_v18 = vld [vmem:[%s18358_s1 + $0x320] sm:$0xff]  ;;  %v13664_v19 = vld [vmem:[%s18360_s0 + $0x178] sm:$0xff]  }
  0xa9   :  { %v14402_v25 = vpop.permute.xlu1 %3472  ;;  %v14404_v26 = vpop.permute.xlu0 %3467 }
  0xaa   :  { %3872 = vperm.xlu1 %13612, %v3274_v22   ;;  %3867 = vperm.xlu0 %13611, %v3273_v23  }
  0xab   :  { %12390 = vmatmul.mubr.msk.bf16.gmra.mrb[76].mxu0 %vm979_vm0, %v13656_v24  ;;  %v13665_v24 = vld [vmem:[%s18360_s0 + $0x180] sm:$0xff]  }
  0xac   :  { %12393 = vmatprep.mubr.msk.bf16.mxu0 %vm979_vm0, %v13657_v27  ;;  %v3292_v27 = vld [vmem:[%s18358_s1 + $0x338] sm:$0xff] }
  0xad   :  { %v14416_v30 = vpop.permute.xlu1 %3482  ;;  %v14418_v31 = vpop.permute.xlu0 %3477 }
  0xae   :  { %3882 = vperm.xlu1 %13612, %v3276_v28   ;;  %3877 = vperm.xlu0 %13611, %v3275_v29   ;;  %v3291_v28 = vld [vmem:[%s18358_s1 + $0x330] sm:$0xff] }
  0xb1   :  { %v14430_v35 = vpop.permute.xlu1 %3492  ;;  %v14432_v36 = vpop.permute.xlu0 %3487 }
  0xb2   :  { %3892 = vperm.xlu1 %13612, %v3278_v32   ;;  %3887 = vperm.xlu0 %13611, %v3277_v33   ;;  %v3294_v33 = vld [vmem:[%s18358_s1 + $0x348] sm:$0xff] }
  0xb3   :  { %12394 = vmatmul.mubr.msk.bf16.gmra.mrb[80].mxu0 %vm979_vm0, %v13658_v34  ;;  %v3293_v34 = vld [vmem:[%s18358_s1 + $0x340] sm:$0xff] }
  0xb4   :  { %12397 = vmatprep.mubr.msk.bf16.mxu0 %vm979_vm0, %v13659_v37  ;;  %v13666_v37 = vld [vmem:[%s18360_s0 + $0x188] sm:$0xff]  }
  0xb5   :  { %v14451_v45 = vpop.permute.xlu1 %3502  ;;  %v14453_v46 = vpop.permute.xlu0 %3497 }
  0xb6   :  { %3902 = vperm.xlu1 %13612, %v3280_v41   ;;  %3897 = vperm.xlu0 %13611, %v3279_v44  }
  0xb9   :  { %v14465_v54 = vpop.permute.xlu1 %3512  ;;  %v14467_v55 = vpop.permute.xlu0 %3507 }
  0xba   :  { %3912 = vperm.xlu1 %13612, %v3282_v47   ;;  %3907 = vperm.xlu0 %13611, %v3281_v50   ;;  %v13667_v47 = vld [vmem:[%s18360_s0 + $0x190] sm:$0xff]   ;;  %v3296_v50 = vld [vmem:[%s18358_s1 + $0x358] sm:$0xff] }
  0xbb   :  { %12398 = vmatmul.mubr.msk.bf16.gmra.mrb[84].mxu0 %vm979_vm0, %v13660_v51  ;;  %v3295_v51 = vld [vmem:[%s18358_s1 + $0x350] sm:$0xff] }
  0xbc   :  { %12401 = vmatprep.mubr.msk.bf16.mxu0 %vm979_vm0, %v13661_v56 }
  0xbd   :  { %v14479_v61 = vpop.permute.xlu1 %3522  ;;  %v14481_v62 = vpop.permute.xlu0 %3517 }
  0xbe   :  { %3922 = vperm.xlu1 %13612, %v3284_v59   ;;  %3917 = vperm.xlu0 %13611, %v3283_v60   ;;  %v3298_v60 = vld [vmem:[%s18358_s1 + $0x368] sm:$0xff] }
  0xc1   :  { %v14493_v4 = vpop.permute.xlu1 %3612  ;;  %v14495_v5 = vpop.permute.xlu0 %3607 }
  0xc2   :  { %3932 = vperm.xlu1 %13612, %v3286_v63   ;;  %3927 = vperm.xlu0 %13611, %v3285_v2   ;;  %v3297_v63 = vld [vmem:[%s18358_s1 + $0x360] sm:$0xff]  ;;  %v13668_v2 = vld [vmem:[%s18360_s0 + $0x198] sm:$0xff]  }
  0xc3   :  { %12402 = vmatmul.mubr.msk.bf16.gmra.mrb[88].mxu0 %vm979_vm0, %v13662_v3 }
  0xc4   :  { %12405 = vmatprep.mubr.msk.bf16.mxu0 %vm979_vm0, %v13663_v8 }
  0xc5   :  { %v14507_v13 = vpop.permute.xlu1 %3622  ;;  %v14509_v14 = vpop.permute.xlu0 %3617 }
  0xc6   :  { %3942 = vperm.xlu1 %13612, %v3288_v9   ;;  %3937 = vperm.xlu0 %13611, %v3287_v12   ;;  %v13669_v9 = vld [vmem:[%s18360_s0 + $0x1a0] sm:$0xff]   ;;  %v3300_v12 = vld [vmem:[%s18358_s1 + $0x378] sm:$0xff] }
  0xc9   :  { %v14521_v22 = vpop.permute.xlu1 %3632  ;;  %v14523_v23 = vpop.permute.xlu0 %3627 }
  0xca   :  { %3952 = vperm.xlu1 %13612, %v3290_v15   ;;  %3947 = vperm.xlu0 %13611, %v3289_v18   ;;  %v3299_v15 = vld [vmem:[%s18358_s1 + $0x370] sm:$0xff] }
  0xcb   :  { %12406 = vmatmul.mubr.msk.bf16.gmra.mrb[92].mxu0 %vm979_vm0, %v13664_v19 }
  0xcc   :  { %12409 = vmatprep.mubr.msk.bf16.mxu0 %vm979_vm0, %v13665_v24  ;;  %v3302_v24 = vld [vmem:[%s18358_s1 + $0x388] sm:$0xff] }
  0xcd   :  { %v14535_v29 = vpop.permute.xlu1 %3642  ;;  %v14537_v32 = vpop.permute.xlu0 %3637 }
  0xce   :  { %3962 = vperm.xlu1 %13612, %v3292_v27   ;;  %3957 = vperm.xlu0 %13611, %v3291_v28   ;;  %v3301_v27 = vld [vmem:[%s18358_s1 + $0x380] sm:$0xff]  ;;  %v13670_v28 = vld [vmem:[%s18360_s0 + $0x1a8] sm:$0xff]  }
  0xd1   :  { %v14549_v41 = vpop.permute.xlu1 %3652  ;;  %v14551_v44 = vpop.permute.xlu0 %3647 }
  0xd2   :  { %18370 = vst [vmem:[#allocation2_spill] sm:$0xff] %v14549_v41  ;;  %3972 = vperm.xlu1 %13612, %v3294_v33   ;;  %3967 = vperm.xlu0 %13611, %v3293_v34  }
  0xd3   :  { %12410 = vmatmul.mubr.msk.bf16.gmra.mrb[96].mxu0 %vm979_vm0, %v13666_v37  ;;  %v13671_v37 = vld [vmem:[%s18360_s0 + $0x1b0] sm:$0xff]  }
  0xd4   :  { %12413 = vmatprep.mubr.msk.bf16.mxu0 %vm979_vm0, %v13667_v47  ;;  %v3304_v47 = vld [vmem:[%s18358_s1 + $0x398] sm:$0xff] }
  0xd5   :  { %v14563_v56 = vpop.permute.xlu1 %3662  ;;  %v14565_v59 = vpop.permute.xlu0 %3657 }
  0xd6   :  { %3982 = vperm.xlu1 %13612, %v3296_v50   ;;  %3977 = vperm.xlu0 %13611, %v3295_v51   ;;  %v3303_v50 = vld [vmem:[%s18358_s1 + $0x390] sm:$0xff] }
  0xd9   :  { %v14577_v3 = vpop.permute.xlu1 %3672  ;;  %v14579_v8 = vpop.permute.xlu0 %3667 }
  0xda   :  { %18371 = vst [vmem:[#allocation3_spill] sm:$0xff] %v14577_v3  ;;  %18372 = vst [vmem:[#allocation4_spill] sm:$0xff] %v14579_v8  ;;  %3992 = vperm.xlu1 %13612, %v3298_v60   ;;  %3987 = vperm.xlu0 %13611, %v3297_v63   ;;  %v14627_v63 = vld [vmem:[%s18362_s10] ss:$0 sm:$0xff] }
  0xdb   :  { %12414 = vmatmul.mubr.msk.bf16.gmra.mrb[100].mxu0 %vm979_vm0, %v13668_v2 }
  0xdc   :  { %12417 = vmatprep.mubr.msk.bf16.mxu0 %vm979_vm0, %v13669_v9  ;;  %v3306_v9 = vld [vmem:[%s18358_s1 + $0x3a8] sm:$0xff] }
  0xdd   :  { %v14591_v18 = vpop.permute.xlu1 %3682  ;;  %v14593_v19 = vpop.permute.xlu0 %3677 }
  0xde   :  { %18373 = vst [vmem:[#allocation5_spill] sm:$0xff] %v14591_v18  ;;  %18374 = vst [vmem:[#allocation6_spill] sm:$0xff] %v14593_v19  ;;  %4002 = vperm.xlu1 %13612, %v3300_v12   ;;  %3997 = vperm.xlu0 %13611, %v3299_v15   ;;  %v3305_v12 = vld [vmem:[%s18358_s1 + $0x3a0] sm:$0xff] }
  0xe1   :  { %v14605_v33 = vpop.permute.xlu1 %3692  ;;  %v14607_v34 = vpop.permute.xlu0 %3687 }
  0xe2   :  { %18375 = vst [vmem:[#allocation7_spill] sm:$0xff] %v14605_v33  ;;  %18376 = vst [vmem:[#allocation8_spill] sm:$0xff] %v14607_v34  ;;  %4012 = vperm.xlu1 %13612, %v3302_v24   ;;  %4007 = vperm.xlu0 %13611, %v3301_v27   ;;  %v13672_v24 = vld [vmem:[%s18360_s0 + $0x1b8] sm:$0xff]  }
  0xe3   :  { %12418 = vmatmul.mubr.msk.bf16.gmra.mrb[104].mxu0 %vm979_vm0, %v13670_v28 }
  0xe4   :  { %12421 = vmatprep.mubr.msk.bf16.mxu0 %vm979_vm0, %v13671_v37 }
  0xe5   :  { %v14619_v51 = vpop.permute.xlu1 %3702  ;;  %v14621_v60 = vpop.permute.xlu0 %3697 }
  0xe6   :  { %18377 = vst [vmem:[#allocation9_spill] sm:$0xff] %v14619_v51  ;;  %18378 = vst [vmem:[#allocation10_spill] sm:$0xff] %v14621_v60  ;;  %4022 = vperm.xlu1 %13612, %v3304_v47   ;;  %4017 = vperm.xlu0 %13611, %v3303_v50   ;;  %v12315_v2 = vpop.f32.mrb[0].mxu0  ;;  %v13673_v47 = vld [vmem:[%s18360_s0 + $0x1c0] sm:$0xff]  }
  0xe7   :  { %v1398_v15 = vpop.f32.mrb[1].mxu0  ;;  %v1407_v27 = vadd.f32 %v12315_v2, %v14627_v63  ;;  %v3308_v2 = vld [vmem:[%s18358_s1 + $0x3b8] sm:$0xff] }
  0xe8   :  { %v1399_v50 = vadd.f32 %v14627_v63, %v1398_v15  ;;  %v12316_v33 = vpop.f32.mrb[2].mxu0 }
  0xe9   :  { %v14639_v28 = vpop.permute.xlu1 %3712  ;;  %v14641_v37 = vpop.permute.xlu0 %3707  ;;  %vm2423_vm2 = vcmp.ge.f32.partialorder %v1407_v27, 0.0  ;;  %v2679_v34 = vmul.f32 0.2, %v1407_v27  ;;  %v1410_v60 = vadd.f32 %v12316_v33, %v14627_v63  ;;  %v3310_v33 = vld [vmem:[%s18358_s1 + $0x3c8] sm:$0xff] }
  0xea   :  { %18379 = vst [vmem:[#allocation11_spill] sm:$0xff] %v14639_v28  ;;  %18380 = vst [vmem:[#allocation12_spill] sm:$0xff] %v14641_v37  ;;  %4032 = vperm.xlu1 %13612, %v3306_v9   ;;  %4027 = vperm.xlu0 %13611, %v3305_v12   ;;  %v1401_v51 = vpop.f32.mrb[3].mxu0  ;;  %v3307_v28 = vld [vmem:[%s18358_s1 + $0x3b0] sm:$0xff]  ;;  %vm2421_vm3 = vcmp.ge.f32.partialorder %v1399_v50, 0.0 }
  0xeb   :  { %v2677_v37 = vmul.f32 0.2, %v1399_v50  ;;  %12422 = vmatmul.mubr.msk.bf16.gmra.mrb[108].mxu0 %vm979_vm0, %v13672_v24  ;;  %v1402_v9 = vadd.f32 %v14627_v63, %v1401_v51  ;;  %vm2424_vm4 = vcmp.ge.f32.partialorder %v1410_v60, 0.0  ;;  %v2680_v3 = vmul.f32 0.2, %v1410_v60  ;;  %v3309_v51 = vld [vmem:[%s18358_s1 + $0x3c0] sm:$0xff] }
  0xec   :  { %12425 = vmatprep.mubr.msk.bf16.mxu0 %vm979_vm0, %v13673_v47  ;;  %v2935_v8 = vsel %vm2423_vm2, %v1407_v27, %v2679_v34  ;;  %v13674_v34 = vld [vmem:[%s18360_s0 + $0x1c8] sm:$0xff]  }
  0xed   :  { %v14656_v12 = vpop.permute.xlu1 %3722  ;;  %v14658_v15 = vpop.permute.xlu0 %3717  ;;  %vm2422_vm5 = vcmp.ge.f32.partialorder %v1402_v9, 0.0  ;;  %v2678_v18 = vmul.f32 0.2, %v1402_v9  ;;  %v2933_v19 = vsel %vm2421_vm3, %v1399_v50, %v2677_v37  ;;  %v2936_v24 = vsel %vm2424_vm4, %v1410_v60, %v2680_v3  ;;  %v13675_v3 = vld [vmem:[%s18360_s0 + $0x1d0] sm:$0xff]  }
  0xee   :  { %18381 = vst [vmem:[#allocation13_spill] sm:$0xff] %v14656_v12  ;;  %18382 = vst [vmem:[#allocation14_spill] sm:$0xff] %v14658_v15  ;;  %4042 = vperm.xlu1 %13612, %v3308_v2   ;;  %4037 = vperm.xlu0 %13611, %v3307_v28   ;;  %v12319_v41 = vpop.f32.mrb[4].mxu0  ;;  %v14671_v28 = vmul.f32 %v14390_v21, %v2935_v8  ;;  %v14674_v37 = vmul.f32 %v14388_v20, %v2936_v24  ;;  %v3312_v24 = vld [vmem:[%s18358_s1 + $0x3d8] sm:$0xff] }
  0xef   :  { %v1414_v12 = vpop.f32.mrb[5].mxu0  ;;  %v2934_v27 = vsel %vm2422_vm5, %v1402_v9, %v2678_v18  ;;  %v1423_v47 = vadd.f32 %v12319_v41, %v14627_v63  ;;  %v14685_v60 = vmul.f32 %v14379_v17, %v2933_v19 }
  0xf0   :  { %v14688_v18 = vmul.f32 %v14377_v16, %v2934_v27  ;;  %v1415_v21 = vadd.f32 %v14627_v63, %v1414_v12  ;;  %v12320_v20 = vpop.f32.mrb[6].mxu0  ;;  %v3311_v16 = vld [vmem:[%s18358_s1 + $0x3d0] sm:$0xff] }
  0xf1   :  { %v14677_v50 = vpop.permute.xlu1 %3732  ;;  %v14679_v2 = vpop.permute.xlu0 %3727  ;;  %vm2427_vm6 = vcmp.ge.f32.partialorder %v1423_v47, 0.0  ;;  %v2683_v8 = vmul.f32 0.2, %v1423_v47  ;;  %v1426_v12 = vadd.f32 %v12320_v20, %v14627_v63 }
  0xf2   :  { %18383 = vst [vmem:[#allocation15_spill] sm:$0xff] %v14677_v50  ;;  %18384 = vst [vmem:[#allocation16_spill] sm:$0xff] %v14679_v2  ;;  %4052 = vperm.xlu1 %13612, %v3310_v33   ;;  %4047 = vperm.xlu0 %13611, %v3309_v51   ;;  %v1417_v9 = vpop.f32.mrb[7].mxu0  ;;  %vm2425_vm7 = vcmp.ge.f32.partialorder %v1415_v21, 0.0  ;;  %v2681_v19 = vmul.f32 0.2, %v1415_v21 }
  0xf3   :  { %12426 = vmatmul.mubr.msk.bf16.gmra.mrb[112].mxu0 %vm979_vm0, %v13674_v34  ;;  %v1418_v33 = vadd.f32 %v14627_v63, %v1417_v9  ;;  %vm2428_vm8 = vcmp.ge.f32.partialorder %v1426_v12, 0.0  ;;  %v2684_v41 = vmul.f32 0.2, %v1426_v12  ;;  %v2939_v50 = vsel %vm2427_vm6, %v1423_v47, %v2683_v8  ;;  %v3314_v34 = vld [vmem:[%s18358_s1 + $0x3e8] sm:$0xff]  ;;  %v3313_v9 = vld [vmem:[%s18358_s1 + $0x3e0] sm:$0xff]  ;;  %v13676_v47 = vld [vmem:[%s18360_s0 + $0x1d8] sm:$0xff]  }
  0xf4   :  { %12429 = vmatprep.mubr.msk.bf16.mxu0 %vm979_vm0, %v13675_v3  ;;  %v2937_v2 = vsel %vm2425_vm7, %v1415_v21, %v2681_v19  ;;  %v14721_v21 = vmul.f32 %v14418_v31, %v2939_v50 }
  0xf5   :  { %v14704_v51 = vpop.permute.xlu1 %3742  ;;  %v14706_v27 = vpop.permute.xlu0 %3737  ;;  %vm2426_vm9 = vcmp.ge.f32.partialorder %v1418_v33, 0.0  ;;  %v2682_v17 = vmul.f32 0.2, %v1418_v33 }
  0xf6   :  { %18385 = vst [vmem:[#allocation17_spill] sm:$0xff] %v14704_v51  ;;  %18386 = vst [vmem:[#allocation18_spill] sm:$0xff] %v14706_v27  ;;  %4062 = vperm.xlu1 %13612, %v3312_v24   ;;  %4057 = vperm.xlu0 %13611, %v3311_v16   ;;  %v12323_v20 = vpop.f32.mrb[8].mxu0  ;;  %v2940_v51 = vsel %vm2428_vm8, %v1426_v12, %v2684_v41  ;;  %v13677_v41 = vld [vmem:[%s18360_s0 + $0x1e0] sm:$0xff]   ;;  %v14735_v12 = vmul.f32 %v14404_v26, %v2937_v2  ;;  %v3316_v26 = vld [vmem:[%s18358_s1 + $0x3f8] sm:$0xff] }
  0xf7   :  { %v1439_v3 = vadd.f32 %v12323_v20, %v14627_v63  ;;  %v1430_v27 = vpop.f32.mrb[9].mxu0  ;;  %v2938_v8 = vsel %vm2426_vm9, %v1418_v33, %v2682_v17  ;;  %v14724_v24 = vmul.f32 %v14416_v30, %v2940_v51  ;;  %vm4999_vm9 = vcmask 64512  }
  0xf8   :  { %v1431_v16 = vadd.f32 %v14627_v63, %v1430_v27  ;;  %v14738_v17 = vmul.f32 %v14402_v25, %v2938_v8  ;;  %v12324_v30 = vpop.f32.mrb[10].mxu0  ;;  %v3315_v25 = vld [vmem:[%s18358_s1 + $0x3f0] sm:$0xff] }
  0xf9   :  { %v14727_v19 = vpop.permute.xlu1 %3752  ;;  %v14729_v15 = vpop.permute.xlu0 %3747  ;;  %vm2431_vm10 = vcmp.ge.f32.partialorder %v1439_v3, 0.0  ;;  %v2687_v31 = vmul.f32 0.2, %v1439_v3  ;;  %v1442_v51 = vadd.f32 %v12324_v30, %v14627_v63 }
  0xfa   :  { %18387 = vst [vmem:[#allocation19_spill] sm:$0xff] %v14727_v19  ;;  %18388 = vst [vmem:[#allocation20_spill] sm:$0xff] %v14729_v15  ;;  %4072 = vperm.xlu1 %13612, %v3314_v34   ;;  %4067 = vperm.xlu0 %13611, %v3313_v9   ;;  %vm2429_vm11 = vcmp.ge.f32.partialorder %v1431_v16, 0.0  ;;  %v2685_v33 = vmul.f32 0.2, %v1431_v16  ;;  %v1433_v27 = vpop.f32.mrb[11].mxu0 }
  0xfb   :  { %v1434_v20 = vadd.f32 %v14627_v63, %v1433_v27  ;;  %12430 = vmatmul.mubr.msk.bf16.gmra.mrb[116].mxu0 %vm979_vm0, %v13676_v47  ;;  %v2943_v34 = vsel %vm2431_vm10, %v1439_v3, %v2687_v31  ;;  %vm2432_vm12 = vcmp.ge.f32.partialorder %v1442_v51, 0.0  ;;  %v2688_v9 = vmul.f32 0.2, %v1442_v51  ;;  %v3318_v47 = vld [vmem:[%s18358_s1 + $0x408] sm:$0xff]  ;;  %v3317_v3 = vld [vmem:[%s18358_s1 + $0x400] sm:$0xff] }
  0xfc   :  { %12433 = vmatprep.mubr.msk.bf16.mxu0 %vm979_vm0, %v13677_v41  ;;  %v2941_v50 = vsel %vm2429_vm11, %v1431_v16, %v2685_v33  ;;  %v14765_v31 = vmul.f32 %v14453_v46, %v2943_v34 }
  0xfd   :  { %v14753_v8 = vpop.permute.xlu1 %3762  ;;  %v14755_v30 = vpop.permute.xlu0 %3757  ;;  %vm2430_vm13 = vcmp.ge.f32.partialorder %v1434_v20, 0.0  ;;  %v2686_v19 = vmul.f32 0.2, %v1434_v20  ;;  %v2944_v15 = vsel %vm2432_vm12, %v1442_v51, %v2688_v9  ;;  %v13678_v51 = vld [vmem:[%s18360_s0 + $0x1e8] sm:$0xff]   ;;  %v3320_v9 = vld [vmem:[%s18358_s1 + $0x418] sm:$0xff] }
  0xfe   :  { %18389 = vst [vmem:[#allocation21_spill] sm:$0xff] %v14753_v8  ;;  %18390 = vst [vmem:[#allocation22_spill] sm:$0xff] %v14755_v30  ;;  %4082 = vperm.xlu1 %13612, %v3316_v26   ;;  %4077 = vperm.xlu0 %13611, %v3315_v25   ;;  %v12327_v2 = vpop.f32.mrb[12].mxu0  ;;  %v14768_v41 = vmul.f32 %v14451_v45, %v2944_v15  ;;  %v14775_v26 = vmul.f32 %v14432_v36, %v2941_v50  ;;  %v13679_v15 = vld [vmem:[%s18360_s0 + $0x1f0] sm:$0xff]  }
  0xff   :  { %v2942_v16 = vsel %vm2430_vm13, %v1434_v20, %v2686_v19  ;;  %v1455_v33 = vadd.f32 %v12327_v2, %v14627_v63  ;;  %v1446_v27 = vpop.f32.mrb[13].mxu0 }
 0x100   :  { %v14778_v25 = vmul.f32 %v14430_v35, %v2942_v16  ;;  %v1447_v46 = vadd.f32 %v14627_v63, %v1446_v27  ;;  %v12328_v2 = vpop.f32.mrb[14].mxu0  ;;  %v3319_v16 = vld [vmem:[%s18358_s1 + $0x410] sm:$0xff] }
 0x101   :  { %v14781_v34 = vpop.permute.xlu1 %3772  ;;  %v14783_v45 = vpop.permute.xlu0 %3767  ;;  %vm2435_vm14 = vcmp.ge.f32.partialorder %v1455_v33, 0.0  ;;  %v2691_v19 = vmul.f32 0.2, %v1455_v33  ;;  %v1458_v50 = vadd.f32 %v12328_v2, %v14627_v63 }
 0x102   :  { %18391 = vst [vmem:[#allocation23_spill] sm:$0xff] %v14781_v34  ;;  %18392 = vst [vmem:[#allocation24_spill] sm:$0xff] %v14783_v45  ;;  %4092 = vperm.xlu1 %13612, %v3318_v47   ;;  %4087 = vperm.xlu0 %13611, %v3317_v3   ;;  %vm2433_vm15 = vcmp.ge.f32.partialorder %v1447_v46, 0.0  ;;  %v2689_v35 = vmul.f32 0.2, %v1447_v46  ;;  %v1449_v20 = vpop.f32.mrb[15].mxu0 }
 0x103   :  { %v1450_v3 = vadd.f32 %v14627_v63, %v1449_v20  ;;  %12434 = vmatmul.mubr.msk.bf16.gmra.mrb[120].mxu0 %vm979_vm0, %v13678_v51  ;;  %v2947_v27 = vsel %vm2435_vm14, %v1455_v33, %v2691_v19  ;;  %vm2436_vm2 = vcmp.ge.f32.partialorder %v1458_v50, 0.0  ;;  %v2692_v36 = vmul.f32 0.2, %v1458_v50  ;;  %v3322_v51 = vld [vmem:[%s18358_s1 + $0x428] sm:$0xff]  ;;  %v3321_v33 = vld [vmem:[%s18358_s1 + $0x420] sm:$0xff] }
 0x104   :  { %12437 = vmatprep.mubr.msk.bf16.mxu0 %vm979_vm0, %v13679_v15  ;;  %v2945_v45 = vsel %vm2433_vm15, %v1447_v46, %v2689_v35  ;;  %v14813_v19 = vmul.f32 %v14481_v62, %v2947_v27  ;;  %v3324_v27 = vld [vmem:[%s18358_s1 + $0x438] sm:$0xff] }
 0x105   :  { %v14801_v2 = vpop.permute.xlu1 %3782  ;;  %v14803_v34 = vpop.permute.xlu0 %3777  ;;  %vm2434_vm3 = vcmp.ge.f32.partialorder %v1450_v3, 0.0  ;;  %v2690_v8 = vmul.f32 0.2, %v1450_v3  ;;  %v2948_v30 = vsel %vm2436_vm2, %v1458_v50, %v2692_v36  ;;  %v13680_v36 = vld [vmem:[%s18360_s0 + $0x1f8] sm:$0xff]   ;;  %v14823_v50 = vmul.f32 %v14467_v55, %v2945_v45 }
 0x106   :  { %18393 = vst [vmem:[#allocation25_spill] sm:$0xff] %v14801_v2  ;;  %18394 = vst [vmem:[#allocation26_spill] sm:$0xff] %v14803_v34  ;;  %4102 = vperm.xlu1 %13612, %v3320_v9   ;;  %4097 = vperm.xlu0 %13611, %v3319_v16   ;;  %v12331_v47 = vpop.f32.mrb[16].mxu0  ;;  %v14816_v15 = vmul.f32 %v14479_v61, %v2948_v30 }
 0x107   :  { %v2946_v46 = vsel %vm2434_vm3, %v1450_v3, %v2690_v8  ;;  %v1471_v35 = vadd.f32 %v12331_v47, %v14627_v63  ;;  %v1462_v20 = vpop.f32.mrb[17].mxu0  ;;  %v13681_v8 = vld [vmem:[%s18360_s0 + $0x200] sm:$0xff]  }
 0x108   :  { %v14826_v9 = vmul.f32 %v14465_v54, %v2946_v46  ;;  %v1463_v62 = vadd.f32 %v14627_v63, %v1462_v20  ;;  %v12332_v47 = vpop.f32.mrb[18].mxu0  ;;  %v3323_v46 = vld [vmem:[%s18358_s1 + $0x430] sm:$0xff] }
 0x109   :  { %v14829_v16 = vpop.permute.xlu1 %3792  ;;  %v14831_v61 = vpop.permute.xlu0 %3787  ;;  %vm2439_vm4 = vcmp.ge.f32.partialorder %v1471_v35, 0.0  ;;  %v2695_v30 = vmul.f32 0.2, %v1471_v35  ;;  %v1474_v45 = vadd.f32 %v12332_v47, %v14627_v63 }
 0x10a   :  { %18395 = vst [vmem:[#allocation27_spill] sm:$0xff] %v14829_v16  ;;  %18396 = vst [vmem:[#allocation28_spill] sm:$0xff] %v14831_v61  ;;  %4112 = vperm.xlu1 %13612, %v3322_v51   ;;  %4107 = vperm.xlu0 %13611, %v3321_v33   ;;  %vm2437_vm5 = vcmp.ge.f32.partialorder %v1463_v62, 0.0  ;;  %v2693_v54 = vmul.f32 0.2, %v1463_v62  ;;  %v1465_v3 = vpop.f32.mrb[19].mxu0 }
 0x10b   :  { %v1466_v33 = vadd.f32 %v14627_v63, %v1465_v3  ;;  %12438 = vmatmul.mubr.msk.bf16.gmra.mrb[124].mxu0 %vm979_vm0, %v13680_v36  ;;  %v2951_v20 = vsel %vm2439_vm4, %v1471_v35, %v2695_v30  ;;  %vm2440_vm6 = vcmp.ge.f32.partialorder %v1474_v45, 0.0  ;;  %v2696_v55 = vmul.f32 0.2, %v1474_v45  ;;  %v3326_v35 = vld [vmem:[%s18358_s1 + $0x448] sm:$0xff]  ;;  %v3325_v36 = vld [vmem:[%s18358_s1 + $0x440] sm:$0xff] }
 0x10c   :  { %12441 = vmatprep.mubr.msk.bf16.mxu0 %vm979_vm0, %v13681_v8  ;;  %v2949_v2 = vsel %vm2437_vm5, %v1463_v62, %v2693_v54  ;;  %v4743_v30 = vmul.f32 %v14260_v38, %v2951_v20  ;;  %v13682_v62 = vld [vmem:[%s18360_s0 + $0x208] sm:$0xff]  }
 0x10d   :  { %v14849_v47 = vpop.permute.xlu1 %3802  ;;  %v14851_v16 = vpop.permute.xlu0 %3797  ;;  %vm2438_vm7 = vcmp.ge.f32.partialorder %v1466_v33, 0.0  ;;  %v2694_v61 = vmul.f32 0.2, %v1466_v33  ;;  %v2952_v51 = vsel %vm2440_vm6, %v1474_v45, %v2696_v55 }
 0x10e   :  { %18397 = vst [vmem:[#allocation29_spill] sm:$0xff] %v14849_v47  ;;  %4122 = vperm.xlu1 %13612, %v3324_v27   ;;  %4117 = vperm.xlu0 %13611, %v3323_v46   ;;  %v12335_v34 = vpop.f32.mrb[20].mxu0  ;;  %v4744_v8 = vmul.f32 %v14271_v42, %v2952_v51  ;;  %v4741_v47 = vmul.f32 %v14262_v39, %v2949_v2  ;;  %v13683_v42 = vld [vmem:[%s18360_s0 + $0x210] sm:$0xff]   ;;  %v3328_v39 = vld [vmem:[%s18358_s1 + $0x458] sm:$0xff] }
 0x10f   :  { %v1487_v3 = vadd.f32 %v12335_v34, %v14627_v63  ;;  %v1478_v27 = vpop.f32.mrb[21].mxu0  ;;  %v2950_v55 = vsel %vm2438_vm7, %v1466_v33, %v2694_v61  ;;  %v3327_v2 = vld [vmem:[%s18358_s1 + $0x450] sm:$0xff] }
 0x110   :  { %v1479_v54 = vadd.f32 %v14627_v63, %v1478_v27  ;;  %v4742_v38 = vmul.f32 %v14273_v43, %v2950_v55  ;;  %v12336_v51 = vpop.f32.mrb[22].mxu0  ;;  %v4991_v61 = vpack.c.bf16 %v4744_v8, %v4743_v30 }
 0x111   :  { %v14868_v45 = vpop.permute.xlu1 %3812  ;;  %v14870_v46 = vpop.permute.xlu0 %3807  ;;  %vm2443_vm8 = vcmp.ge.f32.partialorder %v1487_v3, 0.0  ;;  %v2699_v34 = vmul.f32 0.2, %v1487_v3  ;;  %v1490_v20 = vadd.f32 %v12336_v51, %v14627_v63 }
 0x112   :  { %18398 = vst [vmem:[#allocation30_spill] sm:$0xff] %v14868_v45  ;;  %4132 = vperm.xlu1 %13612, %v3326_v35   ;;  %4127 = vperm.xlu0 %13611, %v3325_v36   ;;  %vm2441_vm10 = vcmp.ge.f32.partialorder %v1479_v54, 0.0  ;;  %v2697_v33 = vmul.f32 0.2, %v1479_v54  ;;  %v1481_v27 = vpop.f32.mrb[23].mxu0  ;;  %v4990_v45 = vpack.c.bf16 %v4742_v38, %v4741_v47  ;;  %v5150_v35 = vsel %vm5024_vm1, %v14440_v40, 0 }
 0x113   :  { %v1482_v43 = vadd.f32 %v14627_v63, %v1481_v27  ;;  %12442 = vmatmul.mubr.msk.bf16.gmra.mrb[128].mxu0 %vm979_vm0, %v13682_v62  ;;  %v2955_v36 = vsel %vm2443_vm8, %v1487_v3, %v2699_v34  ;;  %vm2444_vm11 = vcmp.ge.f32.partialorder %v1490_v20, 0.0  ;;  %v2700_v30 = vmul.f32 0.2, %v1490_v20  ;;  %v14898_v62 = vld [vmem:[%s18361_s3 + $0x8] sm:$0xf] }
 0x114   :  { %12571 = vmatprep.mubr.msk.bf16.mxu1 %vm4999_vm9, %v4990_v45  ;;  %12445 = vmatprep.mubr.msk.bf16.mxu0 %vm979_vm0, %v13683_v42  ;;  %v2953_v55 = vsel %vm2441_vm10, %v1479_v54, %v2697_v33  ;;  %v3330_v38 = vld [vmem:[%s18358_s1 + $0x468] sm:$0xff]  ;;  %v4747_v42 = vmul.f32 %v14301_v53, %v2955_v36 }
 0x115   :  { %v14890_v47 = vpop.permute.xlu1 %3822  ;;  %v14892_v8 = vpop.permute.xlu0 %3817  ;;  %vm2442_vm12 = vcmp.ge.f32.partialorder %v1482_v43, 0.0  ;;  %v2698_v40 = vmul.f32 0.2, %v1482_v43  ;;  %12572 = vmatmul.mubr.msk.bf16.vlgmr.msra.gmra.mrb[0].mxu1 %vm4999_vm9, %v4991_v61  ;;  %v2956_v3 = vsel %vm2444_vm11, %v1490_v20, %v2700_v30  ;;  %v3329_v61 = vld [vmem:[%s18358_s1 + $0x460] sm:$0xff]  ;;  %v13684_v20 = vld [vmem:[%s18360_s0 + $0x218] sm:$0xff]   ;;  %v4745_v27 = vmul.f32 %v14290_v49, %v2953_v55 }
 0x116   :  { %4142 = vperm.xlu1 %13612, %v3328_v39   ;;  %4137 = vperm.xlu0 %13611, %v3327_v2   ;;  %v12339_v45 = vpop.f32.mrb[24].mxu0  ;;  %v4748_v34 = vmul.f32 %v14299_v52, %v2956_v3  ;;  %v13685_v2 = vld [vmem:[%s18360_s0 + $0x220] sm:$0xff]   ;;  %v3332_v3 = vld [vmem:[%s18358_s1 + $0x478] sm:$0xff] }
 0x117   :  { %12588 = vmatpush3.bf16.msra.mxu1 %v5150_v35  ;;  %v2954_v51 = vsel %vm2442_vm12, %v1482_v43, %v2698_v40  ;;  %v1503_v54 = vadd.f32 %v12339_v45, %v14627_v63  ;;  %v1494_v33 = vpop.f32.mrb[25].mxu0 }
 0x118   :  { %13595 = vmatprep.subr.msk.bf16.mxu1 %vm5024_vm1, %v14898_v62  ;;  %v4746_v53 = vmul.f32 %v14288_v48, %v2954_v51  ;;  %v1495_v52 = vadd.f32 %v14627_v63, %v1494_v33  ;;  %v12340_v36 = vpop.f32.mrb[26].mxu0  ;;  %v4993_v30 = vpack.c.bf16 %v4748_v34, %v4747_v42 }
 0x119   :  { %v14919_v39 = vpop.permute.xlu1 %3832  ;;  %v14921_v43 = vpop.permute.xlu0 %3827  ;;  %vm2447_vm13 = vcmp.ge.f32.partialorder %v1503_v54, 0.0  ;;  %v2703_v35 = vmul.f32 0.2, %v1503_v54  ;;  %v1506_v49 = vadd.f32 %v12340_v36, %v14627_v63 }
 0x11a   :  { %4152 = vperm.xlu1 %13612, %v3330_v38   ;;  %vm2445_vm14 = vcmp.ge.f32.partialorder %v1495_v52, 0.0  ;;  %v2701_v40 = vmul.f32 0.2, %v1495_v52  ;;  %4147 = vperm.xlu0 %13611, %v3329_v61   ;;  %v1497_v48 = vpop.f32.mrb[27].mxu0  ;;  %v4992_v55 = vpack.c.bf16 %v4746_v53, %v4745_v27  ;;  %v3331_v38 = vld [vmem:[%s18358_s1 + $0x470] sm:$0xff]  ;;  %v3334_v53 = vld [vmem:[%s18358_s1 + $0x488] sm:$0xff] }
 0x11b   :  { %v1498_v45 = vadd.f32 %v14627_v63, %v1497_v48  ;;  %12446 = vmatmul.mubr.msk.bf16.gmra.mrb[132].mxu0 %vm979_vm0, %v13684_v20  ;;  %v2959_v42 = vsel %vm2447_vm13, %v1503_v54, %v2703_v35  ;;  %vm2448_vm15 = vcmp.ge.f32.partialorder %v1506_v49, 0.0  ;;  %v2704_v34 = vmul.f32 0.2, %v1506_v49 }
 0x11c   :  { %12575 = vmatprep.mubr.msk.bf16.mxu1 %vm4999_vm9, %v4992_v55  ;;  %12449 = vmatprep.mubr.msk.bf16.mxu0 %vm979_vm0, %v13685_v2  ;;  %v2957_v61 = vsel %vm2445_vm14, %v1495_v52, %v2701_v40  ;;  %v4751_v35 = vmul.f32 %v14334_v1, %v2959_v42  ;;  %v13686_v40 = vld [vmem:[%s18360_s0 + $0x228] sm:$0xff]  }
 0x11d   :  { %v14936_v51 = vpop.permute.xlu1 %3842  ;;  %v14938_v33 = vpop.permute.xlu0 %3837  ;;  %vm2446_vm2 = vcmp.ge.f32.partialorder %v1498_v45, 0.0  ;;  %v2702_v27 = vmul.f32 0.2, %v1498_v45  ;;  %12576 = vmatmul.mubr.msk.bf16.gmra.mrb[4].mxu1 %vm4999_vm9, %v4993_v30  ;;  %v2960_v20 = vsel %vm2448_vm15, %v1506_v49, %v2704_v34  ;;  %v3333_v30 = vld [vmem:[%s18358_s1 + $0x480] sm:$0xff]  ;;  %v4749_v49 = vmul.f32 %v14315_v58, %v2957_v61 }
 0x11e   :  { %4162 = vperm.xlu1 %13612, %v3332_v3   ;;  %4157 = vperm.xlu0 %13611, %v3331_v38   ;;  %v12343_v54 = vpop.f32.mrb[28].mxu0  ;;  %v4752_v36 = vmul.f32 %v14332_v0, %v2960_v20  ;;  %v3336_v20 = vld [vmem:[%s18358_s1 + $0x498] sm:$0xff] }
 0x11f   :  { %v2958_v48 = vsel %vm2446_vm2, %v1498_v45, %v2702_v27  ;;  %v1519_v2 = vadd.f32 %v12343_v54, %v14627_v63  ;;  %v1510_v52 = vpop.f32.mrb[29].mxu0  ;;  %v13687_v45 = vld [vmem:[%s18360_s0 + $0x230] sm:$0xff]  }
 0x120   :  { %v4750_v55 = vmul.f32 %v14313_v57, %v2958_v48  ;;  %v1511_v1 = vadd.f32 %v14627_v63, %v1510_v52  ;;  %v12344_v42 = vpop.f32.mrb[30].mxu0  ;;  %v4995_v34 = vpack.c.bf16 %v4752_v36, %v4751_v35 }
 0x121   :  { %v14958_v3 = vpop.permute.xlu1 %3852  ;;  %v14960_v0 = vpop.permute.xlu0 %3847  ;;  %vm2451_vm3 = vcmp.ge.f32.partialorder %v1519_v2, 0.0  ;;  %v2707_v38 = vmul.f32 0.2, %v1519_v2  ;;  %v1522_v58 = vadd.f32 %v12344_v42, %v14627_v63 }
 0x122   :  { %4172 = vperm.xlu1 %13612, %v3334_v53   ;;  %vm2449_vm4 = vcmp.ge.f32.partialorder %v1511_v1, 0.0  ;;  %v2705_v27 = vmul.f32 0.2, %v1511_v1  ;;  %4167 = vperm.xlu0 %13611, %v3333_v30   ;;  %v1513_v57 = vpop.f32.mrb[31].mxu0  ;;  %v4994_v61 = vpack.c.bf16 %v4750_v55, %v4749_v49  ;;  %v3335_v53 = vld [vmem:[%s18358_s1 + $0x490] sm:$0xff]  ;;  %v3338_v55 = vld [vmem:[%s18358_s1 + $0x4a8] sm:$0xff] }
 0x123   :  { %v1514_v54 = vadd.f32 %v14627_v63, %v1513_v57  ;;  %12450 = vmatmul.mubr.msk.bf16.gmra.mrb[136].mxu0 %vm979_vm0, %v13686_v40  ;;  %v2963_v35 = vsel %vm2451_vm3, %v1519_v2, %v2707_v38  ;;  %vm2452_vm5 = vcmp.ge.f32.partialorder %v1522_v58, 0.0  ;;  %v2708_v36 = vmul.f32 0.2, %v1522_v58 }
 0x124   :  { %12579 = vmatprep.mubr.msk.bf16.mxu1 %vm4999_vm9, %v4994_v61  ;;  %12453 = vmatprep.mubr.msk.bf16.mxu0 %vm979_vm0, %v13687_v45  ;;  %v2961_v30 = vsel %vm2449_vm4, %v1511_v1, %v2705_v27  ;;  %v4755_v38 = vmul.f32 %v14362_v11, %v2963_v35  ;;  %v13688_v27 = vld [vmem:[%s18360_s0 + $0x238] sm:$0xff]  }
 0x125   :  { %v14975_v48 = vpop.permute.xlu1 %3862  ;;  %v14977_v52 = vpop.permute.xlu0 %3857  ;;  %vm2450_vm6 = vcmp.ge.f32.partialorder %v1514_v54, 0.0  ;;  %v2706_v49 = vmul.f32 0.2, %v1514_v54  ;;  %12580 = vmatmul.mubr.msk.bf16.gmra.mrb[8].mxu1 %vm4999_vm9, %v4995_v34  ;;  %v2964_v40 = vsel %vm2452_vm5, %v1522_v58, %v2708_v36  ;;  %v3337_v34 = vld [vmem:[%s18358_s1 + $0x4a0] sm:$0xff]  ;;  %v4753_v58 = vmul.f32 %v14351_v7, %v2961_v30 }
 0x126   :  { %4182 = vperm.xlu1 %13612, %v3336_v20   ;;  %4177 = vperm.xlu0 %13611, %v3335_v53   ;;  %v12347_v2 = vpop.f32.mrb[32].mxu0  ;;  %v4756_v42 = vmul.f32 %v14360_v10, %v2964_v40  ;;  %v3340_v40 = vld [vmem:[%s18358_s1 + $0x4b8] sm:$0xff] }
 0x127   :  { %v2962_v57 = vsel %vm2450_vm6, %v1514_v54, %v2706_v49  ;;  %v1535_v45 = vadd.f32 %v12347_v2, %v14627_v63  ;;  %v1526_v1 = vpop.f32.mrb[33].mxu0  ;;  %v13689_v54 = vld [vmem:[%s18360_s0 + $0x240] sm:$0xff]  }
 0x128   :  { %v4754_v61 = vmul.f32 %v14349_v6, %v2962_v57  ;;  %v1527_v11 = vadd.f32 %v14627_v63, %v1526_v1  ;;  %v12348_v35 = vpop.f32.mrb[34].mxu0  ;;  %v4997_v36 = vpack.c.bf16 %v4756_v42, %v4755_v38 }
 0x129   :  { %v14997_v20 = vpop.permute.xlu1 %3872  ;;  %v14999_v10 = vpop.permute.xlu0 %3867  ;;  %vm2455_vm7 = vcmp.ge.f32.partialorder %v1535_v45, 0.0  ;;  %v2711_v53 = vmul.f32 0.2, %v1535_v45  ;;  %v1538_v7 = vadd.f32 %v12348_v35, %v14627_v63 }
 0x12a   :  { %4192 = vperm.xlu1 %13612, %v3338_v55   ;;  %vm2453_vm8 = vcmp.ge.f32.partialorder %v1527_v11, 0.0  ;;  %v2709_v49 = vmul.f32 0.2, %v1527_v11  ;;  %4187 = vperm.xlu0 %13611, %v3337_v34   ;;  %v1529_v6 = vpop.f32.mrb[35].mxu0  ;;  %v4996_v30 = vpack.c.bf16 %v4754_v61, %v4753_v58  ;;  %v3339_v55 = vld [vmem:[%s18358_s1 + $0x4b0] sm:$0xff] }
 0x12b   :  { %v1530_v2 = vadd.f32 %v14627_v63, %v1529_v6  ;;  %12454 = vmatmul.mubr.msk.bf16.gmra.mrb[140].mxu0 %vm979_vm0, %v13688_v27  ;;  %v2967_v38 = vsel %vm2455_vm7, %v1535_v45, %v2711_v53  ;;  %vm2456_vm10 = vcmp.ge.f32.partialorder %v1538_v7, 0.0  ;;  %v2712_v42 = vmul.f32 0.2, %v1538_v7  ;;  %v3342_v53 = vld [vmem:[%s18358_s1 + $0x4c8] sm:$0xff] }
 0x12c   :  { %12583 = vmatprep.mubr.msk.bf16.mxu1 %vm4999_vm9, %v4996_v30  ;;  %12457 = vmatprep.mubr.msk.bf16.mxu0 %vm979_vm0, %v13689_v54  ;;  %v2965_v34 = vsel %vm2453_vm8, %v1527_v11, %v2709_v49  ;;  %v18399_v45 = vpack.c.bf16 %v14688_v18, %v14685_v60  ;;  %v15029_v54 = vmul.f32 %v14509_v14, %v2967_v38  ;;  %v3341_v60 = vld [vmem:[%s18358_s1 + $0x4c0] sm:$0xff]  ;;  %v13690_v18 = vld [vmem:[%s18360_s0 + $0x248] sm:$0xff]  }
 0x12d   :  { %v15014_v57 = vpop.permute.xlu1 %3882  ;;  %v15016_v1 = vpop.permute.xlu0 %3877  ;;  %vm2454_vm11 = vcmp.ge.f32.partialorder %v1530_v2, 0.0  ;;  %v2710_v58 = vmul.f32 0.2, %v1530_v2  ;;  %12584 = vmatmul.mubr.msk.bf16.gmra.mrb[12].mxu1 %vm4999_vm9, %v4997_v36  ;;  %v2968_v27 = vsel %vm2456_vm10, %v1538_v7, %v2712_v42  ;;  %v15042_v7 = vmul.f32 %v14495_v5, %v2965_v34  ;;  %v3344_v34 = vld [vmem:[%s18358_s1 + $0x4d8] sm:$0xff] }
 0x12e   :  { %4202 = vperm.xlu1 %13612, %v3340_v40   ;;  %4197 = vperm.xlu0 %13611, %v3339_v55   ;;  %v12351_v61 = vpop.f32.mrb[36].mxu0  ;;  %v15032_v11 = vmul.f32 %v14507_v13, %v2968_v27  ;;  %v13691_v40 = vld [vmem:[%s18360_s0 + $0x250] sm:$0xff]  }
 0x12f   :  { %12589 = vmatprep.mubr.msk.bf16.mxu1 %vm4999_vm9, %v18399_v45  ;;  %v2966_v35 = vsel %vm2454_vm11, %v1530_v2, %v2710_v58  ;;  %v1551_v36 = vadd.f32 %v12351_v61, %v14627_v63  ;;  %v1542_v49 = vpop.f32.mrb[37].mxu0  ;;  %v3343_v45 = vld [vmem:[%s18358_s1 + $0x4d0] sm:$0xff] }
 0x130   :  { %v15045_v14 = vmul.f32 %v14493_v4, %v2966_v35  ;;  %v1543_v13 = vadd.f32 %v14627_v63, %v1542_v49  ;;  %v12352_v5 = vpop.f32.mrb[38].mxu0 }
 0x131   :  { %v15048_v6 = vpop.permute.xlu1 %3892  ;;  %v15050_v30 = vpop.permute.xlu0 %3887  ;;  %vm2459_vm12 = vcmp.ge.f32.partialorder %v1551_v36, 0.0  ;;  %v2715_v55 = vmul.f32 0.2, %v1551_v36  ;;  %v1554_v38 = vadd.f32 %v12352_v5, %v14627_v63 }
 0x132   :  { %4212 = vperm.xlu1 %13612, %v3342_v53   ;;  %vm2457_vm13 = vcmp.ge.f32.partialorder %v1543_v13, 0.0  ;;  %v2713_v4 = vmul.f32 0.2, %v1543_v13  ;;  %4207 = vperm.xlu0 %13611, %v3341_v60   ;;  %v1545_v42 = vpop.f32.mrb[39].mxu0  ;;  %v5283_v60 = vsel %vm5024_vm1, %v14898_v62, 0  ;;  %v18401_v62 = vpack.c.bf16 %v14738_v17, %v14735_v12  ;;  %v3345_v12 = vld [vmem:[%s18358_s1 + $0x4e0] sm:$0xff] }
 0x133   :  { %v1546_v27 = vadd.f32 %v14627_v63, %v1545_v42  ;;  %12458 = vmatmul.mubr.msk.bf16.gmra.mrb[144].mxu0 %vm979_vm0, %v13690_v18  ;;  %v2971_v61 = vsel %vm2459_vm12, %v1551_v36, %v2715_v55  ;;  %vm2460_vm14 = vcmp.ge.f32.partialorder %v1554_v38, 0.0  ;;  %v2716_v53 = vmul.f32 0.2, %v1554_v38  ;;  %v15083_v36 = vld [vmem:[%s18361_s3 + $0xc] sm:$0xf]  ;;  %v13692_v17 = vld [vmem:[%s18360_s0 + $0x258] sm:$0xff]  }
 0x134   :  { %12461 = vmatprep.mubr.msk.bf16.mxu0 %vm979_vm0, %v13691_v40  ;;  %v2969_v5 = vsel %vm2457_vm13, %v1543_v13, %v2713_v4  ;;  %v18400_v42 = vpack.c.bf16 %v14674_v37, %v14671_v28  ;;  %v3346_v28 = vld [vmem:[%s18358_s1 + $0x4e8] sm:$0xff]  ;;  %v15093_v37 = vmul.f32 %v14537_v32, %v2971_v61 }
 0x135   :  { %v15068_v35 = vpop.permute.xlu1 %3902  ;;  %v15070_v49 = vpop.permute.xlu0 %3897  ;;  %vm2458_vm15 = vcmp.ge.f32.partialorder %v1546_v27, 0.0  ;;  %v2714_v18 = vmul.f32 0.2, %v1546_v27  ;;  %v2972_v55 = vsel %vm2460_vm14, %v1554_v38, %v2716_v53  ;;  %v13693_v53 = vld [vmem:[%s18360_s0 + $0x260] sm:$0xff]  }
 0x136   :  { %12590 = vmatmul.mubr.msk.bf16.vlgmr.msra.gmra.mrb[0].mxu1 %vm4999_vm9, %v18400_v42  ;;  %4222 = vperm.xlu1 %13612, %v3344_v34   ;;  %v12355_v13 = vpop.f32.mrb[40].mxu0  ;;  %v15096_v40 = vmul.f32 %v14535_v29, %v2972_v55  ;;  %v3348_v55 = vld [vmem:[%s18358_s1 + $0x4f8] sm:$0xff] }
 0x137   :  { %4217 = vperm.xlu0 %13611, %v3343_v45   ;;  %12593 = vmatprep.mubr.msk.bf16.mxu1 %vm4999_vm9, %v18401_v62  ;;  %v2970_v4 = vsel %vm2458_vm15, %v1546_v27, %v2714_v18  ;;  %v1567_v38 = vadd.f32 %v12355_v13, %v14627_v63  ;;  %v1558_v34 = vpop.f32.mrb[41].mxu0  ;;  %v15106_v45 = vmul.f32 %v14523_v23, %v2969_v5 }
 0x138   :  { %12606 = vmatpush3.bf16.msra.mxu1 %v5283_v60  ;;  %v15109_v32 = vmul.f32 %v14521_v22, %v2970_v4  ;;  %v1559_v29 = vadd.f32 %v14627_v63, %v1558_v34  ;;  %v12356_v23 = vpop.f32.mrb[42].mxu0 }
 0x139   :  { %v15112_v27 = vpop.permute.xlu1 %3912  ;;  %v15114_v61 = vpop.permute.xlu0 %3907  ;;  %13596 = vmatprep.subr.msk.bf16.mxu1 %vm5024_vm1, %v15083_v36  ;;  %vm2463_vm2 = vcmp.ge.f32.partialorder %v1567_v38, 0.0  ;;  %v2719_v60 = vmul.f32 0.2, %v1567_v38  ;;  %v1570_v18 = vadd.f32 %v12356_v23, %v14627_v63 }
 0x13a   :  { %4232 = vperm.xlu1 %13612, %v3346_v28   ;;  %vm2461_vm3 = vcmp.ge.f32.partialorder %v1559_v29, 0.0  ;;  %v2717_v5 = vmul.f32 0.2, %v1559_v29  ;;  %v1561_v42 = vpop.f32.mrb[43].mxu0  ;;  %v3347_v28 = vld [vmem:[%s18358_s1 + $0x4f0] sm:$0xff] }
 0x13b   :  { %4227 = vperm.xlu0 %13611, %v3345_v12   ;;  %v1562_v13 = vadd.f32 %v14627_v63, %v1561_v42  ;;  %12462 = vmatmul.mubr.msk.bf16.gmra.mrb[148].mxu0 %vm979_vm0, %v13692_v17  ;;  %v2975_v4 = vsel %vm2463_vm2, %v1567_v38, %v2719_v60  ;;  %vm2464_vm4 = vcmp.ge.f32.partialorder %v1570_v18, 0.0  ;;  %v2720_v34 = vmul.f32 0.2, %v1570_v18 }
 0x13c   :  { %12465 = vmatprep.mubr.msk.bf16.mxu0 %vm979_vm0, %v13693_v53  ;;  %v2973_v22 = vsel %vm2461_vm3, %v1559_v29, %v2717_v5  ;;  %v18402_v17 = vpack.c.bf16 %v14724_v24, %v14721_v21  ;;  %v18403_v38 = vpack.c.bf16 %v14778_v25, %v14775_v26  ;;  %v3350_v29 = vld [vmem:[%s18358_s1 + $0x508] sm:$0xff]  ;;  %v15152_v53 = vmul.f32 %v14565_v59, %v2975_v4  ;;  %v3349_v26 = vld [vmem:[%s18358_s1 + $0x500] sm:$0xff]  ;;  %v13695_v4 = vld [vmem:[%s18360_s0 + $0x270] sm:$0xff]  }
 0x13d   :  { %v15134_v12 = vpop.permute.xlu1 %3922  ;;  %v15136_v23 = vpop.permute.xlu0 %3917  ;;  %vm2462_vm5 = vcmp.ge.f32.partialorder %v1562_v13, 0.0  ;;  %v2718_v62 = vmul.f32 0.2, %v1562_v13  ;;  %v2976_v42 = vsel %vm2464_vm4, %v1570_v18, %v2720_v34  ;;  %v13694_v25 = vld [vmem:[%s18360_s0 + $0x268] sm:$0xff]   ;;  %v18404_v59 = vld [vmem:[#allocation2_spill] sm:$0xff] }
 0x13e   :  { %12594 = vmatmul.mubr.msk.bf16.gmra.mrb[4].mxu1 %vm4999_vm9, %v18402_v17  ;;  %4242 = vperm.xlu1 %13612, %v3348_v55   ;;  %v12359_v60 = vpop.f32.mrb[44].mxu0  ;;  %v15155_v21 = vmul.f32 %v14563_v56, %v2976_v42  ;;  %v15165_v55 = vmul.f32 %v14551_v44, %v2973_v22 }
 0x13f   :  { %4237 = vperm.xlu0 %13611, %v3347_v28   ;;  %12597 = vmatprep.mubr.msk.bf16.mxu1 %vm4999_vm9, %v18403_v38  ;;  %v2974_v24 = vsel %vm2462_vm5, %v1562_v13, %v2718_v62  ;;  %v1583_v5 = vadd.f32 %v12359_v60, %v14627_v63  ;;  %v1574_v18 = vpop.f32.mrb[45].mxu0  ;;  %v3352_v60 = vld [vmem:[%s18358_s1 + $0x518] sm:$0xff] }
 0x140   :  { %v15168_v28 = vmul.f32 %v18404_v59, %v2974_v24  ;;  %v1575_v56 = vadd.f32 %v14627_v63, %v1574_v18  ;;  %v12360_v17 = vpop.f32.mrb[46].mxu0 }
 0x141   :  { %v15171_v62 = vpop.permute.xlu1 %3932  ;;  %v15173_v13 = vpop.permute.xlu0 %3927  ;;  %vm2467_vm6 = vcmp.ge.f32.partialorder %v1583_v5, 0.0  ;;  %v2723_v34 = vmul.f32 0.2, %v1583_v5  ;;  %v1586_v42 = vadd.f32 %v12360_v17, %v14627_v63 }
 0x142   :  { %18405 = vst [vmem:[#allocation2_spill] sm:$0xff] %v15171_v62  ;;  %4252 = vperm.xlu1 %13612, %v3350_v29   ;;  %vm2465_vm7 = vcmp.ge.f32.partialorder %v1575_v56, 0.0  ;;  %v2721_v22 = vmul.f32 0.2, %v1575_v56  ;;  %v1577_v38 = vpop.f32.mrb[47].mxu0  ;;  %v3351_v29 = vld [vmem:[%s18358_s1 + $0x510] sm:$0xff] }
 0x143   :  { %4247 = vperm.xlu0 %13611, %v3349_v26   ;;  %v1578_v18 = vadd.f32 %v14627_v63, %v1577_v38  ;;  %12466 = vmatmul.mubr.msk.bf16.gmra.mrb[152].mxu0 %vm979_vm0, %v13694_v25  ;;  %v2979_v59 = vsel %vm2467_vm6, %v1583_v5, %v2723_v34  ;;  %vm2468_vm8 = vcmp.ge.f32.partialorder %v1586_v42, 0.0  ;;  %v2724_v17 = vmul.f32 0.2, %v1586_v42  ;;  %v18409_v38 = vld [vmem:[#allocation5_spill] sm:$0xff] }
 0x144   :  { %12469 = vmatprep.mubr.msk.bf16.mxu0 %vm979_vm0, %v13695_v4  ;;  %v2977_v2 = vsel %vm2465_vm7, %v1575_v56, %v2721_v22  ;;  %v18406_v63 = vpack.c.bf16 %v14768_v41, %v14765_v31  ;;  %v18407_v5 = vpack.c.bf16 %v14826_v9, %v14823_v50  ;;  %v3354_v56 = vld [vmem:[%s18358_s1 + $0x528] sm:$0xff]  ;;  %v18408_v4 = vld [vmem:[#allocation6_spill] sm:$0xff] }
 0x145   :  { %v15191_v26 = vpop.permute.xlu1 %3942  ;;  %v15193_v44 = vpop.permute.xlu0 %3937  ;;  %vm2466_vm10 = vcmp.ge.f32.partialorder %v1578_v18, 0.0  ;;  %v2722_v24 = vmul.f32 0.2, %v1578_v18  ;;  %v2980_v25 = vsel %vm2468_vm8, %v1586_v42, %v2724_v17  ;;  %v15209_v22 = vmul.f32 %v18408_v4, %v2979_v59  ;;  %v15217_v42 = vld [vmem:[%s18362_s10] ss:$0 sm:$0xff]  ;;  %v18410_v59 = vld [vmem:[#allocation4_spill] sm:$0xff] }
 0x146   :  { %12598 = vmatmul.mubr.msk.bf16.gmra.mrb[8].mxu1 %vm4999_vm9, %v18406_v63  ;;  %4262 = vperm.xlu1 %13612, %v3352_v60   ;;  %v12363_v34 = vpop.f32.mrb[48].mxu0  ;;  %v15212_v31 = vmul.f32 %v18409_v38, %v2980_v25  ;;  %v3353_v60 = vld [vmem:[%s18358_s1 + $0x520] sm:$0xff]  ;;  %v15227_v17 = vmul.f32 %v18410_v59, %v2977_v2 }
 0x147   :  { %4257 = vperm.xlu0 %13611, %v3351_v29   ;;  %12601 = vmatprep.mubr.msk.bf16.mxu1 %vm4999_vm9, %v18407_v5  ;;  %v2978_v41 = vsel %vm2466_vm10, %v1578_v18, %v2722_v24  ;;  %v1599_v50 = vadd.f32 %v15217_v42, %v12363_v34  ;;  %v1590_v9 = vpop.f32.mrb[49].mxu0  ;;  %v13696_v29 = vld [vmem:[%s18360_s0 + $0x278] sm:$0xff]   ;;  %v18411_v24 = vld [vmem:[#allocation3_spill] sm:$0xff]  ;;  %v13697_v34 = vld [vmem:[%s18360_s0 + $0x280] sm:$0xff]  }
 0x148   :  { %v15230_v18 = vmul.f32 %v18411_v24, %v2978_v41  ;;  %v1591_v63 = vadd.f32 %v15217_v42, %v1590_v9  ;;  %v12364_v38 = vpop.f32.mrb[50].mxu0  ;;  %v3356_v24 = vld [vmem:[%s18358_s1 + $0x538] sm:$0xff] }
 0x149   :  { %v15233_v25 = vpop.permute.xlu1 %3952  ;;  %v15235_v5 = vpop.permute.xlu0 %3947  ;;  %vm2471_vm11 = vcmp.ge.f32.partialorder %v1599_v50, 0.0  ;;  %v2727_v4 = vmul.f32 0.2, %v1599_v50  ;;  %v1602_v59 = vadd.f32 %v15217_v42, %v12364_v38 }
 0x14a   :  { %18412 = vst [vmem:[#allocation6_spill] sm:$0xff] %v15233_v25  ;;  %18413 = vst [vmem:[#allocation5_spill] sm:$0xff] %v15235_v5  ;;  %4272 = vperm.xlu1 %13612, %v3354_v56   ;;  %vm2469_vm12 = vcmp.ge.f32.partialorder %v1591_v63, 0.0  ;;  %v2725_v41 = vmul.f32 0.2, %v1591_v63  ;;  %v1593_v9 = vpop.f32.mrb[51].mxu0 }
 0x14b   :  { %4267 = vperm.xlu0 %13611, %v3353_v60   ;;  %v1594_v25 = vadd.f32 %v15217_v42, %v1593_v9  ;;  %12470 = vmatmul.mubr.msk.bf16.gmra.mrb[156].mxu0 %vm979_vm0, %v13696_v29  ;;  %v3355_v56 = vld [vmem:[%s18358_s1 + $0x530] sm:$0xff]  ;;  %v2983_v2 = vsel %vm2471_vm11, %v1599_v50, %v2727_v4  ;;  %vm2472_vm13 = vcmp.ge.f32.partialorder %v1602_v59, 0.0  ;;  %v2728_v38 = vmul.f32 0.2, %v1602_v59 }
 0x14c   :  { %12473 = vmatprep.mubr.msk.bf16.mxu0 %vm979_vm0, %v13697_v34  ;;  %v2981_v62 = vsel %vm2469_vm12, %v1591_v63, %v2725_v41  ;;  %v18416_v29 = vpack.c.bf16 %v14816_v15, %v14813_v19  ;;  %v18417_v50 = vpack.c.bf16 %v15045_v14, %v15042_v7  ;;  %v3358_v63 = vld [vmem:[%s18358_s1 + $0x548] sm:$0xff]  ;;  %v18418_v34 = vld [vmem:[#allocation10_spill] sm:$0xff] }
 0x14d   :  { %v15253_v60 = vpop.permute.xlu1 %3962  ;;  %v15255_v5 = vpop.permute.xlu0 %3957  ;;  %vm2470_vm14 = vcmp.ge.f32.partialorder %v1594_v25, 0.0  ;;  %v2726_v58 = vmul.f32 0.2, %v1594_v25  ;;  %v2984_v9 = vsel %vm2472_vm13, %v1602_v59, %v2728_v38  ;;  %v15271_v41 = vmul.f32 %v18418_v34, %v2983_v2  ;;  %v3357_v7 = vld [vmem:[%s18358_s1 + $0x540] sm:$0xff]  ;;  %v13698_v14 = vld [vmem:[%s18360_s0 + $0x288] sm:$0xff]  }
 0x14e   :  { %18414 = vst [vmem:[#allocation4_spill] sm:$0xff] %v15253_v60  ;;  %18415 = vst [vmem:[#allocation3_spill] sm:$0xff] %v15255_v5  ;;  %12602 = vmatmul.mubr.msk.bf16.gmra.mrb[12].mxu1 %vm4999_vm9, %v18416_v29  ;;  %4282 = vperm.xlu1 %13612, %v3356_v24   ;;  %v12367_v4 = vpop.f32.mrb[52].mxu0  ;;  %v18419_v60 = vld [vmem:[#allocation9_spill] sm:$0xff]  ;;  %v18421_v2 = vld [vmem:[#allocation7_spill] sm:$0xff]  ;;  %v18426_v5 = vpack.c.bf16 %v15032_v11, %v15029_v54 }
 0x14f   :  { %4277 = vperm.xlu0 %13611, %v3355_v56   ;;  %12607 = vmatprep.mubr.msk.bf16.mxu1 %vm4999_vm9, %v18417_v50  ;;  %v15274_v19 = vmul.f32 %v18419_v60, %v2984_v9  ;;  %v2982_v15 = vsel %vm2470_vm14, %v1594_v25, %v2726_v58  ;;  %v1615_v59 = vadd.f32 %v15217_v42, %v12367_v4  ;;  %v1606_v24 = vpop.f32.mrb[53].mxu0  ;;  %v18420_v56 = vld [vmem:[#allocation8_spill] sm:$0xff]  ;;  %v3362_v54 = vld [vmem:[%s18358_s1 + $0x568] sm:$0xff]  ;;  %v18428_v11 = vld [vmem:[#allocation14_spill] sm:$0xff] }
 0x150   :  { %v15284_v38 = vmul.f32 %v18420_v56, %v2981_v62  ;;  %v15287_v29 = vmul.f32 %v18421_v2, %v2982_v15  ;;  %v1607_v60 = vadd.f32 %v15217_v42, %v1606_v24  ;;  %v13699_v9 = vld [vmem:[%s18360_s0 + $0x290] sm:$0xff]   ;;  %v12368_v62 = vpop.f32.mrb[54].mxu0  ;;  %v3360_v56 = vld [vmem:[%s18358_s1 + $0x558] sm:$0xff]  ;;  %v5432_v2 = vsel %vm5024_vm1, %v15083_v36, 0 }
 0x151   :  { %v15290_v58 = vpop.permute.xlu1 %3972  ;;  %v15292_v25 = vpop.permute.xlu0 %3967  ;;  %vm2475_vm15 = vcmp.ge.f32.partialorder %v1615_v59, 0.0  ;;  %v2731_v4 = vmul.f32 0.2, %v1615_v59  ;;  %v1618_v15 = vadd.f32 %v15217_v42, %v12368_v62  ;;  %v18427_v36 = vpack.c.bf16 %v15109_v32, %v15106_v45  ;;  %v3361_v45 = vld [vmem:[%s18358_s1 + $0x560] sm:$0xff]  ;;  %v13700_v32 = vld [vmem:[%s18360_s0 + $0x298] sm:$0xff]  }
 0x152   :  { %18422 = vst [vmem:[#allocation10_spill] sm:$0xff] %v15290_v58  ;;  %18423 = vst [vmem:[#allocation9_spill] sm:$0xff] %v15292_v25  ;;  %4292 = vperm.xlu1 %13612, %v3358_v63   ;;  %vm2473_vm2 = vcmp.ge.f32.partialorder %v1607_v60, 0.0  ;;  %v2729_v34 = vmul.f32 0.2, %v1607_v60  ;;  %v1609_v24 = vpop.f32.mrb[55].mxu0 }
 0x153   :  { %4287 = vperm.xlu0 %13611, %v3357_v7   ;;  %v1610_v58 = vadd.f32 %v15217_v42, %v1609_v24  ;;  %12474 = vmatmul.mubr.msk.bf16.gmra.mrb[160].mxu0 %vm979_vm0, %v13698_v14  ;;  %v3359_v63 = vld [vmem:[%s18358_s1 + $0x550] sm:$0xff]  ;;  %v2987_v50 = vsel %vm2475_vm15, %v1615_v59, %v2731_v4  ;;  %vm2476_vm3 = vcmp.ge.f32.partialorder %v1618_v15, 0.0  ;;  %v2732_v62 = vmul.f32 0.2, %v1618_v15 }
 0x154   :  { %12477 = vmatprep.mubr.msk.bf16.mxu0 %vm979_vm0, %v13699_v9  ;;  %v2985_v24 = vsel %vm2473_vm2, %v1607_v60, %v2729_v34  ;;  %v15325_v59 = vld [vmem:[%s18361_s3 + $0x10] sm:$0xf]  ;;  %v18429_v9 = vld [vmem:[#allocation13_spill] sm:$0xff] }
 0x155   :  { %v15310_v7 = vpop.permute.xlu1 %3982  ;;  %v15312_v25 = vpop.permute.xlu0 %3977  ;;  %vm2474_vm4 = vcmp.ge.f32.partialorder %v1610_v58, 0.0  ;;  %v2730_v14 = vmul.f32 0.2, %v1610_v58  ;;  %v2988_v4 = vsel %vm2476_vm3, %v1618_v15, %v2732_v62  ;;  %v18430_v62 = vld [vmem:[#allocation12_spill] sm:$0xff] }
 0x156   :  { %18424 = vst [vmem:[#allocation8_spill] sm:$0xff] %v15310_v7  ;;  %18425 = vst [vmem:[#allocation7_spill] sm:$0xff] %v15312_v25  ;;  %12608 = vmatmul.mubr.msk.bf16.vlgmr.msra.gmra.mrb[0].mxu1 %vm4999_vm9, %v18426_v5  ;;  %4302 = vperm.xlu1 %13612, %v3360_v56   ;;  %v12371_v60 = vpop.f32.mrb[56].mxu0  ;;  %v15335_v5 = vmul.f32 %v18428_v11, %v2987_v50  ;;  %v15338_v34 = vmul.f32 %v18429_v9, %v2988_v4  ;;  %v18431_v50 = vld [vmem:[#allocation11_spill] sm:$0xff] }
 0x157   :  { %4297 = vperm.xlu0 %13611, %v3359_v63   ;;  %12611 = vmatprep.mubr.msk.bf16.mxu1 %vm4999_vm9, %v18427_v36  ;;  %v2986_v56 = vsel %vm2474_vm4, %v1610_v58, %v2730_v14  ;;  %v1631_v15 = vadd.f32 %v15217_v42, %v12371_v60  ;;  %v1622_v63 = vpop.f32.mrb[57].mxu0  ;;  %v15348_v36 = vmul.f32 %v18430_v62, %v2985_v24  ;;  %v13701_v60 = vld [vmem:[%s18360_s0 + $0x2a0] sm:$0xff]  }
 0x158   :  { %12624 = vmatpush3.bf16.msra.mxu1 %v5432_v2  ;;  %v15351_v11 = vmul.f32 %v18431_v50, %v2986_v56  ;;  %v1623_v58 = vadd.f32 %v15217_v42, %v1622_v63  ;;  %v12372_v24 = vpop.f32.mrb[58].mxu0  ;;  %v3364_v50 = vld [vmem:[%s18358_s1 + $0x578] sm:$0xff] }
 0x159   :  { %v15354_v14 = vpop.permute.xlu1 %3992  ;;  %v15356_v4 = vpop.permute.xlu0 %3987  ;;  %13597 = vmatprep.subr.msk.bf16.mxu1 %vm5024_vm1, %v15325_v59  ;;  %vm2479_vm5 = vcmp.ge.f32.partialorder %v1631_v15, 0.0  ;;  %v2735_v2 = vmul.f32 0.2, %v1631_v15  ;;  %v1634_v63 = vadd.f32 %v15217_v42, %v12372_v24 }
 0x15a   :  { %18432 = vst [vmem:[#allocation14_spill] sm:$0xff] %v15354_v14  ;;  %18433 = vst [vmem:[#allocation13_spill] sm:$0xff] %v15356_v4  ;;  %4312 = vperm.xlu1 %13612, %v3362_v54   ;;  %vm2477_vm6 = vcmp.ge.f32.partialorder %v1623_v58, 0.0  ;;  %v2733_v56 = vmul.f32 0.2, %v1623_v58  ;;  %v1625_v62 = vpop.f32.mrb[59].mxu0 }
 0x15b   :  { %4307 = vperm.xlu0 %13611, %v3361_v45   ;;  %v1626_v4 = vadd.f32 %v15217_v42, %v1625_v62  ;;  %12478 = vmatmul.mubr.msk.bf16.gmra.mrb[164].mxu0 %vm979_vm0, %v13700_v32  ;;  %v3363_v54 = vld [vmem:[%s18358_s1 + $0x570] sm:$0xff]  ;;  %v2991_v9 = vsel %vm2479_vm5, %v1631_v15, %v2735_v2  ;;  %vm2480_vm7 = vcmp.ge.f32.partialorder %v1634_v63, 0.0  ;;  %v2736_v24 = vmul.f32 0.2, %v1634_v63 }
 0x15c   :  { %12481 = vmatprep.mubr.msk.bf16.mxu0 %vm979_vm0, %v13701_v60  ;;  %v2989_v25 = vsel %vm2477_vm6, %v1623_v58, %v2733_v56  ;;  %v18436_v32 = vpack.c.bf16 %v15096_v40, %v15093_v37  ;;  %v18437_v15 = vpack.c.bf16 %v15168_v28, %v15165_v55  ;;  %v3366_v58 = vld [vmem:[%s18358_s1 + $0x588] sm:$0xff]  ;;  %v18438_v60 = vld [vmem:[#allocation18_spill] sm:$0xff] }
 0x15d   :  { %v15376_v45 = vpop.permute.xlu1 %4002  ;;  %v15378_v7 = vpop.permute.xlu0 %3997  ;;  %vm2478_vm8 = vcmp.ge.f32.partialorder %v1626_v4, 0.0  ;;  %v2734_v14 = vmul.f32 0.2, %v1626_v4  ;;  %v2992_v62 = vsel %vm2480_vm7, %v1634_v63, %v2736_v24  ;;  %v15394_v56 = vmul.f32 %v18438_v60, %v2991_v9  ;;  %v3365_v55 = vld [vmem:[%s18358_s1 + $0x580] sm:$0xff]  ;;  %v13702_v28 = vld [vmem:[%s18360_s0 + $0x2a8] sm:$0xff]  }
 0x15e   :  { %18434 = vst [vmem:[#allocation12_spill] sm:$0xff] %v15376_v45  ;;  %18435 = vst [vmem:[#allocation11_spill] sm:$0xff] %v15378_v7  ;;  %12612 = vmatmul.mubr.msk.bf16.gmra.mrb[4].mxu1 %vm4999_vm9, %v18436_v32  ;;  %4322 = vperm.xlu1 %13612, %v3364_v50   ;;  %v12375_v2 = vpop.f32.mrb[60].mxu0  ;;  %v18439_v45 = vld [vmem:[#allocation17_spill] sm:$0xff]  ;;  %v18441_v9 = vld [vmem:[#allocation15_spill] sm:$0xff] }
 0x15f   :  { %4317 = vperm.xlu0 %13611, %v3363_v54   ;;  %12615 = vmatprep.mubr.msk.bf16.mxu1 %vm4999_vm9, %v18437_v15  ;;  %v15397_v37 = vmul.f32 %v18439_v45, %v2992_v62  ;;  %v2990_v40 = vsel %vm2478_vm8, %v1626_v4, %v2734_v14  ;;  %v1647_v63 = vadd.f32 %v15217_v42, %v12375_v2  ;;  %v1638_v50 = vpop.f32.mrb[61].mxu0  ;;  %v18440_v54 = vld [vmem:[#allocation16_spill] sm:$0xff] }
 0x160   :  { %v15407_v24 = vmul.f32 %v18440_v54, %v2989_v25  ;;  %v15410_v32 = vmul.f32 %v18441_v9, %v2990_v40  ;;  %v1639_v45 = vadd.f32 %v15217_v42, %v1638_v50  ;;  %v13703_v62 = vld [vmem:[%s18360_s0 + $0x2b0] sm:$0xff]   ;;  %v12376_v2 = vpop.f32.mrb[62].mxu0  ;;  %v3368_v54 = vld [vmem:[%s18358_s1 + $0x598] sm:$0xff] }
 0x161   :  { %v15413_v14 = vpop.permute.xlu1 %4012  ;;  %v15415_v4 = vpop.permute.xlu0 %4007  ;;  %vm2483_vm10 = vcmp.ge.f32.partialorder %v1647_v63, 0.0  ;;  %v2739_v15 = vmul.f32 0.2, %v1647_v63  ;;  %v1650_v40 = vadd.f32 %v15217_v42, %v12376_v2 }
 0x162   :  { %18442 = vst [vmem:[#allocation18_spill] sm:$0xff] %v15413_v14  ;;  %18443 = vst [vmem:[#allocation17_spill] sm:$0xff] %v15415_v4  ;;  %4332 = vperm.xlu1 %13612, %v3366_v58   ;;  %vm2481_vm11 = vcmp.ge.f32.partialorder %v1639_v45, 0.0  ;;  %v2737_v60 = vmul.f32 0.2, %v1639_v45  ;;  %v1641_v50 = vpop.f32.mrb[63].mxu0 }
 0x163   :  { %4327 = vperm.xlu0 %13611, %v3365_v55   ;;  %v1642_v14 = vadd.f32 %v15217_v42, %v1641_v50  ;;  %12482 = vmatmul.mubr.msk.bf16.gmra.mrb[168].mxu0 %vm979_vm0, %v13702_v28  ;;  %v3367_v58 = vld [vmem:[%s18358_s1 + $0x590] sm:$0xff]  ;;  %v2995_v25 = vsel %vm2483_vm10, %v1647_v63, %v2739_v15  ;;  %vm2484_vm12 = vcmp.ge.f32.partialorder %v1650_v40, 0.0  ;;  %v2740_v2 = vmul.f32 0.2, %v1650_v40 }
 0x164   :  { %12485 = vmatprep.mubr.msk.bf16.mxu0 %vm979_vm0, %v13703_v62  ;;  %v2993_v7 = vsel %vm2481_vm11, %v1639_v45, %v2737_v60  ;;  %v18446_v28 = vpack.c.bf16 %v15155_v21, %v15152_v53  ;;  %v18447_v63 = vpack.c.bf16 %v15230_v18, %v15227_v17  ;;  %v3370_v45 = vld [vmem:[%s18358_s1 + $0x5a8] sm:$0xff]  ;;  %v18448_v62 = vld [vmem:[#allocation22_spill] sm:$0xff]  ;;  %v13704_v18 = vld [vmem:[%s18360_s0 + $0x2b8] sm:$0xff]  }
 0x165   :  { %v15433_v55 = vpop.permute.xlu1 %4022  ;;  %v15435_v4 = vpop.permute.xlu0 %4017  ;;  %vm2482_vm13 = vcmp.ge.f32.partialorder %v1642_v14, 0.0  ;;  %v2738_v9 = vmul.f32 0.2, %v1642_v14  ;;  %v2996_v50 = vsel %vm2484_vm12, %v1650_v40, %v2740_v2  ;;  %v15451_v60 = vmul.f32 %v18448_v62, %v2995_v25  ;;  %v3369_v17 = vld [vmem:[%s18358_s1 + $0x5a0] sm:$0xff]  ;;  %v18451_v25 = vld [vmem:[#allocation19_spill] sm:$0xff] }
 0x166   :  { %18444 = vst [vmem:[#allocation16_spill] sm:$0xff] %v15433_v55  ;;  %18445 = vst [vmem:[#allocation15_spill] sm:$0xff] %v15435_v4  ;;  %12616 = vmatmul.mubr.msk.bf16.gmra.mrb[8].mxu1 %vm4999_vm9, %v18446_v28  ;;  %4342 = vperm.xlu1 %13612, %v3368_v54   ;;  %v12379_v15 = vpop.f32.mrb[64].mxu0  ;;  %v18449_v55 = vld [vmem:[#allocation21_spill] sm:$0xff] }
 0x167   :  { %4337 = vperm.xlu0 %13611, %v3367_v58   ;;  %12619 = vmatprep.mubr.msk.bf16.mxu1 %vm4999_vm9, %v18447_v63  ;;  %v15454_v53 = vmul.f32 %v18449_v55, %v2996_v50  ;;  %v2994_v21 = vsel %vm2482_vm13, %v1642_v14, %v2738_v9  ;;  %v1663_v40 = vadd.f32 %v15217_v42, %v12379_v15  ;;  %v1654_v54 = vpop.f32.mrb[65].mxu0  ;;  %v18450_v58 = vld [vmem:[#allocation20_spill] sm:$0xff]  ;;  %v13705_v50 = vld [vmem:[%s18360_s0 + $0x2c0] sm:$0xff]  }
 0x168   :  { %v15464_v2 = vmul.f32 %v18450_v58, %v2993_v7  ;;  %v15467_v28 = vmul.f32 %v18451_v25, %v2994_v21  ;;  %v1655_v55 = vadd.f32 %v15217_v42, %v1654_v54  ;;  %v12380_v15 = vpop.f32.mrb[66].mxu0  ;;  %v3372_v58 = vld [vmem:[%s18358_s1 + $0x5b8] sm:$0xff] }
 0x169   :  { %v15470_v14 = vpop.permute.xlu1 %4032  ;;  %v15472_v9 = vpop.permute.xlu0 %4027  ;;  %vm2487_vm14 = vcmp.ge.f32.partialorder %v1663_v40, 0.0  ;;  %v2743_v63 = vmul.f32 0.2, %v1663_v40  ;;  %v1666_v21 = vadd.f32 %v15217_v42, %v12380_v15 }
 0x16a   :  { %18452 = vst [vmem:[#allocation22_spill] sm:$0xff] %v15470_v14  ;;  %18453 = vst [vmem:[#allocation21_spill] sm:$0xff] %v15472_v9  ;;  %4352 = vperm.xlu1 %13612, %v3370_v45   ;;  %vm2485_vm15 = vcmp.ge.f32.partialorder %v1655_v55, 0.0  ;;  %v2741_v62 = vmul.f32 0.2, %v1655_v55  ;;  %v1657_v54 = vpop.f32.mrb[67].mxu0 }
 0x16b   :  { %4347 = vperm.xlu0 %13611, %v3369_v17   ;;  %v1658_v14 = vadd.f32 %v15217_v42, %v1657_v54  ;;  %12486 = vmatmul.mubr.msk.bf16.gmra.mrb[172].mxu0 %vm979_vm0, %v13704_v18  ;;  %v3371_v45 = vld [vmem:[%s18358_s1 + $0x5b0] sm:$0xff]  ;;  %v2999_v7 = vsel %vm2487_vm14, %v1663_v40, %v2743_v63  ;;  %vm2488_vm2 = vcmp.ge.f32.partialorder %v1666_v21, 0.0  ;;  %v2744_v15 = vmul.f32 0.2, %v1666_v21 }
 0x16c   :  { %12489 = vmatprep.mubr.msk.bf16.mxu0 %vm979_vm0, %v13705_v50  ;;  %v2997_v4 = vsel %vm2485_vm15, %v1655_v55, %v2741_v62  ;;  %v18456_v18 = vpack.c.bf16 %v15212_v31, %v15209_v22  ;;  %v18457_v40 = vpack.c.bf16 %v15287_v29, %v15284_v38  ;;  %v3374_v55 = vld [vmem:[%s18358_s1 + $0x5c8] sm:$0xff]  ;;  %v18458_v50 = vld [vmem:[#allocation26_spill] sm:$0xff] }
 0x16d   :  { %v15490_v17 = vpop.permute.xlu1 %4042  ;;  %v15492_v9 = vpop.permute.xlu0 %4037  ;;  %vm2486_vm3 = vcmp.ge.f32.partialorder %v1658_v14, 0.0  ;;  %v2742_v25 = vmul.f32 0.2, %v1658_v14  ;;  %v3000_v54 = vsel %vm2488_vm2, %v1666_v21, %v2744_v15  ;;  %v15508_v62 = vmul.f32 %v18458_v50, %v2999_v7  ;;  %v3373_v38 = vld [vmem:[%s18358_s1 + $0x5c0] sm:$0xff]  ;;  %v13706_v29 = vld [vmem:[%s18360_s0 + $0x2c8] sm:$0xff]  }
 0x16e   :  { %18454 = vst [vmem:[#allocation20_spill] sm:$0xff] %v15490_v17  ;;  %18455 = vst [vmem:[#allocation19_spill] sm:$0xff] %v15492_v9  ;;  %12620 = vmatmul.mubr.msk.bf16.gmra.mrb[12].mxu1 %vm4999_vm9, %v18456_v18  ;;  %4362 = vperm.xlu1 %13612, %v3372_v58   ;;  %v12383_v63 = vpop.f32.mrb[68].mxu0  ;;  %v18459_v17 = vld [vmem:[#allocation25_spill] sm:$0xff]  ;;  %v18461_v7 = vld [vmem:[#allocation23_spill] sm:$0xff]  ;;  %v18465_v9 = vpack.c.bf16 %v15274_v19, %v15271_v41 }
 0x16f   :  { %4357 = vperm.xlu0 %13611, %v3371_v45   ;;  %12625 = vmatprep.mubr.msk.bf16.mxu1 %vm4999_vm9, %v18457_v40  ;;  %v15511_v22 = vmul.f32 %v18459_v17, %v3000_v54  ;;  %v2998_v31 = vsel %vm2486_vm3, %v1658_v14, %v2742_v25  ;;  %v1679_v21 = vadd.f32 %v15217_v42, %v12383_v63  ;;  %v1670_v58 = vpop.f32.mrb[69].mxu0  ;;  %v18460_v45 = vld [vmem:[#allocation24_spill] sm:$0xff]  ;;  %v3378_v41 = vld [vmem:[%s18358_s1 + $0x5e8] sm:$0xff] }
 0x170   :  { %v15521_v15 = vmul.f32 %v18460_v45, %v2997_v4  ;;  %v15524_v18 = vmul.f32 %v18461_v7, %v2998_v31  ;;  %v1671_v17 = vadd.f32 %v15217_v42, %v1670_v58  ;;  %v13707_v54 = vld [vmem:[%s18360_s0 + $0x2d0] sm:$0xff]   ;;  %v12384_v4 = vpop.f32.mrb[70].mxu0  ;;  %v3376_v45 = vld [vmem:[%s18358_s1 + $0x5d8] sm:$0xff]  ;;  %v5581_v7 = vsel %vm5024_vm1, %v15325_v59, 0 }
 0x171   :  { %v15527_v14 = vpop.permute.xlu1 %4052  ;;  %v15529_v25 = vpop.permute.xlu0 %4047  ;;  %vm2491_vm4 = vcmp.ge.f32.partialorder %v1679_v21, 0.0  ;;  %v2747_v63 = vmul.f32 0.2, %v1679_v21  ;;  %v1682_v31 = vadd.f32 %v15217_v42, %v12384_v4  ;;  %v18466_v59 = vpack.c.bf16 %v15351_v11, %v15348_v36  ;;  %v3377_v36 = vld [vmem:[%s18358_s1 + $0x5e0] sm:$0xff]  ;;  %v13708_v11 = vld [vmem:[%s18360_s0 + $0x2d8] sm:$0xff]  }
 0x172   :  { %18462 = vst [vmem:[#allocation26_spill] sm:$0xff] %v15527_v14  ;;  %18463 = vst [vmem:[#allocation25_spill] sm:$0xff] %v15529_v25  ;;  %4372 = vperm.xlu1 %13612, %v3374_v55   ;;  %vm2489_vm5 = vcmp.ge.f32.partialorder %v1671_v17, 0.0  ;;  %v2745_v50 = vmul.f32 0.2, %v1671_v17  ;;  %v1673_v58 = vpop.f32.mrb[71].mxu0 }
 0x173   :  { %4367 = vperm.xlu0 %13611, %v3373_v38   ;;  %v1674_v14 = vadd.f32 %v15217_v42, %v1673_v58  ;;  %12490 = vmatmul.mubr.msk.bf16.gmra.mrb[176].mxu0 %vm979_vm0, %v13706_v29  ;;  %v3375_v55 = vld [vmem:[%s18358_s1 + $0x5d0] sm:$0xff]  ;;  %v3003_v40 = vsel %vm2491_vm4, %v1679_v21, %v2747_v63  ;;  %vm2492_vm6 = vcmp.ge.f32.partialorder %v1682_v31, 0.0  ;;  %v2748_v4 = vmul.f32 0.2, %v1682_v31 }
 0x174   :  { %12493 = vmatprep.mubr.msk.bf16.mxu0 %vm979_vm0, %v13707_v54  ;;  %v3001_v58 = vsel %vm2489_vm5, %v1671_v17, %v2745_v50  ;;  %v15562_v21 = vld [vmem:[%s18361_s3 + $0x14] sm:$0xf]  ;;  %v15572_v19 = vmul.f32 %v14851_v16, %v3003_v40  ;;  %v18469_v16 = vld [vmem:[#allocation27_spill] sm:$0xff] }
 0x175   :  { %v15547_v38 = vpop.permute.xlu1 %4062  ;;  %v15549_v25 = vpop.permute.xlu0 %4057  ;;  %vm2490_vm7 = vcmp.ge.f32.partialorder %v1674_v14, 0.0  ;;  %v2746_v29 = vmul.f32 0.2, %v1674_v14  ;;  %v3004_v63 = vsel %vm2492_vm6, %v1682_v31, %v2748_v4 }
 0x176   :  { %18464 = vst [vmem:[#allocation24_spill] sm:$0xff] %v15547_v38  ;;  %12626 = vmatmul.mubr.msk.bf16.vlgmr.msra.gmra.mrb[0].mxu1 %vm4999_vm9, %v18465_v9  ;;  %4382 = vperm.xlu1 %13612, %v3376_v45   ;;  %v12387_v17 = vpop.f32.mrb[72].mxu0  ;;  %v18467_v9 = vld [vmem:[#allocation29_spill] sm:$0xff] }
 0x177   :  { %4377 = vperm.xlu0 %13611, %v3375_v55   ;;  %12629 = vmatprep.mubr.msk.bf16.mxu1 %vm4999_vm9, %v18466_v59  ;;  %v15575_v54 = vmul.f32 %v18467_v9, %v3004_v63  ;;  %v3002_v50 = vsel %vm2490_vm7, %v1674_v14, %v2746_v29  ;;  %v1695_v31 = vadd.f32 %v15217_v42, %v12387_v17  ;;  %v1686_v45 = vpop.f32.mrb[73].mxu0  ;;  %v18468_v55 = vld [vmem:[#allocation28_spill] sm:$0xff]  ;;  %v13709_v59 = vld [vmem:[%s18360_s0 + $0x2e0] sm:$0xff]  }
 0x178   :  { %12642 = vmatpush3.bf16.msra.mxu1 %v5581_v7  ;;  %v15585_v4 = vmul.f32 %v18468_v55, %v3001_v58  ;;  %v15588_v40 = vmul.f32 %v18469_v16, %v3002_v50  ;;  %v1687_v14 = vadd.f32 %v15217_v42, %v1686_v45  ;;  %v12388_v58 = vpop.f32.mrb[74].mxu0  ;;  %v3380_v55 = vld [vmem:[%s18358_s1 + $0x5f8] sm:$0xff] }
 0x179   :  { %v15591_v29 = vpop.permute.xlu1 %4072  ;;  %v15593_v63 = vpop.permute.xlu0 %4067  ;;  %13598 = vmatprep.subr.msk.bf16.mxu1 %vm5024_vm1, %v15562_v21  ;;  %vm2495_vm8 = vcmp.ge.f32.partialorder %v1695_v31, 0.0  ;;  %v2751_v7 = vmul.f32 0.2, %v1695_v31  ;;  %v1698_v50 = vadd.f32 %v15217_v42, %v12388_v58 }
 0x17a   :  { %18470 = vst [vmem:[#allocation23_spill] sm:$0xff] %v15591_v29  ;;  %18471 = vst [vmem:[#allocation29_spill] sm:$0xff] %v15593_v63  ;;  %4392 = vperm.xlu1 %13612, %v3378_v41   ;;  %vm2493_vm10 = vcmp.ge.f32.partialorder %v1687_v14, 0.0  ;;  %v2749_v9 = vmul.f32 0.2, %v1687_v14  ;;  %v1689_v45 = vpop.f32.mrb[75].mxu0 }
 0x17b   :  { %4387 = vperm.xlu0 %13611, %v3377_v36   ;;  %v1690_v29 = vadd.f32 %v15217_v42, %v1689_v45  ;;  %12494 = vmatmul.mubr.msk.bf16.gmra.mrb[180].mxu0 %vm979_vm0, %v13708_v11  ;;  %v3379_v41 = vld [vmem:[%s18358_s1 + $0x5f0] sm:$0xff]  ;;  %v3007_v17 = vsel %vm2495_vm8, %v1695_v31, %v2751_v7  ;;  %vm2496_vm11 = vcmp.ge.f32.partialorder %v1698_v50, 0.0  ;;  %v2752_v58 = vmul.f32 0.2, %v1698_v50 }
 0x17c   :  { %12497 = vmatprep.mubr.msk.bf16.mxu0 %vm979_vm0, %v13709_v59  ;;  %v3005_v38 = vsel %vm2493_vm10, %v1687_v14, %v2749_v9  ;;  %v18472_v11 = vpack.c.bf16 %v15338_v34, %v15335_v5  ;;  %v18473_v31 = vpack.c.bf16 %v15410_v32, %v15407_v24  ;;  %v3382_v14 = vld [vmem:[%s18358_s1 + $0x608] sm:$0xff]  ;;  %v15631_v59 = vmul.f32 %v14892_v8, %v3007_v17  ;;  %v3381_v24 = vld [vmem:[%s18358_s1 + $0x600] sm:$0xff] }
 0x17d   :  { %v15613_v36 = vpop.permute.xlu1 %4082  ;;  %v15615_v63 = vpop.permute.xlu0 %4077  ;;  %vm2494_vm12 = vcmp.ge.f32.partialorder %v1690_v29, 0.0  ;;  %v2750_v16 = vmul.f32 0.2, %v1690_v29  ;;  %v3008_v45 = vsel %vm2496_vm11, %v1698_v50, %v2752_v58  ;;  %v13710_v32 = vld [vmem:[%s18360_s0 + $0x2e8] sm:$0xff]   ;;  %v18474_v8 = vld [vmem:[#allocation30_spill] sm:$0xff] }
 0x17e   :  { %12630 = vmatmul.mubr.msk.bf16.gmra.mrb[4].mxu1 %vm4999_vm9, %v18472_v11  ;;  %4402 = vperm.xlu1 %13612, %v3380_v55   ;;  %v12391_v7 = vpop.f32.mrb[76].mxu0  ;;  %v15634_v5 = vmul.f32 %v14890_v47, %v3008_v45  ;;  %v15644_v55 = vmul.f32 %v14870_v46, %v3005_v38 }
 0x17f   :  { %4397 = vperm.xlu0 %13611, %v3379_v41   ;;  %12633 = vmatprep.mubr.msk.bf16.mxu1 %vm4999_vm9, %v18473_v31  ;;  %v3006_v34 = vsel %vm2494_vm12, %v1690_v29, %v2750_v16  ;;  %v1711_v9 = vadd.f32 %v15217_v42, %v12391_v7  ;;  %v1702_v50 = vpop.f32.mrb[77].mxu0  ;;  %v13711_v41 = vld [vmem:[%s18360_s0 + $0x2f0] sm:$0xff]   ;;  %v3384_v7 = vld [vmem:[%s18358_s1 + $0x618] sm:$0xff] }
 0x180   :  { %v15647_v17 = vmul.f32 %v18474_v8, %v3006_v34  ;;  %v1703_v47 = vadd.f32 %v15217_v42, %v1702_v50  ;;  %v12392_v11 = vpop.f32.mrb[78].mxu0 }
 0x181   :  { %v15650_v29 = vpop.permute.xlu1 %4092  ;;  %v15652_v16 = vpop.permute.xlu0 %4087  ;;  %vm2499_vm13 = vcmp.ge.f32.partialorder %v1711_v9, 0.0  ;;  %v2755_v58 = vmul.f32 0.2, %v1711_v9  ;;  %v1714_v45 = vadd.f32 %v15217_v42, %v12392_v11 }
 0x182   :  { %18475 = vst [vmem:[#allocation28_spill] sm:$0xff] %v15650_v29  ;;  %4412 = vperm.xlu1 %13612, %v3382_v14   ;;  %vm2497_vm14 = vcmp.ge.f32.partialorder %v1703_v47, 0.0  ;;  %v2753_v38 = vmul.f32 0.2, %v1703_v47  ;;  %v1705_v31 = vpop.f32.mrb[79].mxu0  ;;  %v3383_v14 = vld [vmem:[%s18358_s1 + $0x610] sm:$0xff] }
 0x183   :  { %4407 = vperm.xlu0 %13611, %v3381_v24   ;;  %v1706_v50 = vadd.f32 %v15217_v42, %v1705_v31  ;;  %12498 = vmatmul.mubr.msk.bf16.gmra.mrb[184].mxu0 %vm979_vm0, %v13710_v32  ;;  %v3011_v8 = vsel %vm2499_vm13, %v1711_v9, %v2755_v58  ;;  %vm2500_vm15 = vcmp.ge.f32.partialorder %v1714_v45, 0.0  ;;  %v2756_v11 = vmul.f32 0.2, %v1714_v45 }
 0x184   :  { %12501 = vmatprep.mubr.msk.bf16.mxu0 %vm979_vm0, %v13711_v41  ;;  %v3009_v29 = vsel %vm2497_vm14, %v1703_v47, %v2753_v38  ;;  %v18476_v32 = vpack.c.bf16 %v15397_v37, %v15394_v56  ;;  %v18477_v9 = vpack.c.bf16 %v15467_v28, %v15464_v2  ;;  %v3386_v47 = vld [vmem:[%s18358_s1 + $0x628] sm:$0xff]  ;;  %v15688_v41 = vmul.f32 %v14938_v33, %v3011_v8  ;;  %v3385_v2 = vld [vmem:[%s18358_s1 + $0x620] sm:$0xff]  ;;  %v13712_v28 = vld [vmem:[%s18360_s0 + $0x2f8] sm:$0xff]  }
 0x185   :  { %v15670_v24 = vpop.permute.xlu1 %4102  ;;  %v15672_v46 = vpop.permute.xlu0 %4097  ;;  %vm2498_vm2 = vcmp.ge.f32.partialorder %v1706_v50, 0.0  ;;  %v2754_v34 = vmul.f32 0.2, %v1706_v50  ;;  %v3012_v31 = vsel %vm2500_vm15, %v1714_v45, %v2756_v11 }
 0x186   :  { %12634 = vmatmul.mubr.msk.bf16.gmra.mrb[8].mxu1 %vm4999_vm9, %v18476_v32  ;;  %4422 = vperm.xlu1 %13612, %v3384_v7   ;;  %v12395_v58 = vpop.f32.mrb[80].mxu0  ;;  %v15691_v56 = vmul.f32 %v14936_v51, %v3012_v31  ;;  %v15701_v7 = vmul.f32 %v14921_v43, %v3009_v29  ;;  %v3388_v31 = vld [vmem:[%s18358_s1 + $0x638] sm:$0xff] }
 0x187   :  { %4417 = vperm.xlu0 %13611, %v3383_v14   ;;  %12637 = vmatprep.mubr.msk.bf16.mxu1 %vm4999_vm9, %v18477_v9  ;;  %v3010_v37 = vsel %vm2498_vm2, %v1706_v50, %v2754_v34  ;;  %v1727_v38 = vadd.f32 %v15217_v42, %v12395_v58  ;;  %v1718_v45 = vpop.f32.mrb[81].mxu0  ;;  %v13713_v14 = vld [vmem:[%s18360_s0 + $0x300] sm:$0xff]  }
 0x188   :  { %v15704_v33 = vmul.f32 %v14919_v39, %v3010_v37  ;;  %v1719_v51 = vadd.f32 %v15217_v42, %v1718_v45  ;;  %v12396_v11 = vpop.f32.mrb[82].mxu0 }
 0x189   :  { %v15707_v34 = vpop.permute.xlu1 %4112  ;;  %v15709_v50 = vpop.permute.xlu0 %4107  ;;  %vm2503_vm3 = vcmp.ge.f32.partialorder %v1727_v38, 0.0  ;;  %v2759_v8 = vmul.f32 0.2, %v1727_v38  ;;  %v1730_v29 = vadd.f32 %v15217_v42, %v12396_v11 }
 0x18a   :  { %4432 = vperm.xlu1 %13612, %v3386_v47   ;;  %vm2501_vm4 = vcmp.ge.f32.partialorder %v1719_v51, 0.0  ;;  %v2757_v39 = vmul.f32 0.2, %v1719_v51  ;;  %v1721_v32 = vpop.f32.mrb[83].mxu0  ;;  %v3387_v47 = vld [vmem:[%s18358_s1 + $0x630] sm:$0xff] }
 0x18b   :  { %4427 = vperm.xlu0 %13611, %v3385_v2   ;;  %v1722_v58 = vadd.f32 %v15217_v42, %v1721_v32  ;;  %12502 = vmatmul.mubr.msk.bf16.gmra.mrb[188].mxu0 %vm979_vm0, %v13712_v28  ;;  %v3015_v37 = vsel %vm2503_vm3, %v1727_v38, %v2759_v8  ;;  %vm2504_vm5 = vcmp.ge.f32.partialorder %v1730_v29, 0.0  ;;  %v2760_v45 = vmul.f32 0.2, %v1730_v29 }
 0x18c   :  { %12505 = vmatprep.mubr.msk.bf16.mxu0 %vm979_vm0, %v13713_v14  ;;  %v3013_v43 = vsel %vm2501_vm4, %v1719_v51, %v2757_v39  ;;  %v18478_v28 = vpack.c.bf16 %v15454_v53, %v15451_v60  ;;  %v18479_v38 = vpack.c.bf16 %v15524_v18, %v15521_v15  ;;  %v3390_v51 = vld [vmem:[%s18358_s1 + $0x648] sm:$0xff]  ;;  %v15745_v14 = vmul.f32 %v14977_v52, %v3015_v37  ;;  %v3389_v15 = vld [vmem:[%s18358_s1 + $0x640] sm:$0xff] }
 0x18d   :  { %v15727_v2 = vpop.permute.xlu1 %4122  ;;  %v15729_v11 = vpop.permute.xlu0 %4117  ;;  %vm2502_vm6 = vcmp.ge.f32.partialorder %v1722_v58, 0.0  ;;  %v2758_v9 = vmul.f32 0.2, %v1722_v58  ;;  %v3016_v32 = vsel %vm2504_vm5, %v1730_v29, %v2760_v45  ;;  %v13714_v18 = vld [vmem:[%s18360_s0 + $0x308] sm:$0xff]  }
 0x18e   :  { %12638 = vmatmul.mubr.msk.bf16.gmra.mrb[12].mxu1 %vm4999_vm9, %v18478_v28  ;;  %4442 = vperm.xlu1 %13612, %v3388_v31   ;;  %v12399_v8 = vpop.f32.mrb[84].mxu0  ;;  %v15748_v60 = vmul.f32 %v14975_v48, %v3016_v32  ;;  %v15758_v31 = vmul.f32 %v14960_v0, %v3013_v43  ;;  %v3392_v32 = vld [vmem:[%s18358_s1 + $0x658] sm:$0xff] }
 0x18f   :  { %4437 = vperm.xlu0 %13611, %v3387_v47   ;;  %12643 = vmatprep.mubr.msk.bf16.mxu1 %vm4999_vm9, %v18479_v38  ;;  %v3014_v53 = vsel %vm2502_vm6, %v1722_v58, %v2758_v9  ;;  %v1743_v39 = vadd.f32 %v15217_v42, %v12399_v8  ;;  %v1734_v29 = vpop.f32.mrb[85].mxu0  ;;  %v13715_v47 = vld [vmem:[%s18360_s0 + $0x310] sm:$0xff]  }
 0x190   :  { %v15761_v52 = vmul.f32 %v14958_v3, %v3014_v53  ;;  %v1735_v48 = vadd.f32 %v15217_v42, %v1734_v29  ;;  %v12400_v0 = vpop.f32.mrb[86].mxu0 }
 0x191   :  { %v15764_v9 = vpop.permute.xlu1 %4132  ;;  %v15766_v58 = vpop.permute.xlu0 %4127  ;;  %vm2507_vm7 = vcmp.ge.f32.partialorder %v1743_v39, 0.0  ;;  %v2763_v45 = vmul.f32 0.2, %v1743_v39  ;;  %v1746_v43 = vadd.f32 %v15217_v42, %v12400_v0  ;;  %v5730_v0 = vsel %vm5024_vm1, %v15562_v21, 0 }
 0x192   :  { %4452 = vperm.xlu1 %13612, %v3390_v51   ;;  %vm2505_vm8 = vcmp.ge.f32.partialorder %v1735_v48, 0.0  ;;  %v2761_v3 = vmul.f32 0.2, %v1735_v48  ;;  %v1737_v28 = vpop.f32.mrb[87].mxu0  ;;  %v3391_v51 = vld [vmem:[%s18358_s1 + $0x650] sm:$0xff]  ;;  %v18481_v21 = vpack.c.bf16 %v15588_v40, %v15585_v4  ;;  %v3393_v4 = vld [vmem:[%s18358_s1 + $0x660] sm:$0xff] }
 0x193   :  { %4447 = vperm.xlu0 %13611, %v3389_v15   ;;  %v1738_v8 = vadd.f32 %v15217_v42, %v1737_v28  ;;  %12506 = vmatmul.mubr.msk.bf16.gmra.mrb[192].mxu0 %vm979_vm0, %v13714_v18  ;;  %v3019_v53 = vsel %vm2507_vm7, %v1743_v39, %v2763_v45  ;;  %vm2508_vm10 = vcmp.ge.f32.partialorder %v1746_v43, 0.0  ;;  %v2764_v29 = vmul.f32 0.2, %v1746_v43  ;;  %v15799_v39 = vld [vmem:[%s18361_s3 + $0x18] sm:$0xf] }
 0x194   :  { %12509 = vmatprep.mubr.msk.bf16.mxu0 %vm979_vm0, %v13715_v47  ;;  %v3017_v37 = vsel %vm2505_vm8, %v1735_v48, %v2761_v3  ;;  %v18480_v18 = vpack.c.bf16 %v15511_v22, %v15508_v62  ;;  %v3394_v62 = vld [vmem:[%s18358_s1 + $0x668] sm:$0xff]  ;;  %v15809_v22 = vmul.f32 %v15016_v1, %v3019_v53  ;;  %v13716_v40 = vld [vmem:[%s18360_s0 + $0x318] sm:$0xff]  }
 0x195   :  { %v15784_v15 = vpop.permute.xlu1 %4142  ;;  %vm2506_vm11 = vcmp.ge.f32.partialorder %v1738_v8, 0.0  ;;  %v2762_v28 = vmul.f32 0.2, %v1738_v8  ;;  %v15790_v38 = vpop.permute.xlu0 %4137  ;;  %v3020_v47 = vsel %vm2508_vm10, %v1746_v43, %v2764_v29  ;;  %v13717_v29 = vld [vmem:[%s18360_s0 + $0x320] sm:$0xff]  }
 0x196   :  { %12644 = vmatmul.mubr.msk.bf16.vlgmr.msra.gmra.mrb[0].mxu1 %vm4999_vm9, %v18480_v18  ;;  %4462 = vperm.xlu1 %13612, %v3392_v32   ;;  %v12403_v48 = vpop.f32.mrb[88].mxu0  ;;  %v15812_v45 = vmul.f32 %v15014_v57, %v3020_v47 }
 0x197   :  { %4457 = vperm.xlu0 %13611, %v3391_v51   ;;  %12647 = vmatprep.mubr.msk.bf16.mxu1 %vm4999_vm9, %v18481_v21  ;;  %v3018_v3 = vsel %vm2506_vm11, %v1738_v8, %v2762_v28  ;;  %v1759_v43 = vadd.f32 %v15217_v42, %v12403_v48  ;;  %v1750_v32 = vpop.f32.mrb[89].mxu0  ;;  %v15822_v51 = vmul.f32 %v14999_v10, %v3017_v37  ;;  %v3396_v21 = vld [vmem:[%s18358_s1 + $0x678] sm:$0xff] }
 0x198   :  { %12660 = vmatpush3.bf16.msra.mxu1 %v5730_v0  ;;  %v15825_v1 = vmul.f32 %v14997_v20, %v3018_v3  ;;  %v1751_v57 = vadd.f32 %v15217_v42, %v1750_v32  ;;  %v12404_v53 = vpop.f32.mrb[90].mxu0 }
 0x199   :  { %v15828_v8 = vpop.permute.xlu1 %4152  ;;  %13599 = vmatprep.subr.msk.bf16.mxu1 %vm5024_vm1, %v15799_v39  ;;  %vm2511_vm12 = vcmp.ge.f32.partialorder %v1759_v43, 0.0  ;;  %v2767_v0 = vmul.f32 0.2, %v1759_v43  ;;  %v15835_v28 = vpop.permute.xlu0 %4147  ;;  %v1762_v10 = vadd.f32 %v15217_v42, %v12404_v53 }
 0x19a   :  { %18482 = vst [vmem:[#allocation27_spill] sm:$0xff] %v15828_v8  ;;  %4472 = vperm.xlu1 %13612, %v3394_v62   ;;  %v1753_v20 = vpop.f32.mrb[91].mxu0  ;;  %vm2509_vm13 = vcmp.ge.f32.partialorder %v1751_v57, 0.0  ;;  %v2765_v18 = vmul.f32 0.2, %v1751_v57  ;;  %v3395_v62 = vld [vmem:[%s18358_s1 + $0x670] sm:$0xff] }
 0x19b   :  { %4467 = vperm.xlu0 %13611, %v3393_v4   ;;  %v1754_v47 = vadd.f32 %v15217_v42, %v1753_v20  ;;  %v3023_v3 = vsel %vm2511_vm12, %v1759_v43, %v2767_v0  ;;  %vm2512_vm14 = vcmp.ge.f32.partialorder %v1762_v10, 0.0  ;;  %v2768_v32 = vmul.f32 0.2, %v1762_v10  ;;  %12510 = vmatmul.mubr.msk.bf16.gmra.mrb[196].mxu0 %vm979_vm0, %v13716_v40 }
 0x19c   :  { %v3021_v53 = vsel %vm2509_vm13, %v1751_v57, %v2765_v18  ;;  %12513 = vmatprep.mubr.msk.bf16.mxu0 %vm979_vm0, %v13717_v29  ;;  %v18483_v43 = vpack.c.bf16 %v15575_v54, %v15572_v19  ;;  %v15860_v40 = vmul.f32 %v15070_v49, %v3023_v3  ;;  %v18484_v29 = vpack.c.bf16 %v15647_v17, %v15644_v55  ;;  %v3398_v19 = vld [vmem:[%s18358_s1 + $0x688] sm:$0xff]  ;;  %v3397_v55 = vld [vmem:[%s18358_s1 + $0x680] sm:$0xff] }
 0x19d   :  { %vm2510_vm15 = vcmp.ge.f32.partialorder %v1754_v47, 0.0  ;;  %v2766_v4 = vmul.f32 0.2, %v1754_v47  ;;  %v15850_v20 = vpop.permute.xlu1 %4162  ;;  %v3024_v37 = vsel %vm2512_vm14, %v1762_v10, %v2768_v32  ;;  %v15853_v8 = vpop.permute.xlu0 %4157  ;;  %v15873_v54 = vmul.f32 %v15050_v30, %v3021_v53  ;;  %v13718_v17 = vld [vmem:[%s18360_s0 + $0x328] sm:$0xff]  }
 0x19e   :  { %12648 = vmatmul.mubr.msk.bf16.gmra.mrb[4].mxu1 %vm4999_vm9, %v18483_v43  ;;  %4482 = vperm.xlu1 %13612, %v3396_v21   ;;  %v15863_v57 = vmul.f32 %v15068_v35, %v3024_v37  ;;  %v12407_v10 = vpop.f32.mrb[92].mxu0 }
 0x19f   :  { %v3022_v0 = vsel %vm2510_vm15, %v1754_v47, %v2766_v4  ;;  %4477 = vperm.xlu0 %13611, %v3395_v62   ;;  %12651 = vmatprep.mubr.msk.bf16.mxu1 %vm4999_vm9, %v18484_v29  ;;  %v1775_v35 = vadd.f32 %v15217_v42, %v12407_v10  ;;  %v1766_v37 = vpop.f32.mrb[93].mxu0  ;;  %v3400_v10 = vld [vmem:[%s18358_s1 + $0x698] sm:$0xff] }
 0x1a0   :  { %v15876_v49 = vmul.f32 %v15048_v6, %v3022_v0  ;;  %v1767_v18 = vadd.f32 %v15217_v42, %v1766_v37  ;;  %v12408_v30 = vpop.f32.mrb[94].mxu0  ;;  %v13719_v6 = vld [vmem:[%s18360_s0 + $0x330] sm:$0xff]   ;;  %v15901_v0 = vld [vmem:[%s18362_s10] ss:$0 sm:$0xff] }
 0x1a1   :  { %v15886_v47 = vpop.permute.xlu1 %4172  ;;  %vm2515_vm2 = vcmp.ge.f32.partialorder %v1775_v35, 0.0  ;;  %v2771_v3 = vmul.f32 0.2, %v1775_v35  ;;  %v15893_v32 = vpop.permute.xlu0 %4167  ;;  %v1778_v62 = vadd.f32 %v15217_v42, %v12408_v30  ;;  %v3399_v37 = vld [vmem:[%s18358_s1 + $0x690] sm:$0xff] }
 0x1a2   :  { %4492 = vperm.xlu1 %13612, %v3398_v19   ;;  %v1769_v53 = vpop.f32.mrb[95].mxu0  ;;  %vm2513_vm3 = vcmp.ge.f32.partialorder %v1767_v18, 0.0  ;;  %v2769_v43 = vmul.f32 0.2, %v1767_v18 }
 0x1a3   :  { %4487 = vperm.xlu0 %13611, %v3397_v55   ;;  %v1770_v29 = vadd.f32 %v15901_v0, %v1769_v53  ;;  %v3027_v42 = vsel %vm2515_vm2, %v1775_v35, %v2771_v3  ;;  %vm2516_vm4 = vcmp.ge.f32.partialorder %v1778_v62, 0.0  ;;  %v2772_v19 = vmul.f32 0.2, %v1778_v62  ;;  %12514 = vmatmul.mubr.msk.bf16.gmra.mrb[200].mxu0 %vm979_vm0, %v13718_v17 }
 0x1a4   :  { %v3025_v55 = vsel %vm2513_vm3, %v1767_v18, %v2769_v43  ;;  %12517 = vmatprep.mubr.msk.bf16.mxu0 %vm979_vm0, %v13719_v6  ;;  %v18485_v35 = vpack.c.bf16 %v15634_v5, %v15631_v59  ;;  %v15921_v17 = vmul.f32 %v15136_v23, %v3027_v42  ;;  %v18486_v6 = vpack.c.bf16 %v15704_v33, %v15701_v7  ;;  %v3402_v59 = vld [vmem:[%s18358_s1 + $0x6a8] sm:$0xff]  ;;  %v3401_v7 = vld [vmem:[%s18358_s1 + $0x6a0] sm:$0xff]  ;;  %v13720_v33 = vld [vmem:[%s18360_s0 + $0x338] sm:$0xff]  }
 0x1a5   :  { %vm2514_vm5 = vcmp.ge.f32.partialorder %v1770_v29, 0.0  ;;  %v2770_v30 = vmul.f32 0.2, %v1770_v29  ;;  %v15911_v21 = vpop.permute.xlu1 %4182  ;;  %v3028_v53 = vsel %vm2516_vm4, %v1778_v62, %v2772_v19  ;;  %v15914_v4 = vpop.permute.xlu0 %4177  ;;  %v15934_v5 = vmul.f32 %v15114_v61, %v3025_v55 }
 0x1a6   :  { %12652 = vmatmul.mubr.msk.bf16.gmra.mrb[8].mxu1 %vm4999_vm9, %v18485_v35  ;;  %4502 = vperm.xlu1 %13612, %v3400_v10   ;;  %v15924_v18 = vmul.f32 %v15134_v12, %v3028_v53  ;;  %v12411_v62 = vpop.f32.mrb[96].mxu0 }
 0x1a7   :  { %v3026_v3 = vsel %vm2514_vm5, %v1770_v29, %v2770_v30  ;;  %4497 = vperm.xlu0 %13611, %v3399_v37   ;;  %12655 = vmatprep.mubr.msk.bf16.mxu1 %vm4999_vm9, %v18486_v6  ;;  %v1791_v12 = vadd.f32 %v15901_v0, %v12411_v62  ;;  %v1782_v43 = vpop.f32.mrb[97].mxu0  ;;  %v3404_v6 = vld [vmem:[%s18358_s1 + $0x6b8] sm:$0xff] }
 0x1a8   :  { %v15937_v23 = vmul.f32 %v15112_v27, %v3026_v3  ;;  %v1783_v29 = vadd.f32 %v15901_v0, %v1782_v43  ;;  %v12412_v61 = vpop.f32.mrb[98].mxu0  ;;  %v13721_v27 = vld [vmem:[%s18360_s0 + $0x340] sm:$0xff]  }
 0x1a9   :  { %v15947_v10 = vpop.permute.xlu1 %4192  ;;  %vm2519_vm6 = vcmp.ge.f32.partialorder %v1791_v12, 0.0  ;;  %v2775_v19 = vmul.f32 0.2, %v1791_v12  ;;  %v15954_v37 = vpop.permute.xlu0 %4187  ;;  %v1794_v55 = vadd.f32 %v15901_v0, %v12412_v61 }
 0x1aa   :  { %4512 = vperm.xlu1 %13612, %v3402_v59   ;;  %v1785_v30 = vpop.f32.mrb[99].mxu0  ;;  %vm2517_vm7 = vcmp.ge.f32.partialorder %v1783_v29, 0.0  ;;  %v2773_v35 = vmul.f32 0.2, %v1783_v29  ;;  %v3403_v59 = vld [vmem:[%s18358_s1 + $0x6b0] sm:$0xff] }
 0x1ab   :  { %4507 = vperm.xlu0 %13611, %v3401_v7   ;;  %v1786_v3 = vadd.f32 %v15901_v0, %v1785_v30  ;;  %v3031_v62 = vsel %vm2519_vm6, %v1791_v12, %v2775_v19  ;;  %vm2520_vm8 = vcmp.ge.f32.partialorder %v1794_v55, 0.0  ;;  %v2776_v43 = vmul.f32 0.2, %v1794_v55  ;;  %12518 = vmatmul.mubr.msk.bf16.gmra.mrb[204].mxu0 %vm979_vm0, %v13720_v33 }
 0x1ac   :  { %v3029_v61 = vsel %vm2517_vm7, %v1783_v29, %v2773_v35  ;;  %12521 = vmatprep.mubr.msk.bf16.mxu0 %vm979_vm0, %v13721_v27  ;;  %v18487_v12 = vpack.c.bf16 %v15691_v56, %v15688_v41  ;;  %v15977_v33 = vmul.f32 %v15193_v44, %v3031_v62  ;;  %v18488_v27 = vpack.c.bf16 %v15761_v52, %v15758_v31  ;;  %v3406_v41 = vld [vmem:[%s18358_s1 + $0x6c8] sm:$0xff]  ;;  %v18489_v44 = vld [vmem:[#allocation2_spill] sm:$0xff]  ;;  %v13723_v62 = vld [vmem:[%s18360_s0 + $0x350] sm:$0xff]  }
 0x1ad   :  { %vm2518_vm10 = vcmp.ge.f32.partialorder %v1786_v3, 0.0  ;;  %v2774_v42 = vmul.f32 0.2, %v1786_v3  ;;  %v15967_v53 = vpop.permute.xlu1 %4202  ;;  %v3032_v7 = vsel %vm2520_vm8, %v1794_v55, %v2776_v43  ;;  %v15970_v30 = vpop.permute.xlu0 %4197  ;;  %v15990_v56 = vmul.f32 %v15173_v13, %v3029_v61  ;;  %v3405_v31 = vld [vmem:[%s18358_s1 + $0x6c0] sm:$0xff]  ;;  %v13722_v52 = vld [vmem:[%s18360_s0 + $0x348] sm:$0xff]  }
 0x1ae   :  { %12656 = vmatmul.mubr.msk.bf16.gmra.mrb[12].mxu1 %vm4999_vm9, %v18487_v12  ;;  %4522 = vperm.xlu1 %13612, %v3404_v6   ;;  %v15980_v29 = vmul.f32 %v15191_v26, %v3032_v7  ;;  %v12415_v55 = vpop.f32.mrb[100].mxu0 }
 0x1af   :  { %v3030_v19 = vsel %vm2518_vm10, %v1786_v3, %v2774_v42  ;;  %4517 = vperm.xlu0 %13611, %v3403_v59   ;;  %12661 = vmatprep.mubr.msk.bf16.mxu1 %vm4999_vm9, %v18488_v27  ;;  %v1807_v26 = vadd.f32 %v15901_v0, %v12415_v55  ;;  %v1798_v42 = vpop.f32.mrb[101].mxu0  ;;  %v3408_v55 = vld [vmem:[%s18358_s1 + $0x6d8] sm:$0xff] }
 0x1b0   :  { %v15993_v35 = vmul.f32 %v18489_v44, %v3030_v19  ;;  %v1799_v13 = vadd.f32 %v15901_v0, %v1798_v42  ;;  %v12416_v6 = vpop.f32.mrb[102].mxu0 }
 0x1b1   :  { %vm2523_vm11 = vcmp.ge.f32.partialorder %v1807_v26, 0.0  ;;  %v2779_v43 = vmul.f32 0.2, %v1807_v26  ;;  %v1810_v59 = vadd.f32 %v15901_v0, %v12416_v6  ;;  %v1801_v61 = vpop.f32.mrb[103].mxu0  ;;  %v16011_v19 = vpop.permute.xlu1 %4212  ;;  %v3407_v6 = vld [vmem:[%s18358_s1 + $0x6d0] sm:$0xff] }
 0x1b2   :  { %4532 = vperm.xlu1 %13612, %v3406_v41   ;;  %vm2521_vm12 = vcmp.ge.f32.partialorder %v1799_v13, 0.0  ;;  %v2777_v12 = vmul.f32 0.2, %v1799_v13  ;;  %18490 = vst [vmem:[#allocation30_spill] sm:$0xff] %v16011_v19  ;;  %v1802_v27 = vadd.f32 %v15901_v0, %v1801_v61  ;;  %v16017_v42 = vpop.permute.xlu0 %4207  ;;  %v5879_v61 = vsel %vm5024_vm1, %v15799_v39, 0 }
 0x1b3   :  { %4527 = vperm.xlu0 %13611, %v3405_v31   ;;  %v3035_v44 = vsel %vm2523_vm11, %v1807_v26, %v2779_v43  ;;  %18491 = vst [vmem:[#allocation2_spill] sm:$0xff] %v16017_v42  ;;  %vm2524_vm13 = vcmp.ge.f32.partialorder %v1810_v59, 0.0  ;;  %v2780_v41 = vmul.f32 0.2, %v1810_v59  ;;  %12522 = vmatmul.mubr.msk.bf16.gmra.mrb[208].mxu0 %vm979_vm0, %v13722_v52  ;;  %v18492_v26 = vpack.c.bf16 %v15748_v60, %v15745_v14  ;;  %v16033_v52 = vld [vmem:[%s18361_s3 + $0x1c] sm:$0xf] }
 0x1b4   :  { %v3033_v3 = vsel %vm2521_vm12, %v1799_v13, %v2777_v12  ;;  %vm2522_vm14 = vcmp.ge.f32.partialorder %v1802_v27, 0.0  ;;  %v2778_v31 = vmul.f32 0.2, %v1802_v27  ;;  %12525 = vmatprep.mubr.msk.bf16.mxu0 %vm979_vm0, %v13723_v62  ;;  %v18493_v13 = vld [vmem:[#allocation3_spill] sm:$0xff]  ;;  %v18494_v12 = vld [vmem:[#allocation4_spill] sm:$0xff]  ;;  %v18495_v39 = vpack.c.bf16 %v15825_v1, %v15822_v51  ;;  %v3409_v51 = vld [vmem:[%s18358_s1 + $0x6e0] sm:$0xff] }
 0x1b5   :  { %v3036_v7 = vsel %vm2524_vm13, %v1810_v59, %v2780_v41  ;;  %v16036_v43 = vmul.f32 %v18493_v13, %v3035_v44  ;;  %v3410_v60 = vld [vmem:[%s18358_s1 + $0x6e8] sm:$0xff]  ;;  %v18496_v59 = vld [vmem:[#allocation5_spill] sm:$0xff]  ;;  %v18497_v44 = vld [vmem:[#allocation6_spill] sm:$0xff] }
 0x1b6   :  { %12662 = vmatmul.mubr.msk.bf16.vlgmr.msra.gmra.mrb[0].mxu1 %vm4999_vm9, %v18492_v26  ;;  %4542 = vperm.xlu1 %13612, %v3408_v55   ;;  %v16039_v62 = vmul.f32 %v18494_v12, %v3036_v7  ;;  %v3034_v48 = vsel %vm2522_vm14, %v1802_v27, %v2778_v31  ;;  %v12419_v14 = vpop.f32.mrb[104].mxu0  ;;  %v16049_v55 = vmul.f32 %v18496_v59, %v3033_v3  ;;  %v13724_v1 = vld [vmem:[%s18360_s0 + $0x358] sm:$0xff]   ;;  %v16071_v13 = vpop.permute.xlu0 %4217  ;;  %v18503_v42 = vld [vmem:[#allocation8_spill] sm:$0xff] }
 0x1b7   :  { %4537 = vperm.xlu0 %13611, %v3407_v6   ;;  %12665 = vmatprep.mubr.msk.bf16.mxu1 %vm4999_vm9, %v18495_v39  ;;  %v16052_v41 = vmul.f32 %v18497_v44, %v3034_v48  ;;  %v1823_v7 = vadd.f32 %v15901_v0, %v12419_v14  ;;  %v1814_v27 = vpop.f32.mrb[105].mxu0  ;;  %v16061_v6 = vpop.permute.xlu1 %4222  ;;  %v13725_v48 = vld [vmem:[%s18360_s0 + $0x360] sm:$0xff]   ;;  %18499 = vst [vmem:[#allocation4_spill] sm:$0xff] %v16071_v13 }
 0x1b8   :  { %12678 = vmatpush3.bf16.msra.mxu1 %v5879_v61  ;;  %18498 = vst [vmem:[#allocation3_spill] sm:$0xff] %v16061_v6  ;;  %v1815_v3 = vadd.f32 %v15901_v0, %v1814_v27  ;;  %v12420_v31 = vpop.f32.mrb[106].mxu0  ;;  %v3412_v27 = vld [vmem:[%s18358_s1 + $0x6f8] sm:$0xff] }
 0x1b9   :  { %13600 = vmatprep.subr.msk.bf16.mxu1 %vm5024_vm1, %v16033_v52  ;;  %vm2527_vm15 = vcmp.ge.f32.partialorder %v1823_v7, 0.0  ;;  %v2783_v12 = vmul.f32 0.2, %v1823_v7  ;;  %v1826_v61 = vadd.f32 %v15901_v0, %v12420_v31  ;;  %v1817_v39 = vpop.f32.mrb[107].mxu0 }
 0x1ba   :  { %4552 = vperm.xlu1 %13612, %v3410_v60   ;;  %vm2525_vm2 = vcmp.ge.f32.partialorder %v1815_v3, 0.0  ;;  %v2781_v59 = vmul.f32 0.2, %v1815_v3  ;;  %v1818_v44 = vadd.f32 %v15901_v0, %v1817_v39  ;;  %v3411_v60 = vld [vmem:[%s18358_s1 + $0x6f0] sm:$0xff]  ;;  %v18500_v39 = vpack.c.bf16 %v15812_v45, %v15809_v22  ;;  %v3414_v22 = vld [vmem:[%s18358_s1 + $0x708] sm:$0xff]  ;;  %v18505_v45 = vld [vmem:[#allocation9_spill] sm:$0xff] }
 0x1bb   :  { %4547 = vperm.xlu0 %13611, %v3409_v51   ;;  %v3039_v26 = vsel %vm2527_vm15, %v1823_v7, %v2783_v12  ;;  %vm2528_vm3 = vcmp.ge.f32.partialorder %v1826_v61, 0.0  ;;  %v2784_v19 = vmul.f32 0.2, %v1826_v61  ;;  %12526 = vmatmul.mubr.msk.bf16.gmra.mrb[212].mxu0 %vm979_vm0, %v13724_v1  ;;  %v18501_v7 = vld [vmem:[#allocation7_spill] sm:$0xff]  ;;  %v16092_v1 = vpop.permute.xlu1 %4232 }
 0x1bc   :  { %v3037_v31 = vsel %vm2525_vm2, %v1815_v3, %v2781_v59  ;;  %vm2526_vm4 = vcmp.ge.f32.partialorder %v1818_v44, 0.0  ;;  %v2782_v14 = vmul.f32 0.2, %v1818_v44  ;;  %12529 = vmatprep.mubr.msk.bf16.mxu0 %vm979_vm0, %v13725_v48  ;;  %v16090_v12 = vmul.f32 %v18501_v7, %v3039_v26  ;;  %18502 = vst [vmem:[#allocation5_spill] sm:$0xff] %v16092_v1  ;;  %v18507_v59 = vld [vmem:[#allocation10_spill] sm:$0xff] }
 0x1bd   :  { %v3040_v51 = vsel %vm2528_vm3, %v1826_v61, %v2784_v19  ;;  %v18504_v48 = vpack.c.bf16 %v15876_v49, %v15873_v54  ;;  %v16105_v26 = vmul.f32 %v18505_v45, %v3037_v31  ;;  %v16107_v61 = vpop.permute.xlu0 %4227  ;;  %v3413_v54 = vld [vmem:[%s18358_s1 + $0x700] sm:$0xff]  ;;  %v13726_v49 = vld [vmem:[%s18360_s0 + $0x368] sm:$0xff]   ;;  %v13727_v31 = vld [vmem:[%s18360_s0 + $0x370] sm:$0xff]  }
 0x1be   :  { %12666 = vmatmul.mubr.msk.bf16.gmra.mrb[4].mxu1 %vm4999_vm9, %v18500_v39  ;;  %4562 = vperm.xlu1 %13612, %v3412_v27   ;;  %v16095_v6 = vmul.f32 %v18503_v42, %v3040_v51  ;;  %v3038_v3 = vsel %vm2526_vm4, %v1818_v44, %v2782_v14  ;;  %v12423_v19 = vpop.f32.mrb[108].mxu0  ;;  %18506 = vst [vmem:[#allocation6_spill] sm:$0xff] %v16107_v61  ;;  %v18511_v61 = vld [vmem:[#allocation12_spill] sm:$0xff] }
 0x1bf   :  { %4557 = vperm.xlu0 %13611, %v3411_v60   ;;  %12669 = vmatprep.mubr.msk.bf16.mxu1 %vm4999_vm9, %v18504_v48  ;;  %v16110_v42 = vmul.f32 %v18507_v59, %v3038_v3  ;;  %v1839_v14 = vadd.f32 %v15901_v0, %v12423_v19  ;;  %v1830_v44 = vpop.f32.mrb[109].mxu0  ;;  %v3416_v59 = vld [vmem:[%s18358_s1 + $0x718] sm:$0xff] }
 0x1c0   :  { %v1831_v27 = vadd.f32 %v15901_v0, %v1830_v44  ;;  %v12424_v60 = vpop.f32.mrb[110].mxu0 }
 0x1c1   :  { %vm2531_vm5 = vcmp.ge.f32.partialorder %v1839_v14, 0.0  ;;  %v2787_v39 = vmul.f32 0.2, %v1839_v14  ;;  %v1842_v7 = vadd.f32 %v15901_v0, %v12424_v60  ;;  %v1833_v3 = vpop.f32.mrb[111].mxu0  ;;  %v16136_v60 = vpop.permute.xlu1 %4242 }
 0x1c2   :  { %4572 = vperm.xlu1 %13612, %v3414_v22   ;;  %vm2529_vm6 = vcmp.ge.f32.partialorder %v1831_v27, 0.0  ;;  %v2785_v19 = vmul.f32 0.2, %v1831_v27  ;;  %v1834_v45 = vadd.f32 %v15901_v0, %v1833_v3  ;;  %v3415_v22 = vld [vmem:[%s18358_s1 + $0x710] sm:$0xff]  ;;  %18508 = vst [vmem:[#allocation7_spill] sm:$0xff] %v16136_v60  ;;  %v16139_v3 = vpop.permute.xlu0 %4237 }
 0x1c3   :  { %4567 = vperm.xlu0 %13611, %v3413_v54   ;;  %v3043_v44 = vsel %vm2531_vm5, %v1839_v14, %v2787_v39  ;;  %vm2532_vm7 = vcmp.ge.f32.partialorder %v1842_v7, 0.0  ;;  %v2788_v51 = vmul.f32 0.2, %v1842_v7  ;;  %12530 = vmatmul.mubr.msk.bf16.gmra.mrb[216].mxu0 %vm979_vm0, %v13726_v49  ;;  %v18509_v14 = vpack.c.bf16 %v15863_v57, %v15860_v40  ;;  %v18510_v49 = vld [vmem:[#allocation11_spill] sm:$0xff]  ;;  %v18513_v57 = vld [vmem:[#allocation13_spill] sm:$0xff] }
 0x1c4   :  { %v3041_v48 = vsel %vm2529_vm6, %v1831_v27, %v2785_v19  ;;  %vm2530_vm8 = vcmp.ge.f32.partialorder %v1834_v45, 0.0  ;;  %v2786_v54 = vmul.f32 0.2, %v1834_v45  ;;  %12533 = vmatprep.mubr.msk.bf16.mxu0 %vm979_vm0, %v13727_v31  ;;  %v16146_v39 = vmul.f32 %v18510_v49, %v3043_v44  ;;  %v3418_v40 = vld [vmem:[%s18358_s1 + $0x728] sm:$0xff]  ;;  %v18514_v19 = vld [vmem:[#allocation14_spill] sm:$0xff] }
 0x1c5   :  { %v3044_v1 = vsel %vm2532_vm7, %v1842_v7, %v2788_v51  ;;  %v18512_v31 = vpack.c.bf16 %v15937_v23, %v15934_v5  ;;  %v16159_v7 = vmul.f32 %v18513_v57, %v3041_v48  ;;  %v3417_v5 = vld [vmem:[%s18358_s1 + $0x720] sm:$0xff]  ;;  %v13728_v23 = vld [vmem:[%s18360_s0 + $0x378] sm:$0xff]  }
 0x1c6   :  { %12670 = vmatmul.mubr.msk.bf16.gmra.mrb[8].mxu1 %vm4999_vm9, %v18509_v14  ;;  %4582 = vperm.xlu1 %13612, %v3416_v59   ;;  %v16149_v13 = vmul.f32 %v18511_v61, %v3044_v1  ;;  %v3042_v27 = vsel %vm2530_vm8, %v1834_v45, %v2786_v54  ;;  %v12427_v51 = vpop.f32.mrb[112].mxu0  ;;  %v13729_v48 = vld [vmem:[%s18360_s0 + $0x380] sm:$0xff]  }
 0x1c7   :  { %4577 = vperm.xlu0 %13611, %v3415_v22   ;;  %12673 = vmatprep.mubr.msk.bf16.mxu1 %vm4999_vm9, %v18512_v31  ;;  %v16162_v59 = vmul.f32 %v18514_v19, %v3042_v27  ;;  %v1855_v1 = vadd.f32 %v15901_v0, %v12427_v51  ;;  %v1846_v61 = vpop.f32.mrb[113].mxu0  ;;  %v16180_v31 = vpop.permute.xlu1 %4252  ;;  %v3420_v19 = vld [vmem:[%s18358_s1 + $0x738] sm:$0xff] }
 0x1c8   :  { %v1847_v45 = vadd.f32 %v15901_v0, %v1846_v61  ;;  %v12428_v44 = vpop.f32.mrb[114].mxu0  ;;  %18515 = vst [vmem:[#allocation8_spill] sm:$0xff] %v16180_v31  ;;  %v16186_v61 = vpop.permute.xlu0 %4247  ;;  %v18517_v31 = vpack.c.bf16 %v15924_v18, %v15921_v17  ;;  %v3422_v17 = vld [vmem:[%s18358_s1 + $0x748] sm:$0xff]  ;;  %v18521_v18 = vld [vmem:[#allocation17_spill] sm:$0xff] }
 0x1c9   :  { %vm2535_vm10 = vcmp.ge.f32.partialorder %v1855_v1, 0.0  ;;  %v2791_v54 = vmul.f32 0.2, %v1855_v1  ;;  %v1858_v14 = vadd.f32 %v15901_v0, %v12428_v44  ;;  %v1849_v49 = vpop.f32.mrb[115].mxu0  ;;  %18516 = vst [vmem:[#allocation9_spill] sm:$0xff] %v16186_v61  ;;  %v3419_v44 = vld [vmem:[%s18358_s1 + $0x730] sm:$0xff] }
 0x1ca   :  { %4592 = vperm.xlu1 %13612, %v3418_v40   ;;  %vm2533_vm11 = vcmp.ge.f32.partialorder %v1847_v45, 0.0  ;;  %v2789_v51 = vmul.f32 0.2, %v1847_v45  ;;  %v1850_v57 = vadd.f32 %v15901_v0, %v1849_v49 }
 0x1cb   :  { %4587 = vperm.xlu0 %13611, %v3417_v5   ;;  %v3047_v22 = vsel %vm2535_vm10, %v1855_v1, %v2791_v54  ;;  %vm2536_vm12 = vcmp.ge.f32.partialorder %v1858_v14, 0.0  ;;  %v2792_v40 = vmul.f32 0.2, %v1858_v14  ;;  %12534 = vmatmul.mubr.msk.bf16.gmra.mrb[220].mxu0 %vm979_vm0, %v13728_v23  ;;  %v18518_v1 = vld [vmem:[#allocation15_spill] sm:$0xff]  ;;  %v18519_v23 = vld [vmem:[#allocation16_spill] sm:$0xff] }
 0x1cc   :  { %v3045_v27 = vsel %vm2533_vm11, %v1847_v45, %v2789_v51  ;;  %vm2534_vm13 = vcmp.ge.f32.partialorder %v1850_v57, 0.0  ;;  %v2790_v5 = vmul.f32 0.2, %v1850_v57  ;;  %12537 = vmatprep.mubr.msk.bf16.mxu0 %vm979_vm0, %v13729_v48  ;;  %v16198_v54 = vmul.f32 %v18518_v1, %v3047_v22  ;;  %v18522_v22 = vld [vmem:[#allocation18_spill] sm:$0xff] }
 0x1cd   :  { %v3048_v49 = vsel %vm2536_vm12, %v1858_v14, %v2792_v40  ;;  %v18520_v45 = vpack.c.bf16 %v15993_v35, %v15990_v56  ;;  %v16211_v14 = vmul.f32 %v18521_v18, %v3045_v27  ;;  %v3421_v56 = vld [vmem:[%s18358_s1 + $0x740] sm:$0xff]  ;;  %v13730_v35 = vld [vmem:[%s18360_s0 + $0x388] sm:$0xff]  }
 0x1ce   :  { %12674 = vmatmul.mubr.msk.bf16.gmra.mrb[12].mxu1 %vm4999_vm9, %v18517_v31  ;;  %4602 = vperm.xlu1 %13612, %v3420_v19   ;;  %v16201_v61 = vmul.f32 %v18519_v23, %v3048_v49  ;;  %v3046_v60 = vsel %vm2534_vm13, %v1850_v57, %v2790_v5  ;;  %v12431_v48 = vpop.f32.mrb[116].mxu0  ;;  %v16223_v19 = vpop.permute.xlu1 %4262 }
 0x1cf   :  { %4597 = vperm.xlu0 %13611, %v3419_v44   ;;  %12679 = vmatprep.mubr.msk.bf16.mxu1 %vm4999_vm9, %v18520_v45  ;;  %v16214_v31 = vmul.f32 %v18522_v22, %v3046_v60  ;;  %v1871_v51 = vadd.f32 %v15901_v0, %v12431_v48  ;;  %v1862_v57 = vpop.f32.mrb[117].mxu0  ;;  %18523 = vst [vmem:[#allocation10_spill] sm:$0xff] %v16223_v19  ;;  %v13731_v44 = vld [vmem:[%s18360_s0 + $0x390] sm:$0xff]   ;;  %v16231_v5 = vpop.permute.xlu0 %4257  ;;  %v3424_v22 = vld [vmem:[%s18358_s1 + $0x758] sm:$0xff] }
 0x1d0   :  { %v1863_v40 = vadd.f32 %v15901_v0, %v1862_v57  ;;  %v12432_v60 = vpop.f32.mrb[118].mxu0  ;;  %18524 = vst [vmem:[#allocation11_spill] sm:$0xff] %v16231_v5 }
 0x1d1   :  { %vm2539_vm14 = vcmp.ge.f32.partialorder %v1871_v51, 0.0  ;;  %v2795_v49 = vmul.f32 0.2, %v1871_v51  ;;  %v1874_v1 = vadd.f32 %v15901_v0, %v12432_v60  ;;  %v1865_v23 = vpop.f32.mrb[119].mxu0 }
 0x1d2   :  { %4612 = vperm.xlu1 %13612, %v3422_v17   ;;  %vm2537_vm15 = vcmp.ge.f32.partialorder %v1863_v40, 0.0  ;;  %v2793_v48 = vmul.f32 0.2, %v1863_v40  ;;  %v1866_v18 = vadd.f32 %v15901_v0, %v1865_v23  ;;  %v3423_v17 = vld [vmem:[%s18358_s1 + $0x750] sm:$0xff] }
 0x1d3   :  { %4607 = vperm.xlu0 %13611, %v3421_v56   ;;  %v3051_v57 = vsel %vm2539_vm14, %v1871_v51, %v2795_v49  ;;  %vm2540_vm2 = vcmp.ge.f32.partialorder %v1874_v1, 0.0  ;;  %v2796_v27 = vmul.f32 0.2, %v1874_v1  ;;  %12538 = vmatmul.mubr.msk.bf16.gmra.mrb[224].mxu0 %vm979_vm0, %v13730_v35  ;;  %v6028_v56 = vsel %vm5024_vm1, %v16033_v52, 0  ;;  %v16254_v35 = vld [vmem:[%s18361_s3 + $0x20] sm:$0xf] }
 0x1d4   :  { %v3049_v60 = vsel %vm2537_vm15, %v1863_v40, %v2793_v48  ;;  %vm2538_vm3 = vcmp.ge.f32.partialorder %v1866_v18, 0.0  ;;  %v2794_v45 = vmul.f32 0.2, %v1866_v18  ;;  %12541 = vmatprep.mubr.msk.bf16.mxu0 %vm979_vm0, %v13731_v44  ;;  %v18525_v51 = vpack.c.bf16 %v15980_v29, %v15977_v33  ;;  %v16256_v40 = vpop.permute.xlu1 %4272  ;;  %v18527_v49 = vld [vmem:[#allocation19_spill] sm:$0xff]  ;;  %v18528_v44 = vld [vmem:[#allocation20_spill] sm:$0xff] }
 0x1d5   :  { %v3052_v23 = vsel %vm2540_vm2, %v1874_v1, %v2796_v27  ;;  %18526 = vst [vmem:[#allocation12_spill] sm:$0xff] %v16256_v40  ;;  %v16259_v48 = vmul.f32 %v18527_v49, %v3051_v57  ;;  %v18529_v33 = vpack.c.bf16 %v16052_v41, %v16049_v55  ;;  %v3426_v27 = vld [vmem:[%s18358_s1 + $0x768] sm:$0xff]  ;;  %v16271_v1 = vpop.permute.xlu0 %4267  ;;  %v3425_v55 = vld [vmem:[%s18358_s1 + $0x760] sm:$0xff]  ;;  %v13732_v41 = vld [vmem:[%s18360_s0 + $0x398] sm:$0xff]  }
 0x1d6   :  { %12680 = vmatmul.mubr.msk.bf16.vlgmr.msra.gmra.mrb[0].mxu1 %vm4999_vm9, %v18525_v51  ;;  %4622 = vperm.xlu1 %13612, %v3424_v22   ;;  %v16262_v19 = vmul.f32 %v18528_v44, %v3052_v23  ;;  %v3050_v52 = vsel %vm2538_vm3, %v1866_v18, %v2794_v45  ;;  %v12435_v29 = vpop.f32.mrb[120].mxu0  ;;  %18530 = vst [vmem:[#allocation13_spill] sm:$0xff] %v16271_v1  ;;  %v18531_v22 = vld [vmem:[#allocation21_spill] sm:$0xff]  ;;  %v18532_v51 = vld [vmem:[#allocation22_spill] sm:$0xff] }
 0x1d7   :  { %4617 = vperm.xlu0 %13611, %v3423_v17   ;;  %12683 = vmatprep.mubr.msk.bf16.mxu1 %vm4999_vm9, %v18529_v33  ;;  %v16274_v57 = vmul.f32 %v18531_v22, %v3049_v60  ;;  %v16277_v23 = vmul.f32 %v18532_v51, %v3050_v52  ;;  %v1887_v45 = vadd.f32 %v15901_v0, %v12435_v29  ;;  %v1878_v18 = vpop.f32.mrb[121].mxu0  ;;  %v13733_v60 = vld [vmem:[%s18360_s0 + $0x3a0] sm:$0xff]  }
 0x1d8   :  { %12696 = vmatpush3.bf16.msra.mxu1 %v6028_v56  ;;  %v1879_v17 = vadd.f32 %v15901_v0, %v1878_v18  ;;  %v12436_v49 = vpop.f32.mrb[122].mxu0  ;;  %v3428_v18 = vld [vmem:[%s18358_s1 + $0x778] sm:$0xff] }
 0x1d9   :  { %13601 = vmatprep.subr.msk.bf16.mxu1 %vm5024_vm1, %v16254_v35  ;;  %vm2543_vm4 = vcmp.ge.f32.partialorder %v1887_v45, 0.0  ;;  %v2799_v52 = vmul.f32 0.2, %v1887_v45  ;;  %v1890_v33 = vadd.f32 %v15901_v0, %v12436_v49  ;;  %v1881_v29 = vpop.f32.mrb[123].mxu0  ;;  %v16305_v49 = vpop.permute.xlu1 %4282 }
 0x1da   :  { %4632 = vperm.xlu1 %13612, %v3426_v27   ;;  %vm2541_vm5 = vcmp.ge.f32.partialorder %v1879_v17, 0.0  ;;  %v2797_v22 = vmul.f32 0.2, %v1879_v17  ;;  %v1882_v51 = vadd.f32 %v15901_v0, %v1881_v29  ;;  %v3427_v27 = vld [vmem:[%s18358_s1 + $0x770] sm:$0xff]  ;;  %v16308_v29 = vpop.permute.xlu0 %4277 }
 0x1db   :  { %4627 = vperm.xlu0 %13611, %v3425_v55   ;;  %v3055_v44 = vsel %vm2543_vm4, %v1887_v45, %v2799_v52  ;;  %vm2544_vm6 = vcmp.ge.f32.partialorder %v1890_v33, 0.0  ;;  %v2800_v40 = vmul.f32 0.2, %v1890_v33  ;;  %12542 = vmatmul.mubr.msk.bf16.gmra.mrb[228].mxu0 %vm979_vm0, %v13732_v41  ;;  %v18533_v45 = vpack.c.bf16 %v16039_v62, %v16036_v43  ;;  %v18534_v52 = vld [vmem:[#allocation24_spill] sm:$0xff]  ;;  %v3430_v43 = vld [vmem:[%s18358_s1 + $0x788] sm:$0xff]  ;;  %v18536_v62 = vld [vmem:[#allocation25_spill] sm:$0xff] }
 0x1dc   :  { %v3053_v56 = vsel %vm2541_vm5, %v1879_v17, %v2797_v22  ;;  %vm2542_vm7 = vcmp.ge.f32.partialorder %v1882_v51, 0.0  ;;  %v2798_v55 = vmul.f32 0.2, %v1882_v51  ;;  %12545 = vmatprep.mubr.msk.bf16.mxu0 %vm979_vm0, %v13733_v60  ;;  %v16315_v41 = vmul.f32 %v15549_v25, %v3055_v44  ;;  %v18537_v25 = vld [vmem:[#allocation26_spill] sm:$0xff] }
 0x1dd   :  { %v3056_v1 = vsel %vm2544_vm6, %v1890_v33, %v2800_v40  ;;  %v18535_v60 = vpack.c.bf16 %v16110_v42, %v16105_v26  ;;  %v16328_v33 = vmul.f32 %v18536_v62, %v3053_v56  ;;  %v3429_v26 = vld [vmem:[%s18358_s1 + $0x780] sm:$0xff]  ;;  %v13734_v42 = vld [vmem:[%s18360_s0 + $0x3a8] sm:$0xff]   ;;  %v13735_v56 = vld [vmem:[%s18360_s0 + $0x3b0] sm:$0xff]  }
 0x1de   :  { %12684 = vmatmul.mubr.msk.bf16.gmra.mrb[4].mxu1 %vm4999_vm9, %v18533_v45  ;;  %4642 = vperm.xlu1 %13612, %v3428_v18   ;;  %v16318_v5 = vmul.f32 %v18534_v52, %v3056_v1  ;;  %v3054_v17 = vsel %vm2542_vm7, %v1882_v51, %v2798_v55  ;;  %v12439_v40 = vpop.f32.mrb[124].mxu0 }
 0x1df   :  { %4637 = vperm.xlu0 %13611, %v3427_v27   ;;  %12687 = vmatprep.mubr.msk.bf16.mxu1 %vm4999_vm9, %v18535_v60  ;;  %v16331_v44 = vmul.f32 %v18537_v25, %v3054_v17  ;;  %v1903_v1 = vadd.f32 %v15901_v0, %v12439_v40  ;;  %v1894_v22 = vpop.f32.mrb[125].mxu0  ;;  %v16349_v60 = vpop.permute.xlu1 %4292  ;;  %v3432_v25 = vld [vmem:[%s18358_s1 + $0x798] sm:$0xff] }
 0x1e0   :  { %v1895_v51 = vadd.f32 %v15901_v0, %v1894_v22  ;;  %v12440_v18 = vpop.f32.mrb[126].mxu0  ;;  %18538 = vst [vmem:[#allocation14_spill] sm:$0xff] %v16349_v60  ;;  %v16355_v22 = vpop.permute.xlu0 %4287  ;;  %v18539_v60 = vpack.c.bf16 %v16095_v6, %v16090_v12  ;;  %v3434_v6 = vld [vmem:[%s18358_s1 + $0x7a8] sm:$0xff]  ;;  %v18541_v12 = vld [vmem:[#allocation29_spill] sm:$0xff] }
 0x1e1   :  { %vm2547_vm8 = vcmp.ge.f32.partialorder %v1903_v1, 0.0  ;;  %v2803_v55 = vmul.f32 0.2, %v1903_v1  ;;  %v1906_v45 = vadd.f32 %v15901_v0, %v12440_v18  ;;  %v1897_v52 = vpop.f32.mrb[127].mxu0  ;;  %v3431_v18 = vld [vmem:[%s18358_s1 + $0x790] sm:$0xff] }
 0x1e2   :  { %4652 = vperm.xlu1 %13612, %v3430_v43   ;;  %vm2545_vm10 = vcmp.ge.f32.partialorder %v1895_v51, 0.0  ;;  %v2801_v40 = vmul.f32 0.2, %v1895_v51  ;;  %v1898_v62 = vadd.f32 %v15901_v0, %v1897_v52 }
 0x1e3   :  { %4647 = vperm.xlu0 %13611, %v3429_v26   ;;  %v3059_v27 = vsel %vm2547_vm8, %v1903_v1, %v2803_v55  ;;  %vm2548_vm11 = vcmp.ge.f32.partialorder %v1906_v45, 0.0  ;;  %v2804_v43 = vmul.f32 0.2, %v1906_v45  ;;  %12546 = vmatmul.mubr.msk.bf16.gmra.mrb[232].mxu0 %vm979_vm0, %v13734_v42 }
 0x1e4   :  { %v3057_v17 = vsel %vm2545_vm10, %v1895_v51, %v2801_v40  ;;  %vm2546_vm12 = vcmp.ge.f32.partialorder %v1898_v62, 0.0  ;;  %v2802_v26 = vmul.f32 0.2, %v1898_v62  ;;  %12549 = vmatprep.mubr.msk.bf16.mxu0 %vm979_vm0, %v13735_v56  ;;  %v16367_v1 = vmul.f32 %v15615_v63, %v3059_v27  ;;  %v18542_v63 = vld [vmem:[#allocation23_spill] sm:$0xff]  ;;  %v16392_v40 = vpop.permute.xlu1 %4302 }
 0x1e5   :  { %v3060_v52 = vsel %vm2548_vm11, %v1906_v45, %v2804_v43  ;;  %v18540_v51 = vpack.c.bf16 %v16162_v59, %v16159_v7  ;;  %v16380_v45 = vmul.f32 %v18541_v12, %v3057_v17  ;;  %v3433_v7 = vld [vmem:[%s18358_s1 + $0x7a0] sm:$0xff]  ;;  %v13736_v59 = vld [vmem:[%s18360_s0 + $0x3b8] sm:$0xff]  }
 0x1e6   :  { %12688 = vmatmul.mubr.msk.bf16.gmra.mrb[8].mxu1 %vm4999_vm9, %v18539_v60  ;;  %4662 = vperm.xlu1 %13612, %v3432_v25   ;;  %v16370_v42 = vmul.f32 %v15613_v36, %v3060_v52  ;;  %v3058_v55 = vsel %vm2546_vm12, %v1898_v62, %v2802_v26  ;;  %v12443_v56 = vpop.f32.mrb[128].mxu0  ;;  %v13737_v25 = vld [vmem:[%s18360_s0 + $0x3c0] sm:$0xff]  }
 0x1e7   :  { %4657 = vperm.xlu0 %13611, %v3431_v18   ;;  %12691 = vmatprep.mubr.msk.bf16.mxu1 %vm4999_vm9, %v18540_v51  ;;  %v16383_v27 = vmul.f32 %v18542_v63, %v3058_v55  ;;  %v1919_v36 = vadd.f32 %v15901_v0, %v12443_v56  ;;  %v1910_v60 = vpop.f32.mrb[129].mxu0  ;;  %v16400_v18 = vpop.permute.xlu0 %4297  ;;  %v3436_v63 = vld [vmem:[%s18358_s1 + $0x7b8] sm:$0xff] }
 0x1e8   :  { %v1911_v62 = vadd.f32 %v15901_v0, %v1910_v60  ;;  %v12444_v17 = vpop.f32.mrb[130].mxu0 }
 0x1e9   :  { %vm2551_vm13 = vcmp.ge.f32.partialorder %v1919_v36, 0.0  ;;  %v2807_v26 = vmul.f32 0.2, %v1919_v36  ;;  %v1922_v52 = vadd.f32 %v15901_v0, %v12444_v17  ;;  %v1913_v55 = vpop.f32.mrb[131].mxu0 }
 0x1ea   :  { %4672 = vperm.xlu1 %13612, %v3434_v6   ;;  %vm2549_vm14 = vcmp.ge.f32.partialorder %v1911_v62, 0.0  ;;  %v2805_v56 = vmul.f32 0.2, %v1911_v62  ;;  %v1914_v12 = vadd.f32 %v15901_v0, %v1913_v55  ;;  %v3435_v6 = vld [vmem:[%s18358_s1 + $0x7b0] sm:$0xff]  ;;  %v18543_v55 = vpack.c.bf16 %v16149_v13, %v16146_v39  ;;  %v3438_v13 = vld [vmem:[%s18358_s1 + $0x7c8] sm:$0xff] }
 0x1eb   :  { %4667 = vperm.xlu0 %13611, %v3433_v7   ;;  %v3063_v60 = vsel %vm2551_vm13, %v1919_v36, %v2807_v26  ;;  %vm2552_vm15 = vcmp.ge.f32.partialorder %v1922_v52, 0.0  ;;  %v2808_v43 = vmul.f32 0.2, %v1922_v52  ;;  %12550 = vmatmul.mubr.msk.bf16.gmra.mrb[236].mxu0 %vm979_vm0, %v13736_v59  ;;  %v16418_v36 = vpop.permute.xlu1 %4312  ;;  %v16433_v39 = vpop.permute.xlu0 %4307 }
 0x1ec   :  { %v3061_v17 = vsel %vm2549_vm14, %v1911_v62, %v2805_v56  ;;  %vm2550_vm2 = vcmp.ge.f32.partialorder %v1914_v12, 0.0  ;;  %v2806_v51 = vmul.f32 0.2, %v1914_v12  ;;  %12553 = vmatprep.mubr.msk.bf16.mxu0 %vm979_vm0, %v13737_v25  ;;  %v16421_v59 = vmul.f32 %v15672_v46, %v3063_v60  ;;  %v13739_v60 = vld [vmem:[%s18360_s0 + $0x3d0] sm:$0xff]  }
 0x1ed   :  { %v3064_v7 = vsel %vm2552_vm15, %v1922_v52, %v2808_v43  ;;  %v18544_v25 = vpack.c.bf16 %v16214_v31, %v16211_v14  ;;  %v16436_v46 = vmul.f32 %v15652_v16, %v3061_v17  ;;  %v18545_v52 = vld [vmem:[#allocation28_spill] sm:$0xff]  ;;  %v3437_v14 = vld [vmem:[%s18358_s1 + $0x7c0] sm:$0xff]  ;;  %v13738_v31 = vld [vmem:[%s18360_s0 + $0x3c8] sm:$0xff]  }
 0x1ee   :  { %12692 = vmatmul.mubr.msk.bf16.gmra.mrb[12].mxu1 %vm4999_vm9, %v18543_v55  ;;  %4682 = vperm.xlu1 %13612, %v3436_v63   ;;  %v16424_v26 = vmul.f32 %v15670_v24, %v3064_v7  ;;  %v3062_v62 = vsel %vm2550_vm2, %v1914_v12, %v2806_v51  ;;  %v12447_v43 = vpop.f32.mrb[132].mxu0 }
 0x1ef   :  { %4677 = vperm.xlu0 %13611, %v3435_v6   ;;  %12697 = vmatprep.mubr.msk.bf16.mxu1 %vm4999_vm9, %v18544_v25  ;;  %v16439_v24 = vmul.f32 %v18545_v52, %v3062_v62  ;;  %v1935_v51 = vadd.f32 %v15901_v0, %v12447_v43  ;;  %v1926_v56 = vpop.f32.mrb[133].mxu0  ;;  %v3440_v43 = vld [vmem:[%s18358_s1 + $0x7d8] sm:$0xff]  ;;  %v16470_v55 = vpop.permute.xlu0 %4317 }
 0x1f0   :  { %v1927_v16 = vadd.f32 %v15901_v0, %v1926_v56  ;;  %v12448_v63 = vpop.f32.mrb[134].mxu0 }
 0x1f1   :  { %vm2555_vm3 = vcmp.ge.f32.partialorder %v1935_v51, 0.0  ;;  %v2811_v6 = vmul.f32 0.2, %v1935_v51  ;;  %v1938_v17 = vadd.f32 %v15901_v0, %v12448_v63  ;;  %v1929_v7 = vpop.f32.mrb[135].mxu0  ;;  %v16465_v63 = vpop.permute.xlu1 %4322 }
 0x1f2   :  { %4692 = vperm.xlu1 %13612, %v3438_v13   ;;  %vm2553_vm4 = vcmp.ge.f32.partialorder %v1927_v16, 0.0  ;;  %v2809_v62 = vmul.f32 0.2, %v1927_v16  ;;  %v1930_v25 = vadd.f32 %v15901_v0, %v1929_v7  ;;  %v3439_v13 = vld [vmem:[%s18358_s1 + $0x7d0] sm:$0xff]  ;;  %v6177_v7 = vsel %vm5024_vm1, %v16254_v35, 0 }
 0x1f3   :  { %4687 = vperm.xlu0 %13611, %v3437_v14   ;;  %v3067_v52 = vsel %vm2555_vm3, %v1935_v51, %v2811_v6  ;;  %vm2556_vm5 = vcmp.ge.f32.partialorder %v1938_v17, 0.0  ;;  %v2812_v56 = vmul.f32 0.2, %v1938_v17  ;;  %12554 = vmatmul.mubr.msk.bf16.gmra.mrb[240].mxu0 %vm979_vm0, %v13738_v31  ;;  %v18546_v31 = vpack.c.bf16 %v16201_v61, %v16198_v54  ;;  %v3442_v54 = vld [vmem:[%s18358_s1 + $0x7e8] sm:$0xff] }
 0x1f4   :  { %v3065_v12 = vsel %vm2553_vm4, %v1927_v16, %v2809_v62  ;;  %vm2554_vm6 = vcmp.ge.f32.partialorder %v1930_v25, 0.0  ;;  %v2810_v14 = vmul.f32 0.2, %v1930_v25  ;;  %12557 = vmatprep.mubr.msk.bf16.mxu0 %vm979_vm0, %v13739_v60  ;;  %v16479_v16 = vld [vmem:[%s18361_s3 + $0x24] sm:$0xf]  ;;  %v16482_v6 = vmul.f32 %v15729_v11, %v3067_v52 }
 0x1f5   :  { %v3068_v51 = vsel %vm2556_vm5, %v1938_v17, %v2812_v56  ;;  %v18547_v17 = vpack.c.bf16 %v16277_v23, %v16274_v57  ;;  %v16495_v62 = vmul.f32 %v15709_v50, %v3065_v12  ;;  %v3441_v57 = vld [vmem:[%s18358_s1 + $0x7e0] sm:$0xff]  ;;  %v13740_v23 = vld [vmem:[%s18360_s0 + $0x3d8] sm:$0xff]   ;;  %v18548_v50 = vpack.c.bf16 %v16262_v19, %v16259_v48 }
 0x1f6   :  { %12698 = vmatmul.mubr.msk.bf16.vlgmr.msra.gmra.mrb[0].mxu1 %vm4999_vm9, %v18546_v31  ;;  %4702 = vperm.xlu1 %13612, %v3440_v43   ;;  %v16485_v60 = vmul.f32 %v15727_v2, %v3068_v51  ;;  %v3066_v35 = vsel %vm2554_vm6, %v1930_v25, %v2810_v14  ;;  %v12451_v61 = vpop.f32.mrb[136].mxu0 }
 0x1f7   :  { %4697 = vperm.xlu0 %13611, %v3439_v13   ;;  %12701 = vmatprep.mubr.msk.bf16.mxu1 %vm4999_vm9, %v18547_v17  ;;  %v16498_v11 = vmul.f32 %v15707_v34, %v3066_v35  ;;  %v1951_v2 = vadd.f32 %v15901_v0, %v12451_v61  ;;  %v1942_v25 = vpop.f32.mrb[137].mxu0  ;;  %v13741_v34 = vld [vmem:[%s18360_s0 + $0x3e0] sm:$0xff]   ;;  %v3444_v35 = vld [vmem:[%s18358_s1 + $0x7f8] sm:$0xff]  ;;  %v16524_v17 = vpop.permute.xlu0 %4327 }
 0x1f8   :  { %12714 = vmatpush3.bf16.msra.mxu1 %v6177_v7  ;;  %v1943_v43 = vadd.f32 %v15901_v0, %v1942_v25  ;;  %v12452_v52 = vpop.f32.mrb[138].mxu0  ;;  %v16518_v7 = vpop.permute.xlu1 %4332  ;;  %v3443_v25 = vld [vmem:[%s18358_s1 + $0x7f0] sm:$0xff] }
 0x1f9   :  { %13602 = vmatprep.subr.msk.bf16.mxu1 %vm5024_vm1, %v16479_v16  ;;  %vm2559_vm7 = vcmp.ge.f32.partialorder %v1951_v2, 0.0  ;;  %v2815_v12 = vmul.f32 0.2, %v1951_v2  ;;  %v1954_v56 = vadd.f32 %v15901_v0, %v12452_v52  ;;  %v1945_v13 = vpop.f32.mrb[139].mxu0  ;;  %v6145_v14 = vpack.c.bf16 %v16498_v11, %v16495_v62 }
 0x1fa   :  { %4712 = vperm.xlu1 %13612, %v3442_v54   ;;  %vm2557_vm8 = vcmp.ge.f32.partialorder %v1943_v43, 0.0  ;;  %v2813_v51 = vmul.f32 0.2, %v1943_v43  ;;  %v1946_v31 = vadd.f32 %v15901_v0, %v1945_v13 }
 0x1fb   :  { %4707 = vperm.xlu0 %13611, %v3441_v57   ;;  %v3071_v61 = vsel %vm2559_vm7, %v1951_v2, %v2815_v12  ;;  %vm2560_vm10 = vcmp.ge.f32.partialorder %v1954_v56, 0.0  ;;  %v2816_v54 = vmul.f32 0.2, %v1954_v56  ;;  %12558 = vmatmul.mubr.msk.bf16.gmra.mrb[244].mxu0 %vm979_vm0, %v13740_v23 }
 0x1fc   :  { %v3069_v52 = vsel %vm2557_vm8, %v1943_v43, %v2813_v51  ;;  %vm2558_vm11 = vcmp.ge.f32.partialorder %v1946_v31, 0.0  ;;  %v2814_v57 = vmul.f32 0.2, %v1946_v31  ;;  %12561 = vmatprep.mubr.msk.bf16.mxu0 %vm979_vm0, %v13741_v34  ;;  %v16536_v2 = vmul.f32 %v15790_v38, %v3071_v61  ;;  %v16563_v51 = vpop.permute.xlu0 %4337 }
 0x1fd   :  { %v3072_v13 = vsel %vm2560_vm10, %v1954_v56, %v2816_v54  ;;  %v18549_v43 = vpack.c.bf16 %v16331_v44, %v16328_v33  ;;  %v16546_v56 = vmul.f32 %v15766_v58, %v3069_v52  ;;  %v13743_v58 = vld [vmem:[%s18360_s0 + $0x3f0] sm:$0xff]  }
 0x1fe   :  { %12702 = vmatmul.mubr.msk.bf16.gmra.mrb[4].mxu1 %vm4999_vm9, %v18548_v50  ;;  %4722 = vperm.xlu1 %13612, %v3444_v35   ;;  %v16539_v23 = vmul.f32 %v15784_v15, %v3072_v13  ;;  %v3070_v12 = vsel %vm2558_vm11, %v1946_v31, %v2814_v57  ;;  %v12455_v34 = vpop.f32.mrb[140].mxu0  ;;  %v13742_v15 = vld [vmem:[%s18360_s0 + $0x3e8] sm:$0xff]   ;;  %v16555_v50 = vpop.permute.xlu1 %4342  ;;  %v16568_v35 = vld [vmem:[%s18362_s10] ss:$0 sm:$0xff] }
 0x1ff   :  { %4717 = vperm.xlu0 %13611, %v3443_v25   ;;  %12705 = vmatprep.mubr.msk.bf16.mxu1 %vm4999_vm9, %v18549_v43  ;;  %v16549_v19 = vmul.f32 %v15764_v9, %v3070_v12  ;;  %v1967_v38 = vadd.f32 %v15901_v0, %v12455_v34  ;;  %v1958_v48 = vpop.f32.mrb[141].mxu0 }
 0x200   :  { %v1959_v33 = vadd.f32 %v15901_v0, %v1958_v48  ;;  %v12456_v44 = vpop.f32.mrb[142].mxu0  ;;  %v6148_v9 = vpack.c.bf16 %v16539_v23, %v16536_v2  ;;  %v18550_v48 = vpack.c.bf16 %v16318_v5, %v16315_v41  ;;  %v18552_v41 = vld [vmem:[#allocation27_spill] sm:$0xff] }
 0x201   :  { %vm2563_vm12 = vcmp.ge.f32.partialorder %v1967_v38, 0.0  ;;  %v2819_v31 = vmul.f32 0.2, %v1967_v38  ;;  %v1970_v61 = vadd.f32 %v16568_v35, %v12456_v44  ;;  %v1961_v0 = vpop.f32.mrb[143].mxu0  ;;  %v6147_v54 = vpack.c.bf16 %v16549_v19, %v16546_v56 }
 0x202   :  { %vm2561_vm13 = vcmp.ge.f32.partialorder %v1959_v33, 0.0  ;;  %v2817_v25 = vmul.f32 0.2, %v1959_v33  ;;  %v1962_v52 = vadd.f32 %v16568_v35, %v1961_v0  ;;  %v16580_v44 = vpop.permute.xlu1 %4352 }
 0x203   :  { %v3075_v57 = vsel %vm2563_vm12, %v1967_v38, %v2819_v31  ;;  %vm2564_vm14 = vcmp.ge.f32.partialorder %v1970_v61, 0.0  ;;  %v2820_v13 = vmul.f32 0.2, %v1970_v61  ;;  %12562 = vmatmul.mubr.msk.bf16.gmra.mrb[248].mxu0 %vm979_vm0, %v13742_v15  ;;  %v16592_v31 = vpop.permute.xlu0 %4347 }
 0x204   :  { %v3073_v12 = vsel %vm2561_vm13, %v1959_v33, %v2817_v25  ;;  %vm2562_vm15 = vcmp.ge.f32.partialorder %v1962_v52, 0.0  ;;  %v2818_v43 = vmul.f32 0.2, %v1962_v52  ;;  %12565 = vmatprep.mubr.msk.bf16.mxu0 %vm979_vm0, %v13743_v58  ;;  %v16583_v0 = vmul.f32 %v15853_v8, %v3075_v57 }
 0x205   :  { %v3076_v34 = vsel %vm2564_vm14, %v1970_v61, %v2820_v13  ;;  %v18551_v33 = vpack.c.bf16 %v16383_v27, %v16380_v45  ;;  %v16595_v5 = vmul.f32 %v15835_v28, %v3073_v12 }
 0x206   :  { %12706 = vmatmul.mubr.msk.bf16.gmra.mrb[8].mxu1 %vm4999_vm9, %v18550_v48  ;;  %v16586_v38 = vmul.f32 %v15850_v20, %v3076_v34  ;;  %v3074_v15 = vsel %vm2562_vm15, %v1962_v52, %v2818_v43  ;;  %v12459_v58 = vpop.f32.mrb[144].mxu0  ;;  %v13744_v20 = vld [vmem:[%s18360_s0 + $0x3f8] sm:$0xff]   ;;  %v18553_v52 = vpack.c.bf16 %v16370_v42, %v16367_v1 }
 0x207   :  { %12709 = vmatprep.mubr.msk.bf16.mxu1 %vm4999_vm9, %v18551_v33  ;;  %v16598_v61 = vmul.f32 %v18552_v41, %v3074_v15  ;;  %v1983_v8 = vadd.f32 %v16568_v35, %v12459_v58  ;;  %v1974_v25 = vpop.f32.mrb[145].mxu0  ;;  %v16612_v33 = vpop.permute.xlu1 %4362 }
 0x208   :  { %v1975_v45 = vadd.f32 %v16568_v35, %v1974_v25  ;;  %v12460_v27 = vpop.f32.mrb[146].mxu0  ;;  %v16614_v25 = vpop.permute.xlu0 %4357 }
 0x209   :  { %vm2567_vm2 = vcmp.ge.f32.partialorder %v1983_v8, 0.0  ;;  %v2823_v57 = vmul.f32 0.2, %v1983_v8  ;;  %v1986_v28 = vadd.f32 %v16568_v35, %v12460_v27  ;;  %v1977_v13 = vpop.f32.mrb[147].mxu0  ;;  %v6149_v12 = vpack.c.bf16 %v16598_v61, %v16595_v5 }
 0x20a   :  { %vm2565_vm3 = vcmp.ge.f32.partialorder %v1975_v45, 0.0  ;;  %v2821_v43 = vmul.f32 0.2, %v1975_v45  ;;  %v1978_v34 = vadd.f32 %v16568_v35, %v1977_v13 }
 0x20b   :  { %v3079_v48 = vsel %vm2567_vm2, %v1983_v8, %v2823_v57  ;;  %vm2568_vm4 = vcmp.ge.f32.partialorder %v1986_v28, 0.0  ;;  %v2824_v15 = vmul.f32 0.2, %v1986_v28  ;;  %12566 = vmatmul.mubr.msk.bf16.gmra.mrb[252].mxu0 %vm979_vm0, %v13744_v20 }
 0x20c   :  { %v3077_v58 = vsel %vm2565_vm3, %v1975_v45, %v2821_v43  ;;  %vm2566_vm5 = vcmp.ge.f32.partialorder %v1978_v34, 0.0  ;;  %v2822_v41 = vmul.f32 0.2, %v1978_v34  ;;  %v16621_v13 = vmul.f32 %v15914_v4, %v3079_v48  ;;  %v16643_v48 = vpop.permute.xlu1 %4372 }
 0x20d   :  { %v3080_v27 = vsel %vm2568_vm4, %v1986_v28, %v2824_v15  ;;  %v18554_v45 = vpack.c.bf16 %v16439_v24, %v16436_v46  ;;  %v16631_v28 = vmul.f32 %v15893_v32, %v3077_v58  ;;  %v16646_v58 = vpop.permute.xlu0 %4367 }
 0x20e   :  { %12710 = vmatmul.mubr.msk.bf16.gmra.mrb[12].mxu1 %vm4999_vm9, %v18553_v52  ;;  %v16624_v8 = vmul.f32 %v15911_v21, %v3080_v27  ;;  %v3078_v20 = vsel %vm2566_vm5, %v1978_v34, %v2822_v41  ;;  %v12463_v57 = vpop.f32.mrb[148].mxu0 }
 0x20f   :  { %12715 = vmatprep.mubr.msk.bf16.mxu1 %vm4999_vm9, %v18554_v45  ;;  %v16634_v1 = vmul.f32 %v15886_v47, %v3078_v20  ;;  %v1999_v42 = vadd.f32 %v16568_v35, %v12463_v57  ;;  %v1990_v4 = vpop.f32.mrb[149].mxu0  ;;  %v6326_v20 = vsel %vm5024_vm1, %v16479_v16, 0 }
 0x210   :  { %v1991_v52 = vadd.f32 %v16568_v35, %v1990_v4  ;;  %v12464_v43 = vpop.f32.mrb[150].mxu0  ;;  %v16653_v4 = vld [vmem:[%s18361_s3 + $0x28] sm:$0xf] }
 0x211   :  { %vm2571_vm6 = vcmp.ge.f32.partialorder %v1999_v42, 0.0  ;;  %v2827_v46 = vmul.f32 0.2, %v1999_v42  ;;  %v2002_v24 = vadd.f32 %v16568_v35, %v12464_v43  ;;  %v1993_v34 = vpop.f32.mrb[151].mxu0 }
 0x212   :  { %vm2569_vm7 = vcmp.ge.f32.partialorder %v1991_v52, 0.0  ;;  %v2825_v47 = vmul.f32 0.2, %v1991_v52  ;;  %v1994_v15 = vadd.f32 %v16568_v35, %v1993_v34  ;;  %v18555_v34 = vpack.c.bf16 %v16424_v26, %v16421_v59 }
 0x213   :  { %v3083_v41 = vsel %vm2571_vm6, %v1999_v42, %v2827_v46  ;;  %vm2572_vm8 = vcmp.ge.f32.partialorder %v2002_v24, 0.0  ;;  %v2828_v27 = vmul.f32 0.2, %v2002_v24 }
 0x214   :  { %v3081_v45 = vsel %vm2569_vm7, %v1991_v52, %v2825_v47  ;;  %vm2570_vm10 = vcmp.ge.f32.partialorder %v1994_v15, 0.0  ;;  %v2826_v57 = vmul.f32 0.2, %v1994_v15  ;;  %v16660_v42 = vmul.f32 %v15970_v30, %v3083_v41  ;;  %v16683_v47 = vpop.permute.xlu0 %4377  ;;  %v18558_v41 = vld [vmem:[#allocation3_spill] sm:$0xff] }
 0x215   :  { %v3084_v43 = vsel %vm2572_vm8, %v2002_v24, %v2828_v27  ;;  %v16670_v24 = vmul.f32 %v15954_v37, %v3081_v45 }
 0x216   :  { %12716 = vmatmul.mubr.msk.bf16.vlgmr.msra.gmra.mrb[0].mxu1 %vm4999_vm9, %v18555_v34  ;;  %v16663_v46 = vmul.f32 %v15967_v53, %v3084_v43  ;;  %v3082_v16 = vsel %vm2570_vm10, %v1994_v15, %v2826_v57  ;;  %v12467_v52 = vpop.f32.mrb[152].mxu0  ;;  %v16678_v53 = vpop.permute.xlu1 %4382 }
 0x217   :  { %12719 = vmatprep.mubr.msk.bf16.mxu1 %vm4999_vm9, %v6145_v14  ;;  %12732 = vmatpush3.bf16.msra.mxu1 %v6326_v20  ;;  %v16673_v59 = vmul.f32 %v15947_v10, %v3082_v16  ;;  %v2015_v30 = vadd.f32 %v16568_v35, %v12467_v52  ;;  %v2006_v26 = vpop.f32.mrb[153].mxu0  ;;  %v18556_v52 = vpack.c.bf16 %v16485_v60, %v16482_v6  ;;  %v18559_v6 = vld [vmem:[#allocation2_spill] sm:$0xff] }
 0x218   :  { %13603 = vmatprep.subr.msk.bf16.mxu1 %vm5024_vm1, %v16653_v4  ;;  %v2007_v62 = vadd.f32 %v16568_v35, %v2006_v26  ;;  %v12468_v11 = vpop.f32.mrb[154].mxu0 }
 0x219   :  { %vm2575_vm11 = vcmp.ge.f32.partialorder %v2015_v30, 0.0  ;;  %v2831_v37 = vmul.f32 0.2, %v2015_v30  ;;  %v2018_v10 = vadd.f32 %v16568_v35, %v12468_v11  ;;  %v2009_v15 = vpop.f32.mrb[155].mxu0  ;;  %v18557_v11 = vld [vmem:[#allocation4_spill] sm:$0xff] }
 0x21a   :  { %vm2573_vm12 = vcmp.ge.f32.partialorder %v2007_v62, 0.0  ;;  %v2829_v27 = vmul.f32 0.2, %v2007_v62  ;;  %v2010_v20 = vadd.f32 %v16568_v35, %v2009_v15  ;;  %v16693_v26 = vpop.permute.xlu1 %4392 }
 0x21b   :  { %v3087_v45 = vsel %vm2575_vm11, %v2015_v30, %v2831_v37  ;;  %vm2576_vm13 = vcmp.ge.f32.partialorder %v2018_v10, 0.0  ;;  %v2832_v57 = vmul.f32 0.2, %v2018_v10  ;;  %v16705_v37 = vpop.permute.xlu0 %4387 }
 0x21c   :  { %v3085_v43 = vsel %vm2573_vm12, %v2007_v62, %v2829_v27  ;;  %vm2574_vm14 = vcmp.ge.f32.partialorder %v2010_v20, 0.0  ;;  %v2830_v34 = vmul.f32 0.2, %v2010_v20  ;;  %v16696_v14 = vmul.f32 %v18557_v11, %v3087_v45 }
 0x21d   :  { %v3088_v16 = vsel %vm2576_vm13, %v2018_v10, %v2832_v57  ;;  %v16708_v60 = vmul.f32 %v18559_v6, %v3085_v43  ;;  %v18560_v10 = vld [vmem:[#allocation30_spill] sm:$0xff] }
 0x21e   :  { %12720 = vmatmul.mubr.msk.bf16.gmra.mrb[4].mxu1 %vm4999_vm9, %v18556_v52  ;;  %v16699_v21 = vmul.f32 %v18558_v41, %v3088_v16  ;;  %v3086_v30 = vsel %vm2574_vm14, %v2010_v20, %v2830_v34  ;;  %v12471_v62 = vpop.f32.mrb[156].mxu0  ;;  %v18566_v43 = vld [vmem:[#allocation10_spill] sm:$0xff] }
 0x21f   :  { %12723 = vmatprep.mubr.msk.bf16.mxu1 %vm4999_vm9, %v6147_v54  ;;  %v16711_v15 = vmul.f32 %v18560_v10, %v3086_v30  ;;  %v2031_v27 = vadd.f32 %v16568_v35, %v12471_v62  ;;  %v2022_v45 = vpop.f32.mrb[157].mxu0  ;;  %v16721_v30 = vpop.permute.xlu1 %4402 }
 0x220   :  { %v2023_v41 = vadd.f32 %v16568_v35, %v2022_v45  ;;  %v12472_v20 = vpop.f32.mrb[158].mxu0  ;;  %v16723_v10 = vpop.permute.xlu0 %4397 }
 0x221   :  { %vm2579_vm15 = vcmp.ge.f32.partialorder %v2031_v27, 0.0  ;;  %v2835_v19 = vmul.f32 0.2, %v2031_v27  ;;  %v2034_v54 = vadd.f32 %v16568_v35, %v12472_v20  ;;  %v2025_v57 = vpop.f32.mrb[159].mxu0 }
 0x222   :  { %vm2577_vm2 = vcmp.ge.f32.partialorder %v2023_v41, 0.0  ;;  %v2833_v34 = vmul.f32 0.2, %v2023_v41  ;;  %v2026_v16 = vadd.f32 %v16568_v35, %v2025_v57  ;;  %v18561_v57 = vld [vmem:[#allocation7_spill] sm:$0xff] }
 0x223   :  { %v3091_v52 = vsel %vm2579_vm15, %v2031_v27, %v2835_v19  ;;  %vm2580_vm3 = vcmp.ge.f32.partialorder %v2034_v54, 0.0  ;;  %v2836_v11 = vmul.f32 0.2, %v2034_v54 }
 0x224   :  { %v3089_v62 = vsel %vm2577_vm2, %v2023_v41, %v2833_v34  ;;  %vm2578_vm4 = vcmp.ge.f32.partialorder %v2026_v16, 0.0  ;;  %v2834_v6 = vmul.f32 0.2, %v2026_v16  ;;  %v16730_v20 = vmul.f32 %v16139_v3, %v3091_v52  ;;  %v18562_v34 = vld [vmem:[#allocation6_spill] sm:$0xff] }
 0x225   :  { %v3092_v45 = vsel %vm2580_vm3, %v2034_v54, %v2836_v11  ;;  %v16740_v54 = vmul.f32 %v18562_v34, %v3089_v62  ;;  %v18563_v11 = vld [vmem:[#allocation5_spill] sm:$0xff]  ;;  %v18565_v62 = vld [vmem:[#allocation11_spill] sm:$0xff] }
 0x226   :  { %12724 = vmatmul.mubr.msk.bf16.gmra.mrb[8].mxu1 %vm4999_vm9, %v6148_v9  ;;  %v16733_v27 = vmul.f32 %v18561_v57, %v3092_v45  ;;  %v3090_v19 = vsel %vm2578_vm4, %v2026_v16, %v2834_v6  ;;  %v12475_v41 = vpop.f32.mrb[160].mxu0  ;;  %v16752_v6 = vpop.permute.xlu1 %4412 }
 0x227   :  { %12727 = vmatprep.mubr.msk.bf16.mxu1 %vm4999_vm9, %v6149_v12  ;;  %v16743_v2 = vmul.f32 %v18563_v11, %v3090_v19  ;;  %v2047_v23 = vadd.f32 %v16568_v35, %v12475_v41  ;;  %v2038_v3 = vpop.f32.mrb[161].mxu0  ;;  %v16755_v19 = vpop.permute.xlu0 %4407 }
 0x228   :  { %v2039_v9 = vadd.f32 %v16568_v35, %v2038_v3  ;;  %v12476_v52 = vpop.f32.mrb[162].mxu0 }
 0x229   :  { %vm2583_vm5 = vcmp.ge.f32.partialorder %v2047_v23, 0.0  ;;  %v2839_v5 = vmul.f32 0.2, %v2047_v23  ;;  %v2050_v61 = vadd.f32 %v16568_v35, %v12476_v52  ;;  %v2041_v12 = vpop.f32.mrb[163].mxu0  ;;  %v18564_v52 = vpack.c.bf16 %v16586_v38, %v16583_v0 }
 0x22a   :  { %vm2581_vm6 = vcmp.ge.f32.partialorder %v2039_v9, 0.0  ;;  %v2837_v45 = vmul.f32 0.2, %v2039_v9  ;;  %v2042_v57 = vadd.f32 %v16568_v35, %v2041_v12 }
 0x22b   :  { %v3095_v41 = vsel %vm2583_vm5, %v2047_v23, %v2839_v5  ;;  %vm2584_vm7 = vcmp.ge.f32.partialorder %v2050_v61, 0.0  ;;  %v2840_v34 = vmul.f32 0.2, %v2050_v61  ;;  %v18567_v23 = vpack.c.bf16 %v16634_v1, %v16631_v28  ;;  %v18568_v5 = vld [vmem:[#allocation9_spill] sm:$0xff]  ;;  %v16783_v1 = vpop.permute.xlu0 %4417 }
 0x22c   :  { %v3093_v11 = vsel %vm2581_vm6, %v2039_v9, %v2837_v45  ;;  %vm2582_vm8 = vcmp.ge.f32.partialorder %v2042_v57, 0.0  ;;  %v2838_v3 = vmul.f32 0.2, %v2042_v57  ;;  %v16762_v56 = vmul.f32 %v18565_v62, %v3095_v41  ;;  %v18569_v45 = vld [vmem:[#allocation8_spill] sm:$0xff]  ;;  %v16778_v41 = vpop.permute.xlu1 %4422 }
 0x22d   :  { %v3096_v16 = vsel %vm2584_vm7, %v2050_v61, %v2840_v34  ;;  %v16772_v61 = vmul.f32 %v18568_v5, %v3093_v11  ;;  %v6475_v5 = vsel %vm5024_vm1, %v16653_v4, 0 }
 0x22e   :  { %12728 = vmatmul.mubr.msk.bf16.gmra.mrb[12].mxu1 %vm4999_vm9, %v18564_v52  ;;  %v16765_v32 = vmul.f32 %v18566_v43, %v3096_v16  ;;  %v3094_v12 = vsel %vm2582_vm8, %v2042_v57, %v2838_v3  ;;  %v12479_v9 = vpop.f32.mrb[164].mxu0  ;;  %v18570_v3 = vpack.c.bf16 %v16624_v8, %v16621_v13  ;;  %v18573_v13 = vld [vmem:[#allocation13_spill] sm:$0xff] }
 0x22f   :  { %12733 = vmatprep.mubr.msk.bf16.mxu1 %vm4999_vm9, %v18567_v23  ;;  %v16775_v0 = vmul.f32 %v18569_v45, %v3094_v12  ;;  %v2063_v38 = vadd.f32 %v16568_v35, %v12479_v9  ;;  %v2054_v62 = vpop.f32.mrb[165].mxu0 }
 0x230   :  { %v2055_v16 = vadd.f32 %v16568_v35, %v2054_v62  ;;  %v12480_v28 = vpop.f32.mrb[166].mxu0 }
 0x231   :  { %vm2587_vm10 = vcmp.ge.f32.partialorder %v2063_v38, 0.0  ;;  %v2843_v57 = vmul.f32 0.2, %v2063_v38  ;;  %v2066_v34 = vadd.f32 %v16568_v35, %v12480_v28  ;;  %v2057_v11 = vpop.f32.mrb[167].mxu0  ;;  %v16794_v28 = vld [vmem:[%s18361_s3 + $0x2c] sm:$0xf] }
 0x232   :  { %vm2585_vm11 = vcmp.ge.f32.partialorder %v2055_v16, 0.0  ;;  %v2841_v52 = vmul.f32 0.2, %v2055_v16  ;;  %v2058_v12 = vadd.f32 %v16568_v35, %v2057_v11  ;;  %v18572_v11 = vpack.c.bf16 %v16673_v59, %v16670_v24 }
 0x233   :  { %v3099_v23 = vsel %vm2587_vm10, %v2063_v38, %v2843_v57  ;;  %vm2588_vm12 = vcmp.ge.f32.partialorder %v2066_v34, 0.0  ;;  %v2844_v9 = vmul.f32 0.2, %v2066_v34  ;;  %v16800_v38 = vpop.permute.xlu1 %4432 }
 0x234   :  { %v3097_v45 = vsel %vm2585_vm11, %v2055_v16, %v2841_v52  ;;  %vm2586_vm13 = vcmp.ge.f32.partialorder %v2058_v12, 0.0  ;;  %v2842_v62 = vmul.f32 0.2, %v2058_v12  ;;  %18571 = vst [vmem:[#allocation15_spill] sm:$0xff] %v16800_v38  ;;  %v16803_v57 = vmul.f32 %v16308_v29, %v3099_v23  ;;  %v16812_v52 = vpop.permute.xlu0 %4427 }
 0x235   :  { %v3100_v43 = vsel %vm2588_vm12, %v2066_v34, %v2844_v9  ;;  %v16815_v8 = vmul.f32 %v18573_v13, %v3097_v45 }
 0x236   :  { %12734 = vmatmul.mubr.msk.bf16.vlgmr.msra.gmra.mrb[0].mxu1 %vm4999_vm9, %v18570_v3  ;;  %v16806_v4 = vmul.f32 %v16305_v49, %v3100_v43  ;;  %v3098_v16 = vsel %vm2586_vm13, %v2058_v12, %v2842_v62  ;;  %v12483_v34 = vpop.f32.mrb[168].mxu0  ;;  %v18574_v3 = vld [vmem:[#allocation12_spill] sm:$0xff] }
 0x237   :  { %12737 = vmatprep.mubr.msk.bf16.mxu1 %vm4999_vm9, %v18572_v11  ;;  %12750 = vmatpush3.bf16.msra.mxu1 %v6475_v5  ;;  %v16818_v9 = vmul.f32 %v18574_v3, %v3098_v16  ;;  %v2079_v29 = vadd.f32 %v16568_v35, %v12483_v34  ;;  %v2070_v49 = vpop.f32.mrb[169].mxu0  ;;  %v16830_v13 = vpop.permute.xlu1 %4442 }
 0x238   :  { %13604 = vmatprep.subr.msk.bf16.mxu1 %vm5024_vm1, %v16794_v28  ;;  %v2071_v24 = vadd.f32 %v16568_v35, %v2070_v49  ;;  %v12484_v59 = vpop.f32.mrb[170].mxu0  ;;  %v16832_v43 = vpop.permute.xlu0 %4437 }
 0x239   :  { %vm2591_vm14 = vcmp.ge.f32.partialorder %v2079_v29, 0.0  ;;  %v2847_v12 = vmul.f32 0.2, %v2079_v29  ;;  %v2082_v23 = vadd.f32 %v16568_v35, %v12484_v59  ;;  %v2073_v5 = vpop.f32.mrb[171].mxu0  ;;  %v18575_v59 = vpack.c.bf16 %v16663_v46, %v16660_v42 }
 0x23a   :  { %vm2589_vm15 = vcmp.ge.f32.partialorder %v2071_v24, 0.0  ;;  %v2845_v62 = vmul.f32 0.2, %v2071_v24  ;;  %v2074_v16 = vadd.f32 %v16568_v35, %v2073_v5 }
 0x23b   :  { %v3103_v11 = vsel %vm2591_vm14, %v2079_v29, %v2847_v12  ;;  %vm2592_vm2 = vcmp.ge.f32.partialorder %v2082_v23, 0.0  ;;  %v2848_v34 = vmul.f32 0.2, %v2082_v23 }
 0x23c   :  { %v3101_v3 = vsel %vm2589_vm15, %v2071_v24, %v2845_v62  ;;  %vm2590_vm3 = vcmp.ge.f32.partialorder %v2074_v16, 0.0  ;;  %v2846_v49 = vmul.f32 0.2, %v2074_v16  ;;  %v16839_v45 = vmul.f32 %v16400_v18, %v3103_v11  ;;  %v18577_v62 = vld [vmem:[#allocation14_spill] sm:$0xff] }
 0x23d   :  { %v3104_v38 = vsel %vm2592_vm2, %v2082_v23, %v2848_v34  ;;  %v18576_v24 = vpack.c.bf16 %v16711_v15, %v16708_v60  ;;  %v16849_v23 = vmul.f32 %v16355_v22, %v3101_v3  ;;  %v16861_v34 = vpop.permute.xlu1 %4452 }
 0x23e   :  { %12738 = vmatmul.mubr.msk.bf16.gmra.mrb[4].mxu1 %vm4999_vm9, %v18575_v59  ;;  %v16842_v29 = vmul.f32 %v16392_v40, %v3104_v38  ;;  %v3102_v12 = vsel %vm2590_vm3, %v2074_v16, %v2846_v49  ;;  %v12487_v5 = vpop.f32.mrb[172].mxu0  ;;  %v16864_v59 = vpop.permute.xlu0 %4447 }
 0x23f   :  { %12741 = vmatprep.mubr.msk.bf16.mxu1 %vm4999_vm9, %v18576_v24  ;;  %v16852_v42 = vmul.f32 %v18577_v62, %v3102_v12  ;;  %v2095_v46 = vadd.f32 %v16568_v35, %v12487_v5  ;;  %v2086_v18 = vpop.f32.mrb[173].mxu0 }
 0x240   :  { %v2087_v11 = vadd.f32 %v16568_v35, %v2086_v18  ;;  %v12488_v40 = vpop.f32.mrb[174].mxu0 }
 0x241   :  { %vm2595_vm4 = vcmp.ge.f32.partialorder %v2095_v46, 0.0  ;;  %v2851_v60 = vmul.f32 0.2, %v2095_v46  ;;  %v2098_v15 = vadd.f32 %v16568_v35, %v12488_v40  ;;  %v2089_v16 = vpop.f32.mrb[175].mxu0  ;;  %v18578_v40 = vpack.c.bf16 %v16699_v21, %v16696_v14 }
 0x242   :  { %vm2593_vm5 = vcmp.ge.f32.partialorder %v2087_v11, 0.0  ;;  %v2849_v3 = vmul.f32 0.2, %v2087_v11  ;;  %v2090_v49 = vadd.f32 %v16568_v35, %v2089_v16 }
 0x243   :  { %v3107_v12 = vsel %vm2595_vm4, %v2095_v46, %v2851_v60  ;;  %vm2596_vm6 = vcmp.ge.f32.partialorder %v2098_v15, 0.0  ;;  %v2852_v24 = vmul.f32 0.2, %v2098_v15  ;;  %v18579_v46 = vpack.c.bf16 %v16743_v2, %v16740_v54  ;;  %v16892_v2 = vpop.permute.xlu0 %4457 }
 0x244   :  { %v3105_v5 = vsel %vm2593_vm5, %v2087_v11, %v2849_v3  ;;  %vm2594_vm7 = vcmp.ge.f32.partialorder %v2090_v49, 0.0  ;;  %v2850_v62 = vmul.f32 0.2, %v2090_v49  ;;  %v16871_v38 = vmul.f32 %v16470_v55, %v3107_v12 }
 0x245   :  { %v3108_v18 = vsel %vm2596_vm6, %v2098_v15, %v2852_v24  ;;  %v16881_v60 = vmul.f32 %v16433_v39, %v3105_v5  ;;  %v16887_v15 = vpop.permute.xlu1 %4462 }
 0x246   :  { %12742 = vmatmul.mubr.msk.bf16.gmra.mrb[8].mxu1 %vm4999_vm9, %v18578_v40  ;;  %v16874_v22 = vmul.f32 %v16465_v63, %v3108_v18  ;;  %v3106_v16 = vsel %vm2594_vm7, %v2090_v49, %v2850_v62  ;;  %v12491_v11 = vpop.f32.mrb[176].mxu0 }
 0x247   :  { %12745 = vmatprep.mubr.msk.bf16.mxu1 %vm4999_vm9, %v18579_v46  ;;  %v16884_v21 = vmul.f32 %v16418_v36, %v3106_v16  ;;  %v2111_v14 = vadd.f32 %v16568_v35, %v12491_v11  ;;  %v2102_v55 = vpop.f32.mrb[177].mxu0  ;;  %v18580_v11 = vpack.c.bf16 %v16733_v27, %v16730_v20 }
 0x248   :  { %v2103_v63 = vadd.f32 %v16568_v35, %v2102_v55  ;;  %v12492_v3 = vpop.f32.mrb[178].mxu0 }
 0x249   :  { %vm2599_vm8 = vcmp.ge.f32.partialorder %v2111_v14, 0.0  ;;  %v2855_v49 = vmul.f32 0.2, %v2111_v14  ;;  %v2114_v39 = vadd.f32 %v16568_v35, %v12492_v3  ;;  %v2105_v12 = vpop.f32.mrb[179].mxu0  ;;  %v6447_v36 = vpack.c.bf16 %v16884_v21, %v16881_v60  ;;  %v16902_v55 = vpop.permute.xlu1 %4472 }
 0x24a   :  { %vm2597_vm10 = vcmp.ge.f32.partialorder %v2103_v63, 0.0  ;;  %v2853_v24 = vmul.f32 0.2, %v2103_v63  ;;  %v2106_v5 = vadd.f32 %v16568_v35, %v2105_v12 }
 0x24b   :  { %v3111_v62 = vsel %vm2599_vm8, %v2111_v14, %v2855_v49  ;;  %vm2600_vm11 = vcmp.ge.f32.partialorder %v2114_v39, 0.0  ;;  %v2856_v18 = vmul.f32 0.2, %v2114_v39 }
 0x24c   :  { %v3109_v40 = vsel %vm2597_vm10, %v2103_v63, %v2853_v24  ;;  %vm2598_vm12 = vcmp.ge.f32.partialorder %v2106_v5, 0.0  ;;  %v2854_v16 = vmul.f32 0.2, %v2106_v5  ;;  %v16905_v3 = vmul.f32 %v16563_v51, %v3111_v62 }
 0x24d   :  { %v3112_v46 = vsel %vm2600_vm11, %v2114_v39, %v2856_v18  ;;  %v18581_v63 = vpack.c.bf16 %v16775_v0, %v16772_v61  ;;  %v16914_v39 = vpop.permute.xlu0 %4467  ;;  %v16917_v20 = vmul.f32 %v16524_v17, %v3109_v40 }
 0x24e   :  { %12746 = vmatmul.mubr.msk.bf16.gmra.mrb[12].mxu1 %vm4999_vm9, %v18580_v11  ;;  %v16908_v54 = vmul.f32 %v16555_v50, %v3112_v46  ;;  %v3110_v14 = vsel %vm2598_vm12, %v2106_v5, %v2854_v16  ;;  %v12495_v49 = vpop.f32.mrb[180].mxu0  ;;  %v6624_v46 = vsel %vm5024_vm1, %v16794_v28, 0  ;;  %v16932_v11 = vpop.permute.xlu1 %4482 }
 0x24f   :  { %12751 = vmatprep.mubr.msk.bf16.mxu1 %vm4999_vm9, %v18581_v63  ;;  %v16920_v27 = vmul.f32 %v16518_v7, %v3110_v14  ;;  %v2127_v51 = vadd.f32 %v16568_v35, %v12495_v49  ;;  %v2118_v12 = vpop.f32.mrb[181].mxu0  ;;  %v16937_v49 = vld [vmem:[%s18361_s3 + $0x30] sm:$0xf] }
 0x250   :  { %v6591_v50 = vpack.c.bf16 %v16908_v54, %v16905_v3  ;;  %v2119_v24 = vadd.f32 %v16568_v35, %v2118_v12  ;;  %v12496_v61 = vpop.f32.mrb[182].mxu0  ;;  %v18588_v54 = vld [vmem:[#allocation15_spill] sm:$0xff] }
 0x251   :  { %vm2603_vm13 = vcmp.ge.f32.partialorder %v2127_v51, 0.0  ;;  %v2859_v0 = vmul.f32 0.2, %v2127_v51  ;;  %v2130_v5 = vadd.f32 %v16568_v35, %v12496_v61  ;;  %v2121_v62 = vpop.f32.mrb[183].mxu0  ;;  %v6590_v17 = vpack.c.bf16 %v16920_v27, %v16917_v20  ;;  %v16939_v12 = vpop.permute.xlu0 %4477 }
 0x252   :  { %vm2601_vm14 = vcmp.ge.f32.partialorder %v2119_v24, 0.0  ;;  %v2857_v7 = vmul.f32 0.2, %v2119_v24  ;;  %v2122_v18 = vadd.f32 %v16568_v35, %v2121_v62  ;;  %v18583_v62 = vpack.c.bf16 %v16818_v9, %v16815_v8 }
 0x253   :  { %v3115_v40 = vsel %vm2603_vm13, %v2127_v51, %v2859_v0  ;;  %vm2604_vm15 = vcmp.ge.f32.partialorder %v2130_v5, 0.0  ;;  %v2860_v16 = vmul.f32 0.2, %v2130_v5  ;;  %v18582_v51 = vpack.c.bf16 %v16765_v32, %v16762_v56 }
 0x254   :  { %v3113_v14 = vsel %vm2601_vm14, %v2119_v24, %v2857_v7  ;;  %vm2602_vm2 = vcmp.ge.f32.partialorder %v2122_v18, 0.0  ;;  %v2858_v63 = vmul.f32 0.2, %v2122_v18  ;;  %v16946_v28 = vmul.f32 %v16614_v25, %v3115_v40 }
 0x255   :  { %v3116_v61 = vsel %vm2604_vm15, %v2130_v5, %v2860_v16  ;;  %v16956_v5 = vmul.f32 %v16592_v31, %v3113_v14  ;;  %v16970_v16 = vpop.permute.xlu1 %4492 }
 0x256   :  { %12752 = vmatmul.mubr.msk.bf16.vlgmr.msra.gmra.mrb[0].mxu1 %vm4999_vm9, %v18582_v51  ;;  %v16949_v24 = vmul.f32 %v16612_v33, %v3116_v61  ;;  %v3114_v0 = vsel %vm2602_vm2, %v2122_v18, %v2858_v63  ;;  %v12499_v7 = vpop.f32.mrb[184].mxu0  ;;  %v16973_v63 = vpop.permute.xlu0 %4487 }
 0x257   :  { %12755 = vmatprep.mubr.msk.bf16.mxu1 %vm4999_vm9, %v18583_v62  ;;  %12768 = vmatpush3.bf16.msra.mxu1 %v6624_v46  ;;  %v16959_v32 = vmul.f32 %v16580_v44, %v3114_v0  ;;  %v2143_v25 = vadd.f32 %v16568_v35, %v12499_v7  ;;  %v2134_v56 = vpop.f32.mrb[185].mxu0 }
 0x258   :  { %13605 = vmatprep.subr.msk.bf16.mxu1 %vm5024_vm1, %v16937_v49  ;;  %v2135_v33 = vadd.f32 %v16568_v35, %v2134_v56  ;;  %v12500_v18 = vpop.f32.mrb[186].mxu0  ;;  %v18584_v56 = vpack.c.bf16 %v16806_v4, %v16803_v57 }
 0x259   :  { %vm2607_vm3 = vcmp.ge.f32.partialorder %v2143_v25, 0.0  ;;  %v2863_v9 = vmul.f32 0.2, %v2143_v25  ;;  %v2146_v31 = vadd.f32 %v16568_v35, %v12500_v18  ;;  %v2137_v40 = vpop.f32.mrb[187].mxu0  ;;  %v6592_v44 = vpack.c.bf16 %v16959_v32, %v16956_v5 }
 0x25a   :  { %vm2605_vm4 = vcmp.ge.f32.partialorder %v2135_v33, 0.0  ;;  %v2861_v46 = vmul.f32 0.2, %v2135_v33  ;;  %v2138_v14 = vadd.f32 %v16568_v35, %v2137_v40 }
 0x25b   :  { %v3119_v61 = vsel %vm2607_vm3, %v2143_v25, %v2863_v9  ;;  %vm2608_vm5 = vcmp.ge.f32.partialorder %v2146_v31, 0.0  ;;  %v2864_v51 = vmul.f32 0.2, %v2146_v31  ;;  %v18585_v25 = vpack.c.bf16 %v16852_v42, %v16849_v23  ;;  %v17001_v42 = vpop.permute.xlu0 %4497 }
 0x25c   :  { %v3117_v0 = vsel %vm2605_vm4, %v2135_v33, %v2861_v46  ;;  %vm2606_vm6 = vcmp.ge.f32.partialorder %v2138_v14, 0.0  ;;  %v2862_v62 = vmul.f32 0.2, %v2138_v14  ;;  %v16980_v18 = vmul.f32 %v16683_v47, %v3119_v61 }
 0x25d   :  { %v3120_v7 = vsel %vm2608_vm5, %v2146_v31, %v2864_v51  ;;  %v16990_v9 = vmul.f32 %v16646_v58, %v3117_v0  ;;  %v16996_v31 = vpop.permute.xlu1 %4502 }
 0x25e   :  { %12756 = vmatmul.mubr.msk.bf16.gmra.mrb[4].mxu1 %vm4999_vm9, %v18584_v56  ;;  %v16983_v8 = vmul.f32 %v16678_v53, %v3120_v7  ;;  %v3118_v40 = vsel %vm2606_vm6, %v2138_v14, %v2862_v62  ;;  %v12503_v33 = vpop.f32.mrb[188].mxu0 }
 0x25f   :  { %12759 = vmatprep.mubr.msk.bf16.mxu1 %vm4999_vm9, %v18585_v25  ;;  %v16993_v57 = vmul.f32 %v16643_v48, %v3118_v40  ;;  %v2159_v4 = vadd.f32 %v16568_v35, %v12503_v33  ;;  %v2150_v47 = vpop.f32.mrb[189].mxu0  ;;  %v18586_v33 = vpack.c.bf16 %v16842_v29, %v16839_v45 }
 0x260   :  { %v2151_v53 = vadd.f32 %v16568_v35, %v2150_v47  ;;  %v12504_v46 = vpop.f32.mrb[190].mxu0 }
 0x261   :  { %vm2611_vm7 = vcmp.ge.f32.partialorder %v2159_v4, 0.0  ;;  %v2867_v14 = vmul.f32 0.2, %v2159_v4  ;;  %v2162_v58 = vadd.f32 %v16568_v35, %v12504_v46  ;;  %v2153_v61 = vpop.f32.mrb[191].mxu0  ;;  %v6594_v48 = vpack.c.bf16 %v16993_v57, %v16990_v9  ;;  %v17011_v47 = vpop.permute.xlu1 %4512 }
 0x262   :  { %vm2609_vm8 = vcmp.ge.f32.partialorder %v2151_v53, 0.0  ;;  %v2865_v51 = vmul.f32 0.2, %v2151_v53  ;;  %v2154_v0 = vadd.f32 %v16568_v35, %v2153_v61 }
 0x263   :  { %v3123_v62 = vsel %vm2611_vm7, %v2159_v4, %v2867_v14  ;;  %vm2612_vm10 = vcmp.ge.f32.partialorder %v2162_v58, 0.0  ;;  %v2868_v7 = vmul.f32 0.2, %v2162_v58  ;;  %v17023_v14 = vpop.permute.xlu0 %4507 }
 0x264   :  { %v3121_v56 = vsel %vm2609_vm8, %v2151_v53, %v2865_v51  ;;  %vm2610_vm11 = vcmp.ge.f32.partialorder %v2154_v0, 0.0  ;;  %v2866_v40 = vmul.f32 0.2, %v2154_v0  ;;  %v17014_v46 = vmul.f32 %v16723_v10, %v3123_v62 }
 0x265   :  { %v3124_v25 = vsel %vm2612_vm10, %v2162_v58, %v2868_v7  ;;  %v17026_v45 = vmul.f32 %v16705_v37, %v3121_v56  ;;  %v17039_v56 = vpop.permute.xlu1 %4522 }
 0x266   :  { %12760 = vmatmul.mubr.msk.bf16.gmra.mrb[8].mxu1 %vm4999_vm9, %v18586_v33  ;;  %v17017_v23 = vmul.f32 %v16721_v30, %v3124_v25  ;;  %v3122_v4 = vsel %vm2610_vm11, %v2154_v0, %v2866_v40  ;;  %v12507_v53 = vpop.f32.mrb[192].mxu0 }
 0x267   :  { %12763 = vmatprep.mubr.msk.bf16.mxu1 %vm4999_vm9, %v6447_v36  ;;  %v17029_v29 = vmul.f32 %v16693_v26, %v3122_v4  ;;  %v2175_v10 = vadd.f32 %v16568_v35, %v12507_v53  ;;  %v2166_v58 = vpop.f32.mrb[193].mxu0  ;;  %v17041_v33 = vpop.permute.xlu0 %4517  ;;  %v18587_v53 = vpack.c.bf16 %v16874_v22, %v16871_v38 }
 0x268   :  { %v2167_v30 = vadd.f32 %v16568_v35, %v2166_v58  ;;  %v12508_v61 = vpop.f32.mrb[194].mxu0  ;;  %v6597_v60 = vpack.c.bf16 %v17017_v23, %v17014_v46 }
 0x269   :  { %vm2615_vm12 = vcmp.ge.f32.partialorder %v2175_v10, 0.0  ;;  %v2871_v21 = vmul.f32 0.2, %v2175_v10  ;;  %v2178_v36 = vadd.f32 %v16568_v35, %v12508_v61  ;;  %v2169_v51 = vpop.f32.mrb[195].mxu0  ;;  %v6596_v37 = vpack.c.bf16 %v17029_v29, %v17026_v45 }
 0x26a   :  { %vm2613_vm13 = vcmp.ge.f32.partialorder %v2167_v30, 0.0  ;;  %v2869_v26 = vmul.f32 0.2, %v2167_v30  ;;  %v2170_v0 = vadd.f32 %v16568_v35, %v2169_v51 }
 0x26b   :  { %v3127_v62 = vsel %vm2615_vm12, %v2175_v10, %v2871_v21  ;;  %vm2616_vm14 = vcmp.ge.f32.partialorder %v2178_v36, 0.0  ;;  %v2872_v7 = vmul.f32 0.2, %v2178_v36 }
 0x26c   :  { %v3125_v40 = vsel %vm2613_vm13, %v2167_v30, %v2869_v26  ;;  %vm2614_vm15 = vcmp.ge.f32.partialorder %v2170_v0, 0.0  ;;  %v2870_v25 = vmul.f32 0.2, %v2170_v0  ;;  %v17048_v58 = vmul.f32 %v16783_v1, %v3127_v62  ;;  %v17070_v26 = vpop.permute.xlu1 %4532  ;;  %v17073_v62 = vpop.permute.xlu0 %4527 }
 0x26d   :  { %v3128_v4 = vsel %vm2616_vm14, %v2178_v36, %v2872_v7  ;;  %v17058_v21 = vmul.f32 %v16755_v19, %v3125_v40 }
 0x26e   :  { %12764 = vmatmul.mubr.msk.bf16.gmra.mrb[12].mxu1 %vm4999_vm9, %v18587_v53  ;;  %v17051_v10 = vmul.f32 %v16778_v41, %v3128_v4  ;;  %v3126_v61 = vsel %vm2614_vm15, %v2170_v0, %v2870_v25  ;;  %v12511_v30 = vpop.f32.mrb[196].mxu0  ;;  %v6773_v25 = vsel %vm5024_vm1, %v16937_v49, 0 }
 0x26f   :  { %12769 = vmatprep.mubr.msk.bf16.mxu1 %vm4999_vm9, %v6590_v17  ;;  %v17061_v38 = vmul.f32 %v16752_v6, %v3126_v61  ;;  %v2191_v22 = vadd.f32 %v16568_v35, %v12511_v30  ;;  %v2182_v1 = vpop.f32.mrb[197].mxu0  ;;  %v17080_v61 = vld [vmem:[%s18361_s3 + $0x34] sm:$0xf] }
 0x270   :  { %v6740_v41 = vpack.c.bf16 %v17051_v10, %v17048_v58  ;;  %v2183_v36 = vadd.f32 %v16568_v35, %v2182_v1  ;;  %v12512_v51 = vpop.f32.mrb[198].mxu0 }
 0x271   :  { %vm2619_vm2 = vcmp.ge.f32.partialorder %v2191_v22, 0.0  ;;  %v2875_v20 = vmul.f32 0.2, %v2191_v22  ;;  %v2194_v27 = vadd.f32 %v16568_v35, %v12512_v51  ;;  %v2185_v17 = vpop.f32.mrb[199].mxu0  ;;  %v6739_v19 = vpack.c.bf16 %v17061_v38, %v17058_v21 }
 0x272   :  { %vm2617_vm3 = vcmp.ge.f32.partialorder %v2183_v36, 0.0  ;;  %v2873_v6 = vmul.f32 0.2, %v2183_v36  ;;  %v2186_v0 = vadd.f32 %v16568_v35, %v2185_v17 }
 0x273   :  { %v3131_v7 = vsel %vm2619_vm2, %v2191_v22, %v2875_v20  ;;  %vm2620_vm4 = vcmp.ge.f32.partialorder %v2194_v27, 0.0  ;;  %v2876_v40 = vmul.f32 0.2, %v2194_v27  ;;  %v17110_v20 = vpop.permute.xlu0 %4537 }
 0x274   :  { %v3129_v4 = vsel %vm2617_vm3, %v2183_v36, %v2873_v6  ;;  %vm2618_vm5 = vcmp.ge.f32.partialorder %v2186_v0, 0.0  ;;  %v2874_v53 = vmul.f32 0.2, %v2186_v0  ;;  %v17087_v22 = vmul.f32 %v16832_v43, %v3131_v7 }
 0x275   :  { %v3132_v30 = vsel %vm2620_vm4, %v2194_v27, %v2876_v40  ;;  %v17097_v51 = vmul.f32 %v16812_v52, %v3129_v4 }
 0x276   :  { %12770 = vmatmul.mubr.msk.bf16.vlgmr.msra.gmra.mrb[0].mxu1 %vm4999_vm9, %v6591_v50  ;;  %v17090_v1 = vmul.f32 %v16830_v13, %v3132_v30  ;;  %v3130_v49 = vsel %vm2618_vm5, %v2186_v0, %v2874_v53  ;;  %v12515_v36 = vpop.f32.mrb[200].mxu0  ;;  %v17105_v13 = vpop.permute.xlu1 %4542 }
 0x277   :  { %12773 = vmatprep.mubr.msk.bf16.mxu1 %vm4999_vm9, %v6592_v44  ;;  %12786 = vmatpush3.bf16.msra.mxu1 %v6773_v25  ;;  %v17100_v3 = vmul.f32 %v18588_v54, %v3130_v49  ;;  %v2207_v43 = vadd.f32 %v16568_v35, %v12515_v36  ;;  %v2198_v50 = vpop.f32.mrb[201].mxu0  ;;  %v18589_v49 = vpack.c.bf16 %v16949_v24, %v16946_v28 }
 0x278   :  { %13606 = vmatprep.subr.msk.bf16.mxu1 %vm5024_vm1, %v17080_v61  ;;  %v2199_v5 = vadd.f32 %v16568_v35, %v2198_v50  ;;  %v12516_v32 = vpop.f32.mrb[202].mxu0  ;;  %v6742_v44 = vpack.c.bf16 %v17090_v1, %v17087_v22 }
 0x279   :  { %vm2623_vm6 = vcmp.ge.f32.partialorder %v2207_v43, 0.0  ;;  %v2879_v52 = vmul.f32 0.2, %v2207_v43  ;;  %v2210_v27 = vadd.f32 %v16568_v35, %v12516_v32  ;;  %v2201_v17 = vpop.f32.mrb[203].mxu0  ;;  %v6741_v6 = vpack.c.bf16 %v17100_v3, %v17097_v51  ;;  %v17132_v32 = vpop.permute.xlu0 %4547 }
 0x27a   :  { %vm2621_vm7 = vcmp.ge.f32.partialorder %v2199_v5, 0.0  ;;  %v2877_v0 = vmul.f32 0.2, %v2199_v5  ;;  %v2202_v7 = vadd.f32 %v16568_v35, %v2201_v17  ;;  %v17120_v36 = vpop.permute.xlu1 %4552 }
 0x27b   :  { %v3135_v40 = vsel %vm2623_vm6, %v2207_v43, %v2879_v52  ;;  %vm2624_vm8 = vcmp.ge.f32.partialorder %v2210_v27, 0.0  ;;  %v2880_v25 = vmul.f32 0.2, %v2210_v27 }
 0x27c   :  { %v3133_v4 = vsel %vm2621_vm7, %v2199_v5, %v2877_v0  ;;  %vm2622_vm10 = vcmp.ge.f32.partialorder %v2202_v7, 0.0  ;;  %v2878_v53 = vmul.f32 0.2, %v2202_v7  ;;  %v17123_v54 = vmul.f32 %v16892_v2, %v3135_v40  ;;  %v17150_v0 = vld [vmem:[%s18362_s10] ss:$0 sm:$0xff] }
 0x27d   :  { %v3136_v30 = vsel %vm2624_vm8, %v2210_v27, %v2880_v25  ;;  %v17135_v28 = vmul.f32 %v16864_v59, %v3133_v4 }
 0x27e   :  { %12774 = vmatmul.mubr.msk.bf16.gmra.mrb[4].mxu1 %vm4999_vm9, %v18589_v49  ;;  %v17126_v50 = vmul.f32 %v16887_v15, %v3136_v30  ;;  %v3134_v43 = vsel %vm2622_vm10, %v2202_v7, %v2878_v53  ;;  %v12519_v5 = vpop.f32.mrb[204].mxu0  ;;  %v17153_v4 = vpop.permute.xlu1 %4562 }
 0x27f   :  { %12777 = vmatprep.mubr.msk.bf16.mxu1 %vm4999_vm9, %v6594_v48  ;;  %v17138_v24 = vmul.f32 %v16861_v34, %v3134_v43  ;;  %v2223_v2 = vadd.f32 %v16568_v35, %v12519_v5  ;;  %v2214_v52 = vpop.f32.mrb[205].mxu0  ;;  %v17155_v30 = vpop.permute.xlu0 %4557  ;;  %v18590_v43 = vpack.c.bf16 %v16983_v8, %v16980_v18 }
 0x280   :  { %v2215_v15 = vadd.f32 %v16568_v35, %v2214_v52  ;;  %v12520_v27 = vpop.f32.mrb[206].mxu0  ;;  %v6744_v9 = vpack.c.bf16 %v17126_v50, %v17123_v54 }
 0x281   :  { %vm2627_vm11 = vcmp.ge.f32.partialorder %v2223_v2, 0.0  ;;  %v2883_v57 = vmul.f32 0.2, %v2223_v2  ;;  %v2226_v48 = vadd.f32 %v16568_v35, %v12520_v27  ;;  %v2217_v17 = vpop.f32.mrb[207].mxu0  ;;  %v6743_v59 = vpack.c.bf16 %v17138_v24, %v17135_v28 }
 0x282   :  { %vm2625_vm12 = vcmp.ge.f32.partialorder %v2215_v15, 0.0  ;;  %v2881_v34 = vmul.f32 0.2, %v2215_v15  ;;  %v2218_v7 = vadd.f32 %v17150_v0, %v2217_v17  ;;  %v17184_v17 = vpop.permute.xlu1 %4572 }
 0x283   :  { %v3139_v40 = vsel %vm2627_vm11, %v2223_v2, %v2883_v57  ;;  %vm2628_vm13 = vcmp.ge.f32.partialorder %v2226_v48, 0.0  ;;  %v2884_v25 = vmul.f32 0.2, %v2226_v48 }
 0x284   :  { %v3137_v53 = vsel %vm2625_vm12, %v2215_v15, %v2881_v34  ;;  %vm2626_vm14 = vcmp.ge.f32.partialorder %v2218_v7, 0.0  ;;  %v2882_v35 = vmul.f32 0.2, %v2218_v7  ;;  %v17162_v5 = vmul.f32 %v16939_v12, %v3139_v40 }
 0x285   :  { %v3140_v49 = vsel %vm2628_vm13, %v2226_v48, %v2884_v25  ;;  %v17172_v27 = vmul.f32 %v16914_v39, %v3137_v53 }
 0x286   :  { %12778 = vmatmul.mubr.msk.bf16.gmra.mrb[8].mxu1 %vm4999_vm9, %v18590_v43  ;;  %v17165_v2 = vmul.f32 %v16932_v11, %v3140_v49  ;;  %v3138_v52 = vsel %vm2626_vm14, %v2218_v7, %v2882_v35  ;;  %v12523_v15 = vpop.f32.mrb[208].mxu0  ;;  %v17187_v7 = vpop.permute.xlu0 %4567 }
 0x287   :  { %12781 = vmatprep.mubr.msk.bf16.mxu1 %vm4999_vm9, %v6596_v37  ;;  %v17175_v8 = vmul.f32 %v16902_v55, %v3138_v52  ;;  %v2239_v18 = vadd.f32 %v17150_v0, %v12523_v15  ;;  %v2230_v12 = vpop.f32.mrb[209].mxu0 }
 0x288   :  { %v2231_v57 = vadd.f32 %v17150_v0, %v2230_v12  ;;  %v12524_v11 = vpop.f32.mrb[210].mxu0  ;;  %v6746_v48 = vpack.c.bf16 %v17165_v2, %v17162_v5  ;;  %v13745_v12 = vld [vmem:[%s18363_s5] sm:$0xff]  }
 0x289   :  { %vm2631_vm15 = vcmp.ge.f32.partialorder %v2239_v18, 0.0  ;;  %v2887_v45 = vmul.f32 0.2, %v2239_v18  ;;  %v2242_v29 = vadd.f32 %v17150_v0, %v12524_v11  ;;  %v2233_v37 = vpop.f32.mrb[211].mxu0  ;;  %v6745_v39 = vpack.c.bf16 %v17175_v8, %v17172_v27  ;;  %12943 = vmatprep.subr.bf16.mxu0 %v13745_v12 }
 0x28a   :  { %vm2629_vm2 = vcmp.ge.f32.partialorder %v2231_v57, 0.0  ;;  %v2885_v55 = vmul.f32 0.2, %v2231_v57  ;;  %v2234_v34 = vadd.f32 %v17150_v0, %v2233_v37  ;;  %12944 = vmatpush3.bf16.msra.mxu0 %v13745_v12 }
 0x28b   :  { %v3143_v40 = vsel %vm2631_vm15, %v2239_v18, %v2887_v45  ;;  %vm2632_vm3 = vcmp.ge.f32.partialorder %v2242_v29, 0.0  ;;  %v2888_v25 = vmul.f32 0.2, %v2242_v29 }
 0x28c   :  { %v3141_v53 = vsel %vm2629_vm2, %v2231_v57, %v2885_v55  ;;  %vm2630_vm4 = vcmp.ge.f32.partialorder %v2234_v34, 0.0  ;;  %v2886_v35 = vmul.f32 0.2, %v2234_v34  ;;  %v17194_v43 = vmul.f32 %v17001_v42, %v3143_v40  ;;  %v17218_v57 = vpop.permute.xlu0 %4577  ;;  %v17227_v55 = vld [vmem:[%s18361_s3 + $0x38] sm:$0xf] }
 0x28d   :  { %v3144_v49 = vsel %vm2632_vm3, %v2242_v29, %v2888_v25  ;;  %v17207_v23 = vmul.f32 %v16973_v63, %v3141_v53  ;;  %v6922_v25 = vsel %vm5024_vm1, %v17080_v61, 0 }
 0x28e   :  { %12782 = vmatmul.mubr.msk.bf16.gmra.mrb[12].mxu1 %vm4999_vm9, %v6597_v60  ;;  %v17197_v52 = vmul.f32 %v16996_v31, %v3144_v49  ;;  %v3142_v15 = vsel %vm2630_vm4, %v2234_v34, %v2886_v35  ;;  %v12527_v18 = vpop.f32.mrb[212].mxu0  ;;  %v17213_v60 = vpop.permute.xlu1 %4582 }
 0x28f   :  { %12787 = vmatprep.mubr.msk.bf16.mxu1 %vm4999_vm9, %v6739_v19  ;;  %v17210_v42 = vmul.f32 %v16970_v16, %v3142_v15  ;;  %v2255_v31 = vadd.f32 %v17150_v0, %v12527_v18  ;;  %v2246_v46 = vpop.f32.mrb[213].mxu0 }
 0x290   :  { %v6889_v21 = vpack.c.bf16 %v17197_v52, %v17194_v43  ;;  %v2247_v38 = vadd.f32 %v17150_v0, %v2246_v46  ;;  %v12528_v19 = vpop.f32.mrb[214].mxu0  ;;  %v17247_v46 = vpop.permute.xlu0 %4587 }
 0x291   :  { %vm2635_vm5 = vcmp.ge.f32.partialorder %v2255_v31, 0.0  ;;  %v2891_v63 = vmul.f32 0.2, %v2255_v31  ;;  %v2258_v11 = vadd.f32 %v17150_v0, %v12528_v19  ;;  %v2249_v16 = vpop.f32.mrb[215].mxu0  ;;  %v6888_v45 = vpack.c.bf16 %v17210_v42, %v17207_v23 }
 0x292   :  { %vm2633_vm6 = vcmp.ge.f32.partialorder %v2247_v38, 0.0  ;;  %v2889_v29 = vmul.f32 0.2, %v2247_v38  ;;  %v2250_v37 = vadd.f32 %v17150_v0, %v2249_v16  ;;  %v17235_v15 = vpop.permute.xlu1 %4592 }
 0x293   :  { %v3147_v34 = vsel %vm2635_vm5, %v2255_v31, %v2891_v63  ;;  %vm2636_vm7 = vcmp.ge.f32.partialorder %v2258_v11, 0.0  ;;  %v2892_v40 = vmul.f32 0.2, %v2258_v11 }
 0x294   :  { %v3145_v53 = vsel %vm2633_vm6, %v2247_v38, %v2889_v29  ;;  %vm2634_vm8 = vcmp.ge.f32.partialorder %v2250_v37, 0.0  ;;  %v2890_v35 = vmul.f32 0.2, %v2250_v37  ;;  %v17238_v18 = vmul.f32 %v17041_v33, %v3147_v34 }
 0x295   :  { %v3148_v49 = vsel %vm2636_vm7, %v2258_v11, %v2892_v40  ;;  %v17250_v58 = vmul.f32 %v17023_v14, %v3145_v53  ;;  %v17267_v40 = vpop.permute.xlu0 %4597 }
 0x296   :  { %12788 = vmatmul.mubr.msk.bf16.vlgmr.msra.gmra.mrb[0].mxu1 %vm4999_vm9, %v6740_v41  ;;  %v17241_v12 = vmul.f32 %v17039_v56, %v3148_v49  ;;  %v3146_v31 = vsel %vm2634_vm8, %v2250_v37, %v2890_v35  ;;  %v12531_v61 = vpop.f32.mrb[216].mxu0  ;;  %v17265_v29 = vpop.permute.xlu1 %4602 }
 0x297   :  { %12791 = vmatprep.mubr.msk.bf16.mxu1 %vm4999_vm9, %v6741_v6  ;;  %12804 = vmatpush3.bf16.msra.mxu1 %v6922_v25  ;;  %v17253_v10 = vmul.f32 %v17011_v47, %v3146_v31  ;;  %v2271_v33 = vadd.f32 %v17150_v0, %v12531_v61  ;;  %v2262_v56 = vpop.f32.mrb[217].mxu0 }
 0x298   :  { %13607 = vmatprep.subr.msk.bf16.mxu1 %vm5024_vm1, %v17227_v55  ;;  %v2263_v41 = vadd.f32 %v17150_v0, %v2262_v56  ;;  %v12532_v51 = vpop.f32.mrb[218].mxu0  ;;  %v6891_v3 = vpack.c.bf16 %v17241_v12, %v17238_v18 }
 0x299   :  { %vm2639_vm10 = vcmp.ge.f32.partialorder %v2271_v33, 0.0  ;;  %v2895_v6 = vmul.f32 0.2, %v2271_v33  ;;  %v2274_v14 = vadd.f32 %v17150_v0, %v12532_v51  ;;  %v2265_v38 = vpop.f32.mrb[219].mxu0  ;;  %v6890_v47 = vpack.c.bf16 %v17253_v10, %v17250_v58  ;;  %v17299_v51 = vpop.permute.xlu0 %4607 }
 0x29a   :  { %vm2637_vm11 = vcmp.ge.f32.partialorder %v2263_v41, 0.0  ;;  %v2893_v19 = vmul.f32 0.2, %v2263_v41  ;;  %v2266_v63 = vadd.f32 %v17150_v0, %v2265_v38  ;;  %v17296_v56 = vpop.permute.xlu1 %4612 }
 0x29b   :  { %v3151_v11 = vsel %vm2639_vm10, %v2271_v33, %v2895_v6  ;;  %vm2640_vm12 = vcmp.ge.f32.partialorder %v2274_v14, 0.0  ;;  %v2896_v16 = vmul.f32 0.2, %v2274_v14 }
 0x29c   :  { %v3149_v37 = vsel %vm2637_vm11, %v2263_v41, %v2893_v19  ;;  %vm2638_vm13 = vcmp.ge.f32.partialorder %v2266_v63, 0.0  ;;  %v2894_v34 = vmul.f32 0.2, %v2266_v63  ;;  %v17274_v53 = vmul.f32 %v17110_v20, %v3151_v11 }
 0x29d   :  { %v3152_v25 = vsel %vm2640_vm12, %v2274_v14, %v2896_v16  ;;  %v17284_v61 = vmul.f32 %v17073_v62, %v3149_v37  ;;  %v17327_v8 = vpop.permute.xlu0 %4617 }
 0x29e   :  { %12792 = vmatmul.mubr.msk.bf16.gmra.mrb[4].mxu1 %vm4999_vm9, %v6742_v44  ;;  %v17277_v35 = vmul.f32 %v17105_v13, %v3152_v25  ;;  %v3150_v49 = vsel %vm2638_vm13, %v2266_v63, %v2894_v34  ;;  %v12535_v31 = vpop.f32.mrb[220].mxu0 }
 0x29f   :  { %12795 = vmatprep.mubr.msk.bf16.mxu1 %vm4999_vm9, %v6743_v59  ;;  %v17287_v22 = vmul.f32 %v17070_v26, %v3150_v49  ;;  %v2287_v1 = vadd.f32 %v17150_v0, %v12535_v31  ;;  %v2278_v44 = vpop.f32.mrb[221].mxu0 }
 0x2a0   :  { %v2279_v20 = vadd.f32 %v17150_v0, %v2278_v44  ;;  %v12536_v13 = vpop.f32.mrb[222].mxu0  ;;  %v6893_v33 = vpack.c.bf16 %v17277_v35, %v17274_v53 }
 0x2a1   :  { %vm2643_vm14 = vcmp.ge.f32.partialorder %v2287_v1, 0.0  ;;  %v2899_v28 = vmul.f32 0.2, %v2287_v1  ;;  %v2290_v24 = vadd.f32 %v17150_v0, %v12536_v13  ;;  %v2281_v59 = vpop.f32.mrb[223].mxu0  ;;  %v6892_v62 = vpack.c.bf16 %v17287_v22, %v17284_v61 }
 0x2a2   :  { %vm2641_vm15 = vcmp.ge.f32.partialorder %v2279_v20, 0.0  ;;  %v2897_v26 = vmul.f32 0.2, %v2279_v20  ;;  %v2282_v41 = vadd.f32 %v17150_v0, %v2281_v59 }
 0x2a3   :  { %v3155_v6 = vsel %vm2643_vm14, %v2287_v1, %v2899_v28  ;;  %vm2644_vm2 = vcmp.ge.f32.partialorder %v2290_v24, 0.0  ;;  %v2900_v14 = vmul.f32 0.2, %v2290_v24 }
 0x2a4   :  { %v3153_v38 = vsel %vm2641_vm15, %v2279_v20, %v2897_v26  ;;  %vm2642_vm3 = vcmp.ge.f32.partialorder %v2282_v41, 0.0  ;;  %v2898_v19 = vmul.f32 0.2, %v2282_v41  ;;  %v17306_v11 = vmul.f32 %v17155_v30, %v3155_v6  ;;  %v17322_v30 = vpop.permute.xlu1 %4622 }
 0x2a5   :  { %v3156_v63 = vsel %vm2644_vm2, %v2290_v24, %v2900_v14  ;;  %v17316_v25 = vmul.f32 %v17132_v32, %v3153_v38 }
 0x2a6   :  { %12796 = vmatmul.mubr.msk.bf16.gmra.mrb[8].mxu1 %vm4999_vm9, %v6744_v9  ;;  %v17309_v16 = vmul.f32 %v17153_v4, %v3156_v63  ;;  %v3154_v37 = vsel %vm2642_vm3, %v2282_v41, %v2898_v19  ;;  %v12539_v34 = vpop.f32.mrb[224].mxu0  ;;  %v17349_v19 = vpop.permute.xlu0 %4627 }
 0x2a7   :  { %12799 = vmatprep.mubr.msk.bf16.mxu1 %vm4999_vm9, %v6745_v39  ;;  %v17319_v54 = vmul.f32 %v17120_v36, %v3154_v37  ;;  %v2303_v50 = vadd.f32 %v17150_v0, %v12539_v34  ;;  %v2294_v9 = vpop.f32.mrb[225].mxu0 }
 0x2a8   :  { %v2295_v4 = vadd.f32 %v17150_v0, %v2294_v9  ;;  %v12540_v49 = vpop.f32.mrb[226].mxu0  ;;  %v6895_v27 = vpack.c.bf16 %v17309_v16, %v17306_v11  ;;  %v17337_v26 = vpop.permute.xlu1 %4632 }
 0x2a9   :  { %vm2647_vm4 = vcmp.ge.f32.partialorder %v2303_v50, 0.0  ;;  %v2903_v39 = vmul.f32 0.2, %v2303_v50  ;;  %v2306_v32 = vadd.f32 %v17150_v0, %v12540_v49  ;;  %v2297_v31 = vpop.f32.mrb[227].mxu0  ;;  %v6894_v36 = vpack.c.bf16 %v17319_v54, %v17316_v25 }
 0x2aa   :  { %vm2645_vm5 = vcmp.ge.f32.partialorder %v2295_v4, 0.0  ;;  %v2901_v1 = vmul.f32 0.2, %v2295_v4  ;;  %v2298_v44 = vadd.f32 %v17150_v0, %v2297_v31  ;;  %v17372_v31 = vld [vmem:[%s18361_s3 + $0x3c] sm:$0xf] }
 0x2ab   :  { %v3159_v20 = vsel %vm2647_vm4, %v2303_v50, %v2903_v39  ;;  %vm2648_vm6 = vcmp.ge.f32.partialorder %v2306_v32, 0.0  ;;  %v2904_v13 = vmul.f32 0.2, %v2306_v32 }
 0x2ac   :  { %v3157_v28 = vsel %vm2645_vm5, %v2295_v4, %v2901_v1  ;;  %vm2646_vm7 = vcmp.ge.f32.partialorder %v2298_v44, 0.0  ;;  %v2902_v24 = vmul.f32 0.2, %v2298_v44  ;;  %v17340_v41 = vmul.f32 %v17218_v57, %v3159_v20  ;;  %v17367_v49 = vpop.permute.xlu1 %4642  ;;  %v17374_v1 = vpop.permute.xlu0 %4637 }
 0x2ad   :  { %v3160_v59 = vsel %vm2648_vm6, %v2306_v32, %v2904_v13  ;;  %v17352_v5 = vmul.f32 %v17187_v7, %v3157_v28  ;;  %v7071_v4 = vsel %vm5024_vm1, %v17227_v55, 0 }
 0x2ae   :  { %12800 = vmatmul.mubr.msk.bf16.gmra.mrb[12].mxu1 %vm4999_vm9, %v6746_v48  ;;  %v17343_v6 = vmul.f32 %v17213_v60, %v3160_v59  ;;  %v3158_v14 = vsel %vm2646_vm7, %v2298_v44, %v2902_v24  ;;  %v12543_v38 = vpop.f32.mrb[228].mxu0 }
 0x2af   :  { %12805 = vmatprep.mubr.msk.bf16.mxu1 %vm4999_vm9, %v6888_v45  ;;  %v17355_v2 = vmul.f32 %v17184_v17, %v3158_v14  ;;  %v2319_v48 = vadd.f32 %v17150_v0, %v12543_v38  ;;  %v2310_v57 = vpop.f32.mrb[229].mxu0 }
 0x2b0   :  { %v7038_v60 = vpack.c.bf16 %v17343_v6, %v17340_v41  ;;  %v2311_v63 = vadd.f32 %v17150_v0, %v2310_v57  ;;  %v12544_v23 = vpop.f32.mrb[230].mxu0  ;;  %v17405_v59 = vpop.permute.xlu1 %4652 }
 0x2b1   :  { %vm2651_vm8 = vcmp.ge.f32.partialorder %v2319_v48, 0.0  ;;  %v2907_v42 = vmul.f32 0.2, %v2319_v48  ;;  %v2322_v45 = vadd.f32 %v17150_v0, %v12544_v23  ;;  %v2313_v37 = vpop.f32.mrb[231].mxu0  ;;  %v7037_v7 = vpack.c.bf16 %v17355_v2, %v17352_v5 }
 0x2b2   :  { %vm2649_vm10 = vcmp.ge.f32.partialorder %v2311_v63, 0.0  ;;  %v2905_v17 = vmul.f32 0.2, %v2311_v63  ;;  %v2314_v34 = vadd.f32 %v17150_v0, %v2313_v37 }
 0x2b3   :  { %v3163_v50 = vsel %vm2651_vm8, %v2319_v48, %v2907_v42  ;;  %vm2652_vm11 = vcmp.ge.f32.partialorder %v2322_v45, 0.0  ;;  %v2908_v9 = vmul.f32 0.2, %v2322_v45  ;;  %v17408_v48 = vpop.permute.xlu0 %4647 }
 0x2b4   :  { %v3161_v39 = vsel %vm2649_vm10, %v2311_v63, %v2905_v17  ;;  %vm2650_vm12 = vcmp.ge.f32.partialorder %v2314_v34, 0.0  ;;  %v2906_v32 = vmul.f32 0.2, %v2314_v34  ;;  %v17381_v55 = vmul.f32 %v17267_v40, %v3163_v50 }
 0x2b5   :  { %v3164_v44 = vsel %vm2652_vm11, %v2322_v45, %v2908_v9  ;;  %v17391_v24 = vmul.f32 %v17247_v46, %v3161_v39 }
 0x2b6   :  { %12806 = vmatmul.mubr.msk.bf16.vlgmr.msra.gmra.mrb[0].mxu1 %vm4999_vm9, %v6889_v21  ;;  %v17384_v20 = vmul.f32 %v17265_v29, %v3164_v44  ;;  %v3162_v13 = vsel %vm2650_vm12, %v2314_v34, %v2906_v32  ;;  %v12547_v28 = vpop.f32.mrb[232].mxu0 }
 0x2b7   :  { %12809 = vmatprep.mubr.msk.bf16.mxu1 %vm4999_vm9, %v6890_v47  ;;  %12822 = vmatpush3.bf16.msra.mxu1 %v7071_v4  ;;  %v17394_v43 = vmul.f32 %v17235_v15, %v3162_v13  ;;  %v2335_v52 = vadd.f32 %v17150_v0, %v12547_v28  ;;  %v2326_v21 = vpop.f32.mrb[233].mxu0  ;;  %v4658_v61 = vpop.permute.xlu0 %4657 }
 0x2b8   :  { %13608 = vmatprep.subr.msk.bf16.mxu1 %vm5024_vm1, %v17372_v31  ;;  %v2327_v29 = vadd.f32 %v17150_v0, %v2326_v21  ;;  %v12548_v40 = vpop.f32.mrb[234].mxu0  ;;  %v7040_v58 = vpack.c.bf16 %v17384_v20, %v17381_v55 }
 0x2b9   :  { %vm2655_vm13 = vcmp.ge.f32.partialorder %v2335_v52, 0.0  ;;  %v2911_v10 = vmul.f32 0.2, %v2335_v52  ;;  %v2338_v46 = vadd.f32 %v17150_v0, %v12548_v40  ;;  %v2329_v47 = vpop.f32.mrb[235].mxu0  ;;  %v7039_v15 = vpack.c.bf16 %v17394_v43, %v17391_v24 }
 0x2ba   :  { %vm2653_vm14 = vcmp.ge.f32.partialorder %v2327_v29, 0.0  ;;  %v2909_v14 = vmul.f32 0.2, %v2327_v29  ;;  %v2330_v38 = vadd.f32 %v17150_v0, %v2329_v47 }
 0x2bb   :  { %v3167_v57 = vsel %vm2655_vm13, %v2335_v52, %v2911_v10  ;;  %vm2656_vm15 = vcmp.ge.f32.partialorder %v2338_v46, 0.0  ;;  %v2912_v63 = vmul.f32 0.2, %v2338_v46 }
 0x2bc   :  { %v3165_v23 = vsel %vm2653_vm14, %v2327_v29, %v2909_v14  ;;  %vm2654_vm2 = vcmp.ge.f32.partialorder %v2330_v38, 0.0  ;;  %v2910_v42 = vmul.f32 0.2, %v2330_v38  ;;  %v17415_v37 = vmul.f32 %v17327_v8, %v3167_v57  ;;  %v4663_v8 = vpop.permute.xlu1 %4662 }
 0x2bd   :  { %v3168_v45 = vsel %vm2656_vm15, %v2338_v46, %v2912_v63  ;;  %v17425_v9 = vmul.f32 %v17299_v51, %v3165_v23 }
 0x2be   :  { %12810 = vmatmul.mubr.msk.bf16.gmra.mrb[4].mxu1 %vm4999_vm9, %v6891_v3  ;;  %v17418_v17 = vmul.f32 %v17322_v30, %v3168_v45  ;;  %v3166_v34 = vsel %vm2654_vm2, %v2330_v38, %v2910_v42  ;;  %v12551_v50 = vpop.f32.mrb[236].mxu0  ;;  %v17454_v38 = vpop.permute.xlu0 %4667 }
 0x2bf   :  { %12813 = vmatprep.mubr.msk.bf16.mxu1 %vm4999_vm9, %v6892_v62  ;;  %v17428_v18 = vmul.f32 %v17296_v56, %v3166_v34  ;;  %v2351_v12 = vadd.f32 %v17150_v0, %v12551_v50  ;;  %v2342_v3 = vpop.f32.mrb[237].mxu0 }
 0x2c0   :  { %v2343_v30 = vadd.f32 %v17150_v0, %v2342_v3  ;;  %v12552_v4 = vpop.f32.mrb[238].mxu0  ;;  %v7042_v39 = vpack.c.bf16 %v17418_v17, %v17415_v37  ;;  %v17442_v40 = vpop.permute.xlu1 %4672 }
 0x2c1   :  { %vm2659_vm3 = vcmp.ge.f32.partialorder %v2351_v12, 0.0  ;;  %v2915_v22 = vmul.f32 0.2, %v2351_v12  ;;  %v2354_v62 = vadd.f32 %v17150_v0, %v12552_v4  ;;  %v2345_v51 = vpop.f32.mrb[239].mxu0  ;;  %v7041_v56 = vpack.c.bf16 %v17428_v18, %v17425_v9 }
 0x2c2   :  { %vm2657_vm4 = vcmp.ge.f32.partialorder %v2343_v30, 0.0  ;;  %v2913_v32 = vmul.f32 0.2, %v2343_v30  ;;  %v2346_v44 = vadd.f32 %v17150_v0, %v2345_v51  ;;  %v4678_v3 = vpop.permute.xlu0 %4677 }
 0x2c3   :  { %v3171_v13 = vsel %vm2659_vm3, %v2351_v12, %v2915_v22  ;;  %vm2660_vm5 = vcmp.ge.f32.partialorder %v2354_v62, 0.0  ;;  %v2916_v28 = vmul.f32 0.2, %v2354_v62 }
 0x2c4   :  { %v3169_v52 = vsel %vm2657_vm4, %v2343_v30, %v2913_v32  ;;  %vm2658_vm6 = vcmp.ge.f32.partialorder %v2346_v44, 0.0  ;;  %v2914_v21 = vmul.f32 0.2, %v2346_v44  ;;  %v17445_v10 = vmul.f32 %v17374_v1, %v3171_v13  ;;  %v4683_v34 = vpop.permute.xlu1 %4682 }
 0x2c5   :  { %v3172_v29 = vsel %vm2660_vm5, %v2354_v62, %v2916_v28  ;;  %v17457_v53 = vmul.f32 %v17349_v19, %v3169_v52 }
 0x2c6   :  { %12814 = vmatmul.mubr.msk.bf16.gmra.mrb[8].mxu1 %vm4999_vm9, %v6893_v33  ;;  %v17448_v46 = vmul.f32 %v17367_v49, %v3172_v29  ;;  %v3170_v47 = vsel %vm2658_vm6, %v2346_v44, %v2914_v21  ;;  %v12555_v14 = vpop.f32.mrb[240].mxu0  ;;  %v4688_v52 = vpop.permute.xlu0 %4687 }
 0x2c7   :  { %12817 = vmatprep.mubr.msk.bf16.mxu1 %vm4999_vm9, %v6894_v36  ;;  %v17460_v35 = vmul.f32 %v17337_v26, %v3170_v47  ;;  %v2367_v33 = vadd.f32 %v17150_v0, %v12555_v14  ;;  %v2358_v1 = vpop.f32.mrb[241].mxu0  ;;  %v7220_v47 = vsel %vm5024_vm1, %v17372_v31, 0 }
 0x2c8   :  { %v2359_v49 = vadd.f32 %v17150_v0, %v2358_v1  ;;  %v12556_v57 = vpop.f32.mrb[242].mxu0  ;;  %v7044_v25 = vpack.c.bf16 %v17448_v46, %v17445_v10  ;;  %v4693_v13 = vpop.permute.xlu1 %4692 }
 0x2c9   :  { %vm2663_vm7 = vcmp.ge.f32.partialorder %v2367_v33, 0.0  ;;  %v2919_v54 = vmul.f32 0.2, %v2367_v33  ;;  %v2370_v36 = vadd.f32 %v17150_v0, %v12556_v57  ;;  %v2361_v63 = vpop.f32.mrb[243].mxu0  ;;  %v7043_v19 = vpack.c.bf16 %v17460_v35, %v17457_v53 }
 0x2ca   :  { %vm2661_vm8 = vcmp.ge.f32.partialorder %v2359_v49, 0.0  ;;  %v2917_v26 = vmul.f32 0.2, %v2359_v49  ;;  %v2362_v23 = vadd.f32 %v17150_v0, %v2361_v63  ;;  %v4698_v43 = vpop.permute.xlu0 %4697 }
 0x2cb   :  { %v3175_v42 = vsel %vm2663_vm7, %v2367_v33, %v2919_v54  ;;  %vm2664_vm10 = vcmp.ge.f32.partialorder %v2370_v36, 0.0  ;;  %v2920_v45 = vmul.f32 0.2, %v2370_v36 }
 0x2cc   :  { %v3173_v50 = vsel %vm2661_vm8, %v2359_v49, %v2917_v26  ;;  %vm2662_vm11 = vcmp.ge.f32.partialorder %v2362_v23, 0.0  ;;  %v2918_v12 = vmul.f32 0.2, %v2362_v23  ;;  %v17474_v4 = vmul.f32 %v4658_v61, %v3175_v42 }
 0x2cd   :  { %v3176_v30 = vsel %vm2664_vm10, %v2370_v36, %v2920_v45  ;;  %v17483_v32 = vmul.f32 %v17408_v48, %v3173_v50 }
 0x2ce   :  { %12818 = vmatmul.mubr.msk.bf16.gmra.mrb[12].mxu1 %vm4999_vm9, %v6895_v27  ;;  %v17476_v22 = vmul.f32 %v4663_v8, %v3176_v30  ;;  %v3174_v62 = vsel %vm2662_vm11, %v2362_v23, %v2918_v12  ;;  %v12559_v51 = vpop.f32.mrb[244].mxu0  ;;  %vm7335_vm11 = vcmask 130048  }
 0x2cf   :  { %12823 = vmatprep.mubr.msk.bf16.mxu1 %vm4999_vm9, %v7037_v7  ;;  %v17486_v44 = vmul.f32 %v17405_v59, %v3174_v62  ;;  %v2383_v11 = vadd.f32 %v17150_v0, %v12559_v51  ;;  %v2374_v16 = vpop.f32.mrb[245].mxu0 }
 0x2d0   :  { %v7187_v27 = vpack.c.bf16 %v17476_v22, %v17474_v4  ;;  %v2375_v8 = vadd.f32 %v17150_v0, %v2374_v16  ;;  %v12560_v61 = vpop.f32.mrb[246].mxu0 }
 0x2d1   :  { %vm2667_vm12 = vcmp.ge.f32.partialorder %v2383_v11, 0.0  ;;  %v2923_v5 = vmul.f32 0.2, %v2383_v11  ;;  %v2386_v2 = vadd.f32 %v17150_v0, %v12560_v61  ;;  %v2377_v7 = vpop.f32.mrb[247].mxu0  ;;  %v7186_v48 = vpack.c.bf16 %v17486_v44, %v17483_v32 }
 0x2d2   :  { %vm2665_vm13 = vcmp.ge.f32.partialorder %v2375_v8, 0.0  ;;  %v2921_v59 = vmul.f32 0.2, %v2375_v8  ;;  %v2378_v28 = vadd.f32 %v17150_v0, %v2377_v7 }
 0x2d3   :  { %v3179_v21 = vsel %vm2667_vm12, %v2383_v11, %v2923_v5  ;;  %vm2668_vm14 = vcmp.ge.f32.partialorder %v2386_v2, 0.0  ;;  %v2924_v29 = vmul.f32 0.2, %v2386_v2  ;;  %v4708_v5 = vpop.permute.xlu0 %4707 }
 0x2d4   :  { %v3177_v14 = vsel %vm2665_vm13, %v2375_v8, %v2921_v59  ;;  %vm2666_vm15 = vcmp.ge.f32.partialorder %v2378_v28, 0.0  ;;  %v2922_v33 = vmul.f32 0.2, %v2378_v28  ;;  %v17502_v49 = vmul.f32 %v4678_v3, %v3179_v21 }
 0x2d5   :  { %v3180_v1 = vsel %vm2668_vm14, %v2386_v2, %v2924_v29  ;;  %v17511_v36 = vmul.f32 %v17454_v38, %v3177_v14 }
 0x2d6   :  { %12824 = vmatmul.mubr.msk.bf16.vlgmr.msra.gmra.mrb[0].mxu1 %vm4999_vm9, %v7038_v60  ;;  %v17504_v57 = vmul.f32 %v4683_v34, %v3180_v1  ;;  %v3178_v54 = vsel %vm2666_vm15, %v2378_v28, %v2922_v33  ;;  %v12563_v31 = vpop.f32.mrb[248].mxu0  ;;  %v4703_v60 = vpop.permute.xlu1 %4702 }
 0x2d7   :  { %12827 = vmatprep.mubr.msk.bf16.mxu1 %vm4999_vm9, %v7039_v15  ;;  %12840 = vmatpush3.bf16.msra.mxu1 %v7220_v47  ;;  %v17514_v63 = vmul.f32 %v17442_v40, %v3178_v54  ;;  %v2399_v41 = vadd.f32 %v17150_v0, %v12563_v31  ;;  %v2390_v6 = vpop.f32.mrb[249].mxu0 }
 0x2d8   :  { %v2391_v26 = vadd.f32 %v17150_v0, %v2390_v6  ;;  %v12564_v23 = vpop.f32.mrb[250].mxu0  ;;  %v7189_v24 = vpack.c.bf16 %v17504_v57, %v17502_v49  ;;  %v4718_v49 = vpop.permute.xlu0 %4717 }
 0x2d9   :  { %vm2671_vm2 = vcmp.ge.f32.partialorder %v2399_v41, 0.0  ;;  %v2927_v15 = vmul.f32 0.2, %v2399_v41  ;;  %v2402_v42 = vadd.f32 %v17150_v0, %v12564_v23  ;;  %v2393_v38 = vpop.f32.mrb[251].mxu0  ;;  %v7188_v40 = vpack.c.bf16 %v17514_v63, %v17511_v36 }
 0x2da   :  { %vm2669_vm3 = vcmp.ge.f32.partialorder %v2391_v26, 0.0  ;;  %v2925_v45 = vmul.f32 0.2, %v2391_v26  ;;  %v2394_v34 = vadd.f32 %v17150_v0, %v2393_v38  ;;  %v4713_v51 = vpop.permute.xlu1 %4712 }
 0x2db   :  { %v3183_v50 = vsel %vm2671_vm2, %v2399_v41, %v2927_v15  ;;  %vm2672_vm4 = vcmp.ge.f32.partialorder %v2402_v42, 0.0  ;;  %v2928_v12 = vmul.f32 0.2, %v2402_v42 }
 0x2dc   :  { %v3181_v3 = vsel %vm2669_vm3, %v2391_v26, %v2925_v45  ;;  %vm2670_vm5 = vcmp.ge.f32.partialorder %v2394_v34, 0.0  ;;  %v2926_v30 = vmul.f32 0.2, %v2394_v34  ;;  %v4975_v11 = vmul.f32 %v4698_v43, %v3183_v50 }
 0x2dd   :  { %v3184_v62 = vsel %vm2672_vm4, %v2402_v42, %v2928_v12  ;;  %v4973_v2 = vmul.f32 %v4688_v52, %v3181_v3 }
 0x2de   :  { %12828 = vmatmul.mubr.msk.bf16.gmra.mrb[4].mxu1 %vm4999_vm9, %v7040_v58  ;;  %v4976_v16 = vmul.f32 %v4703_v60, %v3184_v62  ;;  %v3182_v8 = vsel %vm2670_vm5, %v2394_v34, %v2926_v30  ;;  %v12567_v61 = vpop.f32.mrb[252].mxu0  ;;  %v4723_v1 = vpop.permute.xlu1 %4722 }
 0x2df   :  { %12831 = vmatprep.mubr.msk.bf16.mxu1 %vm4999_vm9, %v7041_v56  ;;  %v4974_v7 = vmul.f32 %v4693_v13, %v3182_v8  ;;  %v2415_v59 = vadd.f32 %v17150_v0, %v12567_v61  ;;  %v2406_v28 = vpop.f32.mrb[253].mxu0 }
 0x2e0   :  { %v2407_v55 = vadd.f32 %v17150_v0, %v2406_v28  ;;  %v12568_v20 = vpop.f32.mrb[254].mxu0  ;;  %v7191_v58 = vpack.c.bf16 %v4976_v16, %v4975_v11 }
 0x2e1   :  { %vm2675_vm6 = vcmp.ge.f32.partialorder %v2415_v59, 0.0  ;;  %v2931_v21 = vmul.f32 0.2, %v2415_v59  ;;  %v2418_v29 = vadd.f32 %v17150_v0, %v12568_v20  ;;  %v2409_v47 = vpop.f32.mrb[255].mxu0  ;;  %v7190_v14 = vpack.c.bf16 %v4974_v7, %v4973_v2  ;;  %v13746_v20 = vld [vmem:[%s18364_s4] sm:$0xff]  }
 0x2e2   :  { %vm2673_vm7 = vcmp.ge.f32.partialorder %v2407_v55, 0.0  ;;  %v2929_v9 = vmul.f32 0.2, %v2407_v55  ;;  %v2410_v18 = vadd.f32 %v17150_v0, %v2409_v47 }
 0x2e3   :  { %v3187_v56 = vsel %vm2675_vm6, %v2415_v59, %v2931_v21  ;;  %vm2676_vm8 = vcmp.ge.f32.partialorder %v2418_v29, 0.0  ;;  %v2932_v13 = vmul.f32 0.2, %v2418_v29 }
 0x2e4   :  { %v3185_v52 = vsel %vm2673_vm7, %v2407_v55, %v2929_v9  ;;  %vm2674_vm10 = vcmp.ge.f32.partialorder %v2410_v18, 0.0  ;;  %v2930_v33 = vmul.f32 0.2, %v2410_v18  ;;  %v4979_v54 = vmul.f32 %v4718_v49, %v3187_v56 }
 0x2e5   :  { %v3188_v57 = vsel %vm2676_vm8, %v2418_v29, %v2932_v13  ;;  %v4977_v0 = vmul.f32 %v4708_v5, %v3185_v52 }
 0x2e6   :  { %12832 = vmatmul.mubr.msk.bf16.gmra.mrb[8].mxu1 %vm4999_vm9, %v7042_v39  ;;  %v4980_v31 = vmul.f32 %v4723_v1, %v3188_v57  ;;  %v3186_v36 = vsel %vm2674_vm10, %v2410_v18, %v2930_v33 }
 0x2e7   :  { %12835 = vmatprep.mubr.msk.bf16.mxu1 %vm4999_vm9, %v7043_v19  ;;  %v4978_v63 = vmul.f32 %v4713_v51, %v3186_v36 }
 0x2e8   :  { %v7193_v41 = vpack.c.bf16 %v4980_v31, %v4979_v54 }
 0x2e9   :  { %v7192_v6 = vpack.c.bf16 %v4978_v63, %v4977_v0 }
 0x2ee   :  { %12836 = vmatmul.mubr.msk.bf16.gmra.mrb[12].mxu1 %vm4999_vm9, %v7044_v25 }
 0x2ef   :  { %12841 = vmatprep.mubr.msk.bf16.mxu1 %vm4999_vm9, %v7186_v48 }
 0x2f6   :  { %12842 = vmatmul.mubr.msk.bf16.vlgmr.msra.gmra.mrb[0].mxu1 %vm4999_vm9, %v7187_v27 }
 0x2f7   :  { %12845 = vmatprep.mubr.msk.bf16.mxu1 %vm4999_vm9, %v7188_v40 }
 0x2fe   :  { %12846 = vmatmul.mubr.msk.bf16.gmra.mrb[4].mxu1 %vm4999_vm9, %v7189_v24 }
 0x2ff   :  { %12849 = vmatprep.mubr.msk.bf16.mxu1 %vm4999_vm9, %v7190_v14 }
 0x306   :  { %12850 = vmatmul.mubr.msk.bf16.gmra.mrb[8].mxu1 %vm4999_vm9, %v7191_v58 }
 0x307   :  { %12853 = vmatprep.mubr.msk.bf16.mxu1 %vm4999_vm9, %v7192_v6 }
 0x30e   :  { %12854 = vmatmul.mubr.msk.bf16.gmra.mrb[12].mxu1 %vm4999_vm9, %v7193_v41 }
 0x30f   :  { %12873 = vmatprep.mubr.bf16.mxu1 %v13746_v20 }
 0x3c9   :  { %v12843_v37 = vpop.f32.mrb[0].mxu1 }
 0x3ca   :  { %v7256_v17 = vpop.f32.mrb[1].mxu1  ;;  %v7339_v25 = vsel %vm7335_vm11, %v12843_v37, 0.0 }
 0x3cb   :  { %v12844_v39 = vpop.f32.mrb[2].mxu1  ;;  %v7336_v46 = vsel %vm7335_vm11, %v7256_v17, 0.0 }
 0x3cc   :  { %v7259_v10 = vpop.f32.mrb[3].mxu1  ;;  %v7341_v4 = vsel %vm7335_vm11, %v12844_v39, 0.0 }
 0x3cd   :  { %v7337_v53 = vsel %vm7335_vm11, %v7259_v10, 0.0 }
 0x3ce   :  { %v7338_v35 = vadd.f32 %v7337_v53, %v7336_v46 }
 0x3d0   :  { %v7340_v19 = vadd.f32 %v7339_v25, %v7338_v35 }
 0x3d1   :  { %v12847_v22 = vpop.f32.mrb[4].mxu1 }
 0x3d2   :  { %v7272_v32 = vpop.f32.mrb[5].mxu1  ;;  %v7342_v44 = vadd.f32 %v7341_v4, %v7340_v19  ;;  %v7347_v43 = vsel %vm7335_vm11, %v12847_v22, 0.0 }
 0x3d3   :  { %v7343_v27 = vsel %vm7335_vm11, %v7272_v32, 0.0  ;;  %v12848_v48 = vpop.f32.mrb[6].mxu1 }
 0x3d4   :  { %v7344_v60 = vadd.f32 %v7343_v27, %v7342_v44  ;;  %v7275_v26 = vpop.f32.mrb[7].mxu1  ;;  %v7349_v42 = vsel %vm7335_vm11, %v12848_v48, 0.0 }
 0x3d5   :  { %v7345_v23 = vsel %vm7335_vm11, %v7275_v26, 0.0 }
 0x3d6   :  { %v7346_v24 = vadd.f32 %v7345_v23, %v7344_v60 }
 0x3d8   :  { %v7348_v15 = vadd.f32 %v7347_v43, %v7346_v24 }
 0x3d9   :  { %v12851_v38 = vpop.f32.mrb[8].mxu1 }
 0x3da   :  { %v7288_v40 = vpop.f32.mrb[9].mxu1  ;;  %v7350_v45 = vadd.f32 %v7349_v42, %v7348_v15  ;;  %v7355_v51 = vsel %vm7335_vm11, %v12851_v38, 0.0 }
 0x3db   :  { %v7351_v34 = vsel %vm7335_vm11, %v7288_v40, 0.0  ;;  %v12852_v50 = vpop.f32.mrb[10].mxu1 }
 0x3dc   :  { %v7352_v12 = vadd.f32 %v7351_v34, %v7350_v45  ;;  %v7291_v3 = vpop.f32.mrb[11].mxu1  ;;  %v7357_v16 = vsel %vm7335_vm11, %v12852_v50, 0.0 }
 0x3dd   :  { %v7353_v30 = vsel %vm7335_vm11, %v7291_v3, 0.0 }
 0x3de   :  { %v7354_v62 = vadd.f32 %v7353_v30, %v7352_v12 }
 0x3e0   :  { %v7356_v11 = vadd.f32 %v7355_v51, %v7354_v62 }
 0x3e1   :  { %v12855_v8 = vpop.f32.mrb[12].mxu1 }
 0x3e2   :  { %v7304_v61 = vpop.f32.mrb[13].mxu1  ;;  %v7358_v5 = vadd.f32 %v7357_v16, %v7356_v11  ;;  %v7363_v21 = vsel %vm7335_vm11, %v12855_v8, 0.0 }
 0x3e3   :  { %v7359_v2 = vsel %vm7335_vm11, %v7304_v61, 0.0  ;;  %v12856_v7 = vpop.f32.mrb[14].mxu1 }
 0x3e4   :  { %v7360_v59 = vadd.f32 %v7359_v2, %v7358_v5  ;;  %v7307_v28 = vpop.f32.mrb[15].mxu1  ;;  %v7365_v29 = vsel %vm7335_vm11, %v12856_v7, 0.0 }
 0x3e5   :  { %v7361_v55 = vsel %vm7335_vm11, %v7307_v28, 0.0 }
 0x3e6   :  { %v7362_v58 = vadd.f32 %v7361_v55, %v7360_v59 }
 0x3e8   :  { %v7364_v47 = vadd.f32 %v7363_v21, %v7362_v58 }
 0x3ea   :  { %v7366_v14 = vadd.f32 %v7365_v29, %v7364_v47 }
 0x3ec   :  { %v7367_v9 = vrot.slane %v7366_v14, 4 }
 0x3ee   :  { %v7368_v18 = vadd.f32 %v7367_v9, %v7366_v14 }
 0x3f0   :  { %v7369_v56 = vrot.slane %v7368_v18, 2 }
 0x3f2   :  { %v7370_v13 = vadd.f32 %v7369_v56, %v7368_v18 }
 0x3f4   :  { %v7371_v52 = vrot.slane %v7370_v13, 1 }
 0x3f6   :  { %v7372_v33 = vadd.f32 %v7371_v52, %v7370_v13 }
 0x3f8   :  { %v7374_v1 = vmul.f32 0.0078125, %v7372_v33 }
 0x3fa   :  { %v17581_v49 = vsub.f32 %v7256_v17, %v7374_v1  ;;  %v17583_v57 = vsub.f32 %v7259_v10, %v7374_v1  ;;  %v17585_v54 = vsub.f32 %v12843_v37, %v7374_v1  ;;  %v17587_v31 = vsub.f32 %v12844_v39, %v7374_v1 }
 0x3fb   :  { %v17589_v36 = vsub.f32 %v7272_v32, %v7374_v1  ;;  %v17591_v0 = vsub.f32 %v7275_v26, %v7374_v1  ;;  %v17593_v63 = vsub.f32 %v12847_v22, %v7374_v1  ;;  %v17595_v41 = vsub.f32 %v12848_v48, %v7374_v1 }
 0x3fc   :  { %v17597_v6 = vsub.f32 %v7288_v40, %v7374_v1  ;;  %v17599_v46 = vsub.f32 %v7291_v3, %v7374_v1  ;;  %v17601_v17 = vsub.f32 %v12851_v38, %v7374_v1  ;;  %v17603_v10 = vsub.f32 %v12852_v50, %v7374_v1 }
 0x3fd   :  { %v17605_v37 = vsub.f32 %v7304_v61, %v7374_v1  ;;  %v7388_v39 = vsub.f32 %v7307_v28, %v7374_v1  ;;  %v17607_v53 = vsub.f32 %v12855_v8, %v7374_v1  ;;  %v17609_v35 = vsub.f32 %v12856_v7, %v7374_v1 }
 0x3fe   :  { %v7391_v25 = vmul.f32 %v17581_v49, %v17581_v49  ;;  %v7392_v19 = vmul.f32 %v17583_v57, %v17583_v57  ;;  %v7393_v4 = vmul.f32 %v17585_v54, %v17585_v54  ;;  %v7394_v22 = vmul.f32 %v17587_v31, %v17587_v31 }
 0x3ff   :  { %v7395_v48 = vmul.f32 %v17589_v36, %v17589_v36  ;;  %v7396_v23 = vmul.f32 %v17591_v0, %v17591_v0  ;;  %v7397_v15 = vmul.f32 %v17593_v63, %v17593_v63  ;;  %v7398_v40 = vmul.f32 %v17595_v41, %v17595_v41 }
 0x400   :  { %v7407_v32 = vsel %vm7335_vm11, %v7391_v25, 0.0  ;;  %v7408_v44 = vsel %vm7335_vm11, %v7392_v19, 0.0  ;;  %v7410_v60 = vsel %vm7335_vm11, %v7393_v4, 0.0  ;;  %v7412_v24 = vsel %vm7335_vm11, %v7394_v22, 0.0 }
 0x401   :  { %v7409_v27 = vadd.f32 %v7408_v44, %v7407_v32  ;;  %v7414_v42 = vsel %vm7335_vm11, %v7395_v48, 0.0  ;;  %v7416_v45 = vsel %vm7335_vm11, %v7396_v23, 0.0  ;;  %v7399_v50 = vmul.f32 %v17597_v6, %v17597_v6 }
 0x402   :  { %v7418_v12 = vsel %vm7335_vm11, %v7397_v15, 0.0  ;;  %v7400_v30 = vmul.f32 %v17599_v46, %v17599_v46  ;;  %v7420_v62 = vsel %vm7335_vm11, %v7398_v40, 0.0  ;;  %v7401_v11 = vmul.f32 %v17601_v17, %v17601_v17  ;;  %v17674_v15 = vld [vmem:[%s18362_s10 + $0x2] ss:$0 sm:$0xff] }
 0x403   :  { %v7411_v26 = vadd.f32 %v7410_v60, %v7409_v27  ;;  %v7422_v16 = vsel %vm7335_vm11, %v7399_v50, 0.0  ;;  %v7402_v61 = vmul.f32 %v17603_v10, %v17603_v10  ;;  %v7403_v7 = vmul.f32 %v17605_v37, %v17605_v37  ;;  %v17662_v60 = vld [vmem:[%s18362_s10 + $0x1] ss:$0 sm:$0xff] }
 0x404   :  { %v7424_v5 = vsel %vm7335_vm11, %v7400_v30, 0.0  ;;  %v7426_v59 = vsel %vm7335_vm11, %v7401_v11, 0.0  ;;  %v7404_v55 = vmul.f32 %v7388_v39, %v7388_v39  ;;  %v7405_v21 = vmul.f32 %v17607_v53, %v17607_v53 }
 0x405   :  { %v7413_v43 = vadd.f32 %v7412_v24, %v7411_v26  ;;  %v7428_v20 = vsel %vm7335_vm11, %v7402_v61, 0.0  ;;  %v7430_v29 = vsel %vm7335_vm11, %v7403_v7, 0.0  ;;  %v7406_v14 = vmul.f32 %v17609_v35, %v17609_v35 }
 0x406   :  { %v7432_v9 = vsel %vm7335_vm11, %v7404_v55, 0.0  ;;  %v7434_v56 = vsel %vm7335_vm11, %v7405_v21, 0.0 }
 0x407   :  { %v7415_v38 = vadd.f32 %v7414_v42, %v7413_v43  ;;  %v7436_v52 = vsel %vm7335_vm11, %v7406_v14, 0.0 }
 0x409   :  { %v7417_v34 = vadd.f32 %v7416_v45, %v7415_v38 }
 0x40b   :  { %v7419_v3 = vadd.f32 %v7418_v12, %v7417_v34 }
 0x40d   :  { %v7421_v51 = vadd.f32 %v7420_v62, %v7419_v3 }
 0x40f   :  { %v7423_v8 = vadd.f32 %v7422_v16, %v7421_v51 }
 0x411   :  { %v7425_v2 = vadd.f32 %v7424_v5, %v7423_v8 }
 0x413   :  { %v7427_v28 = vadd.f32 %v7426_v59, %v7425_v2 }
 0x415   :  { %v7429_v58 = vadd.f32 %v7428_v20, %v7427_v28 }
 0x417   :  { %v7431_v47 = vadd.f32 %v7430_v29, %v7429_v58 }
 0x419   :  { %v7433_v18 = vadd.f32 %v7432_v9, %v7431_v47 }
 0x41b   :  { %v7435_v13 = vadd.f32 %v7434_v56, %v7433_v18 }
 0x41d   :  { %v7437_v33 = vadd.f32 %v7436_v52, %v7435_v13 }
 0x41f   :  { %v7438_v1 = vrot.slane %v7437_v33, 4 }
 0x421   :  { %v7439_v25 = vadd.f32 %v7438_v1, %v7437_v33 }
 0x423   :  { %v7440_v19 = vrot.slane %v7439_v25, 2 }
 0x425   :  { %v7441_v4 = vadd.f32 %v7440_v19, %v7439_v25 }
 0x427   :  { %v7442_v22 = vrot.slane %v7441_v4, 1 }
 0x429   :  { %v7443_v32 = vadd.f32 %v7442_v22, %v7441_v4 }
 0x42b   :  { %v7444_v44 = vmul.f32 0.0078125, %v7443_v32 }
 0x42d   :  { %v7445_v27 = vadd.f32 1e-05, %v7444_v44 }
 0x42f   :  { %13857 = vrsqrt.f32 %v7445_v27 }
 0x439   :  { %v17657_v48 = vpop.eup %13857 }
 0x43a   :  { %v7460_v26 = vmul.f32 %v17657_v48, %v7388_v39  ;;  %v7447_v23 = vmul.f32 %v17657_v48, %v17581_v49  ;;  %v7448_v24 = vmul.f32 %v17657_v48, %v17583_v57  ;;  %v7449_v43 = vmul.f32 %v17657_v48, %v17585_v54 }
 0x43b   :  { %v7450_v42 = vmul.f32 %v17657_v48, %v17587_v31  ;;  %v7451_v39 = vmul.f32 %v17657_v48, %v17589_v36  ;;  %v7452_v49 = vmul.f32 %v17657_v48, %v17591_v0  ;;  %v7453_v57 = vmul.f32 %v17657_v48, %v17593_v63 }
 0x43c   :  { %v7480_v38 = vmul.f32 %v17662_v60, %v7460_v26  ;;  %v7467_v54 = vmul.f32 %v17662_v60, %v7447_v23  ;;  %v7468_v40 = vmul.f32 %v17662_v60, %v7448_v24  ;;  %v7469_v45 = vmul.f32 %v17662_v60, %v7449_v43 }
 0x43d   :  { %v7470_v34 = vmul.f32 %v17662_v60, %v7450_v42  ;;  %v7471_v31 = vmul.f32 %v17662_v60, %v7451_v39  ;;  %v7472_v36 = vmul.f32 %v17662_v60, %v7452_v49  ;;  %v7454_v0 = vmul.f32 %v17657_v48, %v17595_v41 }
 0x43e   :  { %v17694_v50 = vadd.f32 %v17674_v15, %v7480_v38  ;;  %v7487_v63 = vadd.f32 %v17674_v15, %v7467_v54  ;;  %v7488_v12 = vadd.f32 %v17674_v15, %v7468_v40  ;;  %v7489_v3 = vadd.f32 %v17674_v15, %v7469_v45 }
 0x43f   :  { %v7490_v30 = vadd.f32 %v17674_v15, %v7470_v34  ;;  %v7491_v62 = vadd.f32 %v17674_v15, %v7471_v31  ;;  %v7492_v51 = vadd.f32 %v17674_v15, %v7472_v36  ;;  %v7473_v11 = vmul.f32 %v17662_v60, %v7453_v57 }
 0x440   :  { %vm7503_vm9 = vcmp.ge.f32.partialorder %v7487_v63, 0.0  ;;  %vm7504_vm12 = vcmp.ge.f32.partialorder %v7488_v12, 0.0  ;;  %v7519_v41 = vmul.f32 0.2, %v7487_v63  ;;  %v7520_v16 = vmul.f32 0.2, %v7488_v12 }
 0x441   :  { %vm7505_vm13 = vcmp.ge.f32.partialorder %v7489_v3, 0.0  ;;  %vm7506_vm14 = vcmp.ge.f32.partialorder %v7490_v30, 0.0  ;;  %v7521_v8 = vmul.f32 0.2, %v7489_v3  ;;  %v7522_v61 = vmul.f32 0.2, %v7490_v30 }
 0x442   :  { %v7535_v5 = vsel %vm7503_vm9, %v7487_v63, %v7519_v41  ;;  %v7536_v2 = vsel %vm7504_vm12, %v7488_v12, %v7520_v16  ;;  %vm7507_vm15 = vcmp.ge.f32.partialorder %v7491_v62, 0.0  ;;  %vm7508_vm2 = vcmp.ge.f32.partialorder %v7492_v51, 0.0 }
 0x443   :  { %v7551_v7 = vpack.c.bf16 %v7536_v2, %v7535_v5  ;;  %v7537_v59 = vsel %vm7505_vm13, %v7489_v3, %v7521_v8  ;;  %v7538_v28 = vsel %vm7506_vm14, %v7490_v30, %v7522_v61  ;;  %v7523_v55 = vmul.f32 0.2, %v7491_v62  ;;  %v13749_v8 = vld [vmem:[%s18364_s4 + $0x18] sm:$0xff]   ;;  %v13750_v61 = vld [vmem:[%s18364_s4 + $0x20] sm:$0xff]   ;;  %v13751_v5 = vld [vmem:[%s18364_s4 + $0x28] sm:$0xff]  }
 0x444   :  { %v7552_v20 = vpack.c.bf16 %v7538_v28, %v7537_v59  ;;  %v7524_v58 = vmul.f32 0.2, %v7492_v51  ;;  %v7474_v21 = vmul.f32 %v17662_v60, %v7454_v0  ;;  %v7493_v29 = vadd.f32 %v17674_v15, %v7473_v11  ;;  %v13752_v2 = vld [vmem:[%s18364_s4 + $0x30] sm:$0xff]   ;;  %v13754_v59 = vld [vmem:[%s18364_s4 + $0x40] sm:$0xff]   ;;  %v13755_v28 = vld [vmem:[%s18364_s4 + $0x48] sm:$0xff]  }
 0x445   :  { %12857 = vmatprep.subr.bf16.mxu1 %v7551_v7  ;;  %v7539_v47 = vsel %vm7507_vm15, %v7491_v62, %v7523_v55  ;;  %v7455_v14 = vmul.f32 %v17657_v48, %v17597_v6  ;;  %v7456_v9 = vmul.f32 %v17657_v48, %v17599_v46  ;;  %v7457_v18 = vmul.f32 %v17657_v48, %v17601_v17  ;;  %v13756_v55 = vld [vmem:[%s18364_s4 + $0x50] sm:$0xff]  }
 0x446   :  { %12858 = vmatpush3.bf16.msra.mxu1 %v7551_v7  ;;  %v7540_v56 = vsel %vm7508_vm2, %v7492_v51, %v7524_v58  ;;  %v7494_v13 = vadd.f32 %v17674_v15, %v7474_v21  ;;  %vm7509_vm3 = vcmp.ge.f32.partialorder %v7493_v29, 0.0  ;;  %v7525_v52 = vmul.f32 0.2, %v7493_v29  ;;  %v13753_v7 = vld [vmem:[%s18364_s4 + $0x38] sm:$0xff]   ;;  %v13758_v58 = vld [vmem:[%s18364_s4 + $0x60] sm:$0xff]   ;;  %v13759_v21 = vld [vmem:[%s18364_s4 + $0x68] sm:$0xff]  }
 0x447   :  { %12859 = vmatprep.subr.bf16.mxu1 %v7552_v20  ;;  %v7553_v33 = vpack.c.bf16 %v7540_v56, %v7539_v47  ;;  %v7475_v1 = vmul.f32 %v17662_v60, %v7455_v14  ;;  %v7476_v25 = vmul.f32 %v17662_v60, %v7456_v9  ;;  %v7458_v6 = vmul.f32 %v17657_v48, %v17603_v10  ;;  %v13761_v47 = vld [vmem:[%s18364_s4 + $0x78] sm:$0xff]   ;;  %v13762_v14 = vld [vmem:[%s18364_s4 + $0x80] sm:$0xff]   ;;  %v13763_v9 = vld [vmem:[%s18364_s4 + $0x88] sm:$0xff]  }
 0x448   :  { %vm7510_vm4 = vcmp.ge.f32.partialorder %v7494_v13, 0.0  ;;  %v7526_v46 = vmul.f32 0.2, %v7494_v13  ;;  %v7541_v19 = vsel %vm7509_vm3, %v7493_v29, %v7525_v52  ;;  %v7477_v17 = vmul.f32 %v17662_v60, %v7457_v18  ;;  %v13760_v29 = vld [vmem:[%s18364_s4 + $0x70] sm:$0xff]   ;;  %v13765_v56 = vld [vmem:[%s18364_s4 + $0x98] sm:$0xff]   ;;  %v13767_v52 = vld [vmem:[%s18364_s4 + $0xa8] sm:$0xff]  }
 0x449   :  { %v7495_v4 = vadd.f32 %v17674_v15, %v7475_v1  ;;  %v7496_v22 = vadd.f32 %v17674_v15, %v7476_v25  ;;  %v7478_v32 = vmul.f32 %v17662_v60, %v7458_v6  ;;  %v7459_v44 = vmul.f32 %v17657_v48, %v17605_v37  ;;  %v13764_v18 = vld [vmem:[%s18364_s4 + $0x90] sm:$0xff]   ;;  %v13769_v1 = vld [vmem:[%s18364_s4 + $0xb8] sm:$0xff]   ;;  %v13770_v25 = vld [vmem:[%s18364_s4 + $0xc0] sm:$0xff]  }
 0x44a   :  { %12860 = vmatpush3.bf16.msra.mxu1 %v7552_v20  ;;  %v7542_v27 = vsel %vm7510_vm4, %v7494_v13, %v7526_v46  ;;  %v7497_v26 = vadd.f32 %v17674_v15, %v7477_v17  ;;  %v7532_v10 = vmul.f32 0.2, %v17694_v50  ;;  %vm7516_vm8 = vcmp.ge.f32.partialorder %v17694_v50, 0.0  ;;  %v13757_v20 = vld [vmem:[%s18364_s4 + $0x58] sm:$0xff]   ;;  %v13766_v13 = vld [vmem:[%s18364_s4 + $0xa0] sm:$0xff]   ;;  %v13771_v6 = vld [vmem:[%s18364_s4 + $0xc8] sm:$0xff]  }
 0x44b   :  { %12861 = vmatprep.subr.bf16.mxu1 %v7553_v33  ;;  %v7554_v23 = vpack.c.bf16 %v7542_v27, %v7541_v19  ;;  %vm7511_vm5 = vcmp.ge.f32.partialorder %v7495_v4, 0.0  ;;  %vm7512_vm6 = vcmp.ge.f32.partialorder %v7496_v22, 0.0  ;;  %v7527_v24 = vmul.f32 0.2, %v7495_v4  ;;  %v13772_v46 = vld [vmem:[%s18364_s4 + $0xd0] sm:$0xff]   ;;  %v13778_v19 = vld [vmem:[%s18363_s5 + $0x8] sm:$0xff]  }
 0x44c   :  { %v7528_v43 = vmul.f32 0.2, %v7496_v22  ;;  %v7498_v42 = vadd.f32 %v17674_v15, %v7478_v32  ;;  %vm7513_vm7 = vcmp.ge.f32.partialorder %v7497_v26, 0.0  ;;  %v7529_v39 = vmul.f32 0.2, %v7497_v26  ;;  %v13773_v17 = vld [vmem:[%s18364_s4 + $0xd8] sm:$0xff]  }
 0x44d   :  { %v7543_v49 = vsel %vm7511_vm5, %v7495_v4, %v7527_v24  ;;  %v7479_v57 = vmul.f32 %v17662_v60, %v7459_v44  ;;  %v7461_v37 = vmul.f32 %v17657_v48, %v17607_v53  ;;  %v7462_v31 = vmul.f32 %v17657_v48, %v17609_v35  ;;  %v13774_v4 = vld [vmem:[%s18364_s4 + $0xe0] sm:$0xff]   ;;  %v13775_v32 = vld [vmem:[%s18364_s4 + $0xe8] sm:$0xff]   ;;  %v13776_v44 = vld [vmem:[%s18364_s4 + $0xf0] sm:$0xff]  }
 0x44e   :  { %12862 = vmatpush3.bf16.msra.mxu1 %v7553_v33  ;;  %v7544_v38 = vsel %vm7512_vm6, %v7496_v22, %v7528_v43  ;;  %vm7514_vm10 = vcmp.ge.f32.partialorder %v7498_v42, 0.0  ;;  %v7530_v54 = vmul.f32 0.2, %v7498_v42  ;;  %v7545_v40 = vsel %vm7513_vm7, %v7497_v26, %v7529_v39  ;;  %v13768_v33 = vld [vmem:[%s18364_s4 + $0xb0] sm:$0xff]   ;;  %v13777_v27 = vld [vmem:[%s18364_s4 + $0xf8] sm:$0xff]  }
 0x44f   :  { %12863 = vmatprep.subr.bf16.mxu1 %v7554_v23  ;;  %v7555_v45 = vpack.c.bf16 %v7544_v38, %v7543_v49  ;;  %v7499_v34 = vadd.f32 %v17674_v15, %v7479_v57  ;;  %v7481_v36 = vmul.f32 %v17662_v60, %v7461_v37  ;;  %v7548_v63 = vsel %vm7516_vm8, %v17694_v50, %v7532_v10  ;;  %v13779_v22 = vld [vmem:[%s18363_s5 + $0x10] sm:$0xff]   ;;  %v13780_v39 = vld [vmem:[%s18363_s5 + $0x18] sm:$0xff]  }
 0x450   :  { %v7546_v0 = vsel %vm7514_vm10, %v7498_v42, %v7530_v54  ;;  %v7482_v3 = vmul.f32 %v17662_v60, %v7462_v31  ;;  %v13747_v60 = vld [vmem:[%s18364_s4 + $0x8] sm:$0xff]   ;;  %12949 = vmatprep.subr.bf16.mxu0 %v13779_v22  ;;  %vm9200_vm14 = vcmask 261120   ;;  %vm11051_vm4 = vcmask 195584  }
 0x451   :  { %v7556_v12 = vpack.c.bf16 %v7546_v0, %v7545_v40  ;;  %vm7515_vm9 = vcmp.ge.f32.partialorder %v7499_v34, 0.0  ;;  %v7531_v53 = vmul.f32 0.2, %v7499_v34  ;;  %v7501_v30 = vadd.f32 %v17674_v15, %v7481_v36 }
 0x452   :  { %12864 = vmatpush3.bf16.msra.mxu1 %v7554_v23  ;;  %v7502_v51 = vadd.f32 %v17674_v15, %v7482_v3  ;;  %v13748_v15 = vld [vmem:[%s18364_s4 + $0x10] sm:$0xff]   ;;  %vm10936_vm5 = vcmask 517120  }
 0x453   :  { %12865 = vmatprep.subr.bf16.mxu1 %v7555_v45  ;;  %v7547_v62 = vsel %vm7515_vm9, %v7499_v34, %v7531_v53  ;;  %vm7517_vm12 = vcmp.ge.f32.partialorder %v7501_v30, 0.0  ;;  %v7533_v35 = vmul.f32 0.2, %v7501_v30 }
 0x454   :  { %v7557_v11 = vpack.c.bf16 %v7548_v63, %v7547_v62  ;;  %vm7518_vm13 = vcmp.ge.f32.partialorder %v7502_v51, 0.0  ;;  %v7534_v48 = vmul.f32 0.2, %v7502_v51 }
 0x455   :  { %v7549_v41 = vsel %vm7517_vm12, %v7501_v30, %v7533_v35 }
 0x456   :  { %12866 = vmatpush3.bf16.msra.mxu1 %v7555_v45  ;;  %v7550_v50 = vsel %vm7518_vm13, %v7502_v51, %v7534_v48 }
 0x457   :  { %12867 = vmatprep.subr.bf16.mxu1 %v7556_v12  ;;  %v7558_v16 = vpack.c.bf16 %v7550_v50, %v7549_v41  ;;  %v13782_v41 = vld [vmem:[%s18363_s5 + $0x28] sm:$0xff]  }
 0x45a   :  { %12868 = vmatpush3.bf16.msra.mxu1 %v7556_v12  ;;  %v13781_v12 = vld [vmem:[%s18363_s5 + $0x20] sm:$0xff]  }
 0x45b   :  { %12869 = vmatprep.subr.bf16.mxu1 %v7557_v11 }
 0x45e   :  { %12870 = vmatpush3.bf16.msra.mxu1 %v7557_v11 }
 0x45f   :  { %12871 = vmatprep.subr.bf16.mxu1 %v7558_v16 }
 0x462   :  { %12872 = vmatpush3.bf16.msra.mxu1 %v7558_v16 }
 0x463   :  { %12937 = vmatprep.subr.bf16.mxu1 %v13778_v19 }
 0x465   :  { %12874 = vmatmul.mubr.bf16.vlgmr.msra.gmra.mrb[16].mxu1 %v13747_v60 }
 0x466   :  { %12877 = vmatprep.mubr.bf16.mxu1 %v13748_v15  ;;  %12938 = vmatpush3.bf16.msra.mxu1 %v13778_v19 }
 0x46d   :  { %12878 = vmatmul.mubr.bf16.gmra.mrb[20].mxu1 %v13749_v8 }
 0x46e   :  { %12881 = vmatprep.mubr.bf16.mxu1 %v13750_v61 }
 0x475   :  { %12882 = vmatmul.mubr.bf16.gmra.mrb[24].mxu1 %v13751_v5 }
 0x476   :  { %12885 = vmatprep.mubr.bf16.mxu1 %v13752_v2 }
 0x47d   :  { %12886 = vmatmul.mubr.bf16.gmra.mrb[28].mxu1 %v13753_v7 }
 0x47e   :  { %12889 = vmatprep.mubr.bf16.mxu1 %v13754_v59 }
 0x485   :  { %12890 = vmatmul.mubr.bf16.gmra.mrb[32].mxu1 %v13755_v28  ;;  %v13783_v28 = vld [vmem:[%s18363_s5 + $0x30] sm:$0xff]  }
 0x486   :  { %12893 = vmatprep.mubr.bf16.mxu1 %v13756_v55 }
 0x48d   :  { %12894 = vmatmul.mubr.bf16.gmra.mrb[36].mxu1 %v13757_v20 }
 0x48e   :  { %12897 = vmatprep.mubr.bf16.mxu1 %v13758_v58 }
 0x495   :  { %12898 = vmatmul.mubr.bf16.gmra.mrb[40].mxu1 %v13759_v21 }
 0x496   :  { %12901 = vmatprep.mubr.bf16.mxu1 %v13760_v29 }
 0x49d   :  { %12902 = vmatmul.mubr.bf16.gmra.mrb[44].mxu1 %v13761_v47 }
 0x49e   :  { %12905 = vmatprep.mubr.bf16.mxu1 %v13762_v14 }
 0x4a5   :  { %12906 = vmatmul.mubr.bf16.gmra.mrb[48].mxu1 %v13763_v9 }
 0x4a6   :  { %12909 = vmatprep.mubr.bf16.mxu1 %v13764_v18  ;;  %v13784_v18 = vld [vmem:[%s18363_s5 + $0x38] sm:$0xff]  }
 0x4ad   :  { %12910 = vmatmul.mubr.bf16.gmra.mrb[52].mxu1 %v13765_v56 }
 0x4ae   :  { %12913 = vmatprep.mubr.bf16.mxu1 %v13766_v13 }
 0x4b5   :  { %12914 = vmatmul.mubr.bf16.gmra.mrb[56].mxu1 %v13767_v52 }
 0x4b6   :  { %12917 = vmatprep.mubr.bf16.mxu1 %v13768_v33 }
 0x4bd   :  { %12918 = vmatmul.mubr.bf16.gmra.mrb[60].mxu1 %v13769_v1 }
 0x4be   :  { %12921 = vmatprep.mubr.bf16.mxu1 %v13770_v25 }
 0x4c5   :  { %12922 = vmatmul.mubr.bf16.gmra.mrb[64].mxu1 %v13771_v6 }
 0x4c6   :  { %12925 = vmatprep.mubr.bf16.mxu1 %v13772_v46 }
 0x4cd   :  { %12926 = vmatmul.mubr.bf16.gmra.mrb[68].mxu1 %v13773_v17 }
 0x4ce   :  { %12929 = vmatprep.mubr.bf16.mxu1 %v13774_v4  ;;  %v13785_v4 = vld [vmem:[%s18363_s5 + $0x40] sm:$0xff]  }
 0x4d5   :  { %12930 = vmatmul.mubr.bf16.gmra.mrb[72].mxu1 %v13775_v32 }
 0x4d6   :  { %12933 = vmatprep.mubr.bf16.mxu1 %v13776_v44 }
 0x4dd   :  { %12934 = vmatmul.mubr.bf16.gmra.mrb[76].mxu1 %v13777_v27 }
 0x538   :  { %v12875_v26 = vpop.f32.mrb[16].mxu1 }
 0x539   :  { %v7849_v10 = vpop.f32.mrb[17].mxu1 }
 0x53a   :  { %v12876_v23 = vpop.f32.mrb[18].mxu1 }
 0x53b   :  { %v8105_v24 = vpack.c.bf16 %v12876_v23, %v12875_v26  ;;  %v7852_v43 = vpop.f32.mrb[19].mxu1 }
 0x53c   :  { %v8104_v42 = vpack.c.bf16 %v7852_v43, %v7849_v10 }
 0x53e   :  { %12945 = vmatprep.mubr.msk.bf16.mxu0 %vm7335_vm11, %v8104_v42 }
 0x53f   :  { %12946 = vmatmul.mubr.msk.bf16.vlgmr.msra.gmra.mrb[0].mxu0 %vm7335_vm11, %v8105_v24  ;;  %v13786_v24 = vld [vmem:[%s18363_s5 + $0x48] sm:$0xff]  }
 0x540   :  { %v12879_v49 = vpop.f32.mrb[20].mxu1  ;;  %12950 = vmatpush3.bf16.msra.mxu0 %v13779_v22 }
 0x541   :  { %v7865_v57 = vpop.f32.mrb[21].mxu1  ;;  %12955 = vmatprep.subr.bf16.mxu0 %v13780_v39 }
 0x542   :  { %v12880_v37 = vpop.f32.mrb[22].mxu1 }
 0x543   :  { %v8109_v38 = vpack.c.bf16 %v12880_v37, %v12879_v49  ;;  %v7868_v54 = vpop.f32.mrb[23].mxu1 }
 0x544   :  { %v8108_v40 = vpack.c.bf16 %v7868_v54, %v7865_v57 }
 0x546   :  { %12939 = vmatprep.mubr.msk.bf16.mxu1 %vm7335_vm11, %v8108_v40 }
 0x547   :  { %12940 = vmatmul.mubr.msk.bf16.vlgmr.msra.gmra.mrb[80].mxu1 %vm7335_vm11, %v8109_v38 }
 0x548   :  { %v12883_v45 = vpop.f32.mrb[24].mxu1 }
 0x549   :  { %v7881_v34 = vpop.f32.mrb[25].mxu1 }
 0x54a   :  { %v12884_v31 = vpop.f32.mrb[26].mxu1 }
 0x54b   :  { %v8235_v36 = vpack.c.bf16 %v12884_v31, %v12883_v45  ;;  %v7884_v0 = vpop.f32.mrb[27].mxu1  ;;  %v13787_v31 = vld [vmem:[%s18363_s5 + $0x50] sm:$0xff]  }
 0x54c   :  { %v8234_v63 = vpack.c.bf16 %v7884_v0, %v7881_v34 }
 0x54e   :  { %12951 = vmatprep.mubr.msk.bf16.mxu0 %vm7335_vm11, %v8234_v63 }
 0x54f   :  { %12952 = vmatmul.mubr.msk.bf16.vlgmr.msra.gmra.mrb[0].mxu0 %vm7335_vm11, %v8235_v36 }
 0x550   :  { %v12887_v53 = vpop.f32.mrb[28].mxu1  ;;  %12956 = vmatpush3.bf16.msra.mxu0 %v13780_v39 }
 0x551   :  { %v7897_v3 = vpop.f32.mrb[29].mxu1  ;;  %12961 = vmatprep.subr.bf16.mxu0 %v13781_v12 }
 0x552   :  { %v12888_v30 = vpop.f32.mrb[30].mxu1 }
 0x553   :  { %v8304_v62 = vpack.c.bf16 %v12888_v30, %v12887_v53  ;;  %v7900_v51 = vpop.f32.mrb[31].mxu1 }
 0x554   :  { %v8303_v11 = vpack.c.bf16 %v7900_v51, %v7897_v3 }
 0x556   :  { %12957 = vmatprep.mubr.msk.bf16.mxu0 %vm7335_vm11, %v8303_v11 }
 0x558   :  { %v12891_v35 = vpop.f32.mrb[32].mxu1 }
 0x559   :  { %v7913_v48 = vpop.f32.mrb[33].mxu1 }
 0x55a   :  { %v12892_v50 = vpop.f32.mrb[34].mxu1 }
 0x55b   :  { %12958 = vmatmul.mubr.msk.bf16.vlgmr.msra.gmra.mrb[0].mxu0 %vm7335_vm11, %v8304_v62  ;;  %v8373_v16 = vpack.c.bf16 %v12892_v50, %v12891_v35  ;;  %v7916_v60 = vpop.f32.mrb[35].mxu1  ;;  %v13788_v62 = vld [vmem:[%s18363_s5 + $0x58] sm:$0xff]  }
 0x55c   :  { %v8372_v15 = vpack.c.bf16 %v7916_v60, %v7913_v48  ;;  %12962 = vmatpush3.bf16.msra.mxu0 %v13781_v12 }
 0x55d   :  { %12967 = vmatprep.subr.bf16.mxu0 %v13782_v41 }
 0x55e   :  { %12963 = vmatprep.mubr.msk.bf16.mxu0 %vm7335_vm11, %v8372_v15 }
 0x560   :  { %v12895_v8 = vpop.f32.mrb[36].mxu1 }
 0x561   :  { %v7929_v61 = vpop.f32.mrb[37].mxu1 }
 0x562   :  { %v12896_v5 = vpop.f32.mrb[38].mxu1 }
 0x563   :  { %v8442_v2 = vpack.c.bf16 %v12896_v5, %v12895_v8  ;;  %v7932_v7 = vpop.f32.mrb[39].mxu1  ;;  %v13789_v5 = vld [vmem:[%s18363_s5 + $0x60] sm:$0xff]  }
 0x564   :  { %v8441_v59 = vpack.c.bf16 %v7932_v7, %v7929_v61 }
 0x567   :  { %12964 = vmatmul.mubr.msk.bf16.vlgmr.msra.gmra.mrb[0].mxu0 %vm7335_vm11, %v8373_v16 }
 0x568   :  { %12969 = vmatprep.mubr.msk.bf16.mxu0 %vm7335_vm11, %v8441_v59  ;;  %12968 = vmatpush3.bf16.msra.mxu0 %v13782_v41  ;;  %v12899_v55 = vpop.f32.mrb[40].mxu1 }
 0x569   :  { %v7945_v20 = vpop.f32.mrb[41].mxu1  ;;  %12973 = vmatprep.subr.bf16.mxu0 %v13783_v28 }
 0x56a   :  { %v12900_v58 = vpop.f32.mrb[42].mxu1 }
 0x56b   :  { %v8511_v21 = vpack.c.bf16 %v12900_v58, %v12899_v55  ;;  %v7948_v29 = vpop.f32.mrb[43].mxu1  ;;  %v13790_v58 = vld [vmem:[%s18363_s5 + $0x68] sm:$0xff]  }
 0x56c   :  { %v8510_v47 = vpack.c.bf16 %v7948_v29, %v7945_v20  ;;  %v13792_v29 = vld [vmem:[%s18363_s5 + $0x78] sm:$0xff]  }
 0x570   :  { %v12903_v14 = vpop.f32.mrb[44].mxu1 }
 0x571   :  { %v7961_v9 = vpop.f32.mrb[45].mxu1 }
 0x572   :  { %v12904_v56 = vpop.f32.mrb[46].mxu1 }
 0x573   :  { %12970 = vmatmul.mubr.msk.bf16.vlgmr.msra.gmra.mrb[0].mxu0 %vm7335_vm11, %v8442_v2  ;;  %v8580_v13 = vpack.c.bf16 %v12904_v56, %v12903_v14  ;;  %v7964_v52 = vpop.f32.mrb[47].mxu1  ;;  %v13793_v56 = vld [vmem:[%s18365_s6] sm:$0xff]  }
 0x574   :  { %12975 = vmatprep.mubr.msk.bf16.mxu0 %vm7335_vm11, %v8510_v47  ;;  %12974 = vmatpush3.bf16.msra.mxu0 %v13783_v28  ;;  %v8579_v33 = vpack.c.bf16 %v7964_v52, %v7961_v9 }
 0x575   :  { %12979 = vmatprep.subr.bf16.mxu0 %v13784_v18  ;;  %13037 = vmatprep.mubr.msk.bf16.mxu1 %vm9200_vm14, %v13793_v56 }
 0x578   :  { %v12907_v1 = vpop.f32.mrb[48].mxu1 }
 0x579   :  { %v7977_v25 = vpop.f32.mrb[49].mxu1 }
 0x57a   :  { %v12908_v6 = vpop.f32.mrb[50].mxu1 }
 0x57b   :  { %v8649_v46 = vpack.c.bf16 %v12908_v6, %v12907_v1  ;;  %v7980_v19 = vpop.f32.mrb[51].mxu1 }
 0x57c   :  { %v8648_v17 = vpack.c.bf16 %v7980_v19, %v7977_v25 }
 0x57f   :  { %12976 = vmatmul.mubr.msk.bf16.vlgmr.msra.gmra.mrb[0].mxu0 %vm7335_vm11, %v8511_v21  ;;  %v13791_v21 = vld [vmem:[%s18363_s5 + $0x70] sm:$0xff]  }
 0x580   :  { %12981 = vmatprep.mubr.msk.bf16.mxu0 %vm7335_vm11, %v8579_v33  ;;  %12980 = vmatpush3.bf16.msra.mxu0 %v13784_v18  ;;  %v12911_v22 = vpop.f32.mrb[52].mxu1 }
 0x581   :  { %12985 = vmatprep.subr.bf16.mxu0 %v13785_v4  ;;  %v7993_v32 = vpop.f32.mrb[53].mxu1 }
 0x582   :  { %v12912_v44 = vpop.f32.mrb[54].mxu1 }
 0x583   :  { %v8718_v27 = vpack.c.bf16 %v12912_v44, %v12911_v22  ;;  %v7996_v26 = vpop.f32.mrb[55].mxu1 }
 0x584   :  { %v8717_v10 = vpack.c.bf16 %v7996_v26, %v7993_v32 }
 0x588   :  { %v12915_v23 = vpop.f32.mrb[56].mxu1 }
 0x589   :  { %v8009_v43 = vpop.f32.mrb[57].mxu1 }
 0x58a   :  { %v12916_v42 = vpop.f32.mrb[58].mxu1 }
 0x58b   :  { %12982 = vmatmul.mubr.msk.bf16.vlgmr.msra.gmra.mrb[0].mxu0 %vm7335_vm11, %v8580_v13  ;;  %v8787_v39 = vpack.c.bf16 %v12916_v42, %v12915_v23  ;;  %v8012_v49 = vpop.f32.mrb[59].mxu1 }
 0x58c   :  { %12987 = vmatprep.mubr.msk.bf16.mxu0 %vm7335_vm11, %v8648_v17  ;;  %12986 = vmatpush3.bf16.msra.mxu0 %v13785_v4  ;;  %v8786_v57 = vpack.c.bf16 %v8012_v49, %v8009_v43 }
 0x58d   :  { %12991 = vmatprep.subr.bf16.mxu0 %v13786_v24 }
 0x590   :  { %v12919_v37 = vpop.f32.mrb[60].mxu1 }
 0x591   :  { %v8025_v38 = vpop.f32.mrb[61].mxu1 }
 0x592   :  { %v12920_v54 = vpop.f32.mrb[62].mxu1 }
 0x593   :  { %v8856_v40 = vpack.c.bf16 %v12920_v54, %v12919_v37  ;;  %v8028_v45 = vpop.f32.mrb[63].mxu1 }
 0x594   :  { %v8855_v34 = vpack.c.bf16 %v8028_v45, %v8025_v38 }
 0x597   :  { %12988 = vmatmul.mubr.msk.bf16.vlgmr.msra.gmra.mrb[0].mxu0 %vm7335_vm11, %v8649_v46 }
 0x598   :  { %12993 = vmatprep.mubr.msk.bf16.mxu0 %vm7335_vm11, %v8717_v10  ;;  %12992 = vmatpush3.bf16.msra.mxu0 %v13786_v24  ;;  %v12923_v36 = vpop.f32.mrb[64].mxu1 }
 0x599   :  { %12997 = vmatprep.subr.bf16.mxu0 %v13787_v31  ;;  %v8041_v0 = vpop.f32.mrb[65].mxu1 }
 0x59a   :  { %v12924_v63 = vpop.f32.mrb[66].mxu1 }
 0x59b   :  { %v8925_v12 = vpack.c.bf16 %v12924_v63, %v12923_v36  ;;  %v8044_v53 = vpop.f32.mrb[67].mxu1 }
 0x59c   :  { %v8924_v3 = vpack.c.bf16 %v8044_v53, %v8041_v0 }
 0x5a0   :  { %v12927_v30 = vpop.f32.mrb[68].mxu1 }
 0x5a1   :  { %v8057_v51 = vpop.f32.mrb[69].mxu1 }
 0x5a2   :  { %v12928_v11 = vpop.f32.mrb[70].mxu1 }
 0x5a3   :  { %12994 = vmatmul.mubr.msk.bf16.vlgmr.msra.gmra.mrb[0].mxu0 %vm7335_vm11, %v8718_v27  ;;  %v8994_v35 = vpack.c.bf16 %v12928_v11, %v12927_v30  ;;  %v8060_v48 = vpop.f32.mrb[71].mxu1 }
 0x5a4   :  { %12999 = vmatprep.mubr.msk.bf16.mxu0 %vm7335_vm11, %v8786_v57  ;;  %12998 = vmatpush3.bf16.msra.mxu0 %v13787_v31  ;;  %v8993_v41 = vpack.c.bf16 %v8060_v48, %v8057_v51 }
 0x5a5   :  { %13003 = vmatprep.subr.bf16.mxu0 %v13788_v62 }
 0x5a8   :  { %v12931_v50 = vpop.f32.mrb[72].mxu1 }
 0x5a9   :  { %v8073_v16 = vpop.f32.mrb[73].mxu1 }
 0x5aa   :  { %v12932_v60 = vpop.f32.mrb[74].mxu1 }
 0x5ab   :  { %v9063_v15 = vpack.c.bf16 %v12932_v60, %v12931_v50  ;;  %v8076_v8 = vpop.f32.mrb[75].mxu1 }
 0x5ac   :  { %v9062_v61 = vpack.c.bf16 %v8076_v8, %v8073_v16 }
 0x5af   :  { %13000 = vmatmul.mubr.msk.bf16.vlgmr.msra.gmra.mrb[0].mxu0 %vm7335_vm11, %v8787_v39 }
 0x5b0   :  { %13005 = vmatprep.mubr.msk.bf16.mxu0 %vm7335_vm11, %v8855_v34  ;;  %13004 = vmatpush3.bf16.msra.mxu0 %v13788_v62  ;;  %v12935_v2 = vpop.f32.mrb[76].mxu1 }
 0x5b1   :  { %13009 = vmatprep.subr.bf16.mxu0 %v13789_v5  ;;  %v8089_v7 = vpop.f32.mrb[77].mxu1 }
 0x5b2   :  { %v12936_v59 = vpop.f32.mrb[78].mxu1 }
 0x5b3   :  { %v9132_v28 = vpack.c.bf16 %v12936_v59, %v12935_v2  ;;  %v8092_v55 = vpop.f32.mrb[79].mxu1 }
 0x5b4   :  { %v9131_v20 = vpack.c.bf16 %v8092_v55, %v8089_v7  ;;  %v11709_v7 = vld [vmem:[%s18362_s10 + $0x4] ss:$0 sm:$0xff] }
 0x5bb   :  { %13006 = vmatmul.mubr.msk.bf16.vlgmr.msra.gmra.mrb[0].mxu0 %vm7335_vm11, %v8856_v40 }
 0x5bc   :  { %13011 = vmatprep.mubr.msk.bf16.mxu0 %vm7335_vm11, %v8924_v3  ;;  %13010 = vmatpush3.bf16.msra.mxu0 %v13789_v5 }
 0x5bd   :  { %13015 = vmatprep.subr.bf16.mxu0 %v13790_v58 }
 0x5c7   :  { %13012 = vmatmul.mubr.msk.bf16.vlgmr.msra.gmra.mrb[0].mxu0 %vm7335_vm11, %v8925_v12 }
 0x5c8   :  { %13017 = vmatprep.mubr.msk.bf16.mxu0 %vm7335_vm11, %v8993_v41  ;;  %13016 = vmatpush3.bf16.msra.mxu0 %v13790_v58 }
 0x5c9   :  { %13021 = vmatprep.subr.bf16.mxu0 %v13791_v21 }
 0x5d3   :  { %13018 = vmatmul.mubr.msk.bf16.vlgmr.msra.gmra.mrb[0].mxu0 %vm7335_vm11, %v8994_v35 }
 0x5d4   :  { %13023 = vmatprep.mubr.msk.bf16.mxu0 %vm7335_vm11, %v9062_v61  ;;  %13022 = vmatpush3.bf16.msra.mxu0 %v13791_v21 }
 0x5d5   :  { %13027 = vmatprep.subr.bf16.mxu0 %v13792_v29 }
 0x5df   :  { %13024 = vmatmul.mubr.msk.bf16.vlgmr.msra.gmra.mrb[0].mxu0 %vm7335_vm11, %v9063_v15  ;;  %v11708_v15 = vld [vmem:[%s18362_s10 + $0x3] ss:$0 sm:$0xff] }
 0x5e0   :  { %13029 = vmatprep.mubr.msk.bf16.mxu0 %vm7335_vm11, %v9131_v20  ;;  %13028 = vmatpush3.bf16.msra.mxu0 %v13792_v29 }
 0x5eb   :  { %13030 = vmatmul.mubr.msk.bf16.vlgmr.msra.gmra.mrb[0].mxu0 %vm7335_vm11, %v9132_v28 }
 0x61a   :  { %v12941_v47 = vpop.f32.mrb[80].mxu1 }
 0x61b   :  { %v8158_v14 = vpop.f32.mrb[81].mxu1 }
 0x61c   :  { %v12942_v9 = vpop.f32.mrb[82].mxu1 }
 0x61d   :  { %v8161_v18 = vpop.f32.mrb[83].mxu1 }
 0x6be   :  { %v13031_v13 = vpop.f32.mrb[0].mxu0 }
 0x6bf   :  { %v13233_v52 = vadd.f32 %v13031_v13, %v12941_v47  ;;  %v9181_v33 = vpop.f32.mrb[1].mxu0 }
 0x6c0   :  { %v13234_v1 = vadd.f32 %v9181_v33, %v8158_v14  ;;  %v13032_v25 = vpop.f32.mrb[2].mxu0 }
 0x6c1   :  { %v13235_v6 = vadd.f32 %v13032_v25, %v12942_v9  ;;  %v9184_v46 = vpop.f32.mrb[3].mxu0  ;;  %v9204_v32 = vsel %vm9200_vm14, %v13233_v52, 0.0 }
 0x6c2   :  { %v13236_v19 = vadd.f32 %v9184_v46, %v8161_v18  ;;  %v9201_v17 = vsel %vm9200_vm14, %v13234_v1, 0.0  ;;  %v13794_v46 = vld [vmem:[%s18365_s6 + $0x8] sm:$0xff]  }
 0x6c3   :  { %v9206_v27 = vsel %vm9200_vm14, %v13235_v6, 0.0 }
 0x6c4   :  { %v9202_v4 = vsel %vm9200_vm14, %v13236_v19, 0.0 }
 0x6c5   :  { %v9203_v22 = vadd.f32 %v9202_v4, %v9201_v17  ;;  %v13796_v17 = vld [vmem:[%s18365_s6 + $0x18] sm:$0xff]   ;;  %v13797_v4 = vld [vmem:[%s18365_s6 + $0x20] sm:$0xff]  }
 0x6c7   :  { %v9205_v44 = vadd.f32 %v9204_v32, %v9203_v22  ;;  %v13798_v22 = vld [vmem:[%s18365_s6 + $0x28] sm:$0xff]   ;;  %v13799_v32 = vld [vmem:[%s18365_s6 + $0x30] sm:$0xff]  }
 0x6c9   :  { %v9207_v26 = vadd.f32 %v9206_v27, %v9205_v44  ;;  %v13800_v44 = vld [vmem:[%s18365_s6 + $0x38] sm:$0xff]   ;;  %v13801_v27 = vld [vmem:[%s18365_s6 + $0x40] sm:$0xff]  }
 0x6cb   :  { %v9208_v10 = vrot.slane %v9207_v26, 4 }
 0x6cd   :  { %v9209_v23 = vadd.f32 %v9208_v10, %v9207_v26  ;;  %v13802_v26 = vld [vmem:[%s18365_s6 + $0x48] sm:$0xff]   ;;  %v13803_v10 = vld [vmem:[%s18365_s6 + $0x50] sm:$0xff]  }
 0x6cf   :  { %v9210_v24 = vrot.slane %v9209_v23, 2 }
 0x6d1   :  { %v9211_v43 = vadd.f32 %v9210_v24, %v9209_v23  ;;  %v13804_v23 = vld [vmem:[%s18365_s6 + $0x58] sm:$0xff]   ;;  %v13805_v24 = vld [vmem:[%s18365_s6 + $0x60] sm:$0xff]  }
 0x6d3   :  { %v9212_v42 = vrot.slane %v9211_v43, 1 }
 0x6d5   :  { %v9213_v39 = vadd.f32 %v9212_v42, %v9211_v43  ;;  %v13806_v43 = vld [vmem:[%s18365_s6 + $0x68] sm:$0xff]   ;;  %v13807_v42 = vld [vmem:[%s18365_s6 + $0x70] sm:$0xff]  }
 0x6d7   :  { %v9215_v49 = vmul.f32 0.03125, %v9213_v39  ;;  %v13808_v39 = vld [vmem:[%s18365_s6 + $0x78] sm:$0xff]  }
 0x6d9   :  { %v9216_v57 = vsub.f32 %v13234_v1, %v9215_v49  ;;  %v9217_v37 = vsub.f32 %v13236_v19, %v9215_v49  ;;  %v9218_v38 = vsub.f32 %v13233_v52, %v9215_v49  ;;  %v9219_v54 = vsub.f32 %v13235_v6, %v9215_v49  ;;  %v13795_v19 = vld [vmem:[%s18365_s6 + $0x10] sm:$0xff]   ;;  %v13809_v49 = vld [vmem:[%s18365_s6 + $0x80] sm:$0xff]  }
 0x6db   :  { %v9220_v40 = vmul.f32 %v9216_v57, %v9216_v57  ;;  %v9221_v45 = vmul.f32 %v9217_v37, %v9217_v37  ;;  %v9222_v34 = vmul.f32 %v9218_v38, %v9218_v38  ;;  %v9223_v31 = vmul.f32 %v9219_v54, %v9219_v54 }
 0x6dd   :  { %v9224_v36 = vsel %vm9200_vm14, %v9220_v40, 0.0  ;;  %v9225_v0 = vsel %vm9200_vm14, %v9221_v45, 0.0  ;;  %v9227_v12 = vsel %vm9200_vm14, %v9222_v34, 0.0  ;;  %v9229_v3 = vsel %vm9200_vm14, %v9223_v31, 0.0  ;;  %v13814_v40 = vld [vmem:[%s18365_s6 + $0xa8] sm:$0xff]   ;;  %v13815_v45 = vld [vmem:[%s18365_s6 + $0xb0] sm:$0xff]  }
 0x6de   :  { %v9226_v63 = vadd.f32 %v9225_v0, %v9224_v36  ;;  %v13816_v34 = vld [vmem:[%s18365_s6 + $0xb8] sm:$0xff]   ;;  %v13817_v31 = vld [vmem:[%s18366_s7 + $0x10] sm:$0xff]   ;;  %v13819_v0 = vld [vmem:[%s18366_s7] sm:$0xff]  }
 0x6df   :  { %13085 = vmatprep.subr.bf16.mxu0 %v13817_v31  ;;  %v13818_v36 = vld [vmem:[%s18366_s7 + $0x18] sm:$0xff]  }
 0x6e0   :  { %v9228_v53 = vadd.f32 %v9227_v12, %v9226_v63  ;;  %13086 = vmatpush3.bf16.msra.mxu0 %v13817_v31 }
 0x6e1   :  { %13087 = vmatprep.subr.bf16.mxu0 %v13818_v36 }
 0x6e2   :  { %v9230_v30 = vadd.f32 %v9229_v3, %v9228_v53 }
 0x6e4   :  { %v9231_v62 = vrot.slane %v9230_v30, 4  ;;  %13088 = vmatpush3.bf16.msra.mxu0 %v13818_v36 }
 0x6e5   :  { %13093 = vmatprep.subr.bf16.mxu0 %v13819_v0 }
 0x6e6   :  { %v9232_v51 = vadd.f32 %v9231_v62, %v9230_v30 }
 0x6e8   :  { %v9233_v11 = vrot.slane %v9232_v51, 2 }
 0x6ea   :  { %v9234_v35 = vadd.f32 %v9233_v11, %v9232_v51 }
 0x6ec   :  { %v9235_v48 = vrot.slane %v9234_v35, 1 }
 0x6ee   :  { %v9236_v41 = vadd.f32 %v9235_v48, %v9234_v35 }
 0x6f0   :  { %v9237_v50 = vmul.f32 0.03125, %v9236_v41 }
 0x6f2   :  { %v9238_v16 = vadd.f32 1e-05, %v9237_v50 }
 0x6f4   :  { %13859 = vrsqrt.f32 %v9238_v16  ;;  %v13820_v16 = vld [vmem:[%s18366_s7 + $0x8] sm:$0xff]  }
 0x6fe   :  { %v13860_v60 = vpop.eup %13859 }
 0x6ff   :  { %v9241_v8 = vmul.f32 %v13860_v60, %v9217_v37  ;;  %v9240_v61 = vmul.f32 %v13860_v60, %v9216_v57  ;;  %v9242_v5 = vmul.f32 %v13860_v60, %v9218_v38  ;;  %v9243_v2 = vmul.f32 %v13860_v60, %v9219_v54  ;;  %v13810_v57 = vld [vmem:[%s18365_s6 + $0x88] sm:$0xff]   ;;  %v13811_v37 = vld [vmem:[%s18365_s6 + $0x90] sm:$0xff]   ;;  %v13812_v38 = vld [vmem:[%s18365_s6 + $0x98] sm:$0xff]  }
 0x700   :  { %v13813_v54 = vld [vmem:[%s18365_s6 + $0xa0] sm:$0xff]  }
 0x701   :  { %v9249_v59 = vmul.f32 %v11708_v15, %v9241_v8  ;;  %v9248_v28 = vmul.f32 %v11708_v15, %v9240_v61  ;;  %v9250_v55 = vmul.f32 %v11708_v15, %v9242_v5  ;;  %v9251_v20 = vmul.f32 %v11708_v15, %v9243_v2  ;;  %v13821_v60 = vld [vmem:[%s18366_s7 + $0x20] sm:$0xff]  }
 0x703   :  { %v9257_v58 = vadd.f32 %v11709_v7, %v9249_v59  ;;  %v9256_v21 = vadd.f32 %v11709_v7, %v9248_v28  ;;  %v9258_v29 = vadd.f32 %v11709_v7, %v9250_v55  ;;  %v9259_v47 = vadd.f32 %v11709_v7, %v9251_v20  ;;  %v13822_v59 = vld [vmem:[%s18366_s7 + $0x28] sm:$0xff]  }
 0x705   :  { %vm9260_vm11 = vcmp.ge.f32.partialorder %v9256_v21, 0.0  ;;  %vm9261_vm15 = vcmp.ge.f32.partialorder %v9257_v58, 0.0  ;;  %v9264_v14 = vmul.f32 0.2, %v9256_v21  ;;  %v9265_v9 = vmul.f32 0.2, %v9257_v58 }
 0x706   :  { %vm9262_vm2 = vcmp.ge.f32.partialorder %v9258_v29, 0.0  ;;  %vm9263_vm3 = vcmp.ge.f32.partialorder %v9259_v47, 0.0  ;;  %v9266_v18 = vmul.f32 0.2, %v9258_v29  ;;  %v9267_v56 = vmul.f32 0.2, %v9259_v47 }
 0x707   :  { %v9268_v13 = vsel %vm9260_vm11, %v9256_v21, %v9264_v14  ;;  %v9269_v52 = vsel %vm9261_vm15, %v9257_v58, %v9265_v9  ;;  %v13823_v21 = vld [vmem:[%s18366_s7 + $0x30] sm:$0xff]  }
 0x708   :  { %v9272_v33 = vpack.c.bf16 %v9269_v52, %v9268_v13  ;;  %v9270_v1 = vsel %vm9262_vm2, %v9258_v29, %v9266_v18  ;;  %v9271_v25 = vsel %vm9263_vm3, %v9259_v47, %v9267_v56 }
 0x709   :  { %v9273_v6 = vpack.c.bf16 %v9271_v25, %v9270_v1  ;;  %v13825_v1 = vld [vmem:[%s18366_s7 + $0x40] sm:$0xff]  }
 0x70a   :  { %13033 = vmatprep.subr.bf16.mxu1 %v9272_v33 }
 0x70b   :  { %13034 = vmatpush3.bf16.msra.mxu1 %v9272_v33  ;;  %v13824_v33 = vld [vmem:[%s18366_s7 + $0x38] sm:$0xff]  }
 0x70c   :  { %13035 = vmatprep.subr.bf16.mxu1 %v9273_v6 }
 0x70f   :  { %13036 = vmatpush3.bf16.msra.mxu1 %v9273_v6 }
 0x712   :  { %13038 = vmatmul.mubr.msk.bf16.vlgmr.msra.gmra.mrb[84].mxu1 %vm9200_vm14, %v13794_v46 }
 0x713   :  { %13041 = vmatprep.mubr.msk.bf16.mxu1 %vm9200_vm14, %v13795_v19 }
 0x71a   :  { %13042 = vmatmul.mubr.msk.bf16.gmra.mrb[88].mxu1 %vm9200_vm14, %v13796_v17 }
 0x71b   :  { %13045 = vmatprep.mubr.msk.bf16.mxu1 %vm9200_vm14, %v13797_v4 }
 0x722   :  { %13046 = vmatmul.mubr.msk.bf16.gmra.mrb[92].mxu1 %vm9200_vm14, %v13798_v22  ;;  %v13826_v22 = vld [vmem:[%s18366_s7 + $0x48] sm:$0xff]  }
 0x723   :  { %13049 = vmatprep.mubr.msk.bf16.mxu1 %vm9200_vm14, %v13799_v32 }
 0x72a   :  { %13050 = vmatmul.mubr.msk.bf16.gmra.mrb[96].mxu1 %vm9200_vm14, %v13800_v44 }
 0x72b   :  { %13053 = vmatprep.mubr.msk.bf16.mxu1 %vm9200_vm14, %v13801_v27 }
 0x732   :  { %13054 = vmatmul.mubr.msk.bf16.gmra.mrb[100].mxu1 %vm9200_vm14, %v13802_v26 }
 0x733   :  { %13057 = vmatprep.mubr.msk.bf16.mxu1 %vm9200_vm14, %v13803_v10  ;;  %v13827_v10 = vld [vmem:[%s18366_s7 + $0x50] sm:$0xff]  }
 0x73a   :  { %13058 = vmatmul.mubr.msk.bf16.gmra.mrb[104].mxu1 %vm9200_vm14, %v13804_v23 }
 0x73b   :  { %13061 = vmatprep.mubr.msk.bf16.mxu1 %vm9200_vm14, %v13805_v24 }
 0x742   :  { %13062 = vmatmul.mubr.msk.bf16.gmra.mrb[108].mxu1 %vm9200_vm14, %v13806_v43 }
 0x743   :  { %13065 = vmatprep.mubr.msk.bf16.mxu1 %vm9200_vm14, %v13807_v42 }
 0x74a   :  { %13066 = vmatmul.mubr.msk.bf16.gmra.mrb[112].mxu1 %vm9200_vm14, %v13808_v39 }
 0x74b   :  { %13069 = vmatprep.mubr.msk.bf16.mxu1 %vm9200_vm14, %v13809_v49 }
 0x752   :  { %13070 = vmatmul.mubr.msk.bf16.gmra.mrb[116].mxu1 %vm9200_vm14, %v13810_v57 }
 0x753   :  { %13073 = vmatprep.mubr.msk.bf16.mxu1 %vm9200_vm14, %v13811_v37 }
 0x75a   :  { %13074 = vmatmul.mubr.msk.bf16.gmra.mrb[120].mxu1 %vm9200_vm14, %v13812_v38  ;;  %v13828_v38 = vld [vmem:[%s18366_s7 + $0x58] sm:$0xff]  }
 0x75b   :  { %13077 = vmatprep.mubr.msk.bf16.mxu1 %vm9200_vm14, %v13813_v54  ;;  %v13829_v54 = vld [vmem:[%s18366_s7 + $0x60] sm:$0xff]  }
 0x762   :  { %13078 = vmatmul.mubr.msk.bf16.gmra.mrb[124].mxu1 %vm9200_vm14, %v13814_v40 }
 0x763   :  { %13081 = vmatprep.mubr.msk.bf16.mxu1 %vm9200_vm14, %v13815_v45 }
 0x76a   :  { %13082 = vmatmul.mubr.msk.bf16.gmra.mrb[128].mxu1 %vm9200_vm14, %v13816_v34 }
 0x7e5   :  { %v13039_v63 = vpop.f32.mrb[84].mxu1 }
 0x7e6   :  { %v9548_v12 = vpop.f32.mrb[85].mxu1  ;;  %v9740_v7 = vpack.c.bf16 %v13039_v63, %v13039_v63  ;;  %v13830_v63 = vld [vmem:[%s18366_s7 + $0x68] sm:$0xff]  }
 0x7e7   :  { %v13040_v53 = vpop.f32.mrb[86].mxu1 }
 0x7e8   :  { %v9551_v3 = vpop.f32.mrb[87].mxu1 }
 0x7e9   :  { %v9739_v30 = vpack.c.bf16 %v9551_v3, %v9548_v12 }
 0x7ed   :  { %v13043_v62 = vpop.f32.mrb[88].mxu1 }
 0x7ee   :  { %v9564_v51 = vpop.f32.mrb[89].mxu1 }
 0x7ef   :  { %v9745_v11 = vpack.c.bf16 %v9564_v51, %v13040_v53  ;;  %v13044_v35 = vpop.f32.mrb[90].mxu1 }
 0x7f0   :  { %v9883_v48 = vpack.c.bf16 %v13044_v35, %v13043_v62  ;;  %v9567_v41 = vpop.f32.mrb[91].mxu1  ;;  %v13831_v62 = vld [vmem:[%s18366_s7 + $0x70] sm:$0xff]  }
 0x7f1   :  { %v9746_v50 = vpack.c.bf16 %v9567_v41, %v9567_v41  ;;  %13089 = vmatprep.mubr.msk.bf16.mxu0 %vm9200_vm14, %v9745_v11 }
 0x7f3   :  { %13090 = vmatmul.mubr.msk.bf16.vlgmr.msra.gmra.mrb[4].mxu0 %vm9200_vm14, %v9746_v50 }
 0x7f4   :  { %13097 = vmatprep.mubr.msk.bf16.mxu0 %vm9200_vm14, %v9739_v30  ;;  %13094 = vmatpush3.bf16.msra.mxu0 %v13819_v0 }
 0x7f5   :  { %13095 = vmatprep.subr.bf16.mxu0 %v13820_v16  ;;  %v13047_v15 = vpop.f32.mrb[92].mxu1 }
 0x7f6   :  { %v9580_v8 = vpop.f32.mrb[93].mxu1 }
 0x7f7   :  { %v13048_v61 = vpop.f32.mrb[94].mxu1  ;;  %v9884_v9 = vpack.c.bf16 %v9580_v8, %v9580_v8  ;;  %v13833_v8 = vld [vmem:[%s18366_s7 + $0x80] sm:$0xff]  }
 0x7f8   :  { %13096 = vmatpush3.bf16.msra.mxu0 %v13820_v16  ;;  %v9583_v5 = vpop.f32.mrb[95].mxu1  ;;  %v9959_v4 = vpack.c.bf16 %v13048_v61, %v13048_v61 }
 0x7f9   :  { %13101 = vmatprep.subr.bf16.mxu0 %v13821_v60  ;;  %v9958_v2 = vpack.c.bf16 %v13047_v15, %v9583_v5  ;;  %v13832_v15 = vld [vmem:[%s18366_s7 + $0x78] sm:$0xff]  }
 0x7fd   :  { %v13051_v28 = vpop.f32.mrb[96].mxu1 }
 0x7fe   :  { %v9596_v55 = vpop.f32.mrb[97].mxu1  ;;  %v10034_v37 = vpack.c.bf16 %v13051_v28, %v13051_v28 }
 0x7ff   :  { %13098 = vmatmul.mubr.msk.bf16.vlgmr.msra.gmra.mrb[4].mxu0 %vm9200_vm14, %v9740_v7  ;;  %v13052_v20 = vpop.f32.mrb[98].mxu1 }
 0x800   :  { %13105 = vmatprep.mubr.msk.bf16.mxu0 %vm9200_vm14, %v9883_v48  ;;  %13102 = vmatpush3.bf16.msra.mxu0 %v13821_v60  ;;  %v9599_v58 = vpop.f32.mrb[99].mxu1 }
 0x801   :  { %13103 = vmatprep.subr.bf16.mxu0 %v13822_v59  ;;  %v10033_v29 = vpack.c.bf16 %v9599_v58, %v9596_v55  ;;  %v13834_v55 = vld [vmem:[%s18366_s7 + $0x88] sm:$0xff]  }
 0x804   :  { %13104 = vmatpush3.bf16.msra.mxu0 %v13822_v59 }
 0x805   :  { %13109 = vmatprep.subr.bf16.mxu0 %v13823_v21  ;;  %v13055_v47 = vpop.f32.mrb[100].mxu1 }
 0x806   :  { %v9612_v14 = vpop.f32.mrb[101].mxu1 }
 0x807   :  { %v10108_v18 = vpack.c.bf16 %v9612_v14, %v13052_v20  ;;  %v13056_v56 = vpop.f32.mrb[102].mxu1  ;;  %v13835_v20 = vld [vmem:[%s18366_s7 + $0x90] sm:$0xff]   ;;  %v13838_v14 = vld [vmem:[%s18366_s7 + $0xa8] sm:$0xff]  }
 0x808   :  { %v10183_v13 = vpack.c.bf16 %v13056_v56, %v13055_v47  ;;  %v9615_v52 = vpop.f32.mrb[103].mxu1  ;;  %v13840_v56 = vld [vmem:[%s18366_s7 + $0xb8] sm:$0xff]  }
 0x809   :  { %v10109_v0 = vpack.c.bf16 %v9615_v52, %v9615_v52 }
 0x80b   :  { %13106 = vmatmul.mubr.msk.bf16.vlgmr.msra.gmra.mrb[4].mxu0 %vm9200_vm14, %v9884_v9  ;;  %v13839_v9 = vld [vmem:[%s18366_s7 + $0xb0] sm:$0xff]  }
 0x80c   :  { %13113 = vmatprep.mubr.msk.bf16.mxu0 %vm9200_vm14, %v9958_v2  ;;  %13110 = vmatpush3.bf16.msra.mxu0 %v13823_v21  ;;  %v13836_v21 = vld [vmem:[%s18366_s7 + $0x98] sm:$0xff]  }
 0x80d   :  { %13111 = vmatprep.subr.bf16.mxu0 %v13824_v33  ;;  %v18051_v25 = vpop.f32.mrb[104].mxu1 }
 0x80e   :  { %v18053_v6 = vpop.f32.mrb[105].mxu1 }
 0x80f   :  { %v18055_v46 = vpop.f32.mrb[106].mxu1  ;;  %v10184_v48 = vpack.c.bf16 %v18053_v6, %v18053_v6  ;;  %v13844_v6 = vld [vmem:[%s18366_s7 + $0xd8] sm:$0xff]  }
 0x810   :  { %13112 = vmatpush3.bf16.msra.mxu0 %v13824_v33  ;;  %v9631_v19 = vpop.f32.mrb[107].mxu1  ;;  %v10259_v28 = vpack.c.bf16 %v18055_v46, %v18055_v46  ;;  %v13842_v33 = vld [vmem:[%s18366_s7 + $0xc8] sm:$0xff]   ;;  %v13845_v46 = vld [vmem:[%s18366_s7 + $0xe0] sm:$0xff]  }
 0x811   :  { %13117 = vmatprep.subr.bf16.mxu0 %v13825_v1  ;;  %v10258_v17 = vpack.c.bf16 %v18051_v25, %v9631_v19 }
 0x815   :  { %v18061_v32 = vpop.f32.mrb[108].mxu1 }
 0x816   :  { %v18063_v44 = vpop.f32.mrb[109].mxu1  ;;  %v10334_v58 = vpack.c.bf16 %v18061_v32, %v18061_v32  ;;  %v13848_v32 = vld [vmem:[%s18366_s7 + $0xf8] sm:$0xff]  }
 0x817   :  { %13114 = vmatmul.mubr.msk.bf16.vlgmr.msra.gmra.mrb[4].mxu0 %vm9200_vm14, %v9959_v4  ;;  %v18066_v27 = vpop.f32.mrb[110].mxu1  ;;  %v13847_v4 = vld [vmem:[%s18366_s7 + $0xf0] sm:$0xff]  }
 0x818   :  { %13118 = vmatpush3.bf16.msra.mxu0 %v13825_v1  ;;  %13121 = vmatprep.mubr.msk.bf16.mxu0 %vm9200_vm14, %v10033_v29  ;;  %v18069_v26 = vpop.f32.mrb[111].mxu1  ;;  %v13837_v29 = vld [vmem:[%s18366_s7 + $0xa0] sm:$0xff]   ;;  %v13843_v1 = vld [vmem:[%s18366_s7 + $0xd0] sm:$0xff]  }
 0x819   :  { %13119 = vmatprep.subr.bf16.mxu0 %v13826_v22  ;;  %v10333_v23 = vpack.c.bf16 %v18069_v26, %v18063_v44 }
 0x81c   :  { %13120 = vmatpush3.bf16.msra.mxu0 %v13826_v22 }
 0x81d   :  { %13125 = vmatprep.subr.bf16.mxu0 %v13827_v10  ;;  %v18076_v24 = vpop.f32.mrb[112].mxu1 }
 0x81e   :  { %v18078_v43 = vpop.f32.mrb[113].mxu1 }
 0x81f   :  { %v10408_v42 = vpack.c.bf16 %v18078_v43, %v18066_v27  ;;  %v18082_v39 = vpop.f32.mrb[114].mxu1  ;;  %v13849_v27 = vld [vmem:[%s18367_s8] sm:$0xff]  }
 0x820   :  { %v10483_v49 = vpack.c.bf16 %v18082_v39, %v18076_v24  ;;  %v18086_v57 = vpop.f32.mrb[115].mxu1  ;;  %13217 = vmatprep.mubr.msk.bf16.mxu1 %vm11051_vm4, %v13849_v27 }
 0x821   :  { %v10409_v47 = vpack.c.bf16 %v18086_v57, %v18086_v57 }
 0x823   :  { %13122 = vmatmul.mubr.msk.bf16.vlgmr.msra.gmra.mrb[4].mxu0 %vm9200_vm14, %v10034_v37 }
 0x824   :  { %13129 = vmatprep.mubr.msk.bf16.mxu0 %vm9200_vm14, %v10108_v18  ;;  %13126 = vmatpush3.bf16.msra.mxu0 %v13827_v10 }
 0x825   :  { %13127 = vmatprep.subr.bf16.mxu0 %v13828_v38  ;;  %v18096_v40 = vpop.f32.mrb[116].mxu1 }
 0x826   :  { %v18098_v45 = vpop.f32.mrb[117].mxu1 }
 0x827   :  { %v18100_v34 = vpop.f32.mrb[118].mxu1  ;;  %v10484_v18 = vpack.c.bf16 %v18098_v45, %v18098_v45 }
 0x828   :  { %13128 = vmatpush3.bf16.msra.mxu0 %v13828_v38  ;;  %v18102_v31 = vpop.f32.mrb[119].mxu1  ;;  %v10559_v52 = vpack.c.bf16 %v18100_v34, %v18100_v34 }
 0x829   :  { %13133 = vmatprep.subr.bf16.mxu0 %v13829_v54  ;;  %v10558_v36 = vpack.c.bf16 %v18096_v40, %v18102_v31 }
 0x82d   :  { %v18109_v12 = vpop.f32.mrb[120].mxu1 }
 0x82e   :  { %v18111_v53 = vpop.f32.mrb[121].mxu1  ;;  %v10634_v25 = vpack.c.bf16 %v18109_v12, %v18109_v12 }
 0x82f   :  { %13130 = vmatmul.mubr.msk.bf16.vlgmr.msra.gmra.mrb[4].mxu0 %vm9200_vm14, %v10109_v0  ;;  %v18114_v3 = vpop.f32.mrb[122].mxu1 }
 0x830   :  { %13137 = vmatprep.mubr.msk.bf16.mxu0 %vm9200_vm14, %v10183_v13  ;;  %13134 = vmatpush3.bf16.msra.mxu0 %v13829_v54  ;;  %v18117_v30 = vpop.f32.mrb[123].mxu1  ;;  %v13841_v13 = vld [vmem:[%s18366_s7 + $0xc0] sm:$0xff]  }
 0x831   :  { %13135 = vmatprep.subr.bf16.mxu0 %v13830_v63  ;;  %v10633_v51 = vpack.c.bf16 %v18117_v30, %v18111_v53 }
 0x834   :  { %13136 = vmatpush3.bf16.msra.mxu0 %v13830_v63 }
 0x835   :  { %13141 = vmatprep.subr.bf16.mxu0 %v13831_v62  ;;  %v18124_v11 = vpop.f32.mrb[124].mxu1 }
 0x836   :  { %v18126_v35 = vpop.f32.mrb[125].mxu1 }
 0x837   :  { %v10708_v41 = vpack.c.bf16 %v18126_v35, %v18114_v3  ;;  %v18132_v50 = vpop.f32.mrb[126].mxu1 }
 0x838   :  { %v10783_v16 = vpack.c.bf16 %v18132_v50, %v18124_v11  ;;  %v18136_v60 = vpop.f32.mrb[127].mxu1 }
 0x839   :  { %v10709_v19 = vpack.c.bf16 %v18136_v60, %v18136_v60 }
 0x83b   :  { %13138 = vmatmul.mubr.msk.bf16.vlgmr.msra.gmra.mrb[4].mxu0 %vm9200_vm14, %v10184_v48 }
 0x83c   :  { %13145 = vmatprep.mubr.msk.bf16.mxu0 %vm9200_vm14, %v10258_v17  ;;  %13142 = vmatpush3.bf16.msra.mxu0 %v13831_v62  ;;  %v13846_v17 = vld [vmem:[%s18366_s7 + $0xe8] sm:$0xff]  }
 0x83d   :  { %13143 = vmatprep.subr.bf16.mxu0 %v13832_v15  ;;  %v18146_v61 = vpop.f32.mrb[128].mxu1 }
 0x83e   :  { %v18148_v5 = vpop.f32.mrb[129].mxu1 }
 0x83f   :  { %v18150_v2 = vpop.f32.mrb[130].mxu1  ;;  %v10784_v22 = vpack.c.bf16 %v18148_v5, %v18148_v5 }
 0x840   :  { %13144 = vmatpush3.bf16.msra.mxu0 %v13832_v15  ;;  %v18152_v7 = vpop.f32.mrb[131].mxu1  ;;  %v10859_v44 = vpack.c.bf16 %v18150_v2, %v18150_v2  ;;  %v11822_v2 = vld [vmem:[%s18362_s10 + $0x5] ss:$0 sm:$0xff] }
 0x841   :  { %13149 = vmatprep.subr.bf16.mxu0 %v13833_v8  ;;  %v10858_v59 = vpack.c.bf16 %v18146_v61, %v18152_v7 }
 0x847   :  { %13146 = vmatmul.mubr.msk.bf16.vlgmr.msra.gmra.mrb[4].mxu0 %vm9200_vm14, %v10259_v28 }
 0x848   :  { %13150 = vmatpush3.bf16.msra.mxu0 %v13833_v8  ;;  %13153 = vmatprep.mubr.msk.bf16.mxu0 %vm9200_vm14, %v10333_v23 }
 0x849   :  { %13151 = vmatprep.subr.bf16.mxu0 %v13834_v55 }
 0x84c   :  { %13152 = vmatpush3.bf16.msra.mxu0 %v13834_v55  ;;  %v11823_v55 = vld [vmem:[%s18362_s10 + $0x6] ss:$0 sm:$0xff] }
 0x84d   :  { %13157 = vmatprep.subr.bf16.mxu0 %v13835_v20 }
 0x853   :  { %13154 = vmatmul.mubr.msk.bf16.vlgmr.msra.gmra.mrb[4].mxu0 %vm9200_vm14, %v10334_v58 }
 0x854   :  { %13161 = vmatprep.mubr.msk.bf16.mxu0 %vm9200_vm14, %v10408_v42  ;;  %13158 = vmatpush3.bf16.msra.mxu0 %v13835_v20 }
 0x855   :  { %13159 = vmatprep.subr.bf16.mxu0 %v13836_v21 }
 0x858   :  { %13160 = vmatpush3.bf16.msra.mxu0 %v13836_v21 }
 0x859   :  { %13165 = vmatprep.subr.bf16.mxu0 %v13837_v29 }
 0x85f   :  { %13162 = vmatmul.mubr.msk.bf16.vlgmr.msra.gmra.mrb[4].mxu0 %vm9200_vm14, %v10409_v47 }
 0x860   :  { %13169 = vmatprep.mubr.msk.bf16.mxu0 %vm9200_vm14, %v10483_v49  ;;  %13166 = vmatpush3.bf16.msra.mxu0 %v13837_v29 }
 0x861   :  { %13167 = vmatprep.subr.bf16.mxu0 %v13838_v14 }
 0x864   :  { %13168 = vmatpush3.bf16.msra.mxu0 %v13838_v14 }
 0x865   :  { %13173 = vmatprep.subr.bf16.mxu0 %v13839_v9 }
 0x86b   :  { %13170 = vmatmul.mubr.msk.bf16.vlgmr.msra.gmra.mrb[4].mxu0 %vm9200_vm14, %v10484_v18 }
 0x86c   :  { %13177 = vmatprep.mubr.msk.bf16.mxu0 %vm9200_vm14, %v10558_v36  ;;  %13174 = vmatpush3.bf16.msra.mxu0 %v13839_v9 }
 0x86d   :  { %13175 = vmatprep.subr.bf16.mxu0 %v13840_v56 }
 0x870   :  { %13176 = vmatpush3.bf16.msra.mxu0 %v13840_v56 }
 0x871   :  { %13181 = vmatprep.subr.bf16.mxu0 %v13841_v13 }
 0x877   :  { %13178 = vmatmul.mubr.msk.bf16.vlgmr.msra.gmra.mrb[4].mxu0 %vm9200_vm14, %v10559_v52 }
 0x878   :  { %13182 = vmatpush3.bf16.msra.mxu0 %v13841_v13  ;;  %13185 = vmatprep.mubr.msk.bf16.mxu0 %vm9200_vm14, %v10633_v51 }
 0x879   :  { %13183 = vmatprep.subr.bf16.mxu0 %v13842_v33 }
 0x87c   :  { %13184 = vmatpush3.bf16.msra.mxu0 %v13842_v33 }
 0x87d   :  { %13189 = vmatprep.subr.bf16.mxu0 %v13843_v1 }
 0x883   :  { %13186 = vmatmul.mubr.msk.bf16.vlgmr.msra.gmra.mrb[4].mxu0 %vm9200_vm14, %v10634_v25 }
 0x884   :  { %13193 = vmatprep.mubr.msk.bf16.mxu0 %vm9200_vm14, %v10708_v41  ;;  %13190 = vmatpush3.bf16.msra.mxu0 %v13843_v1 }
 0x885   :  { %13191 = vmatprep.subr.bf16.mxu0 %v13844_v6 }
 0x888   :  { %13192 = vmatpush3.bf16.msra.mxu0 %v13844_v6 }
 0x889   :  { %13197 = vmatprep.subr.bf16.mxu0 %v13845_v46 }
 0x88f   :  { %13194 = vmatmul.mubr.msk.bf16.vlgmr.msra.gmra.mrb[4].mxu0 %vm9200_vm14, %v10709_v19  ;;  %v13851_v19 = vld [vmem:[%s18367_s8 + $0x10] sm:$0xff]  }
 0x890   :  { %13201 = vmatprep.mubr.msk.bf16.mxu0 %vm9200_vm14, %v10783_v16  ;;  %13198 = vmatpush3.bf16.msra.mxu0 %v13845_v46  ;;  %v13850_v46 = vld [vmem:[%s18367_s8 + $0x8] sm:$0xff]  }
 0x891   :  { %13199 = vmatprep.subr.bf16.mxu0 %v13846_v17 }
 0x894   :  { %13200 = vmatpush3.bf16.msra.mxu0 %v13846_v17  ;;  %v13852_v17 = vld [vmem:[%s18367_s8 + $0x18] sm:$0xff]  }
 0x895   :  { %13205 = vmatprep.subr.bf16.mxu0 %v13847_v4 }
 0x89b   :  { %13202 = vmatmul.mubr.msk.bf16.vlgmr.msra.gmra.mrb[4].mxu0 %vm9200_vm14, %v10784_v22  ;;  %v13854_v22 = vld [vmem:[%s18367_s8 + $0x28] sm:$0xff]  }
 0x89c   :  { %13209 = vmatprep.mubr.msk.bf16.mxu0 %vm9200_vm14, %v10858_v59  ;;  %13206 = vmatpush3.bf16.msra.mxu0 %v13847_v4  ;;  %v13853_v4 = vld [vmem:[%s18367_s8 + $0x20] sm:$0xff]  }
 0x89d   :  { %13207 = vmatprep.subr.bf16.mxu0 %v13848_v32 }
 0x8a0   :  { %13208 = vmatpush3.bf16.msra.mxu0 %v13848_v32  ;;  %v13855_v32 = vld [vmem:[%s18367_s8 + $0x30] sm:$0xff]  }
 0x8a7   :  { %13210 = vmatmul.mubr.msk.bf16.vlgmr.msra.gmra.mrb[4].mxu0 %vm9200_vm14, %v10859_v44  ;;  %v13856_v44 = vld [vmem:[%s18367_s8 + $0x38] sm:$0xff]  }
 0x97a   :  { %v13211_v26 = vpop.f32.mrb[4].mxu0 }
 0x97b   :  { %v10916_v10 = vpop.f32.mrb[5].mxu0  ;;  %v10937_v49 = vsel %vm10936_vm5, %v13211_v26, 0.0 }
 0x97c   :  { %v13212_v23 = vpop.f32.mrb[6].mxu0  ;;  %v10933_v43 = vsel %vm979_vm0, %v10916_v10, 0.0 }
 0x97d   :  { %v10919_v24 = vpop.f32.mrb[7].mxu0  ;;  %v11177_v23 = vld [vmem:[%s18368_s9 + $0x8] sm:$0xff] }
 0x97e   :  { %v10934_v42 = vsel %vm979_vm0, %v10919_v24, 0.0 }
 0x97f   :  { %v10935_v39 = vadd.f32 %v10934_v42, %v10933_v43  ;;  %v11178_v43 = vld [vmem:[%s18368_s9 + $0x10] sm:$0xff] }
 0x981   :  { %v10938_v57 = vadd.f32 %v10937_v49, %v10935_v39 }
 0x983   :  { %v10939_v37 = vrot.slane %v10938_v57, 4 }
 0x985   :  { %v10940_v38 = vadd.f32 %v10939_v37, %v10938_v57  ;;  %v11179_v57 = vld [vmem:[%s18368_s9 + $0x18] sm:$0xff] }
 0x987   :  { %v10941_v54 = vrot.slane %v10940_v38, 2 }
 0x989   :  { %v10942_v40 = vadd.f32 %v10941_v54, %v10940_v38  ;;  %v11180_v54 = vld [vmem:[%s18368_s9 + $0x20] sm:$0xff] }
 0x98b   :  { %v10943_v45 = vrot.slane %v10942_v40, 1 }
 0x98d   :  { %v10944_v34 = vadd.f32 %v10943_v45, %v10942_v40 }
 0x98f   :  { %v10946_v31 = vmul.f32 0.055555556, %v10944_v34 }
 0x991   :  { %v10947_v36 = vsub.f32 %v10916_v10, %v10946_v31  ;;  %v10948_v0 = vsub.f32 %v10919_v24, %v10946_v31  ;;  %v10949_v63 = vsub.f32 %v13211_v26, %v10946_v31  ;;  %v11176_v10 = vld [vmem:[%s18368_s9] sm:$0xff] }
 0x993   :  { %v10950_v12 = vmul.f32 %v10947_v36, %v10947_v36  ;;  %v10951_v53 = vmul.f32 %v10948_v0, %v10948_v0  ;;  %v10952_v3 = vmul.f32 %v10949_v63, %v10949_v63 }
 0x995   :  { %v10953_v30 = vsel %vm979_vm0, %v10950_v12, 0.0  ;;  %v10954_v62 = vsel %vm979_vm0, %v10951_v53, 0.0  ;;  %v10956_v11 = vsel %vm10936_vm5, %v10952_v3, 0.0  ;;  %v11182_v53 = vld [vmem:[%s18368_s9 + $0x30] sm:$0xff] }
 0x996   :  { %v10955_v51 = vadd.f32 %v10954_v62, %v10953_v30 }
 0x998   :  { %v10957_v35 = vadd.f32 %v10956_v11, %v10955_v51  ;;  %v11183_v51 = vld [vmem:[%s18368_s9 + $0x38] sm:$0xff] }
 0x99a   :  { %v10958_v48 = vrot.slane %v10957_v35, 4 }
 0x99c   :  { %v10959_v41 = vadd.f32 %v10958_v48, %v10957_v35  ;;  %v11184_v48 = vld [vmem:[%s18368_s9 + $0x40] sm:$0xff] }
 0x99e   :  { %v10960_v50 = vrot.slane %v10959_v41, 2 }
 0x9a0   :  { %v10961_v16 = vadd.f32 %v10960_v50, %v10959_v41 }
 0x9a2   :  { %v10962_v60 = vrot.slane %v10961_v16, 1 }
 0x9a4   :  { %v10963_v15 = vadd.f32 %v10962_v60, %v10961_v16 }
 0x9a6   :  { %v10964_v8 = vmul.f32 0.055555556, %v10963_v15  ;;  %v11185_v15 = vld [vmem:[%s18368_s9 + $0x48] sm:$0xff] }
 0x9a8   :  { %v10965_v61 = vadd.f32 1e-05, %v10964_v8 }
 0x9aa   :  { %13861 = vrsqrt.f32 %v10965_v61 }
 0x9b4   :  { %v13862_v5 = vpop.eup %13861 }
 0x9b5   :  { %v10967_v7 = vmul.f32 %v13862_v5, %v10947_v36  ;;  %v10968_v59 = vmul.f32 %v13862_v5, %v10948_v0  ;;  %v10969_v28 = vmul.f32 %v13862_v5, %v10949_v63  ;;  %v11181_v36 = vld [vmem:[%s18368_s9 + $0x28] sm:$0xff] }
 0x9b7   :  { %v10974_v20 = vmul.f32 %v11822_v2, %v10967_v7  ;;  %v10975_v58 = vmul.f32 %v11822_v2, %v10968_v59  ;;  %v10976_v21 = vmul.f32 %v11822_v2, %v10969_v28  ;;  %v11186_v2 = vld [vmem:[%s18368_s9 + $0x50] sm:$0xff] }
 0x9b9   :  { %v10982_v29 = vadd.f32 %v11823_v55, %v10975_v58  ;;  %v10983_v47 = vadd.f32 %v11823_v55, %v10976_v21  ;;  %v10981_v14 = vadd.f32 %v11823_v55, %v10974_v20  ;;  %v11187_v55 = vld [vmem:[%s18368_s9 + $0x58] sm:$0xff]  ;;  %v11188_v21 = vld [vmem:[%s18368_s9 + $0x60] sm:$0xff] }
 0x9bb   :  { %vm10984_vm6 = vcmp.ge.f32.partialorder %v10981_v14, 0.0  ;;  %vm10985_vm7 = vcmp.ge.f32.partialorder %v10982_v29, 0.0  ;;  %v10987_v9 = vmul.f32 0.2, %v10981_v14  ;;  %v10988_v18 = vmul.f32 0.2, %v10982_v29 }
 0x9bc   :  { %vm10986_vm8 = vcmp.ge.f32.partialorder %v10983_v47, 0.0  ;;  %v10989_v56 = vmul.f32 0.2, %v10983_v47 }
 0x9bd   :  { %v10990_v13 = vsel %vm10984_vm6, %v10981_v14, %v10987_v9  ;;  %v10991_v52 = vsel %vm10985_vm7, %v10982_v29, %v10988_v18  ;;  %v11189_v18 = vld [vmem:[%s18368_s9 + $0x68] sm:$0xff] }
 0x9be   :  { %v10993_v33 = vpack.c.bf16 %v10991_v52, %v10990_v13  ;;  %v10992_v1 = vsel %vm10986_vm8, %v10983_v47, %v10989_v56 }
 0x9bf   :  { %v10994_v25 = vpack.c.bf16 %v10992_v1, %v10992_v1 }
 0x9c0   :  { %13213 = vmatprep.subr.bf16.mxu1 %v10993_v33 }
 0x9c1   :  { %13214 = vmatpush3.bf16.msra.mxu1 %v10993_v33  ;;  %v11077_v6 = vsel %vm5024_vm1, %v10994_v25, 0  ;;  %v11190_v33 = vld [vmem:[%s18368_s9 + $0x70] sm:$0xff] }
 0x9c2   :  { %13609 = vmatprep.subr.msk.bf16.mxu1 %vm5024_vm1, %v10994_v25  ;;  %vm11231_vm1 = vcmask 7168  }
 0x9c5   :  { %13216 = vmatpush3.bf16.msra.mxu1 %v11077_v6 }
 0x9c8   :  { %13218 = vmatmul.mubr.msk.bf16.vlgmr.msra.gmra.mrb[132].mxu1 %vm11051_vm4, %v13850_v46  ;;  %v11191_v46 = vld [vmem:[%s18368_s9 + $0x78] sm:$0xff] }
 0x9c9   :  { %13221 = vmatprep.mubr.msk.bf16.mxu1 %vm11051_vm4, %v13851_v19 }
 0x9d0   :  { %13222 = vmatmul.mubr.msk.bf16.gmra.mrb[136].mxu1 %vm11051_vm4, %v13852_v17 }
 0x9d1   :  { %13225 = vmatprep.mubr.msk.bf16.mxu1 %vm11051_vm4, %v13853_v4 }
 0x9d8   :  { %13226 = vmatmul.mubr.msk.bf16.gmra.mrb[140].mxu1 %vm11051_vm4, %v13854_v22 }
 0x9d9   :  { %13229 = vmatprep.mubr.msk.bf16.mxu1 %vm11051_vm4, %v13855_v32 }
 0x9e0   :  { %13230 = vmatmul.mubr.msk.bf16.gmra.mrb[144].mxu1 %vm11051_vm4, %v13856_v44 }
 0xa9b   :  { %v13219_v27 = vpop.f32.mrb[132].mxu1 }
 0xa9c   :  { %v11113_v26 = vpop.f32.mrb[133].mxu1  ;;  %v11194_v37 = vmul.f32 %v13219_v27, %v11178_v43  ;;  %v11840_v27 = vld [vmem:[%s18362_s10 + $0x7] ss:$0 sm:$0xff] }
 0xa9d   :  { %v13220_v24 = vpop.f32.mrb[134].mxu1  ;;  %v11192_v39 = vmul.f32 %v11176_v10, %v11113_v26 }
 0xa9e   :  { %v11116_v42 = vpop.f32.mrb[135].mxu1  ;;  %v11195_v40 = vmul.f32 %v13220_v24, %v11179_v57 }
 0xa9f   :  { %v11193_v49 = vmul.f32 %v11177_v23, %v11116_v42 }
 0xaa1   :  { %v11208_v38 = vadd.f32 %v11193_v49, %v11192_v39 }
 0xaa3   :  { %v11209_v45 = vadd.f32 %v11208_v38, %v11194_v37  ;;  %v13223_v34 = vpop.f32.mrb[136].mxu1 }
 0xaa4   :  { %v11129_v31 = vpop.f32.mrb[137].mxu1  ;;  %v11198_v11 = vmul.f32 %v13223_v34, %v11182_v53 }
 0xaa5   :  { %v11196_v0 = vmul.f32 %v11180_v54, %v11129_v31  ;;  %v11210_v63 = vadd.f32 %v11209_v45, %v11195_v40  ;;  %v13224_v12 = vpop.f32.mrb[138].mxu1 }
 0xaa6   :  { %v11132_v3 = vpop.f32.mrb[139].mxu1  ;;  %v11199_v41 = vmul.f32 %v13224_v12, %v11183_v51 }
 0xaa7   :  { %v11211_v30 = vadd.f32 %v11210_v63, %v11196_v0  ;;  %v11197_v62 = vmul.f32 %v11181_v36, %v11132_v3 }
 0xaa9   :  { %v11212_v35 = vadd.f32 %v11211_v30, %v11197_v62 }
 0xaab   :  { %v11213_v50 = vadd.f32 %v11212_v35, %v11198_v11  ;;  %v13227_v16 = vpop.f32.mrb[140].mxu1 }
 0xaac   :  { %v11145_v60 = vpop.f32.mrb[141].mxu1  ;;  %v11202_v20 = vmul.f32 %v13227_v16, %v11186_v2 }
 0xaad   :  { %v11200_v8 = vmul.f32 %v11184_v48, %v11145_v60  ;;  %v11214_v61 = vadd.f32 %v11213_v50, %v11199_v41  ;;  %v13228_v5 = vpop.f32.mrb[142].mxu1 }
 0xaae   :  { %v11148_v7 = vpop.f32.mrb[143].mxu1  ;;  %v11203_v29 = vmul.f32 %v13228_v5, %v11187_v55 }
 0xaaf   :  { %v11215_v59 = vadd.f32 %v11214_v61, %v11200_v8  ;;  %v11201_v28 = vmul.f32 %v11185_v15, %v11148_v7 }
 0xab1   :  { %v11216_v58 = vadd.f32 %v11215_v59, %v11201_v28 }
 0xab3   :  { %v11217_v47 = vadd.f32 %v11216_v58, %v11202_v20  ;;  %v13231_v14 = vpop.f32.mrb[144].mxu1 }
 0xab4   :  { %v11161_v9 = vpop.f32.mrb[145].mxu1  ;;  %v11206_v19 = vmul.f32 %v13231_v14, %v11190_v33 }
 0xab5   :  { %v11204_v56 = vmul.f32 %v11188_v21, %v11161_v9  ;;  %v11218_v13 = vadd.f32 %v11217_v47, %v11203_v29  ;;  %v13232_v52 = vpop.f32.mrb[146].mxu1 }
 0xab6   :  { %v11164_v1 = vpop.f32.mrb[147].mxu1  ;;  %v11207_v4 = vmul.f32 %v13232_v52, %v11191_v46 }
 0xab7   :  { %v11219_v25 = vadd.f32 %v11218_v13, %v11204_v56  ;;  %v11205_v6 = vmul.f32 %v11189_v18, %v11164_v1 }
 0xab9   :  { %v11220_v17 = vadd.f32 %v11219_v25, %v11205_v6 }
 0xabb   :  { %v11221_v22 = vadd.f32 %v11220_v17, %v11206_v19 }
 0xabd   :  { %v11222_v32 = vadd.f32 %v11221_v22, %v11207_v4 }
 0xabf   :  { %v11223_v44 = vsel %vm979_vm0, %v11222_v32, 0.0 }
 0xac0   :  { %11224 = vadd.xlane.f32.xlu0 %v11223_v44 }
 0xb4d   :  { %v11225_v26 = vpop.xlane.xlu0 %11224 }
 0xb4e   :  { %v11230_v10 = vadd.f32 %v11840_v27, %v11225_v26 }
 0xb50   :  { %11232 = vst.msk [vmem:[%s18369_s11] sm:$0xff] %vm11231_vm1, %v11230_v10 }

</bundles_post_ra>
